<compile_context>
chip_gen: v7x
topology: tpu7x:2x2x1
jax: 0.10.0
libtpu: 0.0.40
codegen_flags: <defaults>
</compile_context>

<pallas_src>
import math
import functools

import numpy as np
import jax
import jax.numpy as jnp
from jax.experimental import pallas as pl
from jax.experimental.pallas import tpu as pltpu


POSI_DIM = (1 + 10 * 2) * 3   # 63
VIEW_DIM = (1 + 4 * 2) * 3    # 27
POSI_PAD = 64                 # lane-friendly padded widths
VIEW_PAD = 32
NET_DEPTH = 8
NET_WIDTH = 256
SKIP_LAYER = 4
NET_WIDTH_COND = 128
OUT_ROWS = 8                  # rgb(3) + sigma(1) + zero pad(4), transposed output
MACS_PER_ROW = 594_560        # sum of all matmul MACs per input row


# ----------------------------- encoders (glue) -----------------------------

def sinusoidal_encode(x, min_deg, max_deg, use_identity=True):
    """Matches SinusoidalEncoder.forward semantics exactly."""
    if max_deg == min_deg:
        return x
    scales = jnp.array([2.0 ** i for i in range(min_deg, max_deg)], dtype=x.dtype)
    xb = (x[..., None, :] * scales[:, None]).reshape(
        x.shape[:-1] + ((max_deg - min_deg) * x.shape[-1],))
    latent = jnp.sin(jnp.concatenate([xb, xb + 0.5 * jnp.pi], axis=-1))
    if use_identity:
        latent = jnp.concatenate([x, latent], axis=-1)
    return latent


# --------------------------- parameter construction ------------------------

def xavier_uniform(key, in_dim, out_dim):
    limit = math.sqrt(6.0 / (in_dim + out_dim))
    return jax.random.uniform(key, (in_dim, out_dim), jnp.float32, -limit, limit)


def make_params(key):
    """f32 reference params. Weights stored [in, out]; biases zero-init.

    Order: 8 base layers, sigma head, bottleneck, rgb hidden, rgb output.
    """
    params = []
    in_dim = POSI_DIM
    for i in range(NET_DEPTH):
        key, sub = jax.random.split(key)
        params.append((xavier_uniform(sub, in_dim, NET_WIDTH),
                       jnp.zeros((1, NET_WIDTH), jnp.float32)))
        if i % SKIP_LAYER == 0 and i > 0:
            in_dim = NET_WIDTH + POSI_DIM
        else:
            in_dim = NET_WIDTH
    key, sub = jax.random.split(key)
    params.append((xavier_uniform(sub, NET_WIDTH, 1), jnp.zeros((1, 1), jnp.float32)))
    key, sub = jax.random.split(key)
    params.append((xavier_uniform(sub, NET_WIDTH, NET_WIDTH),
                   jnp.zeros((1, NET_WIDTH), jnp.float32)))
    key, sub = jax.random.split(key)
    params.append((xavier_uniform(sub, NET_WIDTH + VIEW_DIM, NET_WIDTH_COND),
                   jnp.zeros((1, NET_WIDTH_COND), jnp.float32)))
    key, sub = jax.random.split(key)
    params.append((xavier_uniform(sub, NET_WIDTH_COND, 3), jnp.zeros((1, 3), jnp.float32)))
    return params


def prepare_kernel_params(params):
    """Host-side weight prep: bf16 cast, lane padding, split skip/view weights."""
    wcast = lambda a: a.astype(jnp.bfloat16)
    bcast = lambda a: a.astype(jnp.float32)
    out = []

    # layer 0: pad input rows 63 -> 64 (matches zero-padded xe column)
    w0, b0 = params[0]
    out += [wcast(jnp.pad(w0, ((0, POSI_PAD - POSI_DIM), (0, 0)))), bcast(b0)]
    # layers 1..4
    for i in range(1, 5):
        wi, bi = params[i]
        out += [wcast(wi), bcast(bi)]
    # layer 5 consumes cat([h, xin]): split weight at 256
    w5, b5 = params[5]
    w5a = w5[:NET_WIDTH]                                               # [256, 256]
    w5b = jnp.pad(w5[NET_WIDTH:], ((0, POSI_PAD - POSI_DIM), (0, 0)))  # [64, 256]
    out += [wcast(w5a), wcast(w5b), bcast(b5)]
    # layers 6, 7
    for i in (6, 7):
        wi, bi = params[i]
        out += [wcast(wi), bcast(bi)]
    # bottleneck (256 -> 256, no activation)
    wbk, bbk = params[9]
    out += [wcast(wbk), bcast(bbk)]
    # sigma head (256 -> 1), kept as its own matmul (review: avoid 257-wide fused slab)
    ws, bs = params[8]
    out += [wcast(ws), bcast(bs)]
    # rgb hidden consumes cat([bottleneck, view]): split weight at 256
    wr0, br0 = params[10]
    wr0a = wr0[:NET_WIDTH]                                               # [256, 128]
    wr0b = jnp.pad(wr0[NET_WIDTH:], ((0, VIEW_PAD - VIEW_DIM), (0, 0)))  # [32, 128]
    out += [wcast(wr0a), wcast(wr0b), bcast(br0)]
    # rgb output (128 -> 3)
    wr1, br1 = params[11]
    out += [wcast(wr1), bcast(br1)]
    return tuple(out)


# ------------------------------- Pallas kernel ------------------------------

def nerf_kernel(xe_ref, ce_ref,
                w0_ref, b0_ref, w1_ref, b1_ref, w2_ref, b2_ref, w3_ref, b3_ref,
                w4_ref, b4_ref, w5a_ref, w5b_ref, b5_ref,
                w6_ref, b6_ref, w7_ref, b7_ref,
                wbk_ref, bbk_ref, ws_ref, bs_ref,
                wr0a_ref, wr0b_ref, br0_ref, wr1_ref, br1_ref,
                out_ref):
    xin = xe_ref[...]                      # [tn, 64] bf16 (col 63 is zero pad)
    cin = ce_ref[...]                      # [tn, 32] bf16 (cols 27.. are zero pad)
    tn = xin.shape[0]

    def dense_relu(h, w_ref, b_ref):
        y = jnp.dot(h, w_ref[...], preferred_element_type=jnp.float32) + b_ref[...]
        return jnp.maximum(y, 0.0).astype(jnp.bfloat16)

    h = dense_relu(xin, w0_ref, b0_ref)
    h = dense_relu(h, w1_ref, b1_ref)
    h = dense_relu(h, w2_ref, b2_ref)
    h = dense_relu(h, w3_ref, b3_ref)
    h = dense_relu(h, w4_ref, b4_ref)
    # layer 5 consumes cat([h, xin]) -> split-weight matmul (no concat)
    y = (jnp.dot(h, w5a_ref[...], preferred_element_type=jnp.float32)
         + jnp.dot(xin, w5b_ref[...], preferred_element_type=jnp.float32)
         + b5_ref[...])
    h = jnp.maximum(y, 0.0).astype(jnp.bfloat16)
    h = dense_relu(h, w6_ref, b6_ref)
    h = dense_relu(h, w7_ref, b7_ref)

    # heads (no activation): bottleneck 256 cols, sigma 1 col
    bott = (jnp.dot(h, wbk_ref[...], preferred_element_type=jnp.float32)
            + bbk_ref[...]).astype(jnp.bfloat16)                       # [tn, 256]
    raw_sigma = (jnp.dot(h, ws_ref[...], preferred_element_type=jnp.float32)
                 + bs_ref[...])                                        # [tn, 1] f32

    # rgb MLP; cat([bottleneck, view_enc]) -> split-weight matmul
    y = (jnp.dot(bott, wr0a_ref[...], preferred_element_type=jnp.float32)
         + jnp.dot(cin, wr0b_ref[...], preferred_element_type=jnp.float32)
         + br0_ref[...])
    hr = jnp.maximum(y, 0.0).astype(jnp.bfloat16)                      # [tn, 128]
    raw_rgb = (jnp.dot(hr, wr1_ref[...], preferred_element_type=jnp.float32)
               + br1_ref[...])                                         # [tn, 3]

    # Lane-dense transposed output:
    #   build [tn, 4] = rgb(sigmoid) | sigma(relu), lane-pad to 128 so the
    #   transpose is fully (8,128)-aligned, transpose on the XLU (MXU-bound
    #   kernel -> XLU has slack), then keep only the 8 meaningful sublanes.
    res = jnp.concatenate(
        [jax.nn.sigmoid(raw_rgb),
         jnp.maximum(raw_sigma, 0.0),
         jnp.zeros((tn, 128 - 4), jnp.float32)], axis=-1)              # [tn, 128]
    out_ref[...] = res.T[:OUT_ROWS, :]                                 # [8, tn]


# --------------------------------- wrapper ----------------------------------

def pick_row_tile(n, max_tile=2048, min_tile=256):
    """Largest power-of-two row tile keeping >= 2 grid steps (v7x has 2 TCs)."""
    tn = max_tile
    while tn > min_tile and (n + tn - 1) // tn < 2:
        tn //= 2
    return tn


def _vmem_limit_bytes(tn, kernel_params):
    """Computed VMEM limit (review: don't blanket-request 48 MiB on 64 MiB v7x)."""
    param_bytes = sum(int(np.prod(p.shape)) * p.dtype.itemsize for p in kernel_params)
    io_bytes = tn * (POSI_PAD + VIEW_PAD) * 2 + OUT_ROWS * tn * 4
    pipeline_bytes = 2 * (param_bytes + io_bytes)     # double-buffered windows
    scratch_bytes = 8 * tn * NET_WIDTH * 4            # live activation temporaries
    est = 2 * (pipeline_bytes + scratch_bytes)        # 2x headroom for Mosaic internals
    return int(min(max(est, 24 << 20), 48 << 20))


@functools.partial(jax.jit, static_argnames=("tn",))
def nerf_forward(x, condition, kernel_params, tn=None):
    """x: [N, 3], condition: [N, 3] -> (rgb [N,3] sigmoid, sigma [N,1] relu)."""
    N = x.shape[0]
    if tn is None:
        tn = pick_row_tile(N)

    xe = sinusoidal_encode(x, 0, 10)          # [N, 63] f32
    ce = sinusoidal_encode(condition, 0, 4)   # [N, 27] f32

    # lane padding + bf16 cast (pads multiply zero weight rows -> no effect)
    xe = jnp.pad(xe, ((0, 0), (0, POSI_PAD - POSI_DIM))).astype(jnp.bfloat16)
    ce = jnp.pad(ce, ((0, 0), (0, VIEW_PAD - VIEW_DIM))).astype(jnp.bfloat16)

    # row padding so any N works; padded rows are sliced off afterwards
    n_pad = (-N) % tn
    if n_pad:
        xe = jnp.pad(xe, ((0, n_pad), (0, 0)))
        ce = jnp.pad(ce, ((0, n_pad), (0, 0)))
    n_rows = N + n_pad

    row_spec = lambda f: pl.BlockSpec((tn, f), lambda i: (i, 0))
    param_specs = [pl.BlockSpec(p.shape, lambda i: (0, 0)) for p in kernel_params]

    param_bytes = sum(int(np.prod(p.shape)) * p.dtype.itemsize for p in kernel_params)
    cost = pl.CostEstimate(
        flops=2 * MACS_PER_ROW * n_rows,
        transcendentals=3 * n_rows,   # sigmoid on the 3 rgb channels
        bytes_accessed=n_rows * (POSI_PAD + VIEW_PAD) * 2
                       + OUT_ROWS * n_rows * 4 + param_bytes)

    out = pl.pallas_call(
        nerf_kernel,
        out_shape=jax.ShapeDtypeStruct((OUT_ROWS, n_rows), jnp.float32),
        grid_spec=pltpu.PrefetchScalarGridSpec(
            num_scalar_prefetch=0,
            grid=(n_rows // tn,),
            in_specs=[row_spec(POSI_PAD), row_spec(VIEW_PAD)] + param_specs,
            out_specs=pl.BlockSpec((OUT_ROWS, tn), lambda i: (0, i)),
        ),
        compiler_params=pltpu.CompilerParams(
            dimension_semantics=("parallel",),
            vmem_limit_bytes=_vmem_limit_bytes(tn, kernel_params)),
        cost_estimate=cost,
    )(xe, ce, *kernel_params)

    rgb = out[:3, :N].T       # [N, 3]
    sigma = out[3:4, :N].T    # [N, 1]
    return rgb, sigma


# ------------------------------ pure-JAX reference ---------------------------

def nerf_reference(x, condition, params):
    xe = sinusoidal_encode(x, 0, 10)
    ce = sinusoidal_encode(condition, 0, 4)
    h = xe
    for i in range(NET_DEPTH):
        w, b = params[i]
        h = jnp.maximum(h @ w + b, 0.0)
        if i % SKIP_LAYER == 0 and i > 0:
            h = jnp.concatenate([h, xe], axis=-1)
    ws, bs = params[8]
    raw_sigma = h @ ws + bs
    wbk, bbk = params[9]
    bott = h @ wbk + bbk
    hr = jnp.concatenate([bott, ce], axis=-1)
    wr0, br0 = params[10]
    hr = jnp.maximum(hr @ wr0 + br0, 0.0)
    wr1, br1 = params[11]
    raw_rgb = hr @ wr1 + br1
    return jax.nn.sigmoid(raw_rgb), jnp.maximum(raw_sigma, 0.0)


# ------------------------------------ main -----------------------------------

if __name__ == "__main__":
    key = jax.random.PRNGKey(0)
    kp, kx, kc = jax.random.split(key, 3)

    params = make_params(kp)                         # f32 reference params
    kernel_params = prepare_kernel_params(params)    # bf16 / padded / split kernel params

    N = 1024
    x = jax.random.normal(kx, (N, 3), jnp.float32)           # positions
    condition = jax.random.normal(kc, (N, 3), jnp.float32)   # view directions

    rgb, sigma = nerf_forward(x, condition, kernel_params)   # tn auto -> 512, grid=2
    jax.block_until_ready((rgb, sigma))

    rgb_ref, sigma_ref = nerf_reference(x, condition, params)
    assert rgb.shape == (N, 3) and sigma.shape == (N, 1)
    # bf16 matmul inputs with f32 accumulation: small rounding vs f32 reference
    np.testing.assert_allclose(np.asarray(rgb), np.asarray(rgb_ref), rtol=3e-2, atol=3e-2)
    np.testing.assert_allclose(np.asarray(sigma), np.asarray(sigma_ref), rtol=3e-2, atol=3e-2)

    print("KERNEL_OK")
</pallas_src>

<mosaic_0001>
module attributes {stable_mosaic.version = 11 : i64} {
  func.func @nerf_kernel(%arg0: i32, %arg1: memref<512x64xbf16, #tpu.memory_space<vmem>>, %arg2: memref<512x32xbf16, #tpu.memory_space<vmem>>, %arg3: memref<64x256xbf16, #tpu.memory_space<vmem>>, %arg4: memref<1x256xf32, #tpu.memory_space<vmem>>, %arg5: memref<256x256xbf16, #tpu.memory_space<vmem>>, %arg6: memref<1x256xf32, #tpu.memory_space<vmem>>, %arg7: memref<256x256xbf16, #tpu.memory_space<vmem>>, %arg8: memref<1x256xf32, #tpu.memory_space<vmem>>, %arg9: memref<256x256xbf16, #tpu.memory_space<vmem>>, %arg10: memref<1x256xf32, #tpu.memory_space<vmem>>, %arg11: memref<256x256xbf16, #tpu.memory_space<vmem>>, %arg12: memref<1x256xf32, #tpu.memory_space<vmem>>, %arg13: memref<256x256xbf16, #tpu.memory_space<vmem>>, %arg14: memref<64x256xbf16, #tpu.memory_space<vmem>>, %arg15: memref<1x256xf32, #tpu.memory_space<vmem>>, %arg16: memref<256x256xbf16, #tpu.memory_space<vmem>>, %arg17: memref<1x256xf32, #tpu.memory_space<vmem>>, %arg18: memref<256x256xbf16, #tpu.memory_space<vmem>>, %arg19: memref<1x256xf32, #tpu.memory_space<vmem>>, %arg20: memref<256x256xbf16, #tpu.memory_space<vmem>>, %arg21: memref<1x256xf32, #tpu.memory_space<vmem>>, %arg22: memref<256x1xbf16, #tpu.memory_space<vmem>>, %arg23: memref<1x1xf32, #tpu.memory_space<vmem>>, %arg24: memref<256x128xbf16, #tpu.memory_space<vmem>>, %arg25: memref<32x128xbf16, #tpu.memory_space<vmem>>, %arg26: memref<1x128xf32, #tpu.memory_space<vmem>>, %arg27: memref<128x3xbf16, #tpu.memory_space<vmem>>, %arg28: memref<1x3xf32, #tpu.memory_space<vmem>>, %arg29: memref<8x512xf32, #tpu.memory_space<vmem>>) attributes {dimension_semantics = [#tpu.dimension_semantics<parallel>], iteration_bounds = array<i64: 2>, scalar_prefetch = 0 : i64, scratch_operands = 0 : i64, tpu.core_type = #tpu.core_type<tc>, window_params = [{transform_indices = @transform_0, window_bounds = array<i64: 512, 64>}, {transform_indices = @transform_1, window_bounds = array<i64: 512, 32>}, {pipeline_mode = #tpu.pipeline_mode<synchronous>, transform_indices = @transform_2, window_bounds = array<i64: 64, 256>}, {pipeline_mode = #tpu.pipeline_mode<synchronous>, transform_indices = @transform_3, window_bounds = array<i64: 1, 256>}, {pipeline_mode = #tpu.pipeline_mode<synchronous>, transform_indices = @transform_4, window_bounds = array<i64: 256, 256>}, {pipeline_mode = #tpu.pipeline_mode<synchronous>, transform_indices = @transform_5, window_bounds = array<i64: 1, 256>}, {pipeline_mode = #tpu.pipeline_mode<synchronous>, transform_indices = @transform_6, window_bounds = array<i64: 256, 256>}, {pipeline_mode = #tpu.pipeline_mode<synchronous>, transform_indices = @transform_7, window_bounds = array<i64: 1, 256>}, {pipeline_mode = #tpu.pipeline_mode<synchronous>, transform_indices = @transform_8, window_bounds = array<i64: 256, 256>}, {pipeline_mode = #tpu.pipeline_mode<synchronous>, transform_indices = @transform_9, window_bounds = array<i64: 1, 256>}, {pipeline_mode = #tpu.pipeline_mode<synchronous>, transform_indices = @transform_10, window_bounds = array<i64: 256, 256>}, {pipeline_mode = #tpu.pipeline_mode<synchronous>, transform_indices = @transform_11, window_bounds = array<i64: 1, 256>}, {pipeline_mode = #tpu.pipeline_mode<synchronous>, transform_indices = @transform_12, window_bounds = array<i64: 256, 256>}, {pipeline_mode = #tpu.pipeline_mode<synchronous>, transform_indices = @transform_13, window_bounds = array<i64: 64, 256>}, {pipeline_mode = #tpu.pipeline_mode<synchronous>, transform_indices = @transform_14, window_bounds = array<i64: 1, 256>}, {pipeline_mode = #tpu.pipeline_mode<synchronous>, transform_indices = @transform_15, window_bounds = array<i64: 256, 256>}, {pipeline_mode = #tpu.pipeline_mode<synchronous>, transform_indices = @transform_16, window_bounds = array<i64: 1, 256>}, {pipeline_mode = #tpu.pipeline_mode<synchronous>, transform_indices = @transform_17, window_bounds = array<i64: 256, 256>}, {pipeline_mode = #tpu.pipeline_mode<synchronous>, transform_indices = @transform_18, window_bounds = array<i64: 1, 256>}, {pipeline_mode = #tpu.pipeline_mode<synchronous>, transform_indices = @transform_19, window_bounds = array<i64: 256, 256>}, {pipeline_mode = #tpu.pipeline_mode<synchronous>, transform_indices = @transform_20, window_bounds = array<i64: 1, 256>}, {pipeline_mode = #tpu.pipeline_mode<synchronous>, transform_indices = @transform_21, window_bounds = array<i64: 256, 1>}, {pipeline_mode = #tpu.pipeline_mode<synchronous>, transform_indices = @transform_22, window_bounds = array<i64: 1, 1>}, {pipeline_mode = #tpu.pipeline_mode<synchronous>, transform_indices = @transform_23, window_bounds = array<i64: 256, 128>}, {pipeline_mode = #tpu.pipeline_mode<synchronous>, transform_indices = @transform_24, window_bounds = array<i64: 32, 128>}, {pipeline_mode = #tpu.pipeline_mode<synchronous>, transform_indices = @transform_25, window_bounds = array<i64: 1, 128>}, {pipeline_mode = #tpu.pipeline_mode<synchronous>, transform_indices = @transform_26, window_bounds = array<i64: 128, 3>}, {pipeline_mode = #tpu.pipeline_mode<synchronous>, transform_indices = @transform_27, window_bounds = array<i64: 1, 3>}, {transform_indices = @transform_28, window_bounds = array<i64: 8, 512>}]} {
    %c0 = arith.constant 0 : index
    %c0_0 = arith.constant 0 : index
    %0 = vector.load %arg1[%c0, %c0_0] : memref<512x64xbf16, #tpu.memory_space<vmem>>, vector<512x64xbf16>
    %c0_1 = arith.constant 0 : index
    %c0_2 = arith.constant 0 : index
    %1 = vector.load %arg2[%c0_1, %c0_2] : memref<512x32xbf16, #tpu.memory_space<vmem>>, vector<512x32xbf16>
    %c0_3 = arith.constant 0 : index
    %c0_4 = arith.constant 0 : index
    %2 = vector.load %arg3[%c0_3, %c0_4] : memref<64x256xbf16, #tpu.memory_space<vmem>>, vector<64x256xbf16>
    %cst = arith.constant dense<0.000000e+00> : vector<512x256xf32>
    %3 = tpu.matmul %0, %2, %cst {dimension_numbers = #tpu.dot_dimension_numbers<[1], [0], [0], [1], [0, 0, 1, 1], [], []>} : vector<512x64xbf16>, vector<64x256xbf16>, vector<512x256xf32> -> vector<512x256xf32>
    %c0_5 = arith.constant 0 : index
    %c0_6 = arith.constant 0 : index
    %4 = vector.load %arg4[%c0_5, %c0_6] : memref<1x256xf32, #tpu.memory_space<vmem>>, vector<1x256xf32>
    %5 = vector.broadcast %4 : vector<1x256xf32> to vector<512x256xf32>
    %6 = arith.addf %3, %5 : vector<512x256xf32>
    %cst_7 = arith.constant 0.000000e+00 : f32
    %7 = vector.broadcast %cst_7 : f32 to vector<512x256xf32>
    %8 = arith.maximumf %6, %7 : vector<512x256xf32>
    %9 = arith.truncf %8 : vector<512x256xf32> to vector<512x256xbf16>
    %c0_8 = arith.constant 0 : index
    %c0_9 = arith.constant 0 : index
    %10 = vector.load %arg5[%c0_8, %c0_9] : memref<256x256xbf16, #tpu.memory_space<vmem>>, vector<256x256xbf16>
    %cst_10 = arith.constant dense<0.000000e+00> : vector<512x256xf32>
    %11 = tpu.matmul %9, %10, %cst_10 {dimension_numbers = #tpu.dot_dimension_numbers<[1], [0], [0], [1], [0, 0, 1, 1], [], []>} : vector<512x256xbf16>, vector<256x256xbf16>, vector<512x256xf32> -> vector<512x256xf32>
    %c0_11 = arith.constant 0 : index
    %c0_12 = arith.constant 0 : index
    %12 = vector.load %arg6[%c0_11, %c0_12] : memref<1x256xf32, #tpu.memory_space<vmem>>, vector<1x256xf32>
    %13 = vector.broadcast %12 : vector<1x256xf32> to vector<512x256xf32>
    %14 = arith.addf %11, %13 : vector<512x256xf32>
    %cst_13 = arith.constant 0.000000e+00 : f32
    %15 = vector.broadcast %cst_13 : f32 to vector<512x256xf32>
    %16 = arith.maximumf %14, %15 : vector<512x256xf32>
    %17 = arith.truncf %16 : vector<512x256xf32> to vector<512x256xbf16>
    %c0_14 = arith.constant 0 : index
    %c0_15 = arith.constant 0 : index
    %18 = vector.load %arg7[%c0_14, %c0_15] : memref<256x256xbf16, #tpu.memory_space<vmem>>, vector<256x256xbf16>
    %cst_16 = arith.constant dense<0.000000e+00> : vector<512x256xf32>
    %19 = tpu.matmul %17, %18, %cst_16 {dimension_numbers = #tpu.dot_dimension_numbers<[1], [0], [0], [1], [0, 0, 1, 1], [], []>} : vector<512x256xbf16>, vector<256x256xbf16>, vector<512x256xf32> -> vector<512x256xf32>
    %c0_17 = arith.constant 0 : index
    %c0_18 = arith.constant 0 : index
    %20 = vector.load %arg8[%c0_17, %c0_18] : memref<1x256xf32, #tpu.memory_space<vmem>>, vector<1x256xf32>
    %21 = vector.broadcast %20 : vector<1x256xf32> to vector<512x256xf32>
    %22 = arith.addf %19, %21 : vector<512x256xf32>
    %cst_19 = arith.constant 0.000000e+00 : f32
    %23 = vector.broadcast %cst_19 : f32 to vector<512x256xf32>
    %24 = arith.maximumf %22, %23 : vector<512x256xf32>
    %25 = arith.truncf %24 : vector<512x256xf32> to vector<512x256xbf16>
    %c0_20 = arith.constant 0 : index
    %c0_21 = arith.constant 0 : index
    %26 = vector.load %arg9[%c0_20, %c0_21] : memref<256x256xbf16, #tpu.memory_space<vmem>>, vector<256x256xbf16>
    %cst_22 = arith.constant dense<0.000000e+00> : vector<512x256xf32>
    %27 = tpu.matmul %25, %26, %cst_22 {dimension_numbers = #tpu.dot_dimension_numbers<[1], [0], [0], [1], [0, 0, 1, 1], [], []>} : vector<512x256xbf16>, vector<256x256xbf16>, vector<512x256xf32> -> vector<512x256xf32>
    %c0_23 = arith.constant 0 : index
    %c0_24 = arith.constant 0 : index
    %28 = vector.load %arg10[%c0_23, %c0_24] : memref<1x256xf32, #tpu.memory_space<vmem>>, vector<1x256xf32>
    %29 = vector.broadcast %28 : vector<1x256xf32> to vector<512x256xf32>
    %30 = arith.addf %27, %29 : vector<512x256xf32>
    %cst_25 = arith.constant 0.000000e+00 : f32
    %31 = vector.broadcast %cst_25 : f32 to vector<512x256xf32>
    %32 = arith.maximumf %30, %31 : vector<512x256xf32>
    %33 = arith.truncf %32 : vector<512x256xf32> to vector<512x256xbf16>
    %c0_26 = arith.constant 0 : index
    %c0_27 = arith.constant 0 : index
    %34 = vector.load %arg11[%c0_26, %c0_27] : memref<256x256xbf16, #tpu.memory_space<vmem>>, vector<256x256xbf16>
    %cst_28 = arith.constant dense<0.000000e+00> : vector<512x256xf32>
    %35 = tpu.matmul %33, %34, %cst_28 {dimension_numbers = #tpu.dot_dimension_numbers<[1], [0], [0], [1], [0, 0, 1, 1], [], []>} : vector<512x256xbf16>, vector<256x256xbf16>, vector<512x256xf32> -> vector<512x256xf32>
    %c0_29 = arith.constant 0 : index
    %c0_30 = arith.constant 0 : index
    %36 = vector.load %arg12[%c0_29, %c0_30] : memref<1x256xf32, #tpu.memory_space<vmem>>, vector<1x256xf32>
    %37 = vector.broadcast %36 : vector<1x256xf32> to vector<512x256xf32>
    %38 = arith.addf %35, %37 : vector<512x256xf32>
    %cst_31 = arith.constant 0.000000e+00 : f32
    %39 = vector.broadcast %cst_31 : f32 to vector<512x256xf32>
    %40 = arith.maximumf %38, %39 : vector<512x256xf32>
    %41 = arith.truncf %40 : vector<512x256xf32> to vector<512x256xbf16>
    %c0_32 = arith.constant 0 : index
    %c0_33 = arith.constant 0 : index
    %42 = vector.load %arg13[%c0_32, %c0_33] : memref<256x256xbf16, #tpu.memory_space<vmem>>, vector<256x256xbf16>
    %cst_34 = arith.constant dense<0.000000e+00> : vector<512x256xf32>
    %43 = tpu.matmul %41, %42, %cst_34 {dimension_numbers = #tpu.dot_dimension_numbers<[1], [0], [0], [1], [0, 0, 1, 1], [], []>} : vector<512x256xbf16>, vector<256x256xbf16>, vector<512x256xf32> -> vector<512x256xf32>
    %c0_35 = arith.constant 0 : index
    %c0_36 = arith.constant 0 : index
    %44 = vector.load %arg14[%c0_35, %c0_36] : memref<64x256xbf16, #tpu.memory_space<vmem>>, vector<64x256xbf16>
    %cst_37 = arith.constant dense<0.000000e+00> : vector<512x256xf32>
    %45 = tpu.matmul %0, %44, %cst_37 {dimension_numbers = #tpu.dot_dimension_numbers<[1], [0], [0], [1], [0, 0, 1, 1], [], []>} : vector<512x64xbf16>, vector<64x256xbf16>, vector<512x256xf32> -> vector<512x256xf32>
    %46 = arith.addf %43, %45 : vector<512x256xf32>
    %c0_38 = arith.constant 0 : index
    %c0_39 = arith.constant 0 : index
    %47 = vector.load %arg15[%c0_38, %c0_39] : memref<1x256xf32, #tpu.memory_space<vmem>>, vector<1x256xf32>
    %48 = vector.broadcast %47 : vector<1x256xf32> to vector<512x256xf32>
    %49 = arith.addf %46, %48 : vector<512x256xf32>
    %cst_40 = arith.constant 0.000000e+00 : f32
    %50 = vector.broadcast %cst_40 : f32 to vector<512x256xf32>
    %51 = arith.maximumf %49, %50 : vector<512x256xf32>
    %52 = arith.truncf %51 : vector<512x256xf32> to vector<512x256xbf16>
    %c0_41 = arith.constant 0 : index
    %c0_42 = arith.constant 0 : index
    %53 = vector.load %arg16[%c0_41, %c0_42] : memref<256x256xbf16, #tpu.memory_space<vmem>>, vector<256x256xbf16>
    %cst_43 = arith.constant dense<0.000000e+00> : vector<512x256xf32>
    %54 = tpu.matmul %52, %53, %cst_43 {dimension_numbers = #tpu.dot_dimension_numbers<[1], [0], [0], [1], [0, 0, 1, 1], [], []>} : vector<512x256xbf16>, vector<256x256xbf16>, vector<512x256xf32> -> vector<512x256xf32>
    %c0_44 = arith.constant 0 : index
    %c0_45 = arith.constant 0 : index
    %55 = vector.load %arg17[%c0_44, %c0_45] : memref<1x256xf32, #tpu.memory_space<vmem>>, vector<1x256xf32>
    %56 = vector.broadcast %55 : vector<1x256xf32> to vector<512x256xf32>
    %57 = arith.addf %54, %56 : vector<512x256xf32>
    %cst_46 = arith.constant 0.000000e+00 : f32
    %58 = vector.broadcast %cst_46 : f32 to vector<512x256xf32>
    %59 = arith.maximumf %57, %58 : vector<512x256xf32>
    %60 = arith.truncf %59 : vector<512x256xf32> to vector<512x256xbf16>
    %c0_47 = arith.constant 0 : index
    %c0_48 = arith.constant 0 : index
    %61 = vector.load %arg18[%c0_47, %c0_48] : memref<256x256xbf16, #tpu.memory_space<vmem>>, vector<256x256xbf16>
    %cst_49 = arith.constant dense<0.000000e+00> : vector<512x256xf32>
    %62 = tpu.matmul %60, %61, %cst_49 {dimension_numbers = #tpu.dot_dimension_numbers<[1], [0], [0], [1], [0, 0, 1, 1], [], []>} : vector<512x256xbf16>, vector<256x256xbf16>, vector<512x256xf32> -> vector<512x256xf32>
    %c0_50 = arith.constant 0 : index
    %c0_51 = arith.constant 0 : index
    %63 = vector.load %arg19[%c0_50, %c0_51] : memref<1x256xf32, #tpu.memory_space<vmem>>, vector<1x256xf32>
    %64 = vector.broadcast %63 : vector<1x256xf32> to vector<512x256xf32>
    %65 = arith.addf %62, %64 : vector<512x256xf32>
    %cst_52 = arith.constant 0.000000e+00 : f32
    %66 = vector.broadcast %cst_52 : f32 to vector<512x256xf32>
    %67 = arith.maximumf %65, %66 : vector<512x256xf32>
    %68 = arith.truncf %67 : vector<512x256xf32> to vector<512x256xbf16>
    %c0_53 = arith.constant 0 : index
    %c0_54 = arith.constant 0 : index
    %69 = vector.load %arg20[%c0_53, %c0_54] : memref<256x256xbf16, #tpu.memory_space<vmem>>, vector<256x256xbf16>
    %cst_55 = arith.constant dense<0.000000e+00> : vector<512x256xf32>
    %70 = tpu.matmul %68, %69, %cst_55 {dimension_numbers = #tpu.dot_dimension_numbers<[1], [0], [0], [1], [0, 0, 1, 1], [], []>} : vector<512x256xbf16>, vector<256x256xbf16>, vector<512x256xf32> -> vector<512x256xf32>
    %c0_56 = arith.constant 0 : index
    %c0_57 = arith.constant 0 : index
    %71 = vector.load %arg21[%c0_56, %c0_57] : memref<1x256xf32, #tpu.memory_space<vmem>>, vector<1x256xf32>
    %72 = vector.broadcast %71 : vector<1x256xf32> to vector<512x256xf32>
    %73 = arith.addf %70, %72 : vector<512x256xf32>
    %74 = arith.truncf %73 : vector<512x256xf32> to vector<512x256xbf16>
    %c0_58 = arith.constant 0 : index
    %c0_59 = arith.constant 0 : index
    %75 = vector.load %arg22[%c0_58, %c0_59] : memref<256x1xbf16, #tpu.memory_space<vmem>>, vector<256x1xbf16>
    %cst_60 = arith.constant dense<0.000000e+00> : vector<512x1xf32>
    %76 = tpu.matmul %68, %75, %cst_60 {dimension_numbers = #tpu.dot_dimension_numbers<[1], [0], [0], [1], [0, 0, 1, 1], [], []>} : vector<512x256xbf16>, vector<256x1xbf16>, vector<512x1xf32> -> vector<512x1xf32>
    %c0_61 = arith.constant 0 : index
    %c0_62 = arith.constant 0 : index
    %77 = vector.load %arg23[%c0_61, %c0_62] : memref<1x1xf32, #tpu.memory_space<vmem>>, vector<1x1xf32>
    %78 = vector.broadcast %77 : vector<1x1xf32> to vector<512x1xf32>
    %79 = arith.addf %76, %78 : vector<512x1xf32>
    %c0_63 = arith.constant 0 : index
    %c0_64 = arith.constant 0 : index
    %80 = vector.load %arg24[%c0_63, %c0_64] : memref<256x128xbf16, #tpu.memory_space<vmem>>, vector<256x128xbf16>
    %cst_65 = arith.constant dense<0.000000e+00> : vector<512x128xf32>
    %81 = tpu.matmul %74, %80, %cst_65 {dimension_numbers = #tpu.dot_dimension_numbers<[1], [0], [0], [1], [0, 0, 1, 1], [], []>} : vector<512x256xbf16>, vector<256x128xbf16>, vector<512x128xf32> -> vector<512x128xf32>
    %c0_66 = arith.constant 0 : index
    %c0_67 = arith.constant 0 : index
    %82 = vector.load %arg25[%c0_66, %c0_67] : memref<32x128xbf16, #tpu.memory_space<vmem>>, vector<32x128xbf16>
    %cst_68 = arith.constant dense<0.000000e+00> : vector<512x128xf32>
    %83 = tpu.matmul %1, %82, %cst_68 {dimension_numbers = #tpu.dot_dimension_numbers<[1], [0], [0], [1], [0, 0, 1, 1], [], []>} : vector<512x32xbf16>, vector<32x128xbf16>, vector<512x128xf32> -> vector<512x128xf32>
    %84 = arith.addf %81, %83 : vector<512x128xf32>
    %c0_69 = arith.constant 0 : index
    %c0_70 = arith.constant 0 : index
    %85 = vector.load %arg26[%c0_69, %c0_70] : memref<1x128xf32, #tpu.memory_space<vmem>>, vector<1x128xf32>
    %86 = vector.broadcast %85 : vector<1x128xf32> to vector<512x128xf32>
    %87 = arith.addf %84, %86 : vector<512x128xf32>
    %cst_71 = arith.constant 0.000000e+00 : f32
    %88 = vector.broadcast %cst_71 : f32 to vector<512x128xf32>
    %89 = arith.maximumf %87, %88 : vector<512x128xf32>
    %90 = arith.truncf %89 : vector<512x128xf32> to vector<512x128xbf16>
    %c0_72 = arith.constant 0 : index
    %c0_73 = arith.constant 0 : index
    %91 = vector.load %arg27[%c0_72, %c0_73] : memref<128x3xbf16, #tpu.memory_space<vmem>>, vector<128x3xbf16>
    %cst_74 = arith.constant dense<0.000000e+00> : vector<512x3xf32>
    %92 = tpu.matmul %90, %91, %cst_74 {dimension_numbers = #tpu.dot_dimension_numbers<[1], [0], [0], [1], [0, 0, 1, 1], [], []>} : vector<512x128xbf16>, vector<128x3xbf16>, vector<512x3xf32> -> vector<512x3xf32>
    %c0_75 = arith.constant 0 : index
    %c0_76 = arith.constant 0 : index
    %93 = vector.load %arg28[%c0_75, %c0_76] : memref<1x3xf32, #tpu.memory_space<vmem>>, vector<1x3xf32>
    %94 = vector.broadcast %93 : vector<1x3xf32> to vector<512x3xf32>
    %95 = arith.addf %92, %94 : vector<512x3xf32>
    %96 = arith.negf %95 : vector<512x3xf32>
    %97 = math.exp %96 : vector<512x3xf32>
    %cst_77 = arith.constant 1.000000e+00 : f32
    %98 = vector.broadcast %cst_77 : f32 to vector<512x3xf32>
    %99 = arith.addf %98, %97 : vector<512x3xf32>
    %100 = arith.divf %98, %99 : vector<512x3xf32>
    %cst_78 = arith.constant 0.000000e+00 : f32
    %101 = vector.broadcast %cst_78 : f32 to vector<512x1xf32>
    %102 = arith.maximumf %79, %101 : vector<512x1xf32>
    %cst_79 = arith.constant 0.000000e+00 : f32
    %103 = vector.broadcast %cst_79 : f32 to vector<512x124xf32>
    %104 = tpu.concatenate %100, %102, %103 in 1 : vector<512x3xf32>, vector<512x1xf32>, vector<512x124xf32> -> vector<512x128xf32>
    %105 = tpu.transpose %104, [1, 0] : vector<512x128xf32> -> vector<128x512xf32>
    %106 = vector.extract_strided_slice %105 {offsets = [0, 0], sizes = [8, 512], strides = [1, 1]} : vector<128x512xf32> to vector<8x512xf32>
    %c0_80 = arith.constant 0 : index
    %c0_81 = arith.constant 0 : index
    %107 = vector.load %arg29[%c0_80, %c0_81] : memref<8x512xf32, #tpu.memory_space<vmem>>, vector<8x512xf32>
    tpu.vector_store %arg29[%c0_80, %c0_81], %106 {strides = array<i32>} : memref<8x512xf32, #tpu.memory_space<vmem>>, vector<8x512xf32>,
    return
  }
  func.func @transform_0(%arg0: i32) -> (i32, i32) {
    %c0_i32 = arith.constant 0 : i32
    %c0_i32_0 = arith.constant 0 : i32
    return %arg0, %c0_i32 : i32, i32
  }
  func.func @transform_1(%arg0: i32) -> (i32, i32) {
    %c0_i32 = arith.constant 0 : i32
    %c0_i32_0 = arith.constant 0 : i32
    return %arg0, %c0_i32 : i32, i32
  }
  func.func @transform_2(%arg0: i32) -> (i32, i32) {
    %c0_i32 = arith.constant 0 : i32
    %c0_i32_0 = arith.constant 0 : i32
    %c0_i32_1 = arith.constant 0 : i32
    return %c0_i32, %c0_i32_0 : i32, i32
  }
  func.func @transform_3(%arg0: i32) -> (i32, i32) {
    %c0_i32 = arith.constant 0 : i32
    %c0_i32_0 = arith.constant 0 : i32
    %c0_i32_1 = arith.constant 0 : i32
    return %c0_i32, %c0_i32_0 : i32, i32
  }
  func.func @transform_4(%arg0: i32) -> (i32, i32) {
    %c0_i32 = arith.constant 0 : i32
    %c0_i32_0 = arith.constant 0 : i32
    %c0_i32_1 = arith.constant 0 : i32
    return %c0_i32, %c0_i32_0 : i32, i32
  }
  func.func @transform_5(%arg0: i32) -> (i32, i32) {
    %c0_i32 = arith.constant 0 : i32
    %c0_i32_0 = arith.constant 0 : i32
    %c0_i32_1 = arith.constant 0 : i32
    return %c0_i32, %c0_i32_0 : i32, i32
  }
  func.func @transform_6(%arg0: i32) -> (i32, i32) {
    %c0_i32 = arith.constant 0 : i32
    %c0_i32_0 = arith.constant 0 : i32
    %c0_i32_1 = arith.constant 0 : i32
    return %c0_i32, %c0_i32_0 : i32, i32
  }
  func.func @transform_7(%arg0: i32) -> (i32, i32) {
    %c0_i32 = arith.constant 0 : i32
    %c0_i32_0 = arith.constant 0 : i32
    %c0_i32_1 = arith.constant 0 : i32
    return %c0_i32, %c0_i32_0 : i32, i32
  }
  func.func @transform_8(%arg0: i32) -> (i32, i32) {
    %c0_i32 = arith.constant 0 : i32
    %c0_i32_0 = arith.constant 0 : i32
    %c0_i32_1 = arith.constant 0 : i32
    return %c0_i32, %c0_i32_0 : i32, i32
  }
  func.func @transform_9(%arg0: i32) -> (i32, i32) {
    %c0_i32 = arith.constant 0 : i32
    %c0_i32_0 = arith.constant 0 : i32
    %c0_i32_1 = arith.constant 0 : i32
    return %c0_i32, %c0_i32_0 : i32, i32
  }
  func.func @transform_10(%arg0: i32) -> (i32, i32) {
    %c0_i32 = arith.constant 0 : i32
    %c0_i32_0 = arith.constant 0 : i32
    %c0_i32_1 = arith.constant 0 : i32
    return %c0_i32, %c0_i32_0 : i32, i32
  }
  func.func @transform_11(%arg0: i32) -> (i32, i32) {
    %c0_i32 = arith.constant 0 : i32
    %c0_i32_0 = arith.constant 0 : i32
    %c0_i32_1 = arith.constant 0 : i32
    return %c0_i32, %c0_i32_0 : i32, i32
  }
  func.func @transform_12(%arg0: i32) -> (i32, i32) {
    %c0_i32 = arith.constant 0 : i32
    %c0_i32_0 = arith.constant 0 : i32
    %c0_i32_1 = arith.constant 0 : i32
    return %c0_i32, %c0_i32_0 : i32, i32
  }
  func.func @transform_13(%arg0: i32) -> (i32, i32) {
    %c0_i32 = arith.constant 0 : i32
    %c0_i32_0 = arith.constant 0 : i32
    %c0_i32_1 = arith.constant 0 : i32
    return %c0_i32, %c0_i32_0 : i32, i32
  }
  func.func @transform_14(%arg0: i32) -> (i32, i32) {
    %c0_i32 = arith.constant 0 : i32
    %c0_i32_0 = arith.constant 0 : i32
    %c0_i32_1 = arith.constant 0 : i32
    return %c0_i32, %c0_i32_0 : i32, i32
  }
  func.func @transform_15(%arg0: i32) -> (i32, i32) {
    %c0_i32 = arith.constant 0 : i32
    %c0_i32_0 = arith.constant 0 : i32
    %c0_i32_1 = arith.constant 0 : i32
    return %c0_i32, %c0_i32_0 : i32, i32
  }
  func.func @transform_16(%arg0: i32) -> (i32, i32) {
    %c0_i32 = arith.constant 0 : i32
    %c0_i32_0 = arith.constant 0 : i32
    %c0_i32_1 = arith.constant 0 : i32
    return %c0_i32, %c0_i32_0 : i32, i32
  }
  func.func @transform_17(%arg0: i32) -> (i32, i32) {
    %c0_i32 = arith.constant 0 : i32
    %c0_i32_0 = arith.constant 0 : i32
    %c0_i32_1 = arith.constant 0 : i32
    return %c0_i32, %c0_i32_0 : i32, i32
  }
  func.func @transform_18(%arg0: i32) -> (i32, i32) {
    %c0_i32 = arith.constant 0 : i32
    %c0_i32_0 = arith.constant 0 : i32
    %c0_i32_1 = arith.constant 0 : i32
    return %c0_i32, %c0_i32_0 : i32, i32
  }
  func.func @transform_19(%arg0: i32) -> (i32, i32) {
    %c0_i32 = arith.constant 0 : i32
    %c0_i32_0 = arith.constant 0 : i32
    %c0_i32_1 = arith.constant 0 : i32
    return %c0_i32, %c0_i32_0 : i32, i32
  }
  func.func @transform_20(%arg0: i32) -> (i32, i32) {
    %c0_i32 = arith.constant 0 : i32
    %c0_i32_0 = arith.constant 0 : i32
    %c0_i32_1 = arith.constant 0 : i32
    return %c0_i32, %c0_i32_0 : i32, i32
  }
  func.func @transform_21(%arg0: i32) -> (i32, i32) {
    %c0_i32 = arith.constant 0 : i32
    %c0_i32_0 = arith.constant 0 : i32
    %c0_i32_1 = arith.constant 0 : i32
    return %c0_i32, %c0_i32_0 : i32, i32
  }
  func.func @transform_22(%arg0: i32) -> (i32, i32) {
    %c0_i32 = arith.constant 0 : i32
    %c0_i32_0 = arith.constant 0 : i32
    %c0_i32_1 = arith.constant 0 : i32
    return %c0_i32, %c0_i32_0 : i32, i32
  }
  func.func @transform_23(%arg0: i32) -> (i32, i32) {
    %c0_i32 = arith.constant 0 : i32
    %c0_i32_0 = arith.constant 0 : i32
    %c0_i32_1 = arith.constant 0 : i32
    return %c0_i32, %c0_i32_0 : i32, i32
  }
  func.func @transform_24(%arg0: i32) -> (i32, i32) {
    %c0_i32 = arith.constant 0 : i32
    %c0_i32_0 = arith.constant 0 : i32
    %c0_i32_1 = arith.constant 0 : i32
    return %c0_i32, %c0_i32_0 : i32, i32
  }
  func.func @transform_25(%arg0: i32) -> (i32, i32) {
    %c0_i32 = arith.constant 0 : i32
    %c0_i32_0 = arith.constant 0 : i32
    %c0_i32_1 = arith.constant 0 : i32
    return %c0_i32, %c0_i32_0 : i32, i32
  }
  func.func @transform_26(%arg0: i32) -> (i32, i32) {
    %c0_i32 = arith.constant 0 : i32
    %c0_i32_0 = arith.constant 0 : i32
    %c0_i32_1 = arith.constant 0 : i32
    return %c0_i32, %c0_i32_0 : i32, i32
  }
  func.func @transform_27(%arg0: i32) -> (i32, i32) {
    %c0_i32 = arith.constant 0 : i32
    %c0_i32_0 = arith.constant 0 : i32
    %c0_i32_1 = arith.constant 0 : i32
    return %c0_i32, %c0_i32_0 : i32, i32
  }
  func.func @transform_28(%arg0: i32) -> (i32, i32) {
    %c0_i32 = arith.constant 0 : i32
    %c0_i32_0 = arith.constant 0 : i32
    return %c0_i32, %arg0 : i32, i32
  }
}

</mosaic_0001>

<bundles_post_ra>
// kernel: nerf_forward.1
= control target key start
LH: loop header
LB: loop body
LE: loop exit
PB: predicated region body
PF: predicated region fallthrough
CT: control target
= control target key end

     0   :  { %s17501_s0 = inlined_call_operand.vmem [shape: bf16[1024,64], index: 0, kind: input, shape index: {}]   ;;  %s17502_s1 = inlined_call_operand.vmem [shape: bf16[1024,32], index: 1, kind: input, shape index: {}]   ;;  %s17503_s2 = inlined_call_operand.vmem [shape: bf16[64,256], index: 2, kind: input, shape index: {}]   ;;  %s17504_s3 = inlined_call_operand.vmem [shape: f32[1,256], index: 3, kind: input, shape index: {}]   ;;  %s17505_s4 = inlined_call_operand.vmem [shape: bf16[256,256], index: 4, kind: input, shape index: {}]   ;;  %s17506_s5 = inlined_call_operand.vmem [shape: f32[1,256], index: 5, kind: input, shape index: {}]   ;;  %s17507_s6 = inlined_call_operand.vmem [shape: bf16[256,256], index: 6, kind: input, shape index: {}]   ;;  %s17508_s7 = inlined_call_operand.vmem [shape: f32[1,256], index: 7, kind: input, shape index: {}]   ;;  %s17509_s8 = inlined_call_operand.vmem [shape: bf16[256,256], index: 8, kind: input, shape index: {}]   ;;  %s17510_s9 = inlined_call_operand.vmem [shape: f32[1,256], index: 9, kind: input, shape index: {}]   ;;  %s17511_s10 = inlined_call_operand.vmem [shape: bf16[256,256], index: 10, kind: input, shape index: {}]   ;;  %s17512_s11 = inlined_call_operand.vmem [shape: f32[1,256], index: 11, kind: input, shape index: {}]   ;;  %s17513_s12 = inlined_call_operand.vmem [shape: bf16[256,256], index: 12, kind: input, shape index: {}]   ;;  %s17514_s13 = inlined_call_operand.vmem [shape: bf16[64,256], index: 13, kind: input, shape index: {}]   ;;  %s17515_s14 = inlined_call_operand.vmem [shape: f32[1,256], index: 14, kind: input, shape index: {}]   ;;  %s17516_s15 = inlined_call_operand.vmem [shape: bf16[256,256], index: 15, kind: input, shape index: {}]   ;;  %s17517_s16 = inlined_call_operand.vmem [shape: f32[1,256], index: 16, kind: input, shape index: {}]   ;;  %s17518_s17 = inlined_call_operand.vmem [shape: bf16[256,256], index: 17, kind: input, shape index: {}]   ;;  %s17519_s18 = inlined_call_operand.vmem [shape: f32[1,256], index: 18, kind: input, shape index: {}]   ;;  %s17520_s19 = inlined_call_operand.vmem [shape: bf16[256,256], index: 19, kind: input, shape index: {}]   ;;  %s17521_s20 = inlined_call_operand.vmem [shape: f32[1,256], index: 20, kind: input, shape index: {}]   ;;  %s17522_s21 = inlined_call_operand.vmem [shape: bf16[256,1], index: 21, kind: input, shape index: {}]   ;;  %s17523_s22 = inlined_call_operand.<no memory space> [shape: f32[1,1], index: 22, kind: input, shape index: {}]   ;;  %s17524_s23 = inlined_call_operand.vmem [shape: bf16[256,128], index: 23, kind: input, shape index: {}]   ;;  %s17525_s24 = inlined_call_operand.vmem [shape: bf16[32,128], index: 24, kind: input, shape index: {}]   ;;  %s17526_s25 = inlined_call_operand.vmem [shape: f32[1,128], index: 25, kind: input, shape index: {}]   ;;  %s17527_s26 = inlined_call_operand.vmem [shape: bf16[128,3], index: 26, kind: input, shape index: {}]   ;;  %s17528_s27 = inlined_call_operand.vmem [shape: f32[1,3], index: 27, kind: input, shape index: {}]   ;;  %s17529_s28 = inlined_call_operand.vmem [shape: f32[8,1024], index: 28, kind: output, shape index: {}]  }
   0x1   :  { %17584 = sst [smem:[#allocation46_spill]] %s17501_s0  ;;  %v33_v0 = vstv %s17523_s22 }
   0x2   :  { %17585 = sst [smem:[#allocation47_spill]] %s17502_s1  ;;  %34 = vst [vmem:[#allocation2] sm:$0x1] %v33_v0 }
   0x3   :  { %17586 = sst [smem:[#allocation48_spill]] %s17503_s2 }
   0x4   :  { %17587 = sst [smem:[#allocation49_spill]] %s17504_s3 }
   0x5   :  { %17588 = sst [smem:[#allocation50_spill]] %s17505_s4 }
   0x6   :  { %17589 = sst [smem:[#allocation51_spill]] %s17506_s5 }
   0x7   :  { %17590 = sst [smem:[#allocation52_spill]] %s17507_s6 }
   0x8   :  { %17591 = sst [smem:[#allocation53_spill]] %s17508_s7 }
   0x9   :  { %17592 = sst [smem:[#allocation54_spill]] %s17509_s8 }
   0xa   :  { %17593 = sst [smem:[#allocation55_spill]] %s17510_s9  ;;  %s13097_s9 = smov 0  }
   0xb   :  { %17594 = sst [smem:[#allocation56_spill]] %s17511_s10 }
   0xc   :  { %17595 = sst [smem:[#allocation57_spill]] %s17512_s11 }
   0xd   :  { %17596 = sst [smem:[#allocation58_spill]] %s17513_s12 }
   0xe LB: > { %s17536_s30 = sadd.s32 4294967295, %s12945_s9   ;;  %p11225_p0 = scmp.ge.s32.totalorder %s12945_s9, 1  ;;  %s12945_s9 = sphi %s13097_s9, %s40_s9  }
   0xf   : > { %p776_p1 = scmp.lt.s32.totalorder %s12945_s9, 3 }
  0x11   : > { %p777_p2 = pnand %p11225_p0, %p776_p1 }
  0x13   : > { %780 = sbr.rel (%p777_p2) target bundleno = 3109 (0xc25), region = 132 }
  0x1a   : > { %s17597_s10 = sld [smem:[#allocation48_spill]]  ;;  %s11226_s22 = sshll.u32 %s17536_s30, 6  ;;  %v17539_v3 = vmov 0   ;;  %vm1222_vm0 = vcmask 523264   ;;  %vm8889_vm1 = vcmask 261120   ;;  %vm10891_vm2 = vcmask 23552  }
  0x1b   : > { %1351 = vmatprep.mubr.bf16.mxu0 %v17539_v3  ;;  %p856_p3 = scmp.lt.s32.totalorder %s11226_s22, 127  ;;  %s17598_s6 = sld [smem:[#allocation46_spill]]  ;;  %vm10956_vm3 = vcmask 31744  }
  0x1c   : > { %s17599_s3 = sld [smem:[#allocation50_spill]]  ;;  %s17600_s12 = sld [smem:[#allocation52_spill]] }
  0x1d   : > { %s17814_s22 = smov (!%p856_p3, %s11226_s22), 127  ;;  %s17601_s30 = sld [smem:[#allocation49_spill]] }
  0x1e   : > { %s17537_s8 = sshll.u32 %s17814_s22, 2  ;;  %s17602_s7 = sld [smem:[#allocation54_spill]] }
  0x1f   : > { %s17604_s29 = sld [smem:[#allocation56_spill]]  ;;  %s17605_s4 = sld [smem:[#allocation53_spill]] }
  0x20   : > { %v12135_v1 = vld [vmem:[%s17597_s10 + $0x4] ss:$8 sps:$4 sm:$0xff]   ;;  %v12137_v2 = vld [vmem:[%s17597_s10] ss:$8 sps:$4 sm:$0xff]   ;;  %v12138_v4 = vld [vmem:[%s17597_s10 + $0x14] ss:$8 sps:$4 sm:$0xff]  }
  0x21   : > { %1319 = vmatprep.subr.bf16.mxu0 %v12135_v1  ;;  %v12140_v5 = vld [vmem:[%s17597_s10 + $0x10] ss:$8 sps:$4 sm:$0xff]   ;;  %v12141_v6 = vld [vmem:[%s17597_s10 + $0x24] ss:$8 sps:$4 sm:$0xff]   ;;  %s13131_s0 = scalar_lea.vmem %s17598_s6, %s17537_s8  ;;  %v12143_v7 = vld [vmem:[%s17597_s10 + $0x20] ss:$8 sps:$4 sm:$0xff]  }
  0x22   : > { %1320 = vmatpush1.bf16.msra.mxu0 %v12137_v2  ;;  %v12144_v8 = vld [vmem:[%s17597_s10 + $0x34] ss:$8 sps:$4 sm:$0xff]   ;;  %v12146_v9 = vld [vmem:[%s17597_s10 + $0x30] ss:$8 sps:$4 sm:$0xff]   ;;  %v12147_v10 = vld [vmem:[%s13131_s0] sm:$0xff]   ;;  %s17603_s6 = sld [smem:[#allocation51_spill]] }
  0x23   : > { %1321 = vmatprep.subr.bf16.mxu0 %v12138_v4  ;;  %v12148_v11 = vld [vmem:[%s13131_s0 + $0x8] sm:$0xff]   ;;  %v12149_v12 = vld [vmem:[%s13131_s0 + $0x10] sm:$0xff]   ;;  %v12150_v13 = vld [vmem:[%s13131_s0 + $0x18] sm:$0xff]   ;;  %s17606_s8 = sld [smem:[#allocation58_spill]]  ;;  %s17609_s2 = sshll.u32 %s17814_s22, 2 }
  0x24   : > { %v12167_v14 = vld [vmem:[%s17599_s3 + $0x4] ss:$8 sps:$4 sm:$0xff]   ;;  %v12169_v15 = vld [vmem:[%s17599_s3] ss:$8 sps:$4 sm:$0xff]   ;;  %v12171_v17 = vld [vmem:[%s17599_s3 + $0x14] ss:$8 sps:$4 sm:$0xff]  }
  0x25   : > { %v12151_v16 = vld [vmem:[%s13131_s0 + $0x20] sm:$0xff]   ;;  %2068 = vmatprep.subr.bf16.mxu1 %v12167_v14  ;;  %v12173_v18 = vld [vmem:[%s17599_s3 + $0x10] ss:$8 sps:$4 sm:$0xff]   ;;  %v12152_v21 = vld [vmem:[%s13131_s0 + $0x28] sm:$0xff]  }
  0x26   : > { %1322 = vmatpush1.bf16.msra.mxu0 %v12140_v5  ;;  %2069 = vmatpush1.bf16.msra.mxu1 %v12169_v15  ;;  %v12174_v19 = vld [vmem:[%s17599_s3 + $0x24] ss:$8 sps:$4 sm:$0xff]   ;;  %v12176_v20 = vld [vmem:[%s17599_s3 + $0x20] ss:$8 sps:$4 sm:$0xff]   ;;  %v12178_v22 = vld [vmem:[%s17599_s3 + $0x34] ss:$8 sps:$4 sm:$0xff]  }
  0x27   : > { %1323 = vmatprep.subr.bf16.mxu0 %v12141_v6  ;;  %2070 = vmatprep.subr.bf16.mxu1 %v12171_v17  ;;  %v12180_v23 = vld [vmem:[%s17599_s3 + $0x30] ss:$8 sps:$4 sm:$0xff]   ;;  %v12181_v24 = vld [vmem:[%s17599_s3 + $0x44] ss:$8 sps:$4 sm:$0xff]   ;;  %v12183_v25 = vld [vmem:[%s17599_s3 + $0x40] ss:$8 sps:$4 sm:$0xff]  }
  0x28   : > { %v12153_v26 = vld [vmem:[%s13131_s0 + $0x30] sm:$0xff]   ;;  %v12188_v29 = vld [vmem:[%s17599_s3 + $0x64] ss:$8 sps:$4 sm:$0xff]   ;;  %v12190_v30 = vld [vmem:[%s17599_s3 + $0x60] ss:$8 sps:$4 sm:$0xff]  }
  0x29   : > { %v12185_v27 = vld [vmem:[%s17599_s3 + $0x54] ss:$8 sps:$4 sm:$0xff]   ;;  %v12187_v28 = vld [vmem:[%s17599_s3 + $0x50] ss:$8 sps:$4 sm:$0xff]   ;;  %v12195_v34 = vld [vmem:[%s17600_s12] ss:$8 sps:$4 sm:$0xff]  }
  0x2a   : > { %1324 = vmatpush1.bf16.msra.mxu0 %v12143_v7  ;;  %2071 = vmatpush1.bf16.msra.mxu1 %v12173_v18  ;;  %v12154_v31 = vld [vmem:[%s13131_s0 + $0x38] sm:$0xff]   ;;  %v12197_v35 = vld [vmem:[%s17600_s12 + $0x4] ss:$8 sps:$4 sm:$0xff]   ;;  %v12200_v38 = vld [vmem:[%s17599_s3 + $0x80] ss:$8 sps:$4 sm:$0xff]  }
  0x2b   : > { %1325 = vmatprep.subr.bf16.mxu0 %v12144_v8  ;;  %2072 = vmatprep.subr.bf16.mxu1 %v12174_v19  ;;  %v12192_v32 = vld [vmem:[%s17599_s3 + $0x74] ss:$8 sps:$4 sm:$0xff]   ;;  %v12194_v33 = vld [vmem:[%s17599_s3 + $0x70] ss:$8 sps:$4 sm:$0xff]   ;;  %v12198_v36 = vld [vmem:[%s17599_s3 + $0x84] ss:$8 sps:$4 sm:$0xff]  }
  0x2c   : > { %v12155_v37 = vld [vmem:[%s13131_s0 + $0x40] sm:$0xff]   ;;  %v12202_v39 = vld [vmem:[%s17599_s3 + $0x94] ss:$8 sps:$4 sm:$0xff]   ;;  %v12204_v40 = vld [vmem:[%s17599_s3 + $0x90] ss:$8 sps:$4 sm:$0xff]  }
  0x2d   : > { %v12205_v41 = vld [vmem:[%s17599_s3 + $0xa4] ss:$8 sps:$4 sm:$0xff]   ;;  %v12207_v42 = vld [vmem:[%s17599_s3 + $0xa0] ss:$8 sps:$4 sm:$0xff]   ;;  %v12209_v44 = vld [vmem:[%s17599_s3 + $0xb4] ss:$8 sps:$4 sm:$0xff]  }
  0x2e   : > { %1326 = vmatpush1.bf16.msra.mxu0 %v12146_v9  ;;  %2073 = vmatpush1.bf16.msra.mxu1 %v12176_v20  ;;  %v12156_v43 = vld [vmem:[%s13131_s0 + $0x48] sm:$0xff]   ;;  %v12211_v45 = vld [vmem:[%s17599_s3 + $0xb0] ss:$8 sps:$4 sm:$0xff]   ;;  %v12214_v47 = vld [vmem:[%s17600_s12 + $0x14] ss:$8 sps:$4 sm:$0xff]  }
  0x2f   : > { %2074 = vmatprep.subr.bf16.mxu1 %v12178_v22  ;;  %2817 = vmatprep.subr.bf16.mxu0 %v12197_v35  ;;  %v12212_v46 = vld [vmem:[%s17600_s12 + $0x10] ss:$8 sps:$4 sm:$0xff]   ;;  %v12215_v48 = vld [vmem:[%s17599_s3 + $0xc4] ss:$8 sps:$4 sm:$0xff]   ;;  %v12217_v50 = vld [vmem:[%s17599_s3 + $0xc0] ss:$8 sps:$4 sm:$0xff]  }
  0x30   : > { %v12157_v49 = vld [vmem:[%s13131_s0 + $0x50] sm:$0xff]   ;;  %v12158_v53 = vld [vmem:[%s13131_s0 + $0x58] sm:$0xff]   ;;  %v12222_v54 = vld [vmem:[%s17599_s3 + $0xe4] ss:$8 sps:$4 sm:$0xff]  }
  0x31   : > { %11272 = vmatmul.mubr.msk.bf16.vlgmr.msra.gmra.mrb[0].mxu0 %vm1222_vm0, %v12147_v10  ;;  %v12219_v51 = vld [vmem:[%s17599_s3 + $0xd4] ss:$8 sps:$4 sm:$0xff]   ;;  %v12221_v52 = vld [vmem:[%s17599_s3 + $0xd0] ss:$8 sps:$4 sm:$0xff]   ;;  %v12224_v55 = vld [vmem:[%s17599_s3 + $0xe0] ss:$8 sps:$4 sm:$0xff]  }
  0x32   : > { %1361 = vmatprep.mubr.bf16.mxu0 %v17539_v3  ;;  %2075 = vmatpush1.bf16.msra.mxu1 %v12180_v23  ;;  %v12226_v56 = vld [vmem:[%s17599_s3 + $0xf4] ss:$8 sps:$4 sm:$0xff]   ;;  %v12228_v57 = vld [vmem:[%s17599_s3 + $0xf0] ss:$8 sps:$4 sm:$0xff]   ;;  %v12159_v58 = vld [vmem:[%s13131_s0 + $0x60] sm:$0xff]   ;;  %v1012_v23 = vlaneseq }
  0x33   : > { %2076 = vmatprep.subr.bf16.mxu1 %v12181_v24  ;;  %2818 = vmatpush1.bf16.msra.mxu0 %v12195_v34  ;;  %v12229_v59 = vld [vmem:[%s17600_s12 + $0x20] ss:$8 sps:$4 sm:$0xff]   ;;  %v12231_v60 = vld [vmem:[%s17600_s12 + $0x24] ss:$8 sps:$4 sm:$0xff]   ;;  %v12161_v62 = vld [vmem:[%s13131_s0 + $0x70] sm:$0xff]  }
  0x34   : > { %2819 = vmatprep.subr.bf16.mxu0 %v12214_v47  ;;  %v12160_v61 = vld [vmem:[%s13131_s0 + $0x68] sm:$0xff]   ;;  %v12234_v63 = vld [vmem:[%s17600_s12 + $0x30] ss:$8 sps:$4 sm:$0xff]   ;;  %v12236_v0 = vld [vmem:[%s17600_s12 + $0x34] ss:$8 sps:$4 sm:$0xff]   ;;  %v1013_v24 = vshrl.u32 %v1012_v23, 7 }
  0x35   : > { %v12162_v1 = vld [vmem:[%s13131_s0 + $0x78] sm:$0xff]   ;;  %v12163_v2 = vld [vmem:[%s13131_s0 + $0x80] sm:$0xff]   ;;  %v12164_v6 = vld [vmem:[%s13131_s0 + $0x88] sm:$0xff]  }
  0x36   : > { %2077 = vmatpush1.bf16.msra.mxu1 %v12183_v25  ;;  %v12239_v4 = vld [vmem:[%s17600_s12 + $0x40] ss:$8 sps:$4 sm:$0xff]   ;;  %v12241_v5 = vld [vmem:[%s17600_s12 + $0x44] ss:$8 sps:$4 sm:$0xff]   ;;  %v12165_v7 = vld [vmem:[%s13131_s0 + $0x90] sm:$0xff]  }
  0x37   : > { %2078 = vmatprep.subr.bf16.mxu1 %v12185_v27  ;;  %2820 = vmatpush1.bf16.msra.mxu0 %v12212_v46  ;;  %v12242_v8 = vld [vmem:[%s17600_s12 + $0x50] ss:$8 sps:$4 sm:$0xff]   ;;  %v12244_v9 = vld [vmem:[%s17600_s12 + $0x54] ss:$8 sps:$4 sm:$0xff]   ;;  %v12177_v14 = vld [vmem:[%s13131_s0 + $0xa8] sm:$0xff]  }
  0x38   : > { %2821 = vmatprep.subr.bf16.mxu0 %v12231_v60  ;;  %v12166_v10 = vld [vmem:[%s13131_s0 + $0x98] sm:$0xff]   ;;  %v12184_v15 = vld [vmem:[%s13131_s0 + $0xb0] sm:$0xff]   ;;  %v12201_v19 = vld [vmem:[%s13131_s0 + $0xc0] sm:$0xff]  }
  0x39   : > { %11273 = vmatmul.mubr.msk.bf16.gmra.mrb[4].mxu0 %vm1222_vm0, %v12148_v11  ;;  %v12170_v11 = vld [vmem:[%s13131_s0 + $0xa0] sm:$0xff]   ;;  %v12250_v17 = vld [vmem:[%s17600_s12 + $0x74] ss:$8 sps:$4 sm:$0xff]   ;;  %v12208_v22 = vld [vmem:[%s13131_s0 + $0xc8] sm:$0xff]  }
  0x3a   : > { %1371 = vmatprep.mubr.bf16.mxu0 %v17539_v3  ;;  %2079 = vmatpush1.bf16.msra.mxu1 %v12187_v28  ;;  %v12191_v18 = vld [vmem:[%s13131_s0 + $0xb8] sm:$0xff]   ;;  %v12251_v20 = vld [vmem:[%s17600_s12 + $0x80] ss:$8 sps:$4 sm:$0xff]   ;;  %v12218_v25 = vld [vmem:[%s13131_s0 + $0xd0] sm:$0xff]   ;;  %v13376_v28 = vsub.s32 1, %v1013_v24 }
  0x3b   : > { %2080 = vmatprep.subr.bf16.mxu1 %v12188_v29  ;;  %2822 = vmatpush1.bf16.msra.mxu0 %v12229_v59  ;;  %v1010_v27 = vld [vmem:[%s17601_s30] sm:$0x3]  ;;  %v12254_v29 = vld [vmem:[%s17600_s12 + $0x90] ss:$8 sps:$4 sm:$0xff]   ;;  %s17608_s30 = sld [smem:[#allocation57_spill]] }
  0x3c   : > { %2823 = vmatprep.subr.bf16.mxu0 %v12236_v0 }
  0x3e   : > { %2081 = vmatpush1.bf16.msra.mxu1 %v12190_v30  ;;  %v12256_v30 = vld [vmem:[%s17600_s12 + $0x94] ss:$8 sps:$4 sm:$0xff]  }
  0x3f   : > { %2082 = vmatprep.subr.bf16.mxu1 %v12192_v32  ;;  %2824 = vmatpush1.bf16.msra.mxu0 %v12234_v63  ;;  %v13390_v32 = vrot.slane %v1010_v27, %v13376_v28 }
  0x40   : > { %2825 = vmatprep.subr.bf16.mxu0 %v12241_v5  ;;  %v12233_v5 = vld [vmem:[%s13131_s0 + $0xe8] sm:$0xff]  }
  0x41   : > { %11274 = vmatmul.mubr.msk.bf16.gmra.mrb[8].mxu0 %vm1222_vm0, %v12149_v12  ;;  %v12245_v12 = vld [vmem:[%s17600_s12 + $0x60] ss:$8 sps:$4 sm:$0xff]  }
  0x42   : > { %1381 = vmatprep.mubr.bf16.mxu0 %v17539_v3  ;;  %2083 = vmatpush1.bf16.msra.mxu1 %v12194_v33 }
  0x43   : > { %2084 = vmatprep.subr.bf16.mxu1 %v12198_v36  ;;  %2826 = vmatpush1.bf16.msra.mxu0 %v12239_v4  ;;  %v12225_v36 = vld [vmem:[%s13131_s0 + $0xd8] sm:$0xff]  }
  0x44   : > { %2827 = vmatprep.subr.bf16.mxu0 %v12244_v9 }
  0x46   : > { %2085 = vmatpush1.bf16.msra.mxu1 %v12200_v38 }
  0x47   : > { %2086 = vmatprep.subr.bf16.mxu1 %v12202_v39  ;;  %2828 = vmatpush1.bf16.msra.mxu0 %v12242_v8 }
  0x49   : > { %11275 = vmatmul.mubr.msk.bf16.gmra.mrb[12].mxu0 %vm1222_vm0, %v12150_v13  ;;  %v12247_v13 = vld [vmem:[%s17600_s12 + $0x64] ss:$8 sps:$4 sm:$0xff]  }
  0x4a   : > { %1391 = vmatprep.mubr.bf16.mxu0 %v17539_v3  ;;  %2087 = vmatpush1.bf16.msra.mxu1 %v12204_v40 }
  0x4b   : > { %2088 = vmatprep.subr.bf16.mxu1 %v12205_v41  ;;  %2829 = vmatprep.subr.bf16.mxu0 %v12247_v13 }
  0x4c   : > { %2830 = vmatpush1.bf16.msra.mxu0 %v12245_v12 }
  0x4d   : > { %2831 = vmatprep.subr.bf16.mxu0 %v12250_v17 }
  0x4e   : > { %2089 = vmatpush1.bf16.msra.mxu1 %v12207_v42 }
  0x4f   : > { %2090 = vmatprep.subr.bf16.mxu1 %v12209_v44 }
  0x51   : > { %11276 = vmatmul.mubr.msk.bf16.gmra.mrb[16].mxu0 %vm1222_vm0, %v12151_v16  ;;  %v12248_v16 = vld [vmem:[%s17600_s12 + $0x70] ss:$8 sps:$4 sm:$0xff]  }
  0x52   : > { %1401 = vmatprep.mubr.bf16.mxu0 %v17539_v3  ;;  %2091 = vmatpush1.bf16.msra.mxu1 %v12211_v45 }
  0x53   : > { %2092 = vmatprep.subr.bf16.mxu1 %v12215_v48  ;;  %2832 = vmatpush1.bf16.msra.mxu0 %v12248_v16 }
  0x56   : > { %2093 = vmatpush1.bf16.msra.mxu1 %v12217_v50 }
  0x57   : > { %2094 = vmatprep.subr.bf16.mxu1 %v12219_v51  ;;  %v12232_v51 = vld [vmem:[%s13131_s0 + $0xe0] sm:$0xff]  }
  0x59   : > { %11277 = vmatmul.mubr.msk.bf16.gmra.mrb[20].mxu0 %vm1222_vm0, %v12152_v21  ;;  %v12253_v21 = vld [vmem:[%s17600_s12 + $0x84] ss:$8 sps:$4 sm:$0xff]  }
  0x5a   : > { %1411 = vmatprep.mubr.bf16.mxu0 %v17539_v3  ;;  %2095 = vmatpush1.bf16.msra.mxu1 %v12221_v52 }
  0x5b   : > { %2096 = vmatprep.subr.bf16.mxu1 %v12222_v54  ;;  %2833 = vmatprep.subr.bf16.mxu0 %v12253_v21 }
  0x5c   : > { %2834 = vmatpush1.bf16.msra.mxu0 %v12251_v20  ;;  %v12237_v20 = vld [vmem:[%s13131_s0 + $0xf0] sm:$0xff]  }
  0x5d   : > { %2835 = vmatprep.subr.bf16.mxu0 %v12256_v30 }
  0x5e   : > { %2097 = vmatpush1.bf16.msra.mxu1 %v12224_v55 }
  0x5f   : > { %2098 = vmatprep.subr.bf16.mxu1 %v12226_v56  ;;  %v12257_v56 = vld [vmem:[%s17600_s12 + $0xa0] ss:$8 sps:$4 sm:$0xff]  }
  0x60   : > { %2836 = vmatpush1.bf16.msra.mxu0 %v12254_v29 }
  0x61   : > { %11278 = vmatmul.mubr.msk.bf16.gmra.mrb[24].mxu0 %vm1222_vm0, %v12153_v26  ;;  %v13371_v26 = vsub.s32 0, %v1013_v24 }
  0x62   : > { %1421 = vmatprep.mubr.bf16.mxu0 %v17539_v3  ;;  %2099 = vmatpush1.bf16.msra.mxu1 %v12228_v57  ;;  %v12259_v57 = vld [vmem:[%s17600_s12 + $0xa4] ss:$8 sps:$4 sm:$0xff]  }
  0x63   : > { %2837 = vmatprep.subr.bf16.mxu0 %v12259_v57 }
  0x64   : > { %2838 = vmatpush1.bf16.msra.mxu0 %v12257_v56 }
  0x69   : > { %11279 = vmatmul.mubr.msk.bf16.gmra.mrb[28].mxu0 %vm1222_vm0, %v12154_v31  ;;  %v13386_v31 = vrot.slane %v1010_v27, %v13371_v26  ;;  %v12262_v27 = vld [vmem:[%s17600_s12 + $0xb4] ss:$8 sps:$4 sm:$0xff]  }
  0x6a   : > { %1431 = vmatprep.mubr.bf16.mxu0 %v17539_v3  ;;  %2839 = vmatprep.subr.bf16.mxu0 %v12262_v27 }
  0x71   : > { %11280 = vmatmul.mubr.msk.bf16.gmra.mrb[32].mxu0 %vm1222_vm0, %v12155_v37 }
  0x72   : > { %1441 = vmatprep.mubr.bf16.mxu0 %v17539_v3 }
  0x79   : > { %11281 = vmatmul.mubr.msk.bf16.gmra.mrb[36].mxu0 %vm1222_vm0, %v12156_v43 }
  0x7a   : > { %1451 = vmatprep.mubr.bf16.mxu0 %v17539_v3 }
  0x81   : > { %11282 = vmatmul.mubr.msk.bf16.gmra.mrb[40].mxu0 %vm1222_vm0, %v12157_v49 }
  0x82   : > { %1461 = vmatprep.mubr.bf16.mxu0 %v17539_v3 }
  0x89   : > { %11283 = vmatmul.mubr.msk.bf16.gmra.mrb[44].mxu0 %vm1222_vm0, %v12158_v53 }
  0x8a   : > { %1471 = vmatprep.mubr.bf16.mxu0 %v17539_v3 }
  0x91   : > { %11284 = vmatmul.mubr.msk.bf16.gmra.mrb[48].mxu0 %vm1222_vm0, %v12159_v58 }
  0x92   : > { %1481 = vmatprep.mubr.bf16.mxu0 %v17539_v3 }
  0x99   : > { %11285 = vmatmul.mubr.msk.bf16.gmra.mrb[52].mxu0 %vm1222_vm0, %v12160_v61 }
  0x9a   : > { %1491 = vmatprep.mubr.bf16.mxu0 %v17539_v3 }
  0xa1   : > { %11286 = vmatmul.mubr.msk.bf16.gmra.mrb[56].mxu0 %vm1222_vm0, %v12161_v62 }
  0xa2   : > { %1501 = vmatprep.mubr.bf16.mxu0 %v17539_v3 }
  0xa9   : > { %11287 = vmatmul.mubr.msk.bf16.gmra.mrb[60].mxu0 %vm1222_vm0, %v12162_v1 }
  0xaa   : > { %1511 = vmatprep.mubr.bf16.mxu0 %v17539_v3 }
  0xb1   : > { %11288 = vmatmul.mubr.msk.bf16.gmra.mrb[64].mxu0 %vm1222_vm0, %v12163_v2 }
  0xb2   : > { %1521 = vmatprep.mubr.bf16.mxu0 %v17539_v3 }
  0xb9   : > { %11289 = vmatmul.mubr.msk.bf16.gmra.mrb[68].mxu0 %vm1222_vm0, %v12164_v6 }
  0xba   : > { %1531 = vmatprep.mubr.bf16.mxu0 %v17539_v3 }
  0xc1   : > { %11290 = vmatmul.mubr.msk.bf16.gmra.mrb[72].mxu0 %vm1222_vm0, %v12165_v7 }
  0xc2   : > { %1541 = vmatprep.mubr.bf16.mxu0 %v17539_v3 }
  0xc9   : > { %11291 = vmatmul.mubr.msk.bf16.gmra.mrb[76].mxu0 %vm1222_vm0, %v12166_v10 }
  0xca   : > { %1551 = vmatprep.mubr.bf16.mxu0 %v17539_v3 }
  0xd1   : > { %11292 = vmatmul.mubr.msk.bf16.gmra.mrb[80].mxu0 %vm1222_vm0, %v12170_v11 }
  0xd2   : > { %1561 = vmatprep.mubr.bf16.mxu0 %v17539_v3 }
  0xd9   : > { %11293 = vmatmul.mubr.msk.bf16.gmra.mrb[84].mxu0 %vm1222_vm0, %v12177_v14 }
  0xda   : > { %1571 = vmatprep.mubr.bf16.mxu0 %v17539_v3 }
  0xe1   : > { %11294 = vmatmul.mubr.msk.bf16.gmra.mrb[88].mxu0 %vm1222_vm0, %v12184_v15 }
  0xe2   : > { %1581 = vmatprep.mubr.bf16.mxu0 %v17539_v3 }
  0xe9   : > { %11295 = vmatmul.mubr.msk.bf16.gmra.mrb[92].mxu0 %vm1222_vm0, %v12191_v18 }
  0xea   : > { %1591 = vmatprep.mubr.bf16.mxu0 %v17539_v3 }
  0xf1   : > { %11296 = vmatmul.mubr.msk.bf16.gmra.mrb[96].mxu0 %vm1222_vm0, %v12201_v19 }
  0xf2   : > { %1601 = vmatprep.mubr.bf16.mxu0 %v17539_v3 }
  0xf9   : > { %11297 = vmatmul.mubr.msk.bf16.gmra.mrb[100].mxu0 %vm1222_vm0, %v12208_v22 }
  0xfa   : > { %1611 = vmatprep.mubr.bf16.mxu0 %v17539_v3 }
 0x101   : > { %11298 = vmatmul.mubr.msk.bf16.gmra.mrb[104].mxu0 %vm1222_vm0, %v12218_v25  ;;  %v12260_v25 = vld [vmem:[%s17600_s12 + $0xb0] ss:$8 sps:$4 sm:$0xff]  }
 0x102   : > { %1621 = vmatprep.mubr.bf16.mxu0 %v17539_v3  ;;  %2840 = vmatpush1.bf16.msra.mxu0 %v12260_v25 }
 0x104   : > { %v1353_v33 = vpop.f32.mrb[0].mxu0 }
 0x105   : > { %v1354_v34 = vadd.f32 %v1353_v33, %v13386_v31  ;;  %v1355_v35 = vpop.f32.mrb[1].mxu0 }
 0x106   : > { %v1357_v37 = vpop.f32.mrb[2].mxu0  ;;  %v1356_v38 = vadd.f32 %v1355_v35, %v13390_v32 }
 0x107   : > { %v1358_v39 = vadd.f32 %v1357_v37, %v13386_v31  ;;  %v1359_v40 = vpop.f32.mrb[3].mxu0  ;;  %v1672_v42 = vmax.f32 %v1354_v34, 0.0 }
 0x108   : > { %v1360_v41 = vadd.f32 %v1359_v40, %v13390_v32  ;;  %v1673_v44 = vmax.f32 %v1356_v38, 0.0 }
 0x109   : > { %v1674_v43 = vmax.f32 %v1358_v39, 0.0  ;;  %11299 = vmatmul.mubr.msk.bf16.gmra.mrb[108].mxu0 %vm1222_vm0, %v12225_v36 }
 0x10a   : > { %v1675_v45 = vmax.f32 %v1360_v41, 0.0  ;;  %1631 = vmatprep.mubr.bf16.mxu0 %v17539_v3  ;;  %v12238_v41 = vld [vmem:[%s13131_s0 + $0xf8] sm:$0xff]  }
 0x10b   : > { %v1800_v46 = vpack.c.bf16 %v1674_v43, %v1672_v42 }
 0x10c   : > { %v1363_v47 = vpop.f32.mrb[4].mxu0  ;;  %v1801_v48 = vpack.c.bf16 %v1675_v45, %v1673_v44 }
 0x10d   : > { %v1364_v49 = vadd.f32 %v1363_v47, %v13386_v31  ;;  %v1365_v50 = vpop.f32.mrb[5].mxu0 }
 0x10e   : > { %v1366_v52 = vadd.f32 %v1365_v50, %v13390_v32  ;;  %v1367_v53 = vpop.f32.mrb[6].mxu0  ;;  %2100 = vmatprep.mubr.bf16.mxu1 %v1801_v48 }
 0x10f   : > { %v1368_v54 = vadd.f32 %v1367_v53, %v13386_v31  ;;  %v1369_v55 = vpop.f32.mrb[7].mxu0  ;;  %2101 = vmatmul.mubr.bf16.vlgmr.msra.gmra.mrb[0].mxu1 %v1800_v46  ;;  %v1676_v59 = vmax.f32 %v1364_v49, 0.0 }
 0x110   : > { %v1370_v58 = vadd.f32 %v1369_v55, %v13390_v32  ;;  %v1677_v61 = vmax.f32 %v1366_v52, 0.0 }
 0x111   : > { %v1678_v60 = vmax.f32 %v1368_v54, 0.0  ;;  %11300 = vmatmul.mubr.msk.bf16.gmra.mrb[112].mxu0 %vm1222_vm0, %v12232_v51 }
 0x112   : > { %v1679_v62 = vmax.f32 %v1370_v58, 0.0  ;;  %1641 = vmatprep.mubr.bf16.mxu0 %v17539_v3 }
 0x113   : > { %v1802_v63 = vpack.c.bf16 %v1678_v60, %v1676_v59  ;;  %v12263_v60 = vld [vmem:[%s17600_s12 + $0xc0] ss:$8 sps:$4 sm:$0xff]  }
 0x114   : > { %v1373_v0 = vpop.f32.mrb[8].mxu0  ;;  %v1803_v1 = vpack.c.bf16 %v1679_v62, %v1677_v61  ;;  %v12265_v61 = vld [vmem:[%s17600_s12 + $0xc4] ss:$8 sps:$4 sm:$0xff]  }
 0x115   : > { %v1374_v2 = vadd.f32 %v1373_v0, %v13386_v31  ;;  %v1375_v4 = vpop.f32.mrb[9].mxu0  ;;  %2841 = vmatprep.subr.bf16.mxu0 %v12265_v61 }
 0x116   : > { %v1376_v6 = vadd.f32 %v1375_v4, %v13390_v32  ;;  %v1377_v7 = vpop.f32.mrb[10].mxu0  ;;  %2110 = vmatprep.mubr.bf16.mxu1 %v1803_v1  ;;  %2842 = vmatpush1.bf16.msra.mxu0 %v12263_v60 }
 0x117   : > { %v1378_v8 = vadd.f32 %v1377_v7, %v13386_v31  ;;  %v1379_v9 = vpop.f32.mrb[11].mxu0  ;;  %2111 = vmatmul.mubr.bf16.gmra.mrb[4].mxu1 %v1802_v63  ;;  %v1680_v11 = vmax.f32 %v1374_v2, 0.0 }
 0x118   : > { %v1380_v10 = vadd.f32 %v1379_v9, %v13390_v32  ;;  %v1681_v13 = vmax.f32 %v1376_v6, 0.0 }
 0x119   : > { %v1682_v12 = vmax.f32 %v1378_v8, 0.0  ;;  %11301 = vmatmul.mubr.msk.bf16.gmra.mrb[116].mxu0 %vm1222_vm0, %v12233_v5 }
 0x11a   : > { %v1683_v14 = vmax.f32 %v1380_v10, 0.0  ;;  %1651 = vmatprep.mubr.bf16.mxu0 %v17539_v3 }
 0x11b   : > { %v1804_v15 = vpack.c.bf16 %v1682_v12, %v1680_v11 }
 0x11c   : > { %v1383_v16 = vpop.f32.mrb[12].mxu0  ;;  %v1805_v17 = vpack.c.bf16 %v1683_v14, %v1681_v13 }
 0x11d   : > { %v1384_v18 = vadd.f32 %v1383_v16, %v13386_v31  ;;  %v1385_v19 = vpop.f32.mrb[13].mxu0 }
 0x11e   : > { %v1386_v21 = vadd.f32 %v1385_v19, %v13390_v32  ;;  %v1387_v22 = vpop.f32.mrb[14].mxu0  ;;  %2120 = vmatprep.mubr.bf16.mxu1 %v1805_v17 }
 0x11f   : > { %v1388_v23 = vadd.f32 %v1387_v22, %v13386_v31  ;;  %v1389_v24 = vpop.f32.mrb[15].mxu0  ;;  %2121 = vmatmul.mubr.bf16.gmra.mrb[8].mxu1 %v1804_v15  ;;  %v1684_v30 = vmax.f32 %v1384_v18, 0.0 }
 0x120   : > { %v1390_v29 = vadd.f32 %v1389_v24, %v13390_v32  ;;  %v1685_v34 = vmax.f32 %v1386_v21, 0.0 }
 0x121   : > { %v1686_v33 = vmax.f32 %v1388_v23, 0.0  ;;  %11302 = vmatmul.mubr.msk.bf16.gmra.mrb[120].mxu0 %vm1222_vm0, %v12237_v20 }
 0x122   : > { %v1687_v35 = vmax.f32 %v1390_v29, 0.0  ;;  %1661 = vmatprep.mubr.bf16.mxu0 %v17539_v3  ;;  %v12266_v29 = vld [vmem:[%s17600_s12 + $0xd0] ss:$8 sps:$4 sm:$0xff]  }
 0x123   : > { %v1806_v36 = vpack.c.bf16 %v1686_v33, %v1684_v30  ;;  %v12268_v30 = vld [vmem:[%s17600_s12 + $0xd4] ss:$8 sps:$4 sm:$0xff]  }
 0x124   : > { %v1393_v37 = vpop.f32.mrb[16].mxu0  ;;  %v1807_v38 = vpack.c.bf16 %v1687_v35, %v1685_v34  ;;  %2843 = vmatprep.subr.bf16.mxu0 %v12268_v30 }
 0x125   : > { %v1394_v39 = vadd.f32 %v1393_v37, %v13386_v31  ;;  %v1395_v40 = vpop.f32.mrb[17].mxu0  ;;  %2844 = vmatpush1.bf16.msra.mxu0 %v12266_v29 }
 0x126   : > { %v1396_v42 = vadd.f32 %v1395_v40, %v13390_v32  ;;  %v1397_v43 = vpop.f32.mrb[18].mxu0  ;;  %2130 = vmatprep.mubr.bf16.mxu1 %v1807_v38 }
 0x127   : > { %v1398_v44 = vadd.f32 %v1397_v43, %v13386_v31  ;;  %v1399_v45 = vpop.f32.mrb[19].mxu0  ;;  %2131 = vmatmul.mubr.bf16.gmra.mrb[12].mxu1 %v1806_v36  ;;  %v1688_v47 = vmax.f32 %v1394_v39, 0.0 }
 0x128   : > { %v1400_v46 = vadd.f32 %v1399_v45, %v13390_v32  ;;  %v1689_v49 = vmax.f32 %v1396_v42, 0.0 }
 0x129   : > { %v1690_v48 = vmax.f32 %v1398_v44, 0.0  ;;  %11303 = vmatmul.mubr.msk.bf16.gmra.mrb[124].mxu0 %vm1222_vm0, %v12238_v41 }
 0x12a   : > { %v1691_v50 = vmax.f32 %v1400_v46, 0.0 }
 0x12b   : > { %v1808_v51 = vpack.c.bf16 %v1690_v48, %v1688_v47 }
 0x12c   : > { %v1403_v52 = vpop.f32.mrb[20].mxu0  ;;  %v1809_v53 = vpack.c.bf16 %v1691_v50, %v1689_v49 }
 0x12d   : > { %v1404_v54 = vadd.f32 %v1403_v52, %v13386_v31  ;;  %v1405_v55 = vpop.f32.mrb[21].mxu0  ;;  %v12269_v52 = vld [vmem:[%s17602_s7] ss:$8 sps:$4 sm:$0xff]  }
 0x12e   : > { %v1406_v56 = vadd.f32 %v1405_v55, %v13390_v32  ;;  %v1407_v57 = vpop.f32.mrb[22].mxu0  ;;  %2140 = vmatprep.mubr.bf16.mxu1 %v1809_v53  ;;  %v12271_v53 = vld [vmem:[%s17602_s7 + $0x4] ss:$8 sps:$4 sm:$0xff]  }
 0x12f   : > { %v1408_v58 = vadd.f32 %v1407_v57, %v13386_v31  ;;  %v1409_v59 = vpop.f32.mrb[23].mxu0  ;;  %2141 = vmatmul.mubr.bf16.gmra.mrb[16].mxu1 %v1808_v51  ;;  %v1692_v63 = vmax.f32 %v1404_v54, 0.0  ;;  %3566 = vmatprep.subr.bf16.mxu1 %v12271_v53 }
 0x130   : > { %v1410_v62 = vadd.f32 %v1409_v59, %v13390_v32  ;;  %v1693_v1 = vmax.f32 %v1406_v56, 0.0  ;;  %3567 = vmatpush1.bf16.msra.mxu1 %v12269_v52 }
 0x131   : > { %v1694_v0 = vmax.f32 %v1408_v58, 0.0 }
 0x132   : > { %v1695_v2 = vmax.f32 %v1410_v62, 0.0 }
 0x133   : > { %v1810_v4 = vpack.c.bf16 %v1694_v0, %v1692_v63  ;;  %v12272_v63 = vld [vmem:[%s17600_s12 + $0xe0] ss:$8 sps:$4 sm:$0xff]   ;;  %v12274_v0 = vld [vmem:[%s17600_s12 + $0xe4] ss:$8 sps:$4 sm:$0xff]  }
 0x134   : > { %v1413_v5 = vpop.f32.mrb[24].mxu0  ;;  %v1811_v6 = vpack.c.bf16 %v1695_v2, %v1693_v1  ;;  %2845 = vmatprep.subr.bf16.mxu0 %v12274_v0 }
 0x135   : > { %v1414_v7 = vadd.f32 %v1413_v5, %v13386_v31  ;;  %v1415_v8 = vpop.f32.mrb[25].mxu0  ;;  %2846 = vmatpush1.bf16.msra.mxu0 %v12272_v63 }
 0x136   : > { %v1416_v9 = vadd.f32 %v1415_v8, %v13390_v32  ;;  %v1417_v10 = vpop.f32.mrb[26].mxu0  ;;  %2150 = vmatprep.mubr.bf16.mxu1 %v1811_v6 }
 0x137   : > { %v1418_v11 = vadd.f32 %v1417_v10, %v13386_v31  ;;  %v1419_v12 = vpop.f32.mrb[27].mxu0  ;;  %2151 = vmatmul.mubr.bf16.gmra.mrb[20].mxu1 %v1810_v4  ;;  %v1696_v14 = vmax.f32 %v1414_v7, 0.0 }
 0x138   : > { %v1420_v13 = vadd.f32 %v1419_v12, %v13390_v32  ;;  %v1697_v16 = vmax.f32 %v1416_v9, 0.0 }
 0x139   : > { %v1698_v15 = vmax.f32 %v1418_v11, 0.0 }
 0x13a   : > { %v1699_v17 = vmax.f32 %v1420_v13, 0.0 }
 0x13b   : > { %v1812_v18 = vpack.c.bf16 %v1698_v15, %v1696_v14 }
 0x13c   : > { %v1423_v19 = vpop.f32.mrb[28].mxu0  ;;  %v1813_v20 = vpack.c.bf16 %v1699_v17, %v1697_v16 }
 0x13d   : > { %v1424_v21 = vadd.f32 %v1423_v19, %v13386_v31  ;;  %v1425_v22 = vpop.f32.mrb[29].mxu0 }
 0x13e   : > { %v1426_v23 = vadd.f32 %v1425_v22, %v13390_v32  ;;  %v1427_v24 = vpop.f32.mrb[30].mxu0  ;;  %2160 = vmatprep.mubr.bf16.mxu1 %v1813_v20  ;;  %v12277_v22 = vld [vmem:[%s17602_s7 + $0x14] ss:$8 sps:$4 sm:$0xff]  }
 0x13f   : > { %v1428_v25 = vadd.f32 %v1427_v24, %v13386_v31  ;;  %v1429_v27 = vpop.f32.mrb[31].mxu0  ;;  %2161 = vmatmul.mubr.bf16.gmra.mrb[24].mxu1 %v1812_v18  ;;  %v1700_v34 = vmax.f32 %v1424_v21, 0.0  ;;  %v12275_v21 = vld [vmem:[%s17602_s7 + $0x10] ss:$8 sps:$4 sm:$0xff]   ;;  %3568 = vmatprep.subr.bf16.mxu1 %v12277_v22 }
 0x140   : > { %v1430_v33 = vadd.f32 %v1429_v27, %v13390_v32  ;;  %v1701_v36 = vmax.f32 %v1426_v23, 0.0  ;;  %3569 = vmatpush1.bf16.msra.mxu1 %v12275_v21 }
 0x141   : > { %v1702_v35 = vmax.f32 %v1428_v25, 0.0 }
 0x142   : > { %v1703_v37 = vmax.f32 %v1430_v33, 0.0 }
 0x143   : > { %v1814_v38 = vpack.c.bf16 %v1702_v35, %v1700_v34 }
 0x144   : > { %v1433_v39 = vpop.f32.mrb[32].mxu0  ;;  %v1815_v40 = vpack.c.bf16 %v1703_v37, %v1701_v36  ;;  %v12278_v36 = vld [vmem:[%s17600_s12 + $0xf0] ss:$8 sps:$4 sm:$0xff]   ;;  %v12280_v37 = vld [vmem:[%s17600_s12 + $0xf4] ss:$8 sps:$4 sm:$0xff]  }
 0x145   : > { %v1434_v41 = vadd.f32 %v1433_v39, %v13386_v31  ;;  %v1435_v42 = vpop.f32.mrb[33].mxu0  ;;  %2847 = vmatprep.subr.bf16.mxu0 %v12280_v37 }
 0x146   : > { %v1436_v43 = vadd.f32 %v1435_v42, %v13390_v32  ;;  %v1437_v44 = vpop.f32.mrb[34].mxu0  ;;  %2170 = vmatprep.mubr.bf16.mxu1 %v1815_v40  ;;  %2848 = vmatpush1.bf16.msra.mxu0 %v12278_v36 }
 0x147   : > { %v1438_v45 = vadd.f32 %v1437_v44, %v13386_v31  ;;  %v1439_v46 = vpop.f32.mrb[35].mxu0  ;;  %2171 = vmatmul.mubr.bf16.gmra.mrb[28].mxu1 %v1814_v38  ;;  %v1704_v48 = vmax.f32 %v1434_v41, 0.0 }
 0x148   : > { %v1440_v47 = vadd.f32 %v1439_v46, %v13390_v32  ;;  %v1705_v50 = vmax.f32 %v1436_v43, 0.0 }
 0x149   : > { %v1706_v49 = vmax.f32 %v1438_v45, 0.0 }
 0x14a   : > { %v1707_v51 = vmax.f32 %v1440_v47, 0.0 }
 0x14b   : > { %v1816_v54 = vpack.c.bf16 %v1706_v49, %v1704_v48 }
 0x14c   : > { %v1443_v55 = vpop.f32.mrb[36].mxu0  ;;  %v1817_v56 = vpack.c.bf16 %v1707_v51, %v1705_v50 }
 0x14d   : > { %v1444_v57 = vadd.f32 %v1443_v55, %v13386_v31  ;;  %v1445_v58 = vpop.f32.mrb[37].mxu0 }
 0x14e   : > { %v1446_v59 = vadd.f32 %v1445_v58, %v13390_v32  ;;  %v1447_v60 = vpop.f32.mrb[38].mxu0  ;;  %2180 = vmatprep.mubr.bf16.mxu1 %v1817_v56  ;;  %v12281_v58 = vld [vmem:[%s17602_s7 + $0x20] ss:$8 sps:$4 sm:$0xff]  }
 0x14f   : > { %v1448_v61 = vadd.f32 %v1447_v60, %v13386_v31  ;;  %v1449_v62 = vpop.f32.mrb[39].mxu0  ;;  %2181 = vmatmul.mubr.bf16.gmra.mrb[32].mxu1 %v1816_v54  ;;  %v1708_v2 = vmax.f32 %v1444_v57, 0.0 }
 0x150   : > { %v1450_v1 = vadd.f32 %v1449_v62, %v13390_v32  ;;  %v1709_v5 = vmax.f32 %v1446_v59, 0.0  ;;  %v12283_v59 = vld [vmem:[%s17602_s7 + $0x24] ss:$8 sps:$4 sm:$0xff]  }
 0x151   : > { %v1710_v4 = vmax.f32 %v1448_v61, 0.0  ;;  %3570 = vmatprep.subr.bf16.mxu1 %v12283_v59  ;;  %v12287_v59 = vld [vmem:[%s17602_s7 + $0x40] ss:$8 sps:$4 sm:$0xff]  }
 0x152   : > { %v1711_v6 = vmax.f32 %v1450_v1, 0.0  ;;  %3571 = vmatpush1.bf16.msra.mxu1 %v12281_v58 }
 0x153   : > { %v1818_v7 = vpack.c.bf16 %v1710_v4, %v1708_v2 }
 0x154   : > { %v1453_v8 = vpop.f32.mrb[40].mxu0  ;;  %v1819_v9 = vpack.c.bf16 %v1711_v6, %v1709_v5 }
 0x155   : > { %v1454_v10 = vadd.f32 %v1453_v8, %v13386_v31  ;;  %v1455_v11 = vpop.f32.mrb[41].mxu0 }
 0x156   : > { %v1456_v12 = vadd.f32 %v1455_v11, %v13390_v32  ;;  %v1457_v13 = vpop.f32.mrb[42].mxu0  ;;  %2190 = vmatprep.mubr.bf16.mxu1 %v1819_v9 }
 0x157   : > { %v1458_v14 = vadd.f32 %v1457_v13, %v13386_v31  ;;  %v1459_v15 = vpop.f32.mrb[43].mxu0  ;;  %2191 = vmatmul.mubr.bf16.gmra.mrb[36].mxu1 %v1818_v7  ;;  %v1712_v17 = vmax.f32 %v1454_v10, 0.0 }
 0x158   : > { %v1460_v16 = vadd.f32 %v1459_v15, %v13390_v32  ;;  %v1713_v19 = vmax.f32 %v1456_v12, 0.0 }
 0x159   : > { %v1714_v18 = vmax.f32 %v1458_v14, 0.0 }
 0x15a   : > { %v1715_v20 = vmax.f32 %v1460_v16, 0.0 }
 0x15b   : > { %v1820_v23 = vpack.c.bf16 %v1714_v18, %v1712_v17 }
 0x15c   : > { %v1463_v24 = vpop.f32.mrb[44].mxu0  ;;  %v1821_v25 = vpack.c.bf16 %v1715_v20, %v1713_v19 }
 0x15d   : > { %v1464_v27 = vadd.f32 %v1463_v24, %v13386_v31  ;;  %v1465_v29 = vpop.f32.mrb[45].mxu0 }
 0x15e   : > { %v1466_v30 = vadd.f32 %v1465_v29, %v13390_v32  ;;  %v1467_v33 = vpop.f32.mrb[46].mxu0  ;;  %2200 = vmatprep.mubr.bf16.mxu1 %v1821_v25  ;;  %v12284_v25 = vld [vmem:[%s17602_s7 + $0x30] ss:$8 sps:$4 sm:$0xff]  }
 0x15f   : > { %v1468_v34 = vadd.f32 %v1467_v33, %v13386_v31  ;;  %v1469_v35 = vpop.f32.mrb[47].mxu0  ;;  %2201 = vmatmul.mubr.bf16.gmra.mrb[40].mxu1 %v1820_v23  ;;  %v1716_v39 = vmax.f32 %v1464_v27, 0.0  ;;  %v12286_v27 = vld [vmem:[%s17602_s7 + $0x34] ss:$8 sps:$4 sm:$0xff]  }
 0x160   : > { %v1470_v38 = vadd.f32 %v1469_v35, %v13390_v32  ;;  %v1717_v41 = vmax.f32 %v1466_v30, 0.0  ;;  %3572 = vmatprep.subr.bf16.mxu1 %v12286_v27  ;;  %v12290_v27 = vld [vmem:[%s17602_s7 + $0x50] ss:$8 sps:$4 sm:$0xff]  }
 0x161   : > { %v1718_v40 = vmax.f32 %v1468_v34, 0.0  ;;  %3573 = vmatpush1.bf16.msra.mxu1 %v12284_v25 }
 0x162   : > { %v1719_v42 = vmax.f32 %v1470_v38, 0.0 }
 0x163   : > { %v1822_v43 = vpack.c.bf16 %v1718_v40, %v1716_v39 }
 0x164   : > { %v1473_v44 = vpop.f32.mrb[48].mxu0  ;;  %v1823_v45 = vpack.c.bf16 %v1719_v42, %v1717_v41 }
 0x165   : > { %v1474_v46 = vadd.f32 %v1473_v44, %v13386_v31  ;;  %v1475_v47 = vpop.f32.mrb[49].mxu0 }
 0x166   : > { %v1476_v48 = vadd.f32 %v1475_v47, %v13390_v32  ;;  %v1477_v49 = vpop.f32.mrb[50].mxu0  ;;  %2210 = vmatprep.mubr.bf16.mxu1 %v1823_v45 }
 0x167   : > { %v1478_v50 = vadd.f32 %v1477_v49, %v13386_v31  ;;  %v1479_v51 = vpop.f32.mrb[51].mxu0  ;;  %2211 = vmatmul.mubr.bf16.gmra.mrb[44].mxu1 %v1822_v43  ;;  %v1720_v53 = vmax.f32 %v1474_v46, 0.0 }
 0x168   : > { %v1480_v52 = vadd.f32 %v1479_v51, %v13390_v32  ;;  %v1721_v55 = vmax.f32 %v1476_v48, 0.0 }
 0x169   : > { %v1722_v54 = vmax.f32 %v1478_v50, 0.0 }
 0x16a   : > { %v1723_v56 = vmax.f32 %v1480_v52, 0.0 }
 0x16b   : > { %v1824_v57 = vpack.c.bf16 %v1722_v54, %v1720_v53 }
 0x16c   : > { %v1483_v60 = vpop.f32.mrb[52].mxu0  ;;  %v1825_v61 = vpack.c.bf16 %v1723_v56, %v1721_v55 }
 0x16d   : > { %v1484_v62 = vadd.f32 %v1483_v60, %v13386_v31  ;;  %v1485_v63 = vpop.f32.mrb[53].mxu0  ;;  %v12289_v60 = vld [vmem:[%s17602_s7 + $0x44] ss:$8 sps:$4 sm:$0xff]  }
 0x16e   : > { %v1486_v0 = vadd.f32 %v1485_v63, %v13390_v32  ;;  %v1487_v1 = vpop.f32.mrb[54].mxu0  ;;  %2220 = vmatprep.mubr.bf16.mxu1 %v1825_v61  ;;  %3574 = vmatprep.subr.bf16.mxu1 %v12289_v60  ;;  %v12293_v60 = vld [vmem:[%s17602_s7 + $0x60] ss:$8 sps:$4 sm:$0xff]  }
 0x16f   : > { %v1488_v2 = vadd.f32 %v1487_v1, %v13386_v31  ;;  %v1489_v4 = vpop.f32.mrb[55].mxu0  ;;  %2221 = vmatmul.mubr.bf16.gmra.mrb[48].mxu1 %v1824_v57  ;;  %v1724_v6 = vmax.f32 %v1484_v62, 0.0 }
 0x170   : > { %v1490_v5 = vadd.f32 %v1489_v4, %v13390_v32  ;;  %v1725_v8 = vmax.f32 %v1486_v0, 0.0  ;;  %3575 = vmatpush1.bf16.msra.mxu1 %v12287_v59 }
 0x171   : > { %v1726_v7 = vmax.f32 %v1488_v2, 0.0 }
 0x172   : > { %v1727_v9 = vmax.f32 %v1490_v5, 0.0 }
 0x173   : > { %v1826_v10 = vpack.c.bf16 %v1726_v7, %v1724_v6 }
 0x174   : > { %v1493_v11 = vpop.f32.mrb[56].mxu0  ;;  %v1827_v12 = vpack.c.bf16 %v1727_v9, %v1725_v8 }
 0x175   : > { %v1494_v13 = vadd.f32 %v1493_v11, %v13386_v31  ;;  %v1495_v14 = vpop.f32.mrb[57].mxu0 }
 0x176   : > { %v1496_v15 = vadd.f32 %v1495_v14, %v13390_v32  ;;  %v1497_v16 = vpop.f32.mrb[58].mxu0  ;;  %2230 = vmatprep.mubr.bf16.mxu1 %v1827_v12 }
 0x177   : > { %v1498_v17 = vadd.f32 %v1497_v16, %v13386_v31  ;;  %v1499_v18 = vpop.f32.mrb[59].mxu0  ;;  %2231 = vmatmul.mubr.bf16.gmra.mrb[52].mxu1 %v1826_v10  ;;  %v1728_v20 = vmax.f32 %v1494_v13, 0.0 }
 0x178   : > { %v1500_v19 = vadd.f32 %v1499_v18, %v13390_v32  ;;  %v1729_v22 = vmax.f32 %v1496_v15, 0.0 }
 0x179   : > { %v1730_v21 = vmax.f32 %v1498_v17, 0.0 }
 0x17a   : > { %v1731_v23 = vmax.f32 %v1500_v19, 0.0 }
 0x17b   : > { %v1828_v24 = vpack.c.bf16 %v1730_v21, %v1728_v20 }
 0x17c   : > { %v1503_v29 = vpop.f32.mrb[60].mxu0  ;;  %v1829_v30 = vpack.c.bf16 %v1731_v23, %v1729_v22 }
 0x17d   : > { %v1504_v33 = vadd.f32 %v1503_v29, %v13386_v31  ;;  %v1505_v34 = vpop.f32.mrb[61].mxu0  ;;  %v12292_v29 = vld [vmem:[%s17602_s7 + $0x54] ss:$8 sps:$4 sm:$0xff]  }
 0x17e   : > { %v1506_v35 = vadd.f32 %v1505_v34, %v13390_v32  ;;  %v1507_v36 = vpop.f32.mrb[62].mxu0  ;;  %2240 = vmatprep.mubr.bf16.mxu1 %v1829_v30  ;;  %3576 = vmatprep.subr.bf16.mxu1 %v12292_v29  ;;  %v12296_v29 = vld [vmem:[%s17602_s7 + $0x70] ss:$8 sps:$4 sm:$0xff]  }
 0x17f   : > { %v1508_v37 = vadd.f32 %v1507_v36, %v13386_v31  ;;  %v1509_v38 = vpop.f32.mrb[63].mxu0  ;;  %2241 = vmatmul.mubr.bf16.gmra.mrb[56].mxu1 %v1828_v24  ;;  %v1732_v40 = vmax.f32 %v1504_v33, 0.0 }
 0x180   : > { %v1510_v39 = vadd.f32 %v1509_v38, %v13390_v32  ;;  %v1733_v42 = vmax.f32 %v1506_v35, 0.0  ;;  %3577 = vmatpush1.bf16.msra.mxu1 %v12290_v27 }
 0x181   : > { %v1734_v41 = vmax.f32 %v1508_v37, 0.0 }
 0x182   : > { %v1735_v43 = vmax.f32 %v1510_v39, 0.0 }
 0x183   : > { %v1830_v44 = vpack.c.bf16 %v1734_v41, %v1732_v40 }
 0x184   : > { %v1513_v45 = vpop.f32.mrb[64].mxu0  ;;  %v1831_v46 = vpack.c.bf16 %v1735_v43, %v1733_v42 }
 0x185   : > { %v1514_v47 = vadd.f32 %v1513_v45, %v13386_v31  ;;  %v1515_v48 = vpop.f32.mrb[65].mxu0 }
 0x186   : > { %v1516_v49 = vadd.f32 %v1515_v48, %v13390_v32  ;;  %v1517_v50 = vpop.f32.mrb[66].mxu0  ;;  %2250 = vmatprep.mubr.bf16.mxu1 %v1831_v46 }
 0x187   : > { %v1518_v51 = vadd.f32 %v1517_v50, %v13386_v31  ;;  %v1519_v52 = vpop.f32.mrb[67].mxu0  ;;  %2251 = vmatmul.mubr.bf16.gmra.mrb[60].mxu1 %v1830_v44  ;;  %v1736_v54 = vmax.f32 %v1514_v47, 0.0 }
 0x188   : > { %v1520_v53 = vadd.f32 %v1519_v52, %v13390_v32  ;;  %v1737_v56 = vmax.f32 %v1516_v49, 0.0 }
 0x189   : > { %v1738_v55 = vmax.f32 %v1518_v51, 0.0 }
 0x18a   : > { %v1739_v57 = vmax.f32 %v1520_v53, 0.0 }
 0x18b   : > { %v1832_v58 = vpack.c.bf16 %v1738_v55, %v1736_v54 }
 0x18c   : > { %v1523_v61 = vpop.f32.mrb[68].mxu0  ;;  %v1833_v62 = vpack.c.bf16 %v1739_v57, %v1737_v56 }
 0x18d   : > { %v1524_v63 = vadd.f32 %v1523_v61, %v13386_v31  ;;  %v1525_v0 = vpop.f32.mrb[69].mxu0  ;;  %v12295_v61 = vld [vmem:[%s17602_s7 + $0x64] ss:$8 sps:$4 sm:$0xff]  }
 0x18e   : > { %v1526_v1 = vadd.f32 %v1525_v0, %v13390_v32  ;;  %v1527_v2 = vpop.f32.mrb[70].mxu0  ;;  %2260 = vmatprep.mubr.bf16.mxu1 %v1833_v62  ;;  %3578 = vmatprep.subr.bf16.mxu1 %v12295_v61  ;;  %v12299_v61 = vld [vmem:[%s17602_s7 + $0x80] ss:$8 sps:$4 sm:$0xff]  }
 0x18f   : > { %v1528_v4 = vadd.f32 %v1527_v2, %v13386_v31  ;;  %v1529_v5 = vpop.f32.mrb[71].mxu0  ;;  %2261 = vmatmul.mubr.bf16.gmra.mrb[64].mxu1 %v1832_v58  ;;  %v1740_v7 = vmax.f32 %v1524_v63, 0.0 }
 0x190   : > { %v1530_v6 = vadd.f32 %v1529_v5, %v13390_v32  ;;  %v1741_v9 = vmax.f32 %v1526_v1, 0.0  ;;  %3579 = vmatpush1.bf16.msra.mxu1 %v12293_v60 }
 0x191   : > { %v1742_v8 = vmax.f32 %v1528_v4, 0.0 }
 0x192   : > { %v1743_v10 = vmax.f32 %v1530_v6, 0.0 }
 0x193   : > { %v1834_v11 = vpack.c.bf16 %v1742_v8, %v1740_v7 }
 0x194   : > { %v1533_v12 = vpop.f32.mrb[72].mxu0  ;;  %v1835_v13 = vpack.c.bf16 %v1743_v10, %v1741_v9 }
 0x195   : > { %v1534_v14 = vadd.f32 %v1533_v12, %v13386_v31  ;;  %v1535_v15 = vpop.f32.mrb[73].mxu0 }
 0x196   : > { %v1536_v16 = vadd.f32 %v1535_v15, %v13390_v32  ;;  %v1537_v17 = vpop.f32.mrb[74].mxu0  ;;  %2270 = vmatprep.mubr.bf16.mxu1 %v1835_v13 }
 0x197   : > { %v1538_v18 = vadd.f32 %v1537_v17, %v13386_v31  ;;  %v1539_v19 = vpop.f32.mrb[75].mxu0  ;;  %2271 = vmatmul.mubr.bf16.gmra.mrb[68].mxu1 %v1834_v11  ;;  %v1744_v21 = vmax.f32 %v1534_v14, 0.0 }
 0x198   : > { %v1540_v20 = vadd.f32 %v1539_v19, %v13390_v32  ;;  %v1745_v23 = vmax.f32 %v1536_v16, 0.0 }
 0x199   : > { %v1746_v22 = vmax.f32 %v1538_v18, 0.0 }
 0x19a   : > { %v1747_v24 = vmax.f32 %v1540_v20, 0.0 }
 0x19b   : > { %v1836_v25 = vpack.c.bf16 %v1746_v22, %v1744_v21 }
 0x19c   : > { %v1543_v30 = vpop.f32.mrb[76].mxu0  ;;  %v1837_v33 = vpack.c.bf16 %v1747_v24, %v1745_v23 }
 0x19d   : > { %v1544_v34 = vadd.f32 %v1543_v30, %v13386_v31  ;;  %v1545_v35 = vpop.f32.mrb[77].mxu0  ;;  %v12298_v30 = vld [vmem:[%s17602_s7 + $0x74] ss:$8 sps:$4 sm:$0xff]  }
 0x19e   : > { %v1546_v36 = vadd.f32 %v1545_v35, %v13390_v32  ;;  %v1547_v37 = vpop.f32.mrb[78].mxu0  ;;  %2280 = vmatprep.mubr.bf16.mxu1 %v1837_v33  ;;  %3580 = vmatprep.subr.bf16.mxu1 %v12298_v30  ;;  %v12302_v30 = vld [vmem:[%s17602_s7 + $0x90] ss:$8 sps:$4 sm:$0xff]  }
 0x19f   : > { %v1548_v38 = vadd.f32 %v1547_v37, %v13386_v31  ;;  %v1549_v39 = vpop.f32.mrb[79].mxu0  ;;  %2281 = vmatmul.mubr.bf16.gmra.mrb[72].mxu1 %v1836_v25  ;;  %v1748_v41 = vmax.f32 %v1544_v34, 0.0 }
 0x1a0   : > { %v1550_v40 = vadd.f32 %v1549_v39, %v13390_v32  ;;  %v1749_v43 = vmax.f32 %v1546_v36, 0.0  ;;  %3581 = vmatpush1.bf16.msra.mxu1 %v12296_v29 }
 0x1a1   : > { %v1750_v42 = vmax.f32 %v1548_v38, 0.0 }
 0x1a2   : > { %v1751_v44 = vmax.f32 %v1550_v40, 0.0 }
 0x1a3   : > { %v1838_v45 = vpack.c.bf16 %v1750_v42, %v1748_v41 }
 0x1a4   : > { %v1553_v46 = vpop.f32.mrb[80].mxu0  ;;  %v1839_v47 = vpack.c.bf16 %v1751_v44, %v1749_v43 }
 0x1a5   : > { %v1554_v48 = vadd.f32 %v1553_v46, %v13386_v31  ;;  %v1555_v49 = vpop.f32.mrb[81].mxu0 }
 0x1a6   : > { %v1556_v50 = vadd.f32 %v1555_v49, %v13390_v32  ;;  %v1557_v51 = vpop.f32.mrb[82].mxu0  ;;  %2290 = vmatprep.mubr.bf16.mxu1 %v1839_v47 }
 0x1a7   : > { %v1558_v52 = vadd.f32 %v1557_v51, %v13386_v31  ;;  %v1559_v53 = vpop.f32.mrb[83].mxu0  ;;  %2291 = vmatmul.mubr.bf16.gmra.mrb[76].mxu1 %v1838_v45  ;;  %v1752_v55 = vmax.f32 %v1554_v48, 0.0 }
 0x1a8   : > { %v1560_v54 = vadd.f32 %v1559_v53, %v13390_v32  ;;  %v1753_v57 = vmax.f32 %v1556_v50, 0.0 }
 0x1a9   : > { %v1754_v56 = vmax.f32 %v1558_v52, 0.0 }
 0x1aa   : > { %v1755_v58 = vmax.f32 %v1560_v54, 0.0 }
 0x1ab   : > { %v1840_v59 = vpack.c.bf16 %v1754_v56, %v1752_v55 }
 0x1ac   : > { %v1563_v62 = vpop.f32.mrb[84].mxu0  ;;  %v1841_v63 = vpack.c.bf16 %v1755_v58, %v1753_v57 }
 0x1ad   : > { %v1564_v0 = vadd.f32 %v1563_v62, %v13386_v31  ;;  %v1565_v1 = vpop.f32.mrb[85].mxu0  ;;  %v12301_v62 = vld [vmem:[%s17602_s7 + $0x84] ss:$8 sps:$4 sm:$0xff]  }
 0x1ae   : > { %v1566_v2 = vadd.f32 %v1565_v1, %v13390_v32  ;;  %v1567_v4 = vpop.f32.mrb[86].mxu0  ;;  %2300 = vmatprep.mubr.bf16.mxu1 %v1841_v63  ;;  %3582 = vmatprep.subr.bf16.mxu1 %v12301_v62 }
 0x1af   : > { %v1568_v5 = vadd.f32 %v1567_v4, %v13386_v31  ;;  %v1569_v6 = vpop.f32.mrb[87].mxu0  ;;  %2301 = vmatmul.mubr.bf16.gmra.mrb[80].mxu1 %v1840_v59  ;;  %v1756_v8 = vmax.f32 %v1564_v0, 0.0 }
 0x1b0   : > { %v1570_v7 = vadd.f32 %v1569_v6, %v13390_v32  ;;  %v1757_v10 = vmax.f32 %v1566_v2, 0.0  ;;  %3583 = vmatpush1.bf16.msra.mxu1 %v12299_v61 }
 0x1b1   : > { %v1758_v9 = vmax.f32 %v1568_v5, 0.0 }
 0x1b2   : > { %v1759_v11 = vmax.f32 %v1570_v7, 0.0 }
 0x1b3   : > { %v1842_v12 = vpack.c.bf16 %v1758_v9, %v1756_v8 }
 0x1b4   : > { %v1573_v13 = vpop.f32.mrb[88].mxu0  ;;  %v1843_v14 = vpack.c.bf16 %v1759_v11, %v1757_v10 }
 0x1b5   : > { %v1574_v15 = vadd.f32 %v1573_v13, %v13386_v31  ;;  %v1575_v16 = vpop.f32.mrb[89].mxu0 }
 0x1b6   : > { %v1576_v17 = vadd.f32 %v1575_v16, %v13390_v32  ;;  %v1577_v18 = vpop.f32.mrb[90].mxu0  ;;  %2310 = vmatprep.mubr.bf16.mxu1 %v1843_v14 }
 0x1b7   : > { %v1578_v19 = vadd.f32 %v1577_v18, %v13386_v31  ;;  %v1579_v20 = vpop.f32.mrb[91].mxu0  ;;  %2311 = vmatmul.mubr.bf16.gmra.mrb[84].mxu1 %v1842_v12  ;;  %v1760_v22 = vmax.f32 %v1574_v15, 0.0 }
 0x1b8   : > { %v1580_v21 = vadd.f32 %v1579_v20, %v13390_v32  ;;  %v1761_v24 = vmax.f32 %v1576_v17, 0.0 }
 0x1b9   : > { %v1762_v23 = vmax.f32 %v1578_v19, 0.0 }
 0x1ba   : > { %v1763_v25 = vmax.f32 %v1580_v21, 0.0 }
 0x1bb   : > { %v1844_v27 = vpack.c.bf16 %v1762_v23, %v1760_v22 }
 0x1bc   : > { %v1583_v33 = vpop.f32.mrb[92].mxu0  ;;  %v1845_v34 = vpack.c.bf16 %v1763_v25, %v1761_v24 }
 0x1bd   : > { %v1584_v35 = vadd.f32 %v1583_v33, %v13386_v31  ;;  %v1585_v36 = vpop.f32.mrb[93].mxu0  ;;  %v12304_v33 = vld [vmem:[%s17602_s7 + $0x94] ss:$8 sps:$4 sm:$0xff]  }
 0x1be   : > { %v1586_v37 = vadd.f32 %v1585_v36, %v13390_v32  ;;  %v1587_v38 = vpop.f32.mrb[94].mxu0  ;;  %2320 = vmatprep.mubr.bf16.mxu1 %v1845_v34  ;;  %v1896_v36 = vld [vmem:[%s17603_s6] sm:$0x3]  ;;  %3584 = vmatprep.subr.bf16.mxu1 %v12304_v33  ;;  %s12948_s6 = smov 3  }
 0x1bf   : > { %v1588_v39 = vadd.f32 %v1587_v38, %v13386_v31  ;;  %v1589_v40 = vpop.f32.mrb[95].mxu0  ;;  %2321 = vmatmul.mubr.bf16.gmra.mrb[88].mxu1 %v1844_v27  ;;  %v1764_v42 = vmax.f32 %v1584_v35, 0.0 }
 0x1c0   : > { %v1590_v41 = vadd.f32 %v1589_v40, %v13390_v32  ;;  %v1765_v44 = vmax.f32 %v1586_v37, 0.0  ;;  %3585 = vmatpush1.bf16.msra.mxu1 %v12302_v30 }
 0x1c1   : > { %v1766_v43 = vmax.f32 %v1588_v39, 0.0 }
 0x1c2   : > { %v1767_v45 = vmax.f32 %v1590_v41, 0.0 }
 0x1c3   : > { %v1846_v46 = vpack.c.bf16 %v1766_v43, %v1764_v42  ;;  %v13617_v43 = vrot.slane %v1896_v36, %v13371_v26 }
 0x1c4   : > { %v1593_v47 = vpop.f32.mrb[96].mxu0  ;;  %v1847_v48 = vpack.c.bf16 %v1767_v45, %v1765_v44  ;;  %v13621_v45 = vrot.slane %v1896_v36, %v13376_v28 }
 0x1c5   : > { %v1594_v49 = vadd.f32 %v1593_v47, %v13386_v31  ;;  %v1595_v50 = vpop.f32.mrb[97].mxu0 }
 0x1c6   : > { %v1596_v51 = vadd.f32 %v1595_v50, %v13390_v32  ;;  %v1597_v52 = vpop.f32.mrb[98].mxu0  ;;  %2330 = vmatprep.mubr.bf16.mxu1 %v1847_v48 }
 0x1c7   : > { %v1598_v53 = vadd.f32 %v1597_v52, %v13386_v31  ;;  %v1599_v54 = vpop.f32.mrb[99].mxu0  ;;  %2331 = vmatmul.mubr.bf16.gmra.mrb[92].mxu1 %v1846_v46  ;;  %v1768_v56 = vmax.f32 %v1594_v49, 0.0 }
 0x1c8   : > { %v1600_v55 = vadd.f32 %v1599_v54, %v13390_v32  ;;  %v1769_v58 = vmax.f32 %v1596_v51, 0.0 }
 0x1c9   : > { %v1770_v57 = vmax.f32 %v1598_v53, 0.0 }
 0x1ca   : > { %v1771_v59 = vmax.f32 %v1600_v55, 0.0 }
 0x1cb   : > { %v1848_v60 = vpack.c.bf16 %v1770_v57, %v1768_v56 }
 0x1cc   : > { %v1603_v63 = vpop.f32.mrb[100].mxu0  ;;  %v1849_v0 = vpack.c.bf16 %v1771_v59, %v1769_v58 }
 0x1cd   : > { %v1604_v1 = vadd.f32 %v1603_v63, %v13386_v31  ;;  %v1605_v2 = vpop.f32.mrb[101].mxu0 }
 0x1ce   : > { %v1606_v4 = vadd.f32 %v1605_v2, %v13390_v32  ;;  %v1607_v5 = vpop.f32.mrb[102].mxu0  ;;  %2340 = vmatprep.mubr.bf16.mxu1 %v1849_v0 }
 0x1cf   : > { %v1608_v6 = vadd.f32 %v1607_v5, %v13386_v31  ;;  %v1609_v7 = vpop.f32.mrb[103].mxu0  ;;  %2341 = vmatmul.mubr.bf16.gmra.mrb[96].mxu1 %v1848_v60  ;;  %v1772_v9 = vmax.f32 %v1604_v1, 0.0 }
 0x1d0   : > { %v1610_v8 = vadd.f32 %v1609_v7, %v13390_v32  ;;  %v1773_v11 = vmax.f32 %v1606_v4, 0.0 }
 0x1d1   : > { %v1774_v10 = vmax.f32 %v1608_v6, 0.0 }
 0x1d2   : > { %v1775_v12 = vmax.f32 %v1610_v8, 0.0 }
 0x1d3   : > { %v1850_v13 = vpack.c.bf16 %v1774_v10, %v1772_v9 }
 0x1d4   : > { %v1613_v14 = vpop.f32.mrb[104].mxu0  ;;  %v1851_v15 = vpack.c.bf16 %v1775_v12, %v1773_v11 }
 0x1d5   : > { %v1614_v16 = vadd.f32 %v1613_v14, %v13386_v31  ;;  %v1615_v17 = vpop.f32.mrb[105].mxu0 }
 0x1d6   : > { %v1616_v18 = vadd.f32 %v1615_v17, %v13390_v32  ;;  %v1617_v19 = vpop.f32.mrb[106].mxu0  ;;  %2350 = vmatprep.mubr.bf16.mxu1 %v1851_v15 }
 0x1d7   : > { %v1618_v20 = vadd.f32 %v1617_v19, %v13386_v31  ;;  %v1619_v21 = vpop.f32.mrb[107].mxu0  ;;  %2351 = vmatmul.mubr.bf16.gmra.mrb[100].mxu1 %v1850_v13  ;;  %v1776_v23 = vmax.f32 %v1614_v16, 0.0  ;;  %v12305_v19 = vld [vmem:[%s17602_s7 + $0xa0] ss:$8 sps:$4 sm:$0xff]  }
 0x1d8   : > { %v1620_v22 = vadd.f32 %v1619_v21, %v13390_v32  ;;  %v1777_v25 = vmax.f32 %v1616_v18, 0.0 }
 0x1d9   : > { %v1778_v24 = vmax.f32 %v1618_v20, 0.0  ;;  %v12307_v20 = vld [vmem:[%s17602_s7 + $0xa4] ss:$8 sps:$4 sm:$0xff]  }
 0x1da   : > { %v1779_v27 = vmax.f32 %v1620_v22, 0.0  ;;  %3586 = vmatprep.subr.bf16.mxu1 %v12307_v20  ;;  %v12308_v20 = vld [vmem:[%s17602_s7 + $0xb0] ss:$8 sps:$4 sm:$0xff]  }
 0x1db   : > { %v1852_v29 = vpack.c.bf16 %v1778_v24, %v1776_v23  ;;  %3587 = vmatpush1.bf16.msra.mxu1 %v12305_v19 }
 0x1dc   : > { %v1623_v34 = vpop.f32.mrb[108].mxu0  ;;  %v1853_v35 = vpack.c.bf16 %v1779_v27, %v1777_v25 }
 0x1dd   : > { %v1624_v37 = vadd.f32 %v1623_v34, %v13386_v31  ;;  %v1625_v38 = vpop.f32.mrb[109].mxu0 }
 0x1de   : > { %v1626_v39 = vadd.f32 %v1625_v38, %v13390_v32  ;;  %v1627_v40 = vpop.f32.mrb[110].mxu0  ;;  %2360 = vmatprep.mubr.bf16.mxu1 %v1853_v35 }
 0x1df   : > { %v1628_v41 = vadd.f32 %v1627_v40, %v13386_v31  ;;  %v1629_v42 = vpop.f32.mrb[111].mxu0  ;;  %2361 = vmatmul.mubr.bf16.gmra.mrb[104].mxu1 %v1852_v29  ;;  %v1780_v46 = vmax.f32 %v1624_v37, 0.0 }
 0x1e0   : > { %v1630_v44 = vadd.f32 %v1629_v42, %v13390_v32  ;;  %v1781_v48 = vmax.f32 %v1626_v39, 0.0 }
 0x1e1   : > { %v1782_v47 = vmax.f32 %v1628_v41, 0.0 }
 0x1e2   : > { %v1783_v49 = vmax.f32 %v1630_v44, 0.0  ;;  %v2102_v50 = vpop.f32.mrb[0].mxu1 }
 0x1e3   : > { %v2103_v51 = vadd.f32 %v2102_v50, %v13617_v43  ;;  %v2104_v52 = vpop.f32.mrb[1].mxu1  ;;  %v1854_v53 = vpack.c.bf16 %v1782_v47, %v1780_v46 }
 0x1e4   : > { %v2105_v54 = vadd.f32 %v2104_v52, %v13621_v45  ;;  %v1633_v55 = vpop.f32.mrb[112].mxu0  ;;  %v2106_v56 = vpop.f32.mrb[2].mxu1  ;;  %v1855_v57 = vpack.c.bf16 %v1783_v49, %v1781_v48 }
 0x1e5   : > { %v1634_v58 = vadd.f32 %v1633_v55, %v13386_v31  ;;  %v2107_v59 = vadd.f32 %v2106_v56, %v13617_v43  ;;  %v1635_v60 = vpop.f32.mrb[113].mxu0  ;;  %v2108_v61 = vpop.f32.mrb[3].mxu1  ;;  %v2421_v1 = vmax.f32 %v2103_v51, 0.0 }
 0x1e6   : > { %v1636_v62 = vadd.f32 %v1635_v60, %v13390_v32  ;;  %v2109_v63 = vadd.f32 %v2108_v61, %v13621_v45  ;;  %v1637_v0 = vpop.f32.mrb[114].mxu0  ;;  %2370 = vmatprep.mubr.bf16.mxu1 %v1855_v57  ;;  %v2422_v7 = vmax.f32 %v2105_v54, 0.0 }
 0x1e7   : > { %v2423_v2 = vmax.f32 %v2107_v59, 0.0  ;;  %v1638_v4 = vadd.f32 %v1637_v0, %v13386_v31  ;;  %v1639_v5 = vpop.f32.mrb[115].mxu0  ;;  %2371 = vmatmul.mubr.bf16.gmra.mrb[108].mxu1 %v1854_v53  ;;  %v1784_v9 = vmax.f32 %v1634_v58, 0.0 }
 0x1e8   : > { %v1640_v6 = vadd.f32 %v1639_v5, %v13390_v32  ;;  %v2424_v8 = vmax.f32 %v2109_v63, 0.0  ;;  %v1785_v12 = vmax.f32 %v1636_v62, 0.0 }
 0x1e9   : > { %v2549_v10 = vpack.c.bf16 %v2423_v2, %v2421_v1  ;;  %v1786_v11 = vmax.f32 %v1638_v4, 0.0 }
 0x1ea   : > { %v1787_v13 = vmax.f32 %v1640_v6, 0.0  ;;  %v2112_v14 = vpop.f32.mrb[4].mxu1  ;;  %v2550_v15 = vpack.c.bf16 %v2424_v8, %v2422_v7 }
 0x1eb   : > { %v2113_v16 = vadd.f32 %v2112_v14, %v13617_v43  ;;  %v2114_v17 = vpop.f32.mrb[5].mxu1  ;;  %v1856_v18 = vpack.c.bf16 %v1786_v11, %v1784_v9 }
 0x1ec   : > { %v2115_v21 = vadd.f32 %v2114_v17, %v13621_v45  ;;  %v1643_v22 = vpop.f32.mrb[116].mxu0  ;;  %v2116_v23 = vpop.f32.mrb[6].mxu1  ;;  %2849 = vmatprep.mubr.bf16.mxu0 %v2550_v15  ;;  %v1857_v24 = vpack.c.bf16 %v1787_v13, %v1785_v12 }
 0x1ed   : > { %v1644_v25 = vadd.f32 %v1643_v22, %v13386_v31  ;;  %v2117_v27 = vadd.f32 %v2116_v23, %v13617_v43  ;;  %v1645_v29 = vpop.f32.mrb[117].mxu0  ;;  %v2118_v30 = vpop.f32.mrb[7].mxu1  ;;  %2850 = vmatmul.mubr.bf16.vlgmr.msra.gmra.mrb[128].mxu0 %v2549_v10  ;;  %v2425_v38 = vmax.f32 %v2113_v16, 0.0 }
 0x1ee   : > { %v1646_v33 = vadd.f32 %v1645_v29, %v13390_v32  ;;  %v2119_v34 = vadd.f32 %v2118_v30, %v13621_v45  ;;  %v1647_v35 = vpop.f32.mrb[118].mxu0  ;;  %2380 = vmatprep.mubr.bf16.mxu1 %v1857_v24  ;;  %v2426_v41 = vmax.f32 %v2115_v21, 0.0  ;;  %v12310_v21 = vld [vmem:[%s17602_s7 + $0xb4] ss:$8 sps:$4 sm:$0xff]  }
 0x1ef   : > { %v1648_v36 = vadd.f32 %v1647_v35, %v13386_v31  ;;  %v1649_v37 = vpop.f32.mrb[119].mxu0  ;;  %2381 = vmatmul.mubr.bf16.gmra.mrb[112].mxu1 %v1856_v18  ;;  %v2427_v39 = vmax.f32 %v2117_v27, 0.0  ;;  %v1788_v44 = vmax.f32 %v1644_v25, 0.0  ;;  %3588 = vmatprep.subr.bf16.mxu1 %v12310_v21 }
 0x1f0   : > { %v1650_v40 = vadd.f32 %v1649_v37, %v13390_v32  ;;  %v2428_v42 = vmax.f32 %v2119_v34, 0.0  ;;  %v1789_v48 = vmax.f32 %v1646_v33, 0.0  ;;  %3589 = vmatpush1.bf16.msra.mxu1 %v12308_v20 }
 0x1f1   : > { %v1790_v46 = vmax.f32 %v1648_v36, 0.0  ;;  %v2551_v47 = vpack.c.bf16 %v2427_v39, %v2425_v38 }
 0x1f2   : > { %v1791_v49 = vmax.f32 %v1650_v40, 0.0  ;;  %v2122_v50 = vpop.f32.mrb[8].mxu1  ;;  %v2552_v51 = vpack.c.bf16 %v2428_v42, %v2426_v41 }
 0x1f3   : > { %v2123_v52 = vadd.f32 %v2122_v50, %v13617_v43  ;;  %v2124_v53 = vpop.f32.mrb[9].mxu1  ;;  %v1858_v54 = vpack.c.bf16 %v1790_v46, %v1788_v44 }
 0x1f4   : > { %v2125_v55 = vadd.f32 %v2124_v53, %v13621_v45  ;;  %v1653_v56 = vpop.f32.mrb[120].mxu0  ;;  %v2126_v57 = vpop.f32.mrb[10].mxu1  ;;  %2859 = vmatprep.mubr.bf16.mxu0 %v2552_v51  ;;  %v1859_v58 = vpack.c.bf16 %v1791_v49, %v1789_v48 }
 0x1f5   : > { %v1654_v59 = vadd.f32 %v1653_v56, %v13386_v31  ;;  %v2127_v60 = vadd.f32 %v2126_v57, %v13617_v43  ;;  %v1655_v61 = vpop.f32.mrb[121].mxu0  ;;  %v2128_v62 = vpop.f32.mrb[11].mxu1  ;;  %2860 = vmatmul.mubr.bf16.gmra.mrb[132].mxu0 %v2551_v47  ;;  %v2429_v5 = vmax.f32 %v2123_v52, 0.0 }
 0x1f6   : > { %v1656_v63 = vadd.f32 %v1655_v61, %v13390_v32  ;;  %v2129_v0 = vadd.f32 %v2128_v62, %v13621_v45  ;;  %v1657_v1 = vpop.f32.mrb[122].mxu0  ;;  %2390 = vmatprep.mubr.bf16.mxu1 %v1859_v58  ;;  %v2430_v8 = vmax.f32 %v2125_v55, 0.0 }
 0x1f7   : > { %v1658_v2 = vadd.f32 %v1657_v1, %v13386_v31  ;;  %v1659_v4 = vpop.f32.mrb[123].mxu0  ;;  %2391 = vmatmul.mubr.bf16.gmra.mrb[116].mxu1 %v1858_v54  ;;  %v2431_v6 = vmax.f32 %v2127_v60, 0.0  ;;  %v1792_v10 = vmax.f32 %v1654_v59, 0.0 }
 0x1f8   : > { %v1660_v7 = vadd.f32 %v1659_v4, %v13390_v32  ;;  %v2432_v9 = vmax.f32 %v2129_v0, 0.0  ;;  %v1793_v13 = vmax.f32 %v1656_v63, 0.0 }
 0x1f9   : > { %v1794_v11 = vmax.f32 %v1658_v2, 0.0  ;;  %v2553_v12 = vpack.c.bf16 %v2431_v6, %v2429_v5  ;;  %v12311_v6 = vld [vmem:[%s17602_s7 + $0xc0] ss:$8 sps:$4 sm:$0xff]  }
 0x1fa   : > { %v1795_v14 = vmax.f32 %v1660_v7, 0.0  ;;  %v2132_v15 = vpop.f32.mrb[12].mxu1  ;;  %v2554_v16 = vpack.c.bf16 %v2432_v9, %v2430_v8  ;;  %v12313_v7 = vld [vmem:[%s17602_s7 + $0xc4] ss:$8 sps:$4 sm:$0xff]  }
 0x1fb   : > { %v2133_v17 = vadd.f32 %v2132_v15, %v13617_v43  ;;  %v2134_v18 = vpop.f32.mrb[13].mxu1  ;;  %v1860_v19 = vpack.c.bf16 %v1794_v11, %v1792_v10  ;;  %3590 = vmatprep.subr.bf16.mxu1 %v12313_v7  ;;  %v12317_v7 = vld [vmem:[%s17602_s7 + $0xe0] ss:$8 sps:$4 sm:$0xff]  }
 0x1fc   : > { %v2135_v22 = vadd.f32 %v2134_v18, %v13621_v45  ;;  %v1663_v23 = vpop.f32.mrb[124].mxu0  ;;  %v2136_v24 = vpop.f32.mrb[14].mxu1  ;;  %2869 = vmatprep.mubr.bf16.mxu0 %v2554_v16  ;;  %v1861_v25 = vpack.c.bf16 %v1795_v14, %v1793_v13  ;;  %3591 = vmatpush1.bf16.msra.mxu1 %v12311_v6 }
 0x1fd   : > { %v1664_v27 = vadd.f32 %v1663_v23, %v13386_v31  ;;  %v2137_v29 = vadd.f32 %v2136_v24, %v13617_v43  ;;  %v1665_v30 = vpop.f32.mrb[125].mxu0  ;;  %v2138_v33 = vpop.f32.mrb[15].mxu1  ;;  %2870 = vmatmul.mubr.bf16.gmra.mrb[136].mxu0 %v2553_v12  ;;  %v2433_v39 = vmax.f32 %v2133_v17, 0.0 }
 0x1fe   : > { %v1666_v34 = vadd.f32 %v1665_v30, %v13390_v32  ;;  %v2139_v35 = vadd.f32 %v2138_v33, %v13621_v45  ;;  %v1667_v36 = vpop.f32.mrb[126].mxu0  ;;  %2400 = vmatprep.mubr.bf16.mxu1 %v1861_v25  ;;  %v2434_v42 = vmax.f32 %v2135_v22, 0.0 }
 0x1ff   : > { %v1668_v37 = vadd.f32 %v1667_v36, %v13386_v31  ;;  %v1669_v38 = vpop.f32.mrb[127].mxu0  ;;  %2401 = vmatmul.mubr.bf16.gmra.mrb[120].mxu1 %v1860_v19  ;;  %v2435_v40 = vmax.f32 %v2137_v29, 0.0  ;;  %v1796_v46 = vmax.f32 %v1664_v27, 0.0 }
 0x200   : > { %v1670_v41 = vadd.f32 %v1669_v38, %v13390_v32  ;;  %v2436_v44 = vmax.f32 %v2139_v35, 0.0  ;;  %v1797_v49 = vmax.f32 %v1666_v34, 0.0 }
 0x201   : > { %v1798_v47 = vmax.f32 %v1668_v37, 0.0  ;;  %v2555_v48 = vpack.c.bf16 %v2435_v40, %v2433_v39  ;;  %v12314_v40 = vld [vmem:[%s17602_s7 + $0xd0] ss:$8 sps:$4 sm:$0xff]  }
 0x202   : > { %v1799_v50 = vmax.f32 %v1670_v41, 0.0  ;;  %v2142_v51 = vpop.f32.mrb[16].mxu1  ;;  %v2556_v52 = vpack.c.bf16 %v2436_v44, %v2434_v42  ;;  %v12316_v41 = vld [vmem:[%s17602_s7 + $0xd4] ss:$8 sps:$4 sm:$0xff]  }
 0x203   : > { %v2143_v53 = vadd.f32 %v2142_v51, %v13617_v43  ;;  %v2144_v54 = vpop.f32.mrb[17].mxu1  ;;  %v1862_v55 = vpack.c.bf16 %v1798_v47, %v1796_v46  ;;  %3592 = vmatprep.subr.bf16.mxu1 %v12316_v41  ;;  %v12320_v41 = vld [vmem:[%s17602_s7 + $0xf0] ss:$8 sps:$4 sm:$0xff]  }
 0x204   : > { %v2145_v31 = vadd.f32 %v2144_v54, %v13621_v45  ;;  %v2146_v56 = vpop.f32.mrb[18].mxu1  ;;  %2879 = vmatprep.mubr.bf16.mxu0 %v2556_v52  ;;  %v1863_v57 = vpack.c.bf16 %v1799_v50, %v1797_v49  ;;  %3593 = vmatpush1.bf16.msra.mxu1 %v12314_v40 }
 0x205   : > { %v2147_v32 = vadd.f32 %v2146_v56, %v13617_v43  ;;  %v2148_v58 = vpop.f32.mrb[19].mxu1  ;;  %2880 = vmatmul.mubr.bf16.gmra.mrb[140].mxu0 %v2555_v48  ;;  %v2437_v60 = vmax.f32 %v2143_v53, 0.0 }
 0x206   : > { %v2149_v59 = vadd.f32 %v2148_v58, %v13621_v45  ;;  %2410 = vmatprep.mubr.bf16.mxu1 %v1863_v57  ;;  %v2438_v62 = vmax.f32 %v2145_v31, 0.0 }
 0x207   : > { %2411 = vmatmul.mubr.bf16.gmra.mrb[124].mxu1 %v1862_v55  ;;  %v2439_v61 = vmax.f32 %v2147_v32, 0.0 }
 0x208   : > { %v2440_v63 = vmax.f32 %v2149_v59, 0.0 }
 0x209   : > { %v2557_v0 = vpack.c.bf16 %v2439_v61, %v2437_v60 }
 0x20a   : > { %v2152_v1 = vpop.f32.mrb[20].mxu1  ;;  %v2558_v2 = vpack.c.bf16 %v2440_v63, %v2438_v62 }
 0x20b   : > { %v2153_v4 = vadd.f32 %v2152_v1, %v13617_v43  ;;  %v2154_v5 = vpop.f32.mrb[21].mxu1 }
 0x20c   : > { %v2155_v8 = vadd.f32 %v2154_v5, %v13621_v45  ;;  %v2156_v9 = vpop.f32.mrb[22].mxu1  ;;  %2889 = vmatprep.mubr.bf16.mxu0 %v2558_v2 }
 0x20d   : > { %v2157_v10 = vadd.f32 %v2156_v9, %v13617_v43  ;;  %v2158_v11 = vpop.f32.mrb[23].mxu1  ;;  %2890 = vmatmul.mubr.bf16.gmra.mrb[144].mxu0 %v2557_v0  ;;  %v2441_v13 = vmax.f32 %v2153_v4, 0.0 }
 0x20e   : > { %v2159_v12 = vadd.f32 %v2158_v11, %v13621_v45  ;;  %v2442_v15 = vmax.f32 %v2155_v8, 0.0  ;;  %v12319_v8 = vld [vmem:[%s17602_s7 + $0xe4] ss:$8 sps:$4 sm:$0xff]  }
 0x20f   : > { %v2443_v14 = vmax.f32 %v2157_v10, 0.0  ;;  %3594 = vmatprep.subr.bf16.mxu1 %v12319_v8 }
 0x210   : > { %v2444_v16 = vmax.f32 %v2159_v12, 0.0  ;;  %3595 = vmatpush1.bf16.msra.mxu1 %v12317_v7 }
 0x211   : > { %v2559_v17 = vpack.c.bf16 %v2443_v14, %v2441_v13 }
 0x212   : > { %v2162_v18 = vpop.f32.mrb[24].mxu1  ;;  %v2560_v19 = vpack.c.bf16 %v2444_v16, %v2442_v15 }
 0x213   : > { %v2163_v20 = vadd.f32 %v2162_v18, %v13617_v43  ;;  %v2164_v21 = vpop.f32.mrb[25].mxu1 }
 0x214   : > { %v2165_v22 = vadd.f32 %v2164_v21, %v13621_v45  ;;  %v2166_v23 = vpop.f32.mrb[26].mxu1  ;;  %2899 = vmatprep.mubr.bf16.mxu0 %v2560_v19 }
 0x215   : > { %v2167_v24 = vadd.f32 %v2166_v23, %v13617_v43  ;;  %v2168_v25 = vpop.f32.mrb[27].mxu1  ;;  %2900 = vmatmul.mubr.bf16.gmra.mrb[148].mxu0 %v2559_v17  ;;  %v2445_v29 = vmax.f32 %v2163_v20, 0.0 }
 0x216   : > { %v2169_v27 = vadd.f32 %v2168_v25, %v13621_v45  ;;  %v2446_v33 = vmax.f32 %v2165_v22, 0.0 }
 0x217   : > { %v2447_v30 = vmax.f32 %v2167_v24, 0.0 }
 0x218   : > { %v2448_v34 = vmax.f32 %v2169_v27, 0.0 }
 0x219   : > { %v2561_v35 = vpack.c.bf16 %v2447_v30, %v2445_v29 }
 0x21a   : > { %v2172_v36 = vpop.f32.mrb[28].mxu1  ;;  %v2562_v37 = vpack.c.bf16 %v2448_v34, %v2446_v33 }
 0x21b   : > { %v2173_v38 = vadd.f32 %v2172_v36, %v13617_v43  ;;  %v2174_v39 = vpop.f32.mrb[29].mxu1 }
 0x21c   : > { %v2175_v42 = vadd.f32 %v2174_v39, %v13621_v45  ;;  %v2176_v44 = vpop.f32.mrb[30].mxu1  ;;  %2909 = vmatprep.mubr.bf16.mxu0 %v2562_v37 }
 0x21d   : > { %v2177_v46 = vadd.f32 %v2176_v44, %v13617_v43  ;;  %v2178_v47 = vpop.f32.mrb[31].mxu1  ;;  %2910 = vmatmul.mubr.bf16.gmra.mrb[152].mxu0 %v2561_v35  ;;  %v2449_v49 = vmax.f32 %v2173_v38, 0.0 }
 0x21e   : > { %v2179_v48 = vadd.f32 %v2178_v47, %v13621_v45  ;;  %v2450_v51 = vmax.f32 %v2175_v42, 0.0  ;;  %v12322_v42 = vld [vmem:[%s17602_s7 + $0xf4] ss:$8 sps:$4 sm:$0xff]  }
 0x21f   : > { %v2451_v50 = vmax.f32 %v2177_v46, 0.0  ;;  %3596 = vmatprep.subr.bf16.mxu1 %v12322_v42 }
 0x220   : > { %v2452_v52 = vmax.f32 %v2179_v48, 0.0  ;;  %3597 = vmatpush1.bf16.msra.mxu1 %v12320_v41 }
 0x221   : > { %v2563_v53 = vpack.c.bf16 %v2451_v50, %v2449_v49 }
 0x222   : > { %v2182_v54 = vpop.f32.mrb[32].mxu1  ;;  %v2564_v55 = vpack.c.bf16 %v2452_v52, %v2450_v51 }
 0x223   : > { %v2183_v31 = vadd.f32 %v2182_v54, %v13617_v43  ;;  %v2184_v56 = vpop.f32.mrb[33].mxu1 }
 0x224   : > { %v2185_v57 = vadd.f32 %v2184_v56, %v13621_v45  ;;  %v2186_v32 = vpop.f32.mrb[34].mxu1  ;;  %2919 = vmatprep.mubr.bf16.mxu0 %v2564_v55 }
 0x225   : > { %v2187_v58 = vadd.f32 %v2186_v32, %v13617_v43  ;;  %v2188_v59 = vpop.f32.mrb[35].mxu1  ;;  %2920 = vmatmul.mubr.bf16.gmra.mrb[156].mxu0 %v2563_v53  ;;  %v2453_v61 = vmax.f32 %v2183_v31, 0.0 }
 0x226   : > { %v2189_v60 = vadd.f32 %v2188_v59, %v13621_v45  ;;  %v2454_v63 = vmax.f32 %v2185_v57, 0.0 }
 0x227   : > { %v2455_v62 = vmax.f32 %v2187_v58, 0.0 }
 0x228   : > { %v2456_v0 = vmax.f32 %v2189_v60, 0.0 }
 0x229   : > { %v2565_v1 = vpack.c.bf16 %v2455_v62, %v2453_v61 }
 0x22a   : > { %v2192_v2 = vpop.f32.mrb[36].mxu1  ;;  %v2566_v4 = vpack.c.bf16 %v2456_v0, %v2454_v63 }
 0x22b   : > { %v2193_v5 = vadd.f32 %v2192_v2, %v13617_v43  ;;  %v2194_v6 = vpop.f32.mrb[37].mxu1 }
 0x22c   : > { %v2195_v9 = vadd.f32 %v2194_v6, %v13621_v45  ;;  %v2196_v10 = vpop.f32.mrb[38].mxu1  ;;  %2929 = vmatprep.mubr.bf16.mxu0 %v2566_v4 }
 0x22d   : > { %v2197_v11 = vadd.f32 %v2196_v10, %v13617_v43  ;;  %v2198_v12 = vpop.f32.mrb[39].mxu1  ;;  %2930 = vmatmul.mubr.bf16.gmra.mrb[160].mxu0 %v2565_v1  ;;  %v2457_v14 = vmax.f32 %v2193_v5, 0.0 }
 0x22e   : > { %v2199_v13 = vadd.f32 %v2198_v12, %v13621_v45  ;;  %v2458_v16 = vmax.f32 %v2195_v9, 0.0  ;;  %v12325_v12 = vld [vmem:[%s17514_s13 + $0x4] ss:$8 sps:$4 sm:$0xff]  }
 0x22f   : > { %v2459_v15 = vmax.f32 %v2197_v11, 0.0  ;;  %4940 = vmatprep.subr.bf16.mxu1 %v12325_v12  ;;  %v12328_v12 = vld [vmem:[%s17604_s29 + $0x4] ss:$8 sps:$4 sm:$0xff]  }
 0x230   : > { %v2460_v17 = vmax.f32 %v2199_v13, 0.0  ;;  %4315 = vmatprep.subr.bf16.mxu0 %v12328_v12  ;;  %v12335_v12 = vld [vmem:[%s17604_s29 + $0x20] ss:$8 sps:$4 sm:$0xff]  }
 0x231   : > { %v2567_v18 = vpack.c.bf16 %v2459_v15, %v2457_v14 }
 0x232   : > { %v2202_v19 = vpop.f32.mrb[40].mxu1  ;;  %v2568_v20 = vpack.c.bf16 %v2460_v17, %v2458_v16 }
 0x233   : > { %v2203_v21 = vadd.f32 %v2202_v19, %v13617_v43  ;;  %v2204_v22 = vpop.f32.mrb[41].mxu1 }
 0x234   : > { %v2205_v23 = vadd.f32 %v2204_v22, %v13621_v45  ;;  %v2206_v24 = vpop.f32.mrb[42].mxu1  ;;  %2939 = vmatprep.mubr.bf16.mxu0 %v2568_v20 }
 0x235   : > { %v2207_v25 = vadd.f32 %v2206_v24, %v13617_v43  ;;  %v2208_v27 = vpop.f32.mrb[43].mxu1  ;;  %2940 = vmatmul.mubr.bf16.gmra.mrb[164].mxu0 %v2567_v18  ;;  %v2461_v30 = vmax.f32 %v2203_v21, 0.0 }
 0x236   : > { %v2209_v29 = vadd.f32 %v2208_v27, %v13621_v45  ;;  %v2462_v34 = vmax.f32 %v2205_v23, 0.0 }
 0x237   : > { %v2463_v33 = vmax.f32 %v2207_v25, 0.0 }
 0x238   : > { %v2464_v35 = vmax.f32 %v2209_v29, 0.0 }
 0x239   : > { %v2569_v36 = vpack.c.bf16 %v2463_v33, %v2461_v30 }
 0x23a   : > { %v2212_v37 = vpop.f32.mrb[44].mxu1  ;;  %v2570_v38 = vpack.c.bf16 %v2464_v35, %v2462_v34 }
 0x23b   : > { %v2213_v39 = vadd.f32 %v2212_v37, %v13617_v43  ;;  %v2214_v40 = vpop.f32.mrb[45].mxu1 }
 0x23c   : > { %v2215_v44 = vadd.f32 %v2214_v40, %v13621_v45  ;;  %v2216_v46 = vpop.f32.mrb[46].mxu1  ;;  %2949 = vmatprep.mubr.bf16.mxu0 %v2570_v38 }
 0x23d   : > { %v2217_v47 = vadd.f32 %v2216_v46, %v13617_v43  ;;  %v2218_v48 = vpop.f32.mrb[47].mxu1  ;;  %2950 = vmatmul.mubr.bf16.gmra.mrb[168].mxu0 %v2569_v36  ;;  %v2465_v50 = vmax.f32 %v2213_v39, 0.0 }
 0x23e   : > { %v2219_v49 = vadd.f32 %v2218_v48, %v13621_v45  ;;  %v2466_v52 = vmax.f32 %v2215_v44, 0.0 }
 0x23f   : > { %v2467_v51 = vmax.f32 %v2217_v47, 0.0 }
 0x240   : > { %v2468_v53 = vmax.f32 %v2219_v49, 0.0 }
 0x241   : > { %v2571_v54 = vpack.c.bf16 %v2467_v51, %v2465_v50 }
 0x242   : > { %v2222_v55 = vpop.f32.mrb[48].mxu1  ;;  %v2572_v31 = vpack.c.bf16 %v2468_v53, %v2466_v52 }
 0x243   : > { %v2223_v56 = vadd.f32 %v2222_v55, %v13617_v43  ;;  %v2224_v57 = vpop.f32.mrb[49].mxu1 }
 0x244   : > { %v2225_v32 = vadd.f32 %v2224_v57, %v13621_v45  ;;  %v2226_v58 = vpop.f32.mrb[50].mxu1  ;;  %2959 = vmatprep.mubr.bf16.mxu0 %v2572_v31 }
 0x245   : > { %v2227_v59 = vadd.f32 %v2226_v58, %v13617_v43  ;;  %v2228_v60 = vpop.f32.mrb[51].mxu1  ;;  %2960 = vmatmul.mubr.bf16.gmra.mrb[172].mxu0 %v2571_v54  ;;  %v2469_v62 = vmax.f32 %v2223_v56, 0.0 }
 0x246   : > { %v2229_v61 = vadd.f32 %v2228_v60, %v13621_v45  ;;  %v2470_v0 = vmax.f32 %v2225_v32, 0.0 }
 0x247   : > { %v2471_v63 = vmax.f32 %v2227_v59, 0.0 }
 0x248   : > { %v2472_v1 = vmax.f32 %v2229_v61, 0.0 }
 0x249   : > { %v2573_v2 = vpack.c.bf16 %v2471_v63, %v2469_v62 }
 0x24a   : > { %v2232_v4 = vpop.f32.mrb[52].mxu1  ;;  %v2574_v5 = vpack.c.bf16 %v2472_v1, %v2470_v0 }
 0x24b   : > { %v2233_v6 = vadd.f32 %v2232_v4, %v13617_v43  ;;  %v2234_v7 = vpop.f32.mrb[53].mxu1 }
 0x24c   : > { %v2235_v8 = vadd.f32 %v2234_v7, %v13621_v45  ;;  %v2236_v9 = vpop.f32.mrb[54].mxu1  ;;  %2969 = vmatprep.mubr.bf16.mxu0 %v2574_v5 }
 0x24d   : > { %v2237_v10 = vadd.f32 %v2236_v9, %v13617_v43  ;;  %v2238_v11 = vpop.f32.mrb[55].mxu1  ;;  %2970 = vmatmul.mubr.bf16.gmra.mrb[176].mxu0 %v2573_v2  ;;  %v2473_v14 = vmax.f32 %v2233_v6, 0.0 }
 0x24e   : > { %v2239_v13 = vadd.f32 %v2238_v11, %v13621_v45  ;;  %v2474_v16 = vmax.f32 %v2235_v8, 0.0  ;;  %v12326_v11 = vld [vmem:[%s17604_s29] ss:$8 sps:$4 sm:$0xff]  }
 0x24f   : > { %v2475_v15 = vmax.f32 %v2237_v10, 0.0  ;;  %4316 = vmatpush1.bf16.msra.mxu0 %v12326_v11 }
 0x250   : > { %v2476_v17 = vmax.f32 %v2239_v13, 0.0 }
 0x251   : > { %v2575_v18 = vpack.c.bf16 %v2475_v15, %v2473_v14 }
 0x252   : > { %v2242_v19 = vpop.f32.mrb[56].mxu1  ;;  %v2576_v20 = vpack.c.bf16 %v2476_v17, %v2474_v16 }
 0x253   : > { %v2243_v21 = vadd.f32 %v2242_v19, %v13617_v43  ;;  %v2244_v22 = vpop.f32.mrb[57].mxu1 }
 0x254   : > { %v2245_v23 = vadd.f32 %v2244_v22, %v13621_v45  ;;  %v2246_v24 = vpop.f32.mrb[58].mxu1  ;;  %2979 = vmatprep.mubr.bf16.mxu0 %v2576_v20 }
 0x255   : > { %v2247_v25 = vadd.f32 %v2246_v24, %v13617_v43  ;;  %v2248_v27 = vpop.f32.mrb[59].mxu1  ;;  %2980 = vmatmul.mubr.bf16.gmra.mrb[180].mxu0 %v2575_v18  ;;  %v2477_v30 = vmax.f32 %v2243_v21, 0.0 }
 0x256   : > { %v2249_v29 = vadd.f32 %v2248_v27, %v13621_v45  ;;  %v2478_v34 = vmax.f32 %v2245_v23, 0.0 }
 0x257   : > { %v2479_v33 = vmax.f32 %v2247_v25, 0.0 }
 0x258   : > { %v2480_v35 = vmax.f32 %v2249_v29, 0.0 }
 0x259   : > { %v2577_v36 = vpack.c.bf16 %v2479_v33, %v2477_v30 }
 0x25a   : > { %v2252_v37 = vpop.f32.mrb[60].mxu1  ;;  %v2578_v38 = vpack.c.bf16 %v2480_v35, %v2478_v34 }
 0x25b   : > { %v2253_v39 = vadd.f32 %v2252_v37, %v13617_v43  ;;  %v2254_v40 = vpop.f32.mrb[61].mxu1 }
 0x25c   : > { %v2255_v41 = vadd.f32 %v2254_v40, %v13621_v45  ;;  %v2256_v42 = vpop.f32.mrb[62].mxu1  ;;  %2989 = vmatprep.mubr.bf16.mxu0 %v2578_v38 }
 0x25d   : > { %v2257_v44 = vadd.f32 %v2256_v42, %v13617_v43  ;;  %v2258_v46 = vpop.f32.mrb[63].mxu1  ;;  %2990 = vmatmul.mubr.bf16.gmra.mrb[184].mxu0 %v2577_v36  ;;  %v2481_v48 = vmax.f32 %v2253_v39, 0.0 }
 0x25e   : > { %v2259_v47 = vadd.f32 %v2258_v46, %v13621_v45  ;;  %v2482_v50 = vmax.f32 %v2255_v41, 0.0 }
 0x25f   : > { %v2483_v49 = vmax.f32 %v2257_v44, 0.0 }
 0x260   : > { %v2484_v51 = vmax.f32 %v2259_v47, 0.0  ;;  %v12329_v47 = vld [vmem:[%s17604_s29 + $0x10] ss:$8 sps:$4 sm:$0xff]  }
 0x261   : > { %v2579_v52 = vpack.c.bf16 %v2483_v49, %v2481_v48  ;;  %v12331_v48 = vld [vmem:[%s17604_s29 + $0x14] ss:$8 sps:$4 sm:$0xff]  }
 0x262   : > { %v2262_v53 = vpop.f32.mrb[64].mxu1  ;;  %v2580_v54 = vpack.c.bf16 %v2484_v51, %v2482_v50  ;;  %4317 = vmatprep.subr.bf16.mxu0 %v12331_v48  ;;  %v12338_v48 = vld [vmem:[%s17604_s29 + $0x30] ss:$8 sps:$4 sm:$0xff]  }
 0x263   : > { %v2263_v55 = vadd.f32 %v2262_v53, %v13617_v43  ;;  %v2264_v31 = vpop.f32.mrb[65].mxu1  ;;  %4318 = vmatpush1.bf16.msra.mxu0 %v12329_v47 }
 0x264   : > { %v2265_v56 = vadd.f32 %v2264_v31, %v13621_v45  ;;  %v2266_v57 = vpop.f32.mrb[66].mxu1  ;;  %2999 = vmatprep.mubr.bf16.mxu0 %v2580_v54 }
 0x265   : > { %v2267_v32 = vadd.f32 %v2266_v57, %v13617_v43  ;;  %v2268_v58 = vpop.f32.mrb[67].mxu1  ;;  %3000 = vmatmul.mubr.bf16.gmra.mrb[188].mxu0 %v2579_v52  ;;  %v2485_v60 = vmax.f32 %v2263_v55, 0.0 }
 0x266   : > { %v2269_v59 = vadd.f32 %v2268_v58, %v13621_v45  ;;  %v2486_v62 = vmax.f32 %v2265_v56, 0.0 }
 0x267   : > { %v2487_v61 = vmax.f32 %v2267_v32, 0.0 }
 0x268   : > { %v2488_v63 = vmax.f32 %v2269_v59, 0.0 }
 0x269   : > { %v2581_v0 = vpack.c.bf16 %v2487_v61, %v2485_v60 }
 0x26a   : > { %v2272_v1 = vpop.f32.mrb[68].mxu1  ;;  %v2582_v2 = vpack.c.bf16 %v2488_v63, %v2486_v62 }
 0x26b   : > { %v2273_v4 = vadd.f32 %v2272_v1, %v13617_v43  ;;  %v2274_v5 = vpop.f32.mrb[69].mxu1 }
 0x26c   : > { %v2275_v6 = vadd.f32 %v2274_v5, %v13621_v45  ;;  %v2276_v7 = vpop.f32.mrb[70].mxu1  ;;  %3009 = vmatprep.mubr.bf16.mxu0 %v2582_v2 }
 0x26d   : > { %v2277_v8 = vadd.f32 %v2276_v7, %v13617_v43  ;;  %v2278_v9 = vpop.f32.mrb[71].mxu1  ;;  %3010 = vmatmul.mubr.bf16.gmra.mrb[192].mxu0 %v2581_v0  ;;  %v2489_v13 = vmax.f32 %v2273_v4, 0.0 }
 0x26e   : > { %v2279_v10 = vadd.f32 %v2278_v9, %v13621_v45  ;;  %v2490_v15 = vmax.f32 %v2275_v6, 0.0 }
 0x26f   : > { %v2491_v14 = vmax.f32 %v2277_v8, 0.0 }
 0x270   : > { %v2492_v16 = vmax.f32 %v2279_v10, 0.0 }
 0x271   : > { %v2583_v17 = vpack.c.bf16 %v2491_v14, %v2489_v13  ;;  %v12337_v13 = vld [vmem:[%s17604_s29 + $0x24] ss:$8 sps:$4 sm:$0xff]  }
 0x272   : > { %v2282_v18 = vpop.f32.mrb[72].mxu1  ;;  %v2584_v19 = vpack.c.bf16 %v2492_v16, %v2490_v15  ;;  %4319 = vmatprep.subr.bf16.mxu0 %v12337_v13  ;;  %v12341_v13 = vld [vmem:[%s17604_s29 + $0x40] ss:$8 sps:$4 sm:$0xff]  }
 0x273   : > { %v2283_v20 = vadd.f32 %v2282_v18, %v13617_v43  ;;  %v2284_v21 = vpop.f32.mrb[73].mxu1  ;;  %4320 = vmatpush1.bf16.msra.mxu0 %v12335_v12 }
 0x274   : > { %v2285_v22 = vadd.f32 %v2284_v21, %v13621_v45  ;;  %v2286_v23 = vpop.f32.mrb[74].mxu1  ;;  %3019 = vmatprep.mubr.bf16.mxu0 %v2584_v19 }
 0x275   : > { %v2287_v24 = vadd.f32 %v2286_v23, %v13617_v43  ;;  %v2288_v25 = vpop.f32.mrb[75].mxu1  ;;  %3020 = vmatmul.mubr.bf16.gmra.mrb[196].mxu0 %v2583_v17  ;;  %v2493_v29 = vmax.f32 %v2283_v20, 0.0 }
 0x276   : > { %v2289_v27 = vadd.f32 %v2288_v25, %v13621_v45  ;;  %v2494_v33 = vmax.f32 %v2285_v22, 0.0 }
 0x277   : > { %v2495_v30 = vmax.f32 %v2287_v24, 0.0 }
 0x278   : > { %v2496_v34 = vmax.f32 %v2289_v27, 0.0 }
 0x279   : > { %v2585_v35 = vpack.c.bf16 %v2495_v30, %v2493_v29 }
 0x27a   : > { %v2292_v36 = vpop.f32.mrb[76].mxu1  ;;  %v2586_v37 = vpack.c.bf16 %v2496_v34, %v2494_v33 }
 0x27b   : > { %v2293_v38 = vadd.f32 %v2292_v36, %v13617_v43  ;;  %v2294_v39 = vpop.f32.mrb[77].mxu1 }
 0x27c   : > { %v2295_v40 = vadd.f32 %v2294_v39, %v13621_v45  ;;  %v2296_v41 = vpop.f32.mrb[78].mxu1  ;;  %3029 = vmatprep.mubr.bf16.mxu0 %v2586_v37 }
 0x27d   : > { %v2297_v42 = vadd.f32 %v2296_v41, %v13617_v43  ;;  %v2298_v44 = vpop.f32.mrb[79].mxu1  ;;  %3030 = vmatmul.mubr.bf16.gmra.mrb[200].mxu0 %v2585_v35  ;;  %v2497_v49 = vmax.f32 %v2293_v38, 0.0 }
 0x27e   : > { %v2299_v46 = vadd.f32 %v2298_v44, %v13621_v45  ;;  %v2498_v51 = vmax.f32 %v2295_v40, 0.0 }
 0x27f   : > { %v2499_v50 = vmax.f32 %v2297_v42, 0.0 }
 0x280   : > { %v2500_v52 = vmax.f32 %v2299_v46, 0.0 }
 0x281   : > { %v2587_v53 = vpack.c.bf16 %v2499_v50, %v2497_v49  ;;  %v12340_v49 = vld [vmem:[%s17604_s29 + $0x34] ss:$8 sps:$4 sm:$0xff]  }
 0x282   : > { %v2302_v54 = vpop.f32.mrb[80].mxu1  ;;  %v2588_v55 = vpack.c.bf16 %v2500_v52, %v2498_v51  ;;  %4321 = vmatprep.subr.bf16.mxu0 %v12340_v49 }
 0x283   : > { %v2303_v31 = vadd.f32 %v2302_v54, %v13617_v43  ;;  %v2304_v56 = vpop.f32.mrb[81].mxu1  ;;  %4322 = vmatpush1.bf16.msra.mxu0 %v12338_v48 }
 0x284   : > { %v2305_v57 = vadd.f32 %v2304_v56, %v13621_v45  ;;  %v2306_v32 = vpop.f32.mrb[82].mxu1  ;;  %3039 = vmatprep.mubr.bf16.mxu0 %v2588_v55 }
 0x285   : > { %v2307_v58 = vadd.f32 %v2306_v32, %v13617_v43  ;;  %v2308_v59 = vpop.f32.mrb[83].mxu1  ;;  %3040 = vmatmul.mubr.bf16.gmra.mrb[204].mxu0 %v2587_v53  ;;  %v2501_v61 = vmax.f32 %v2303_v31, 0.0 }
 0x286   : > { %v2309_v60 = vadd.f32 %v2308_v59, %v13621_v45  ;;  %v2502_v63 = vmax.f32 %v2305_v57, 0.0 }
 0x287   : > { %v2503_v62 = vmax.f32 %v2307_v58, 0.0 }
 0x288   : > { %v2504_v0 = vmax.f32 %v2309_v60, 0.0 }
 0x289   : > { %v2589_v1 = vpack.c.bf16 %v2503_v62, %v2501_v61 }
 0x28a   : > { %v2312_v2 = vpop.f32.mrb[84].mxu1  ;;  %v2590_v4 = vpack.c.bf16 %v2504_v0, %v2502_v63 }
 0x28b   : > { %v2313_v5 = vadd.f32 %v2312_v2, %v13617_v43  ;;  %v2314_v6 = vpop.f32.mrb[85].mxu1 }
 0x28c   : > { %v2315_v7 = vadd.f32 %v2314_v6, %v13621_v45  ;;  %v2316_v8 = vpop.f32.mrb[86].mxu1  ;;  %3049 = vmatprep.mubr.bf16.mxu0 %v2590_v4 }
 0x28d   : > { %v2317_v9 = vadd.f32 %v2316_v8, %v13617_v43  ;;  %v2318_v10 = vpop.f32.mrb[87].mxu1  ;;  %3050 = vmatmul.mubr.bf16.gmra.mrb[208].mxu0 %v2589_v1  ;;  %v2505_v14 = vmax.f32 %v2313_v5, 0.0 }
 0x28e   : > { %v2319_v11 = vadd.f32 %v2318_v10, %v13621_v45  ;;  %v2506_v16 = vmax.f32 %v2315_v7, 0.0 }
 0x28f   : > { %v2507_v15 = vmax.f32 %v2317_v9, 0.0 }
 0x290   : > { %v2508_v17 = vmax.f32 %v2319_v11, 0.0 }
 0x291   : > { %v2591_v18 = vpack.c.bf16 %v2507_v15, %v2505_v14  ;;  %v12343_v14 = vld [vmem:[%s17604_s29 + $0x44] ss:$8 sps:$4 sm:$0xff]  }
 0x292   : > { %v2322_v19 = vpop.f32.mrb[88].mxu1  ;;  %v2592_v20 = vpack.c.bf16 %v2508_v17, %v2506_v16  ;;  %4323 = vmatprep.subr.bf16.mxu0 %v12343_v14 }
 0x293   : > { %v2323_v21 = vadd.f32 %v2322_v19, %v13617_v43  ;;  %v2324_v22 = vpop.f32.mrb[89].mxu1  ;;  %4324 = vmatpush1.bf16.msra.mxu0 %v12341_v13 }
 0x294   : > { %v2325_v23 = vadd.f32 %v2324_v22, %v13621_v45  ;;  %v2326_v24 = vpop.f32.mrb[90].mxu1  ;;  %3059 = vmatprep.mubr.bf16.mxu0 %v2592_v20 }
 0x295   : > { %v2327_v25 = vadd.f32 %v2326_v24, %v13617_v43  ;;  %v2328_v27 = vpop.f32.mrb[91].mxu1  ;;  %3060 = vmatmul.mubr.bf16.gmra.mrb[212].mxu0 %v2591_v18  ;;  %v2509_v30 = vmax.f32 %v2323_v21, 0.0 }
 0x296   : > { %v2329_v29 = vadd.f32 %v2328_v27, %v13621_v45  ;;  %v2510_v34 = vmax.f32 %v2325_v23, 0.0 }
 0x297   : > { %v2511_v33 = vmax.f32 %v2327_v25, 0.0 }
 0x298   : > { %v2512_v35 = vmax.f32 %v2329_v29, 0.0 }
 0x299   : > { %v2593_v36 = vpack.c.bf16 %v2511_v33, %v2509_v30 }
 0x29a   : > { %v2332_v37 = vpop.f32.mrb[92].mxu1  ;;  %v2594_v38 = vpack.c.bf16 %v2512_v35, %v2510_v34 }
 0x29b   : > { %v2333_v39 = vadd.f32 %v2332_v37, %v13617_v43  ;;  %v2334_v40 = vpop.f32.mrb[93].mxu1 }
 0x29c   : > { %v2335_v41 = vadd.f32 %v2334_v40, %v13621_v45  ;;  %v2336_v42 = vpop.f32.mrb[94].mxu1  ;;  %3069 = vmatprep.mubr.bf16.mxu0 %v2594_v38  ;;  %v2645_v40 = vld [vmem:[%s17605_s4] sm:$0x3]  ;;  %s17607_s4 = sld [smem:[#allocation55_spill]] }
 0x29d   : > { %v2337_v44 = vadd.f32 %v2336_v42, %v13617_v43  ;;  %v2338_v46 = vpop.f32.mrb[95].mxu1  ;;  %3070 = vmatmul.mubr.bf16.gmra.mrb[216].mxu0 %v2593_v36  ;;  %v2513_v50 = vmax.f32 %v2333_v39, 0.0  ;;  %v13823_v49 = vrot.slane %v2645_v40, %v13371_v26 }
 0x29e   : > { %v2339_v47 = vadd.f32 %v2338_v46, %v13621_v45  ;;  %v2514_v52 = vmax.f32 %v2335_v41, 0.0 }
 0x29f   : > { %v2515_v51 = vmax.f32 %v2337_v44, 0.0 }
 0x2a0   : > { %v2516_v53 = vmax.f32 %v2339_v47, 0.0 }
 0x2a1   : > { %v2595_v54 = vpack.c.bf16 %v2515_v51, %v2513_v50  ;;  %v13827_v51 = vrot.slane %v2645_v40, %v13376_v28 }
 0x2a2   : > { %v2342_v55 = vpop.f32.mrb[96].mxu1  ;;  %v2596_v31 = vpack.c.bf16 %v2516_v53, %v2514_v52  ;;  %v12344_v52 = vld [vmem:[%s17604_s29 + $0x50] ss:$8 sps:$4 sm:$0xff]   ;;  %v12346_v53 = vld [vmem:[%s17604_s29 + $0x54] ss:$8 sps:$4 sm:$0xff]  }
 0x2a3   : > { %v2343_v56 = vadd.f32 %v2342_v55, %v13617_v43  ;;  %v2344_v57 = vpop.f32.mrb[97].mxu1  ;;  %4325 = vmatprep.subr.bf16.mxu0 %v12346_v53 }
 0x2a4   : > { %v2345_v32 = vadd.f32 %v2344_v57, %v13621_v45  ;;  %v2346_v58 = vpop.f32.mrb[98].mxu1  ;;  %3079 = vmatprep.mubr.bf16.mxu0 %v2596_v31  ;;  %4326 = vmatpush1.bf16.msra.mxu0 %v12344_v52 }
 0x2a5   : > { %v2347_v59 = vadd.f32 %v2346_v58, %v13617_v43  ;;  %v2348_v60 = vpop.f32.mrb[99].mxu1  ;;  %3080 = vmatmul.mubr.bf16.gmra.mrb[220].mxu0 %v2595_v54  ;;  %v2517_v62 = vmax.f32 %v2343_v56, 0.0 }
 0x2a6   : > { %v2349_v61 = vadd.f32 %v2348_v60, %v13621_v45  ;;  %v2518_v0 = vmax.f32 %v2345_v32, 0.0 }
 0x2a7   : > { %v2519_v63 = vmax.f32 %v2347_v59, 0.0 }
 0x2a8   : > { %v2520_v1 = vmax.f32 %v2349_v61, 0.0 }
 0x2a9   : > { %v2597_v2 = vpack.c.bf16 %v2519_v63, %v2517_v62 }
 0x2aa   : > { %v2352_v4 = vpop.f32.mrb[100].mxu1  ;;  %v2598_v5 = vpack.c.bf16 %v2520_v1, %v2518_v0 }
 0x2ab   : > { %v2353_v6 = vadd.f32 %v2352_v4, %v13617_v43  ;;  %v2354_v7 = vpop.f32.mrb[101].mxu1 }
 0x2ac   : > { %v2355_v8 = vadd.f32 %v2354_v7, %v13621_v45  ;;  %v2356_v9 = vpop.f32.mrb[102].mxu1  ;;  %3089 = vmatprep.mubr.bf16.mxu0 %v2598_v5 }
 0x2ad   : > { %v2357_v10 = vadd.f32 %v2356_v9, %v13617_v43  ;;  %v2358_v11 = vpop.f32.mrb[103].mxu1  ;;  %3090 = vmatmul.mubr.bf16.gmra.mrb[224].mxu0 %v2597_v2  ;;  %v2521_v15 = vmax.f32 %v2353_v6, 0.0 }
 0x2ae   : > { %v2359_v12 = vadd.f32 %v2358_v11, %v13621_v45  ;;  %v2522_v17 = vmax.f32 %v2355_v8, 0.0 }
 0x2af   : > { %v2523_v16 = vmax.f32 %v2357_v10, 0.0 }
 0x2b0   : > { %v2524_v18 = vmax.f32 %v2359_v12, 0.0 }
 0x2b1   : > { %v2599_v19 = vpack.c.bf16 %v2523_v16, %v2521_v15 }
 0x2b2   : > { %v2362_v20 = vpop.f32.mrb[104].mxu1  ;;  %v2600_v21 = vpack.c.bf16 %v2524_v18, %v2522_v17 }
 0x2b3   : > { %v2363_v22 = vadd.f32 %v2362_v20, %v13617_v43  ;;  %v2364_v23 = vpop.f32.mrb[105].mxu1  ;;  %v12323_v20 = vld [vmem:[%s17514_s13] ss:$8 sps:$4 sm:$0xff]  }
 0x2b4   : > { %v2365_v24 = vadd.f32 %v2364_v23, %v13621_v45  ;;  %v2366_v25 = vpop.f32.mrb[106].mxu1  ;;  %3099 = vmatprep.mubr.bf16.mxu0 %v2600_v21 }
 0x2b5   : > { %v2367_v27 = vadd.f32 %v2366_v25, %v13617_v43  ;;  %v2368_v29 = vpop.f32.mrb[107].mxu1  ;;  %3100 = vmatmul.mubr.bf16.gmra.mrb[228].mxu0 %v2599_v19  ;;  %v2525_v33 = vmax.f32 %v2363_v22, 0.0 }
 0x2b6   : > { %v2369_v30 = vadd.f32 %v2368_v29, %v13621_v45  ;;  %v2526_v35 = vmax.f32 %v2365_v24, 0.0 }
 0x2b7   : > { %v2527_v34 = vmax.f32 %v2367_v27, 0.0  ;;  %v12334_v27 = vld [vmem:[%s17514_s13 + $0x14] ss:$8 sps:$4 sm:$0xff]  }
 0x2b8   : > { %v2528_v36 = vmax.f32 %v2369_v30, 0.0 }
 0x2b9   : > { %v2601_v37 = vpack.c.bf16 %v2527_v34, %v2525_v33 }
 0x2ba   : > { %v2372_v38 = vpop.f32.mrb[108].mxu1  ;;  %v2602_v39 = vpack.c.bf16 %v2528_v36, %v2526_v35 }
 0x2bb   : > { %v2373_v41 = vadd.f32 %v2372_v38, %v13617_v43  ;;  %v2374_v42 = vpop.f32.mrb[109].mxu1 }
 0x2bc   : > { %v2375_v44 = vadd.f32 %v2374_v42, %v13621_v45  ;;  %v2376_v46 = vpop.f32.mrb[110].mxu1  ;;  %3109 = vmatprep.mubr.bf16.mxu0 %v2602_v39  ;;  %v12332_v42 = vld [vmem:[%s17514_s13 + $0x10] ss:$8 sps:$4 sm:$0xff]  }
 0x2bd   : > { %v2377_v47 = vadd.f32 %v2376_v46, %v13617_v43  ;;  %v2378_v48 = vpop.f32.mrb[111].mxu1  ;;  %3110 = vmatmul.mubr.bf16.gmra.mrb[232].mxu0 %v2601_v37  ;;  %v2529_v54 = vmax.f32 %v2373_v41, 0.0 }
 0x2be   : > { %v2379_v50 = vadd.f32 %v2378_v48, %v13621_v45  ;;  %v2530_v56 = vmax.f32 %v2375_v44, 0.0 }
 0x2bf   : > { %v2531_v55 = vmax.f32 %v2377_v47, 0.0 }
 0x2c0   : > { %v2851_v31 = vpop.f32.mrb[128].mxu0  ;;  %v2532_v57 = vmax.f32 %v2379_v50, 0.0 }
 0x2c1   : > { %v2852_v32 = vadd.f32 %v2851_v31, %v13823_v49  ;;  %v2853_v58 = vpop.f32.mrb[129].mxu0  ;;  %v2603_v59 = vpack.c.bf16 %v2531_v55, %v2529_v54  ;;  %v12349_v54 = vld [vmem:[%s17514_s13 + $0x24] ss:$8 sps:$4 sm:$0xff]   ;;  %v12350_v55 = vld [vmem:[%s17604_s29 + $0x60] ss:$8 sps:$4 sm:$0xff]  }
 0x2c2   : > { %v2854_v60 = vadd.f32 %v2853_v58, %v13827_v51  ;;  %v2382_v61 = vpop.f32.mrb[112].mxu1  ;;  %v2855_v62 = vpop.f32.mrb[130].mxu0  ;;  %v2604_v63 = vpack.c.bf16 %v2532_v57, %v2530_v56 }
 0x2c3   : > { %v2383_v0 = vadd.f32 %v2382_v61, %v13617_v43  ;;  %v2856_v1 = vadd.f32 %v2855_v62, %v13823_v49  ;;  %v2384_v2 = vpop.f32.mrb[113].mxu1  ;;  %v2857_v4 = vpop.f32.mrb[131].mxu0  ;;  %v3170_v8 = vmax.f32 %v2852_v32, 0.0  ;;  %v12352_v32 = vld [vmem:[%s17604_s29 + $0x64] ss:$8 sps:$4 sm:$0xff]  }
 0x2c4   : > { %v2385_v5 = vadd.f32 %v2384_v2, %v13621_v45  ;;  %v2858_v6 = vadd.f32 %v2857_v4, %v13827_v51  ;;  %v2386_v7 = vpop.f32.mrb[114].mxu1  ;;  %3119 = vmatprep.mubr.bf16.mxu0 %v2604_v63  ;;  %v3171_v12 = vmax.f32 %v2854_v60, 0.0  ;;  %v12347_v62 = vld [vmem:[%s17514_s13 + $0x20] ss:$8 sps:$4 sm:$0xff]   ;;  %4327 = vmatprep.subr.bf16.mxu0 %v12352_v32 }
 0x2c5   : > { %v3172_v9 = vmax.f32 %v2856_v1, 0.0  ;;  %v2387_v10 = vadd.f32 %v2386_v7, %v13617_v43  ;;  %v2388_v11 = vpop.f32.mrb[115].mxu1  ;;  %3120 = vmatmul.mubr.bf16.gmra.mrb[236].mxu0 %v2603_v59  ;;  %v2533_v16 = vmax.f32 %v2383_v0, 0.0 }
 0x2c6   : > { %v3173_v13 = vmax.f32 %v2858_v6, 0.0  ;;  %v2389_v14 = vadd.f32 %v2388_v11, %v13621_v45  ;;  %v2534_v21 = vmax.f32 %v2385_v5, 0.0  ;;  %4328 = vmatpush1.bf16.msra.mxu0 %v12350_v55 }
 0x2c7   : > { %v3298_v15 = vpack.c.bf16 %v3172_v9, %v3170_v8  ;;  %v2535_v17 = vmax.f32 %v2387_v10, 0.0 }
 0x2c8   : > { %v2861_v18 = vpop.f32.mrb[132].mxu0  ;;  %v3299_v19 = vpack.c.bf16 %v3173_v13, %v3171_v12  ;;  %v2536_v22 = vmax.f32 %v2389_v14, 0.0 }
 0x2c9   : > { %v2862_v23 = vadd.f32 %v2861_v18, %v13823_v49  ;;  %v2863_v24 = vpop.f32.mrb[133].mxu0  ;;  %v2605_v25 = vpack.c.bf16 %v2535_v17, %v2533_v16 }
 0x2ca   : > { %v2864_v29 = vadd.f32 %v2863_v24, %v13827_v51  ;;  %v2392_v30 = vpop.f32.mrb[116].mxu1  ;;  %v2865_v33 = vpop.f32.mrb[134].mxu0  ;;  %3598 = vmatprep.mubr.bf16.mxu1 %v3299_v19  ;;  %v2606_v34 = vpack.c.bf16 %v2536_v22, %v2534_v21 }
 0x2cb   : > { %v2393_v35 = vadd.f32 %v2392_v30, %v13617_v43  ;;  %v2866_v36 = vadd.f32 %v2865_v33, %v13823_v49  ;;  %v2394_v37 = vpop.f32.mrb[117].mxu1  ;;  %v2867_v38 = vpop.f32.mrb[135].mxu0  ;;  %3599 = vmatmul.mubr.bf16.vlgmr.msra.gmra.mrb[128].mxu1 %v3298_v15  ;;  %v3174_v44 = vmax.f32 %v2862_v23, 0.0 }
 0x2cc   : > { %v2395_v39 = vadd.f32 %v2394_v37, %v13621_v45  ;;  %v2868_v40 = vadd.f32 %v2867_v38, %v13827_v51  ;;  %4941 = vmatpush1.bf16.msra.mxu1 %v12323_v20  ;;  %v2396_v41 = vpop.f32.mrb[118].mxu1  ;;  %3129 = vmatprep.mubr.bf16.mxu0 %v2606_v34  ;;  %v3175_v50 = vmax.f32 %v2864_v29, 0.0 }
 0x2cd   : > { %v3176_v46 = vmax.f32 %v2866_v36, 0.0  ;;  %v2397_v47 = vadd.f32 %v2396_v41, %v13617_v43  ;;  %v2398_v48 = vpop.f32.mrb[119].mxu1  ;;  %3130 = vmatmul.mubr.bf16.gmra.mrb[240].mxu0 %v2605_v25  ;;  %4942 = vmatprep.subr.bf16.mxu1 %v12334_v27  ;;  %v2537_v56 = vmax.f32 %v2393_v35, 0.0 }
 0x2ce   : > { %v3177_v52 = vmax.f32 %v2868_v40, 0.0  ;;  %v2399_v53 = vadd.f32 %v2398_v48, %v13621_v45  ;;  %v2538_v60 = vmax.f32 %v2395_v39, 0.0 }
 0x2cf   : > { %v3300_v31 = vpack.c.bf16 %v3176_v46, %v3174_v44  ;;  %v2539_v57 = vmax.f32 %v2397_v47, 0.0 }
 0x2d0   : > { %v2871_v58 = vpop.f32.mrb[136].mxu0  ;;  %v3301_v59 = vpack.c.bf16 %v3177_v52, %v3175_v50  ;;  %v2540_v61 = vmax.f32 %v2399_v53, 0.0  ;;  %4943 = vmatpush1.bf16.msra.mxu1 %v12332_v42 }
 0x2d1   : > { %v2872_v63 = vadd.f32 %v2871_v58, %v13823_v49  ;;  %v2873_v0 = vpop.f32.mrb[137].mxu0  ;;  %v2607_v1 = vpack.c.bf16 %v2539_v57, %v2537_v56  ;;  %4944 = vmatprep.subr.bf16.mxu1 %v12349_v54  ;;  %v12353_v56 = vld [vmem:[%s17604_s29 + $0x70] ss:$8 sps:$4 sm:$0xff]   ;;  %v12355_v57 = vld [vmem:[%s17604_s29 + $0x74] ss:$8 sps:$4 sm:$0xff]  }
 0x2d2   : > { %v2874_v2 = vadd.f32 %v2873_v0, %v13827_v51  ;;  %v2402_v4 = vpop.f32.mrb[120].mxu1  ;;  %v2875_v5 = vpop.f32.mrb[138].mxu0  ;;  %3608 = vmatprep.mubr.bf16.mxu1 %v3301_v59  ;;  %v2608_v6 = vpack.c.bf16 %v2540_v61, %v2538_v60  ;;  %4329 = vmatprep.subr.bf16.mxu0 %v12355_v57 }
 0x2d3   : > { %v2403_v7 = vadd.f32 %v2402_v4, %v13617_v43  ;;  %v2876_v8 = vadd.f32 %v2875_v5, %v13823_v49  ;;  %v2404_v9 = vpop.f32.mrb[121].mxu1  ;;  %v2877_v10 = vpop.f32.mrb[139].mxu0  ;;  %3609 = vmatmul.mubr.bf16.gmra.mrb[132].mxu1 %v3300_v31  ;;  %v3178_v14 = vmax.f32 %v2872_v63, 0.0  ;;  %4330 = vmatpush1.bf16.msra.mxu0 %v12353_v56 }
 0x2d4   : > { %v2405_v11 = vadd.f32 %v2404_v9, %v13621_v45  ;;  %v2878_v12 = vadd.f32 %v2877_v10, %v13827_v51  ;;  %v2406_v13 = vpop.f32.mrb[122].mxu1  ;;  %3139 = vmatprep.mubr.bf16.mxu0 %v2608_v6  ;;  %4945 = vmatpush1.bf16.msra.mxu1 %v12347_v62  ;;  %v3179_v18 = vmax.f32 %v2874_v2, 0.0 }
 0x2d5   : > { %v3180_v15 = vmax.f32 %v2876_v8, 0.0  ;;  %v2407_v16 = vadd.f32 %v2406_v13, %v13617_v43  ;;  %v2408_v17 = vpop.f32.mrb[123].mxu1  ;;  %3140 = vmatmul.mubr.bf16.gmra.mrb[244].mxu0 %v2607_v1  ;;  %v2541_v22 = vmax.f32 %v2403_v7, 0.0 }
 0x2d6   : > { %v3181_v19 = vmax.f32 %v2878_v12, 0.0  ;;  %v2409_v20 = vadd.f32 %v2408_v17, %v13621_v45  ;;  %v2542_v27 = vmax.f32 %v2405_v11, 0.0 }
 0x2d7   : > { %v3302_v21 = vpack.c.bf16 %v3180_v15, %v3178_v14  ;;  %v2543_v23 = vmax.f32 %v2407_v16, 0.0 }
 0x2d8   : > { %v2881_v24 = vpop.f32.mrb[140].mxu0  ;;  %v3303_v25 = vpack.c.bf16 %v3181_v19, %v3179_v18  ;;  %v2544_v29 = vmax.f32 %v2409_v20, 0.0 }
 0x2d9   : > { %v2882_v30 = vadd.f32 %v2881_v24, %v13823_v49  ;;  %v2883_v33 = vpop.f32.mrb[141].mxu0  ;;  %v2609_v34 = vpack.c.bf16 %v2543_v23, %v2541_v22 }
 0x2da   : > { %v2884_v35 = vadd.f32 %v2883_v33, %v13827_v51  ;;  %v2412_v36 = vpop.f32.mrb[124].mxu1  ;;  %v2885_v37 = vpop.f32.mrb[142].mxu0  ;;  %3618 = vmatprep.mubr.bf16.mxu1 %v3303_v25  ;;  %v2610_v38 = vpack.c.bf16 %v2544_v29, %v2542_v27  ;;  %v12356_v27 = vld [vmem:[%s17604_s29 + $0x80] ss:$8 sps:$4 sm:$0xff]   ;;  %v12358_v29 = vld [vmem:[%s17604_s29 + $0x84] ss:$8 sps:$4 sm:$0xff]  }
 0x2db   : > { %v2413_v39 = vadd.f32 %v2412_v36, %v13617_v43  ;;  %v2886_v40 = vadd.f32 %v2885_v37, %v13823_v49  ;;  %v2414_v41 = vpop.f32.mrb[125].mxu1  ;;  %v2887_v42 = vpop.f32.mrb[143].mxu0  ;;  %3619 = vmatmul.mubr.bf16.gmra.mrb[136].mxu1 %v3302_v21  ;;  %v3182_v48 = vmax.f32 %v2882_v30, 0.0  ;;  %4331 = vmatprep.subr.bf16.mxu0 %v12358_v29 }
 0x2dc   : > { %v2415_v44 = vadd.f32 %v2414_v41, %v13621_v45  ;;  %v2888_v46 = vadd.f32 %v2887_v42, %v13827_v51  ;;  %v2416_v47 = vpop.f32.mrb[126].mxu1  ;;  %3149 = vmatprep.mubr.bf16.mxu0 %v2610_v38  ;;  %v3183_v54 = vmax.f32 %v2884_v35, 0.0  ;;  %4332 = vmatpush1.bf16.msra.mxu0 %v12356_v27  ;;  %v12364_v27 = vld [vmem:[%s17514_s13 + $0x34] ss:$8 sps:$4 sm:$0xff]  }
 0x2dd   : > { %v3184_v50 = vmax.f32 %v2886_v40, 0.0  ;;  %v2417_v52 = vadd.f32 %v2416_v47, %v13617_v43  ;;  %v2418_v53 = vpop.f32.mrb[127].mxu1  ;;  %3150 = vmatmul.mubr.bf16.gmra.mrb[248].mxu0 %v2609_v34  ;;  %v2545_v58 = vmax.f32 %v2413_v39, 0.0  ;;  %4946 = vmatprep.subr.bf16.mxu1 %v12364_v27 }
 0x2de   : > { %v3185_v55 = vmax.f32 %v2888_v46, 0.0  ;;  %v2419_v31 = vadd.f32 %v2418_v53, %v13621_v45  ;;  %v2546_v43 = vmax.f32 %v2415_v44, 0.0 }
 0x2df   : > { %v3304_v32 = vpack.c.bf16 %v3184_v50, %v3182_v48  ;;  %v2547_v59 = vmax.f32 %v2417_v52, 0.0 }
 0x2e0   : > { %v2891_v60 = vpop.f32.mrb[144].mxu0  ;;  %v3305_v61 = vpack.c.bf16 %v3185_v55, %v3183_v54  ;;  %v2548_v62 = vmax.f32 %v2419_v31, 0.0 }
 0x2e1   : > { %v2892_v63 = vadd.f32 %v2891_v60, %v13823_v49  ;;  %v2893_v0 = vpop.f32.mrb[145].mxu0  ;;  %v2611_v45 = vpack.c.bf16 %v2547_v59, %v2545_v58 }
 0x2e2   : > { %v2894_v1 = vadd.f32 %v2893_v0, %v13827_v51  ;;  %v2895_v2 = vpop.f32.mrb[146].mxu0  ;;  %3628 = vmatprep.mubr.bf16.mxu1 %v3305_v61  ;;  %v2612_v4 = vpack.c.bf16 %v2548_v62, %v2546_v43  ;;  %v12359_v43 = vld [vmem:[%s17604_s29 + $0x90] ss:$8 sps:$4 sm:$0xff]   ;;  %v12361_v62 = vld [vmem:[%s17604_s29 + $0x94] ss:$8 sps:$4 sm:$0xff]  }
 0x2e3   : > { %v2896_v5 = vadd.f32 %v2895_v2, %v13823_v49  ;;  %v2897_v6 = vpop.f32.mrb[147].mxu0  ;;  %3629 = vmatmul.mubr.bf16.gmra.mrb[140].mxu1 %v3304_v32  ;;  %v3186_v8 = vmax.f32 %v2892_v63, 0.0  ;;  %4333 = vmatprep.subr.bf16.mxu0 %v12361_v62 }
 0x2e4   : > { %v2898_v7 = vadd.f32 %v2897_v6, %v13827_v51  ;;  %3159 = vmatprep.mubr.bf16.mxu0 %v2612_v4  ;;  %v3187_v10 = vmax.f32 %v2894_v1, 0.0  ;;  %4334 = vmatpush1.bf16.msra.mxu0 %v12359_v43 }
 0x2e5   : > { %v3188_v9 = vmax.f32 %v2896_v5, 0.0  ;;  %3160 = vmatmul.mubr.bf16.gmra.mrb[252].mxu0 %v2611_v45 }
 0x2e6   : > { %v3189_v11 = vmax.f32 %v2898_v7, 0.0 }
 0x2e7   : > { %v3306_v12 = vpack.c.bf16 %v3188_v9, %v3186_v8 }
 0x2e8   : > { %v2901_v13 = vpop.f32.mrb[148].mxu0  ;;  %v3307_v14 = vpack.c.bf16 %v3189_v11, %v3187_v10 }
 0x2e9   : > { %v2902_v15 = vadd.f32 %v2901_v13, %v13823_v49  ;;  %v2903_v16 = vpop.f32.mrb[149].mxu0 }
 0x2ea   : > { %v2904_v17 = vadd.f32 %v2903_v16, %v13827_v51  ;;  %v2905_v18 = vpop.f32.mrb[150].mxu0  ;;  %3638 = vmatprep.mubr.bf16.mxu1 %v3307_v14 }
 0x2eb   : > { %v2906_v19 = vadd.f32 %v2905_v18, %v13823_v49  ;;  %v2907_v20 = vpop.f32.mrb[151].mxu0  ;;  %3639 = vmatmul.mubr.bf16.gmra.mrb[144].mxu1 %v3306_v12  ;;  %v3190_v22 = vmax.f32 %v2902_v15, 0.0 }
 0x2ec   : > { %v2908_v21 = vadd.f32 %v2907_v20, %v13827_v51  ;;  %v3191_v24 = vmax.f32 %v2904_v17, 0.0 }
 0x2ed   : > { %v3192_v23 = vmax.f32 %v2906_v19, 0.0 }
 0x2ee   : > { %v3193_v25 = vmax.f32 %v2908_v21, 0.0 }
 0x2ef   : > { %v3308_v30 = vpack.c.bf16 %v3192_v23, %v3190_v22 }
 0x2f0   : > { %v2911_v33 = vpop.f32.mrb[152].mxu0  ;;  %v3309_v34 = vpack.c.bf16 %v3193_v25, %v3191_v24  ;;  %v12362_v25 = vld [vmem:[%s17514_s13 + $0x30] ss:$8 sps:$4 sm:$0xff]  }
 0x2f1   : > { %v2912_v35 = vadd.f32 %v2911_v33, %v13823_v49  ;;  %v2913_v36 = vpop.f32.mrb[153].mxu0  ;;  %v12365_v33 = vld [vmem:[%s17604_s29 + $0xa0] ss:$8 sps:$4 sm:$0xff]   ;;  %4947 = vmatpush1.bf16.msra.mxu1 %v12362_v25 }
 0x2f2   : > { %v2914_v37 = vadd.f32 %v2913_v36, %v13827_v51  ;;  %v2915_v38 = vpop.f32.mrb[154].mxu0  ;;  %3648 = vmatprep.mubr.bf16.mxu1 %v3309_v34  ;;  %v12367_v34 = vld [vmem:[%s17604_s29 + $0xa4] ss:$8 sps:$4 sm:$0xff]  }
 0x2f3   : > { %v2916_v39 = vadd.f32 %v2915_v38, %v13823_v49  ;;  %v2917_v40 = vpop.f32.mrb[155].mxu0  ;;  %3649 = vmatmul.mubr.bf16.gmra.mrb[148].mxu1 %v3308_v30  ;;  %v3194_v42 = vmax.f32 %v2912_v35, 0.0  ;;  %4335 = vmatprep.subr.bf16.mxu0 %v12367_v34 }
 0x2f4   : > { %v2918_v41 = vadd.f32 %v2917_v40, %v13827_v51  ;;  %v3195_v46 = vmax.f32 %v2914_v37, 0.0  ;;  %4336 = vmatpush1.bf16.msra.mxu0 %v12365_v33 }
 0x2f5   : > { %v3196_v44 = vmax.f32 %v2916_v39, 0.0 }
 0x2f6   : > { %v3197_v47 = vmax.f32 %v2918_v41, 0.0 }
 0x2f7   : > { %v3310_v48 = vpack.c.bf16 %v3196_v44, %v3194_v42 }
 0x2f8   : > { %v2921_v50 = vpop.f32.mrb[156].mxu0  ;;  %v3311_v52 = vpack.c.bf16 %v3197_v47, %v3195_v46  ;;  %v12370_v46 = vld [vmem:[%s17604_s29 + $0xb4] ss:$8 sps:$4 sm:$0xff]  }
 0x2f9   : > { %v2922_v53 = vadd.f32 %v2921_v50, %v13823_v49  ;;  %v2923_v54 = vpop.f32.mrb[157].mxu0  ;;  %4337 = vmatprep.subr.bf16.mxu0 %v12370_v46 }
 0x2fa   : > { %v2924_v55 = vadd.f32 %v2923_v54, %v13827_v51  ;;  %v2925_v31 = vpop.f32.mrb[158].mxu0  ;;  %3658 = vmatprep.mubr.bf16.mxu1 %v3311_v52 }
 0x2fb   : > { %v2926_v56 = vadd.f32 %v2925_v31, %v13823_v49  ;;  %v2927_v57 = vpop.f32.mrb[159].mxu0  ;;  %3659 = vmatmul.mubr.bf16.gmra.mrb[152].mxu1 %v3310_v48  ;;  %v3198_v58 = vmax.f32 %v2922_v53, 0.0  ;;  %v12368_v48 = vld [vmem:[%s17604_s29 + $0xb0] ss:$8 sps:$4 sm:$0xff]   ;;  %v12373_v31 = vld [vmem:[%s17604_s29 + $0xc4] ss:$8 sps:$4 sm:$0xff]  }
 0x2fc   : > { %v2928_v32 = vadd.f32 %v2927_v57, %v13827_v51  ;;  %v3199_v60 = vmax.f32 %v2924_v55, 0.0  ;;  %4338 = vmatpush1.bf16.msra.mxu0 %v12368_v48 }
 0x2fd   : > { %v3200_v59 = vmax.f32 %v2926_v56, 0.0  ;;  %4339 = vmatprep.subr.bf16.mxu0 %v12373_v31 }
 0x2fe   : > { %v3201_v61 = vmax.f32 %v2928_v32, 0.0  ;;  %v12371_v32 = vld [vmem:[%s17604_s29 + $0xc0] ss:$8 sps:$4 sm:$0xff]  }
 0x2ff   : > { %v3312_v63 = vpack.c.bf16 %v3200_v59, %v3198_v58 }
 0x300   : > { %v2931_v0 = vpop.f32.mrb[160].mxu0  ;;  %v3313_v45 = vpack.c.bf16 %v3201_v61, %v3199_v60  ;;  %4340 = vmatpush1.bf16.msra.mxu0 %v12371_v32 }
 0x301   : > { %v2932_v1 = vadd.f32 %v2931_v0, %v13823_v49  ;;  %v2933_v2 = vpop.f32.mrb[161].mxu0 }
 0x302   : > { %v2934_v4 = vadd.f32 %v2933_v2, %v13827_v51  ;;  %v2935_v5 = vpop.f32.mrb[162].mxu0  ;;  %3668 = vmatprep.mubr.bf16.mxu1 %v3313_v45  ;;  %v12374_v45 = vld [vmem:[%s17604_s29 + $0xd0] ss:$8 sps:$4 sm:$0xff]  }
 0x303   : > { %v2936_v6 = vadd.f32 %v2935_v5, %v13823_v49  ;;  %v2937_v7 = vpop.f32.mrb[163].mxu0  ;;  %3669 = vmatmul.mubr.bf16.gmra.mrb[156].mxu1 %v3312_v63  ;;  %v3202_v9 = vmax.f32 %v2932_v1, 0.0  ;;  %v12376_v63 = vld [vmem:[%s17604_s29 + $0xd4] ss:$8 sps:$4 sm:$0xff]  }
 0x304   : > { %v2938_v8 = vadd.f32 %v2937_v7, %v13827_v51  ;;  %v3203_v11 = vmax.f32 %v2934_v4, 0.0  ;;  %4341 = vmatprep.subr.bf16.mxu0 %v12376_v63  ;;  %v12379_v7 = vld [vmem:[%s17604_s29 + $0xe4] ss:$8 sps:$4 sm:$0xff]  }
 0x305   : > { %v3204_v10 = vmax.f32 %v2936_v6, 0.0  ;;  %4342 = vmatpush1.bf16.msra.mxu0 %v12374_v45 }
 0x306   : > { %v3205_v12 = vmax.f32 %v2938_v8, 0.0  ;;  %4343 = vmatprep.subr.bf16.mxu0 %v12379_v7 }
 0x307   : > { %v3314_v13 = vpack.c.bf16 %v3204_v10, %v3202_v9  ;;  %v12377_v10 = vld [vmem:[%s17604_s29 + $0xe0] ss:$8 sps:$4 sm:$0xff]  }
 0x308   : > { %v2941_v14 = vpop.f32.mrb[164].mxu0  ;;  %v3315_v15 = vpack.c.bf16 %v3205_v12, %v3203_v11 }
 0x309   : > { %v2942_v16 = vadd.f32 %v2941_v14, %v13823_v49  ;;  %v2943_v17 = vpop.f32.mrb[165].mxu0  ;;  %4344 = vmatpush1.bf16.msra.mxu0 %v12377_v10 }
 0x30a   : > { %v2944_v18 = vadd.f32 %v2943_v17, %v13827_v51  ;;  %v2945_v19 = vpop.f32.mrb[166].mxu0  ;;  %3678 = vmatprep.mubr.bf16.mxu1 %v3315_v15  ;;  %v12382_v17 = vld [vmem:[%s17604_s29 + $0xf4] ss:$8 sps:$4 sm:$0xff]  }
 0x30b   : > { %v2946_v20 = vadd.f32 %v2945_v19, %v13823_v49  ;;  %v2947_v21 = vpop.f32.mrb[167].mxu0  ;;  %3679 = vmatmul.mubr.bf16.gmra.mrb[160].mxu1 %v3314_v13  ;;  %v3206_v23 = vmax.f32 %v2942_v16, 0.0  ;;  %v12380_v19 = vld [vmem:[%s17604_s29 + $0xf0] ss:$8 sps:$4 sm:$0xff]   ;;  %4345 = vmatprep.subr.bf16.mxu0 %v12382_v17 }
 0x30c   : > { %v2948_v22 = vadd.f32 %v2947_v21, %v13827_v51  ;;  %v3207_v29 = vmax.f32 %v2944_v18, 0.0 }
 0x30d   : > { %v3208_v24 = vmax.f32 %v2946_v20, 0.0  ;;  %4346 = vmatpush1.bf16.msra.mxu0 %v12380_v19 }
 0x30e   : > { %v3209_v30 = vmax.f32 %v2948_v22, 0.0 }
 0x30f   : > { %v3316_v35 = vpack.c.bf16 %v3208_v24, %v3206_v23 }
 0x310   : > { %v2951_v36 = vpop.f32.mrb[168].mxu0  ;;  %v3317_v37 = vpack.c.bf16 %v3209_v30, %v3207_v29 }
 0x311   : > { %v2952_v38 = vadd.f32 %v2951_v36, %v13823_v49  ;;  %v2953_v39 = vpop.f32.mrb[169].mxu0 }
 0x312   : > { %v2954_v40 = vadd.f32 %v2953_v39, %v13827_v51  ;;  %v2955_v41 = vpop.f32.mrb[170].mxu0  ;;  %3688 = vmatprep.mubr.bf16.mxu1 %v3317_v37 }
 0x313   : > { %v2956_v42 = vadd.f32 %v2955_v41, %v13823_v49  ;;  %v2957_v44 = vpop.f32.mrb[171].mxu0  ;;  %3689 = vmatmul.mubr.bf16.gmra.mrb[164].mxu1 %v3316_v35  ;;  %v3210_v50 = vmax.f32 %v2952_v38, 0.0 }
 0x314   : > { %v2958_v47 = vadd.f32 %v2957_v44, %v13827_v51  ;;  %v3211_v53 = vmax.f32 %v2954_v40, 0.0 }
 0x315   : > { %v3212_v52 = vmax.f32 %v2956_v42, 0.0 }
 0x316   : > { %v3213_v54 = vmax.f32 %v2958_v47, 0.0 }
 0x317   : > { %v3318_v55 = vpack.c.bf16 %v3212_v52, %v3210_v50 }
 0x318   : > { %v2961_v56 = vpop.f32.mrb[172].mxu0  ;;  %v3319_v57 = vpack.c.bf16 %v3213_v54, %v3211_v53 }
 0x319   : > { %v2962_v58 = vadd.f32 %v2961_v56, %v13823_v49  ;;  %v2963_v59 = vpop.f32.mrb[173].mxu0 }
 0x31a   : > { %v2964_v60 = vadd.f32 %v2963_v59, %v13827_v51  ;;  %v2965_v61 = vpop.f32.mrb[174].mxu0  ;;  %3698 = vmatprep.mubr.bf16.mxu1 %v3319_v57 }
 0x31b   : > { %v2966_v43 = vadd.f32 %v2965_v61, %v13823_v49  ;;  %v2967_v62 = vpop.f32.mrb[175].mxu0  ;;  %3699 = vmatmul.mubr.bf16.gmra.mrb[168].mxu1 %v3318_v55  ;;  %v3214_v1 = vmax.f32 %v2962_v58, 0.0 }
 0x31c   : > { %v2968_v0 = vadd.f32 %v2967_v62, %v13827_v51  ;;  %v3215_v4 = vmax.f32 %v2964_v60, 0.0 }
 0x31d   : > { %v3216_v2 = vmax.f32 %v2966_v43, 0.0 }
 0x31e   : > { %v3217_v5 = vmax.f32 %v2968_v0, 0.0 }
 0x31f   : > { %v3320_v6 = vpack.c.bf16 %v3216_v2, %v3214_v1 }
 0x320   : > { %v2971_v8 = vpop.f32.mrb[176].mxu0  ;;  %v3321_v9 = vpack.c.bf16 %v3217_v5, %v3215_v4 }
 0x321   : > { %v2972_v11 = vadd.f32 %v2971_v8, %v13823_v49  ;;  %v2973_v12 = vpop.f32.mrb[177].mxu0 }
 0x322   : > { %v2974_v13 = vadd.f32 %v2973_v12, %v13827_v51  ;;  %v2975_v14 = vpop.f32.mrb[178].mxu0  ;;  %3708 = vmatprep.mubr.bf16.mxu1 %v3321_v9 }
 0x323   : > { %v2976_v15 = vadd.f32 %v2975_v14, %v13823_v49  ;;  %v2977_v16 = vpop.f32.mrb[179].mxu0  ;;  %3709 = vmatmul.mubr.bf16.gmra.mrb[172].mxu1 %v3320_v6  ;;  %v3218_v20 = vmax.f32 %v2972_v11, 0.0 }
 0x324   : > { %v2978_v18 = vadd.f32 %v2977_v16, %v13827_v51  ;;  %v3219_v22 = vmax.f32 %v2974_v13, 0.0 }
 0x325   : > { %v3220_v21 = vmax.f32 %v2976_v15, 0.0 }
 0x326   : > { %v3221_v23 = vmax.f32 %v2978_v18, 0.0 }
 0x327   : > { %v3322_v24 = vpack.c.bf16 %v3220_v21, %v3218_v20 }
 0x328   : > { %v2981_v25 = vpop.f32.mrb[180].mxu0  ;;  %v3323_v27 = vpack.c.bf16 %v3221_v23, %v3219_v22 }
 0x329   : > { %v2982_v29 = vadd.f32 %v2981_v25, %v13823_v49  ;;  %v2983_v30 = vpop.f32.mrb[181].mxu0 }
 0x32a   : > { %v2984_v33 = vadd.f32 %v2983_v30, %v13827_v51  ;;  %v2985_v34 = vpop.f32.mrb[182].mxu0  ;;  %3718 = vmatprep.mubr.bf16.mxu1 %v3323_v27 }
 0x32b   : > { %v2986_v35 = vadd.f32 %v2985_v34, %v13823_v49  ;;  %v2987_v36 = vpop.f32.mrb[183].mxu0  ;;  %3719 = vmatmul.mubr.bf16.gmra.mrb[176].mxu1 %v3322_v24  ;;  %v3222_v38 = vmax.f32 %v2982_v29, 0.0 }
 0x32c   : > { %v2988_v37 = vadd.f32 %v2987_v36, %v13827_v51  ;;  %v3223_v40 = vmax.f32 %v2984_v33, 0.0 }
 0x32d   : > { %v3224_v39 = vmax.f32 %v2986_v35, 0.0 }
 0x32e   : > { %v3225_v41 = vmax.f32 %v2988_v37, 0.0  ;;  %v12385_v37 = vld [vmem:[%s17606_s8 + $0x4] ss:$8 sps:$4 sm:$0xff]  }
 0x32f   : > { %v3324_v42 = vpack.c.bf16 %v3224_v39, %v3222_v38  ;;  %5453 = vmatprep.subr.bf16.mxu1 %v12385_v37 }
 0x330   : > { %v2991_v44 = vpop.f32.mrb[184].mxu0  ;;  %v3325_v46 = vpack.c.bf16 %v3225_v41, %v3223_v40 }
 0x331   : > { %v2992_v47 = vadd.f32 %v2991_v44, %v13823_v49  ;;  %v2993_v48 = vpop.f32.mrb[185].mxu0 }
 0x332   : > { %v2994_v50 = vadd.f32 %v2993_v48, %v13827_v51  ;;  %v2995_v52 = vpop.f32.mrb[186].mxu0  ;;  %3728 = vmatprep.mubr.bf16.mxu1 %v3325_v46 }
 0x333   : > { %v2996_v53 = vadd.f32 %v2995_v52, %v13823_v49  ;;  %v2997_v54 = vpop.f32.mrb[187].mxu0  ;;  %3729 = vmatmul.mubr.bf16.gmra.mrb[180].mxu1 %v3324_v42  ;;  %v3226_v31 = vmax.f32 %v2992_v47, 0.0 }
 0x334   : > { %v2998_v55 = vadd.f32 %v2997_v54, %v13827_v51  ;;  %v3227_v57 = vmax.f32 %v2994_v50, 0.0 }
 0x335   : > { %v3228_v56 = vmax.f32 %v2996_v53, 0.0 }
 0x336   : > { %v3229_v32 = vmax.f32 %v2998_v55, 0.0 }
 0x337   : > { %v3326_v58 = vpack.c.bf16 %v3228_v56, %v3226_v31 }
 0x338   : > { %v3001_v59 = vpop.f32.mrb[188].mxu0  ;;  %v3327_v60 = vpack.c.bf16 %v3229_v32, %v3227_v57 }
 0x339   : > { %v3002_v61 = vadd.f32 %v3001_v59, %v13823_v49  ;;  %v3003_v43 = vpop.f32.mrb[189].mxu0 }
 0x33a   : > { %v3004_v62 = vadd.f32 %v3003_v43, %v13827_v51  ;;  %v3005_v63 = vpop.f32.mrb[190].mxu0  ;;  %3738 = vmatprep.mubr.bf16.mxu1 %v3327_v60 }
 0x33b   : > { %v3006_v0 = vadd.f32 %v3005_v63, %v13823_v49  ;;  %v3007_v45 = vpop.f32.mrb[191].mxu0  ;;  %3739 = vmatmul.mubr.bf16.gmra.mrb[184].mxu1 %v3326_v58  ;;  %v3230_v2 = vmax.f32 %v3002_v61, 0.0 }
 0x33c   : > { %v3008_v1 = vadd.f32 %v3007_v45, %v13827_v51  ;;  %v3231_v5 = vmax.f32 %v3004_v62, 0.0 }
 0x33d   : > { %v3232_v4 = vmax.f32 %v3006_v0, 0.0 }
 0x33e   : > { %v3233_v6 = vmax.f32 %v3008_v1, 0.0 }
 0x33f   : > { %v3328_v7 = vpack.c.bf16 %v3232_v4, %v3230_v2 }
 0x340   : > { %v3011_v8 = vpop.f32.mrb[192].mxu0  ;;  %v3329_v9 = vpack.c.bf16 %v3233_v6, %v3231_v5 }
 0x341   : > { %v3012_v10 = vadd.f32 %v3011_v8, %v13823_v49  ;;  %v3013_v11 = vpop.f32.mrb[193].mxu0 }
 0x342   : > { %v3014_v12 = vadd.f32 %v3013_v11, %v13827_v51  ;;  %v3015_v13 = vpop.f32.mrb[194].mxu0  ;;  %3748 = vmatprep.mubr.bf16.mxu1 %v3329_v9 }
 0x343   : > { %v3016_v14 = vadd.f32 %v3015_v13, %v13823_v49  ;;  %v3017_v15 = vpop.f32.mrb[195].mxu0  ;;  %3749 = vmatmul.mubr.bf16.gmra.mrb[188].mxu1 %v3328_v7  ;;  %v3234_v17 = vmax.f32 %v3012_v10, 0.0 }
 0x344   : > { %v3018_v16 = vadd.f32 %v3017_v15, %v13827_v51  ;;  %v3235_v19 = vmax.f32 %v3014_v12, 0.0 }
 0x345   : > { %v3236_v18 = vmax.f32 %v3016_v14, 0.0 }
 0x346   : > { %v3237_v20 = vmax.f32 %v3018_v16, 0.0 }
 0x347   : > { %v3330_v21 = vpack.c.bf16 %v3236_v18, %v3234_v17 }
 0x348   : > { %v3021_v22 = vpop.f32.mrb[196].mxu0  ;;  %v3331_v23 = vpack.c.bf16 %v3237_v20, %v3235_v19 }
 0x349   : > { %v3022_v24 = vadd.f32 %v3021_v22, %v13823_v49  ;;  %v3023_v25 = vpop.f32.mrb[197].mxu0 }
 0x34a   : > { %v3024_v27 = vadd.f32 %v3023_v25, %v13827_v51  ;;  %v3025_v29 = vpop.f32.mrb[198].mxu0  ;;  %3758 = vmatprep.mubr.bf16.mxu1 %v3331_v23 }
 0x34b   : > { %v3026_v30 = vadd.f32 %v3025_v29, %v13823_v49  ;;  %v3027_v33 = vpop.f32.mrb[199].mxu0  ;;  %3759 = vmatmul.mubr.bf16.gmra.mrb[192].mxu1 %v3330_v21  ;;  %v3238_v35 = vmax.f32 %v3022_v24, 0.0 }
 0x34c   : > { %v3028_v34 = vadd.f32 %v3027_v33, %v13827_v51  ;;  %v3239_v38 = vmax.f32 %v3024_v27, 0.0 }
 0x34d   : > { %v3240_v36 = vmax.f32 %v3026_v30, 0.0 }
 0x34e   : > { %v3241_v39 = vmax.f32 %v3028_v34, 0.0 }
 0x34f   : > { %v3332_v40 = vpack.c.bf16 %v3240_v36, %v3238_v35 }
 0x350   : > { %v3031_v41 = vpop.f32.mrb[200].mxu0  ;;  %v3333_v42 = vpack.c.bf16 %v3241_v39, %v3239_v38 }
 0x351   : > { %v3032_v44 = vadd.f32 %v3031_v41, %v13823_v49  ;;  %v3033_v46 = vpop.f32.mrb[201].mxu0 }
 0x352   : > { %v3034_v47 = vadd.f32 %v3033_v46, %v13827_v51  ;;  %v3035_v48 = vpop.f32.mrb[202].mxu0  ;;  %3768 = vmatprep.mubr.bf16.mxu1 %v3333_v42 }
 0x353   : > { %v3036_v50 = vadd.f32 %v3035_v48, %v13823_v49  ;;  %v3037_v52 = vpop.f32.mrb[203].mxu0  ;;  %3769 = vmatmul.mubr.bf16.gmra.mrb[196].mxu1 %v3332_v40  ;;  %v3242_v54 = vmax.f32 %v3032_v44, 0.0 }
 0x354   : > { %v3038_v53 = vadd.f32 %v3037_v52, %v13827_v51  ;;  %v3243_v31 = vmax.f32 %v3034_v47, 0.0 }
 0x355   : > { %v3244_v55 = vmax.f32 %v3036_v50, 0.0 }
 0x356   : > { %v3245_v56 = vmax.f32 %v3038_v53, 0.0 }
 0x357   : > { %v3334_v57 = vpack.c.bf16 %v3244_v55, %v3242_v54 }
 0x358   : > { %v3041_v32 = vpop.f32.mrb[204].mxu0  ;;  %v3335_v58 = vpack.c.bf16 %v3245_v56, %v3243_v31 }
 0x359   : > { %v3042_v59 = vadd.f32 %v3041_v32, %v13823_v49  ;;  %v3043_v60 = vpop.f32.mrb[205].mxu0 }
 0x35a   : > { %v3044_v61 = vadd.f32 %v3043_v60, %v13827_v51  ;;  %v3045_v43 = vpop.f32.mrb[206].mxu0  ;;  %3778 = vmatprep.mubr.bf16.mxu1 %v3335_v58 }
 0x35b   : > { %v3046_v62 = vadd.f32 %v3045_v43, %v13823_v49  ;;  %v3047_v63 = vpop.f32.mrb[207].mxu0  ;;  %3779 = vmatmul.mubr.bf16.gmra.mrb[200].mxu1 %v3334_v57  ;;  %v3246_v45 = vmax.f32 %v3042_v59, 0.0 }
 0x35c   : > { %v3048_v0 = vadd.f32 %v3047_v63, %v13827_v51  ;;  %v3247_v2 = vmax.f32 %v3044_v61, 0.0 }
 0x35d   : > { %v3248_v1 = vmax.f32 %v3046_v62, 0.0 }
 0x35e   : > { %v3249_v4 = vmax.f32 %v3048_v0, 0.0 }
 0x35f   : > { %v3336_v5 = vpack.c.bf16 %v3248_v1, %v3246_v45 }
 0x360   : > { %v3051_v6 = vpop.f32.mrb[208].mxu0  ;;  %v3337_v7 = vpack.c.bf16 %v3249_v4, %v3247_v2 }
 0x361   : > { %v3052_v8 = vadd.f32 %v3051_v6, %v13823_v49  ;;  %v3053_v9 = vpop.f32.mrb[209].mxu0 }
 0x362   : > { %v3054_v10 = vadd.f32 %v3053_v9, %v13827_v51  ;;  %v3055_v11 = vpop.f32.mrb[210].mxu0  ;;  %3788 = vmatprep.mubr.bf16.mxu1 %v3337_v7 }
 0x363   : > { %v3056_v12 = vadd.f32 %v3055_v11, %v13823_v49  ;;  %v3057_v13 = vpop.f32.mrb[211].mxu0  ;;  %3789 = vmatmul.mubr.bf16.gmra.mrb[204].mxu1 %v3336_v5  ;;  %v3250_v15 = vmax.f32 %v3052_v8, 0.0 }
 0x364   : > { %v3058_v14 = vadd.f32 %v3057_v13, %v13827_v51  ;;  %v3251_v17 = vmax.f32 %v3054_v10, 0.0 }
 0x365   : > { %v3252_v16 = vmax.f32 %v3056_v12, 0.0 }
 0x366   : > { %v3253_v18 = vmax.f32 %v3058_v14, 0.0 }
 0x367   : > { %v3338_v19 = vpack.c.bf16 %v3252_v16, %v3250_v15 }
 0x368   : > { %v3061_v20 = vpop.f32.mrb[212].mxu0  ;;  %v3339_v21 = vpack.c.bf16 %v3253_v18, %v3251_v17 }
 0x369   : > { %v3062_v22 = vadd.f32 %v3061_v20, %v13823_v49  ;;  %v3063_v23 = vpop.f32.mrb[213].mxu0 }
 0x36a   : > { %v3064_v24 = vadd.f32 %v3063_v23, %v13827_v51  ;;  %v3065_v25 = vpop.f32.mrb[214].mxu0  ;;  %3798 = vmatprep.mubr.bf16.mxu1 %v3339_v21 }
 0x36b   : > { %v3066_v27 = vadd.f32 %v3065_v25, %v13823_v49  ;;  %v3067_v29 = vpop.f32.mrb[215].mxu0  ;;  %3799 = vmatmul.mubr.bf16.gmra.mrb[208].mxu1 %v3338_v19  ;;  %v3254_v33 = vmax.f32 %v3062_v22, 0.0 }
 0x36c   : > { %v3068_v30 = vadd.f32 %v3067_v29, %v13827_v51  ;;  %v3255_v35 = vmax.f32 %v3064_v24, 0.0 }
 0x36d   : > { %v3256_v34 = vmax.f32 %v3066_v27, 0.0 }
 0x36e   : > { %v3257_v36 = vmax.f32 %v3068_v30, 0.0 }
 0x36f   : > { %v3340_v37 = vpack.c.bf16 %v3256_v34, %v3254_v33 }
 0x370   : > { %v3071_v38 = vpop.f32.mrb[216].mxu0  ;;  %v3341_v39 = vpack.c.bf16 %v3257_v36, %v3255_v35 }
 0x371   : > { %v3072_v40 = vadd.f32 %v3071_v38, %v13823_v49  ;;  %v3073_v41 = vpop.f32.mrb[217].mxu0 }
 0x372   : > { %v3074_v42 = vadd.f32 %v3073_v41, %v13827_v51  ;;  %v3075_v44 = vpop.f32.mrb[218].mxu0  ;;  %3808 = vmatprep.mubr.bf16.mxu1 %v3341_v39 }
 0x373   : > { %v3076_v46 = vadd.f32 %v3075_v44, %v13823_v49  ;;  %v3077_v47 = vpop.f32.mrb[219].mxu0  ;;  %3809 = vmatmul.mubr.bf16.gmra.mrb[212].mxu1 %v3340_v37  ;;  %v3258_v50 = vmax.f32 %v3072_v40, 0.0 }
 0x374   : > { %v3078_v48 = vadd.f32 %v3077_v47, %v13827_v51  ;;  %v3259_v53 = vmax.f32 %v3074_v42, 0.0 }
 0x375   : > { %v3260_v52 = vmax.f32 %v3076_v46, 0.0 }
 0x376   : > { %v3261_v54 = vmax.f32 %v3078_v48, 0.0 }
 0x377   : > { %v3342_v55 = vpack.c.bf16 %v3260_v52, %v3258_v50 }
 0x378   : > { %v3081_v31 = vpop.f32.mrb[220].mxu0  ;;  %v3343_v56 = vpack.c.bf16 %v3261_v54, %v3259_v53 }
 0x379   : > { %v3082_v57 = vadd.f32 %v3081_v31, %v13823_v49  ;;  %v3083_v32 = vpop.f32.mrb[221].mxu0 }
 0x37a   : > { %v3084_v58 = vadd.f32 %v3083_v32, %v13827_v51  ;;  %v3085_v59 = vpop.f32.mrb[222].mxu0  ;;  %3818 = vmatprep.mubr.bf16.mxu1 %v3343_v56 }
 0x37b   : > { %v3086_v60 = vadd.f32 %v3085_v59, %v13823_v49  ;;  %v3087_v61 = vpop.f32.mrb[223].mxu0  ;;  %3819 = vmatmul.mubr.bf16.gmra.mrb[216].mxu1 %v3342_v55  ;;  %v3262_v62 = vmax.f32 %v3082_v57, 0.0  ;;  %v3394_v55 = vld [vmem:[%s17607_s4] sm:$0x3]  ;;  %s17610_s4 = sld [smem:[#allocation47_spill]] }
 0x37c   : > { %v3088_v43 = vadd.f32 %v3087_v61, %v13827_v51  ;;  %v3263_v0 = vmax.f32 %v3084_v58, 0.0 }
 0x37d   : > { %v3264_v63 = vmax.f32 %v3086_v60, 0.0  ;;  %v14050_v60 = vrot.slane %v3394_v55, %v13371_v26 }
 0x37e   : > { %v3265_v45 = vmax.f32 %v3088_v43, 0.0  ;;  %v14054_v43 = vrot.slane %v3394_v55, %v13376_v28 }
 0x37f   : > { %v3344_v1 = vpack.c.bf16 %v3264_v63, %v3262_v62 }
 0x380   : > { %v3091_v2 = vpop.f32.mrb[224].mxu0  ;;  %v3345_v4 = vpack.c.bf16 %v3265_v45, %v3263_v0 }
 0x381   : > { %v3092_v5 = vadd.f32 %v3091_v2, %v13823_v49  ;;  %v3093_v6 = vpop.f32.mrb[225].mxu0 }
 0x382   : > { %v3094_v7 = vadd.f32 %v3093_v6, %v13827_v51  ;;  %v3095_v8 = vpop.f32.mrb[226].mxu0  ;;  %3828 = vmatprep.mubr.bf16.mxu1 %v3345_v4 }
 0x383   : > { %v3096_v9 = vadd.f32 %v3095_v8, %v13823_v49  ;;  %v3097_v10 = vpop.f32.mrb[227].mxu0  ;;  %3829 = vmatmul.mubr.bf16.gmra.mrb[220].mxu1 %v3344_v1  ;;  %v3266_v12 = vmax.f32 %v3092_v5, 0.0 }
 0x384   : > { %v3098_v11 = vadd.f32 %v3097_v10, %v13827_v51  ;;  %v3267_v14 = vmax.f32 %v3094_v7, 0.0 }
 0x385   : > { %v3268_v13 = vmax.f32 %v3096_v9, 0.0 }
 0x386   : > { %v3269_v15 = vmax.f32 %v3098_v11, 0.0 }
 0x387   : > { %v3346_v16 = vpack.c.bf16 %v3268_v13, %v3266_v12 }
 0x388   : > { %v3101_v17 = vpop.f32.mrb[228].mxu0  ;;  %v3347_v18 = vpack.c.bf16 %v3269_v15, %v3267_v14 }
 0x389   : > { %v3102_v19 = vadd.f32 %v3101_v17, %v13823_v49  ;;  %v3103_v20 = vpop.f32.mrb[229].mxu0 }
 0x38a   : > { %v3104_v21 = vadd.f32 %v3103_v20, %v13827_v51  ;;  %v3105_v22 = vpop.f32.mrb[230].mxu0  ;;  %3838 = vmatprep.mubr.bf16.mxu1 %v3347_v18 }
 0x38b   : > { %v3106_v23 = vadd.f32 %v3105_v22, %v13823_v49  ;;  %v3107_v24 = vpop.f32.mrb[231].mxu0  ;;  %3839 = vmatmul.mubr.bf16.gmra.mrb[224].mxu1 %v3346_v16  ;;  %v3270_v27 = vmax.f32 %v3102_v19, 0.0 }
 0x38c   : > { %v3108_v25 = vadd.f32 %v3107_v24, %v13827_v51  ;;  %v3271_v30 = vmax.f32 %v3104_v21, 0.0 }
 0x38d   : > { %v3272_v29 = vmax.f32 %v3106_v23, 0.0 }
 0x38e   : > { %v3273_v33 = vmax.f32 %v3108_v25, 0.0 }
 0x38f   : > { %v3348_v34 = vpack.c.bf16 %v3272_v29, %v3270_v27 }
 0x390   : > { %v3111_v35 = vpop.f32.mrb[232].mxu0  ;;  %v3349_v36 = vpack.c.bf16 %v3273_v33, %v3271_v30 }
 0x391   : > { %v3112_v37 = vadd.f32 %v3111_v35, %v13823_v49  ;;  %v3113_v38 = vpop.f32.mrb[233].mxu0 }
 0x392   : > { %v3114_v39 = vadd.f32 %v3113_v38, %v13827_v51  ;;  %v3115_v40 = vpop.f32.mrb[234].mxu0  ;;  %3848 = vmatprep.mubr.bf16.mxu1 %v3349_v36 }
 0x393   : > { %v3116_v41 = vadd.f32 %v3115_v40, %v13823_v49  ;;  %v3117_v42 = vpop.f32.mrb[235].mxu0  ;;  %3849 = vmatmul.mubr.bf16.gmra.mrb[228].mxu1 %v3348_v34  ;;  %v3274_v46 = vmax.f32 %v3112_v37, 0.0 }
 0x394   : > { %v3118_v44 = vadd.f32 %v3117_v42, %v13827_v51  ;;  %v3275_v48 = vmax.f32 %v3114_v39, 0.0 }
 0x395   : > { %v3276_v47 = vmax.f32 %v3116_v41, 0.0 }
 0x396   : > { %v3277_v50 = vmax.f32 %v3118_v44, 0.0 }
 0x397   : > { %v3350_v52 = vpack.c.bf16 %v3276_v47, %v3274_v46 }
 0x398   : > { %v3121_v53 = vpop.f32.mrb[236].mxu0  ;;  %v3351_v54 = vpack.c.bf16 %v3277_v50, %v3275_v48 }
 0x399   : > { %v3122_v31 = vadd.f32 %v3121_v53, %v13823_v49  ;;  %v3123_v56 = vpop.f32.mrb[237].mxu0 }
 0x39a   : > { %v3124_v57 = vadd.f32 %v3123_v56, %v13827_v51  ;;  %v3125_v32 = vpop.f32.mrb[238].mxu0  ;;  %3858 = vmatprep.mubr.bf16.mxu1 %v3351_v54 }
 0x39b   : > { %v3126_v58 = vadd.f32 %v3125_v32, %v13823_v49  ;;  %v3127_v59 = vpop.f32.mrb[239].mxu0  ;;  %3859 = vmatmul.mubr.bf16.gmra.mrb[232].mxu1 %v3350_v52  ;;  %v3278_v62 = vmax.f32 %v3122_v31, 0.0 }
 0x39c   : > { %v3128_v61 = vadd.f32 %v3127_v59, %v13827_v51  ;;  %v3279_v0 = vmax.f32 %v3124_v57, 0.0 }
 0x39d   : > { %v3280_v63 = vmax.f32 %v3126_v58, 0.0 }
 0x39e   : > { %v3281_v45 = vmax.f32 %v3128_v61, 0.0  ;;  %v3600_v1 = vpop.f32.mrb[128].mxu1 }
 0x39f   : > { %v3601_v2 = vadd.f32 %v3600_v1, %v14050_v60  ;;  %v3602_v4 = vpop.f32.mrb[129].mxu1  ;;  %v3352_v5 = vpack.c.bf16 %v3280_v63, %v3278_v62 }
 0x3a0   : > { %v3603_v6 = vadd.f32 %v3602_v4, %v14054_v43  ;;  %v3131_v7 = vpop.f32.mrb[240].mxu0  ;;  %v3604_v8 = vpop.f32.mrb[130].mxu1  ;;  %v3353_v9 = vpack.c.bf16 %v3281_v45, %v3279_v0 }
 0x3a1   : > { %v3132_v10 = vadd.f32 %v3131_v7, %v13823_v49  ;;  %v3605_v11 = vadd.f32 %v3604_v8, %v14050_v60  ;;  %v3133_v12 = vpop.f32.mrb[241].mxu0  ;;  %v3606_v13 = vpop.f32.mrb[131].mxu1  ;;  %v3919_v17 = vmax.f32 %v3601_v2, 0.0 }
 0x3a2   : > { %v3134_v14 = vadd.f32 %v3133_v12, %v13827_v51  ;;  %v3607_v15 = vadd.f32 %v3606_v13, %v14054_v43  ;;  %v3135_v16 = vpop.f32.mrb[242].mxu0  ;;  %3868 = vmatprep.mubr.bf16.mxu1 %v3353_v9  ;;  %v3920_v21 = vmax.f32 %v3603_v6, 0.0 }
 0x3a3   : > { %v3921_v18 = vmax.f32 %v3605_v11, 0.0  ;;  %v3136_v19 = vadd.f32 %v3135_v16, %v13823_v49  ;;  %v3137_v20 = vpop.f32.mrb[243].mxu0  ;;  %3869 = vmatmul.mubr.bf16.gmra.mrb[236].mxu1 %v3352_v5  ;;  %v3282_v24 = vmax.f32 %v3132_v10, 0.0 }
 0x3a4   : > { %v3922_v22 = vmax.f32 %v3607_v15, 0.0  ;;  %v3138_v23 = vadd.f32 %v3137_v20, %v13827_v51  ;;  %v3283_v29 = vmax.f32 %v3134_v14, 0.0 }
 0x3a5   : > { %v4047_v25 = vpack.c.bf16 %v3921_v18, %v3919_v17  ;;  %v3284_v27 = vmax.f32 %v3136_v19, 0.0 }
 0x3a6   : > { %v3285_v30 = vmax.f32 %v3138_v23, 0.0  ;;  %v3610_v33 = vpop.f32.mrb[132].mxu1  ;;  %v4048_v34 = vpack.c.bf16 %v3922_v22, %v3920_v21 }
 0x3a7   : > { %v3611_v35 = vadd.f32 %v3610_v33, %v14050_v60  ;;  %v3612_v36 = vpop.f32.mrb[133].mxu1  ;;  %v3354_v37 = vpack.c.bf16 %v3284_v27, %v3282_v24 }
 0x3a8   : > { %v3613_v38 = vadd.f32 %v3612_v36, %v14054_v43  ;;  %v3141_v39 = vpop.f32.mrb[244].mxu0  ;;  %v3614_v40 = vpop.f32.mrb[134].mxu1  ;;  %4347 = vmatprep.mubr.bf16.mxu0 %v4048_v34  ;;  %v3355_v41 = vpack.c.bf16 %v3285_v30, %v3283_v29 }
 0x3a9   : > { %v3142_v42 = vadd.f32 %v3141_v39, %v13823_v49  ;;  %v3615_v44 = vadd.f32 %v3614_v40, %v14050_v60  ;;  %v3143_v46 = vpop.f32.mrb[245].mxu0  ;;  %v3616_v47 = vpop.f32.mrb[135].mxu1  ;;  %4348 = vmatmul.mubr.bf16.vlgmr.msra.gmra.mrb[0].mxu0 %v4047_v25  ;;  %v3923_v53 = vmax.f32 %v3611_v35, 0.0 }
 0x3aa   : > { %v3144_v48 = vadd.f32 %v3143_v46, %v13827_v51  ;;  %v3617_v50 = vadd.f32 %v3616_v47, %v14054_v43  ;;  %v3145_v52 = vpop.f32.mrb[246].mxu0  ;;  %3878 = vmatprep.mubr.bf16.mxu1 %v3355_v41  ;;  %v3924_v56 = vmax.f32 %v3613_v38, 0.0 }
 0x3ab   : > { %v3925_v54 = vmax.f32 %v3615_v44, 0.0  ;;  %v3146_v55 = vadd.f32 %v3145_v52, %v13823_v49  ;;  %v3147_v31 = vpop.f32.mrb[247].mxu0  ;;  %3879 = vmatmul.mubr.bf16.gmra.mrb[240].mxu1 %v3354_v37  ;;  %v3286_v58 = vmax.f32 %v3142_v42, 0.0 }
 0x3ac   : > { %v3926_v57 = vmax.f32 %v3617_v50, 0.0  ;;  %v3148_v32 = vadd.f32 %v3147_v31, %v13827_v51  ;;  %v3287_v62 = vmax.f32 %v3144_v48, 0.0 }
 0x3ad   : > { %v4049_v59 = vpack.c.bf16 %v3925_v54, %v3923_v53  ;;  %v3288_v61 = vmax.f32 %v3146_v55, 0.0 }
 0x3ae   : > { %v3289_v63 = vmax.f32 %v3148_v32, 0.0  ;;  %v3620_v0 = vpop.f32.mrb[136].mxu1  ;;  %v4050_v45 = vpack.c.bf16 %v3926_v57, %v3924_v56 }
 0x3af   : > { %v3621_v1 = vadd.f32 %v3620_v0, %v14050_v60  ;;  %v3622_v2 = vpop.f32.mrb[137].mxu1  ;;  %v3356_v4 = vpack.c.bf16 %v3288_v61, %v3286_v58 }
 0x3b0   : > { %v3623_v5 = vadd.f32 %v3622_v2, %v14054_v43  ;;  %v3151_v6 = vpop.f32.mrb[248].mxu0  ;;  %v3624_v7 = vpop.f32.mrb[138].mxu1  ;;  %4357 = vmatprep.mubr.bf16.mxu0 %v4050_v45  ;;  %v3357_v8 = vpack.c.bf16 %v3289_v63, %v3287_v62 }
 0x3b1   : > { %v3152_v9 = vadd.f32 %v3151_v6, %v13823_v49  ;;  %v3625_v10 = vadd.f32 %v3624_v7, %v14050_v60  ;;  %v3153_v11 = vpop.f32.mrb[249].mxu0  ;;  %v3626_v12 = vpop.f32.mrb[139].mxu1  ;;  %4358 = vmatmul.mubr.bf16.gmra.mrb[4].mxu0 %v4049_v59  ;;  %v3927_v16 = vmax.f32 %v3621_v1, 0.0 }
 0x3b2   : > { %v3154_v13 = vadd.f32 %v3153_v11, %v13827_v51  ;;  %v3627_v14 = vadd.f32 %v3626_v12, %v14054_v43  ;;  %v3155_v15 = vpop.f32.mrb[250].mxu0  ;;  %3888 = vmatprep.mubr.bf16.mxu1 %v3357_v8  ;;  %v3928_v20 = vmax.f32 %v3623_v5, 0.0 }
 0x3b3   : > { %v3929_v17 = vmax.f32 %v3625_v10, 0.0  ;;  %v3156_v18 = vadd.f32 %v3155_v15, %v13823_v49  ;;  %v3157_v19 = vpop.f32.mrb[251].mxu0  ;;  %3889 = vmatmul.mubr.bf16.gmra.mrb[244].mxu1 %v3356_v4  ;;  %v3290_v23 = vmax.f32 %v3152_v9, 0.0 }
 0x3b4   : > { %v3930_v21 = vmax.f32 %v3627_v14, 0.0  ;;  %v3158_v22 = vadd.f32 %v3157_v19, %v13827_v51  ;;  %v3291_v27 = vmax.f32 %v3154_v13, 0.0  ;;  %v12383_v19 = vld [vmem:[%s17606_s8] ss:$8 sps:$4 sm:$0xff]  }
 0x3b5   : > { %v4051_v24 = vpack.c.bf16 %v3929_v17, %v3927_v16  ;;  %v3292_v25 = vmax.f32 %v3156_v18, 0.0 }
 0x3b6   : > { %v3293_v29 = vmax.f32 %v3158_v22, 0.0  ;;  %v3630_v30 = vpop.f32.mrb[140].mxu1  ;;  %v4052_v33 = vpack.c.bf16 %v3930_v21, %v3928_v20  ;;  %v12388_v22 = vld [vmem:[%s17606_s8 + $0x14] ss:$8 sps:$4 sm:$0xff]  }
 0x3b7   : > { %v3631_v34 = vadd.f32 %v3630_v30, %v14050_v60  ;;  %v3632_v35 = vpop.f32.mrb[141].mxu1  ;;  %v3358_v36 = vpack.c.bf16 %v3292_v25, %v3290_v23 }
 0x3b8   : > { %v3633_v37 = vadd.f32 %v3632_v35, %v14054_v43  ;;  %v3161_v38 = vpop.f32.mrb[252].mxu0  ;;  %v3634_v39 = vpop.f32.mrb[142].mxu1  ;;  %4367 = vmatprep.mubr.bf16.mxu0 %v4052_v33  ;;  %v3359_v40 = vpack.c.bf16 %v3293_v29, %v3291_v27  ;;  %v12905_v27 = vld [vmem:[%s13131_s0] sm:$0xff]   ;;  %v12386_v33 = vld [vmem:[%s17606_s8 + $0x10] ss:$8 sps:$4 sm:$0xff]  }
 0x3b9   : > { %v3162_v41 = vadd.f32 %v3161_v38, %v13823_v49  ;;  %v3635_v42 = vadd.f32 %v3634_v39, %v14050_v60  ;;  %v3163_v44 = vpop.f32.mrb[253].mxu0  ;;  %v3636_v46 = vpop.f32.mrb[143].mxu1  ;;  %4368 = vmatmul.mubr.bf16.gmra.mrb[8].mxu0 %v4051_v24  ;;  %v3931_v52 = vmax.f32 %v3631_v34, 0.0  ;;  %v12391_v35 = vld [vmem:[%s17606_s8 + $0x24] ss:$8 sps:$4 sm:$0xff]  }
 0x3ba   : > { %v3164_v47 = vadd.f32 %v3163_v44, %v13827_v51  ;;  %v3637_v48 = vadd.f32 %v3636_v46, %v14054_v43  ;;  %v3165_v50 = vpop.f32.mrb[254].mxu0  ;;  %3898 = vmatprep.mubr.bf16.mxu1 %v3359_v40  ;;  %v3932_v31 = vmax.f32 %v3633_v37, 0.0 }
 0x3bb   : > { %v3933_v53 = vmax.f32 %v3635_v42, 0.0  ;;  %v3166_v54 = vadd.f32 %v3165_v50, %v13823_v49  ;;  %v3167_v55 = vpop.f32.mrb[255].mxu0  ;;  %3899 = vmatmul.mubr.bf16.gmra.mrb[248].mxu1 %v3358_v36  ;;  %v3294_v32 = vmax.f32 %v3162_v41, 0.0  ;;  %v12389_v42 = vld [vmem:[%s17606_s8 + $0x20] ss:$8 sps:$4 sm:$0xff]  }
 0x3bc   : > { %v3934_v56 = vmax.f32 %v3637_v48, 0.0  ;;  %v3168_v57 = vadd.f32 %v3167_v55, %v13827_v51  ;;  %v3295_v61 = vmax.f32 %v3164_v47, 0.0  ;;  %v12394_v47 = vld [vmem:[%s17606_s8 + $0x34] ss:$8 sps:$4 sm:$0xff]  }
 0x3bd   : > { %v4053_v58 = vpack.c.bf16 %v3933_v53, %v3931_v52  ;;  %v3296_v59 = vmax.f32 %v3166_v54, 0.0  ;;  %v12906_v53 = vld [vmem:[%s13131_s0 + $0x8] sm:$0xff]  }
 0x3be   : > { %v3297_v62 = vmax.f32 %v3168_v57, 0.0  ;;  %v3640_v63 = vpop.f32.mrb[144].mxu1  ;;  %v4054_v0 = vpack.c.bf16 %v3934_v56, %v3932_v31  ;;  %v12392_v31 = vld [vmem:[%s17606_s8 + $0x30] ss:$8 sps:$4 sm:$0xff]   ;;  %v12397_v57 = vld [vmem:[%s17606_s8 + $0x44] ss:$8 sps:$4 sm:$0xff]  }
 0x3bf   : > { %v3641_v45 = vadd.f32 %v3640_v63, %v14050_v60  ;;  %v3642_v1 = vpop.f32.mrb[145].mxu1  ;;  %v3360_v2 = vpack.c.bf16 %v3296_v59, %v3294_v32 }
 0x3c0   : > { %v3643_v4 = vadd.f32 %v3642_v1, %v14054_v43  ;;  %v3644_v49 = vpop.f32.mrb[146].mxu1  ;;  %4377 = vmatprep.mubr.bf16.mxu0 %v4054_v0  ;;  %v3361_v5 = vpack.c.bf16 %v3297_v62, %v3295_v61  ;;  %v12395_v0 = vld [vmem:[%s17606_s8 + $0x40] ss:$8 sps:$4 sm:$0xff]  }
 0x3c1   : > { %v3645_v6 = vadd.f32 %v3644_v49, %v14050_v60  ;;  %v3646_v7 = vpop.f32.mrb[147].mxu1  ;;  %4378 = vmatmul.mubr.bf16.gmra.mrb[12].mxu0 %v4053_v58  ;;  %v3935_v8 = vmax.f32 %v3641_v45, 0.0 }
 0x3c2   : > { %v3647_v51 = vadd.f32 %v3646_v7, %v14054_v43  ;;  %3908 = vmatprep.mubr.bf16.mxu1 %v3361_v5  ;;  %v3936_v10 = vmax.f32 %v3643_v4, 0.0 }
 0x3c3   : > { %v3937_v9 = vmax.f32 %v3645_v6, 0.0  ;;  %3909 = vmatmul.mubr.bf16.gmra.mrb[252].mxu1 %v3360_v2  ;;  %v12400_v2 = vld [vmem:[%s17606_s8 + $0x54] ss:$8 sps:$4 sm:$0xff]  }
 0x3c4   : > { %v3938_v11 = vmax.f32 %v3647_v51, 0.0  ;;  %4972 = vmatprep.mubr.bf16.mxu1 %v17539_v3  ;;  %v12907_v6 = vld [vmem:[%s13131_s0 + $0x10] sm:$0xff]  }
 0x3c5   : > { %v4055_v12 = vpack.c.bf16 %v3937_v9, %v3935_v8  ;;  %v12398_v8 = vld [vmem:[%s17606_s8 + $0x50] ss:$8 sps:$4 sm:$0xff]  }
 0x3c6   : > { %v3650_v13 = vpop.f32.mrb[148].mxu1  ;;  %v4056_v14 = vpack.c.bf16 %v3938_v11, %v3936_v10  ;;  %v12403_v10 = vld [vmem:[%s17606_s8 + $0x64] ss:$8 sps:$4 sm:$0xff]  }
 0x3c7   : > { %v3651_v15 = vadd.f32 %v3650_v13, %v14050_v60  ;;  %v3652_v16 = vpop.f32.mrb[149].mxu1 }
 0x3c8   : > { %v3653_v17 = vadd.f32 %v3652_v16, %v14054_v43  ;;  %v3654_v18 = vpop.f32.mrb[150].mxu1  ;;  %4387 = vmatprep.mubr.bf16.mxu0 %v4056_v14 }
 0x3c9   : > { %v3655_v20 = vadd.f32 %v3654_v18, %v14050_v60  ;;  %v3656_v21 = vpop.f32.mrb[151].mxu1  ;;  %4388 = vmatmul.mubr.bf16.gmra.mrb[16].mxu0 %v4055_v12  ;;  %v3939_v24 = vmax.f32 %v3651_v15, 0.0 }
 0x3ca   : > { %v3657_v23 = vadd.f32 %v3656_v21, %v14054_v43  ;;  %v3940_v29 = vmax.f32 %v3653_v17, 0.0  ;;  %v12401_v17 = vld [vmem:[%s17606_s8 + $0x60] ss:$8 sps:$4 sm:$0xff]  }
 0x3cb   : > { %v3941_v25 = vmax.f32 %v3655_v20, 0.0  ;;  %11440 = vmatmul.mubr.msk.bf16.vlgmr.msra.gmra.mrb[0].mxu1 %vm1222_vm0, %v12905_v27  ;;  %v12406_v20 = vld [vmem:[%s17606_s8 + $0x74] ss:$8 sps:$4 sm:$0xff]  }
 0x3cc   : > { %v3942_v30 = vmax.f32 %v3657_v23, 0.0  ;;  %5454 = vmatpush1.bf16.msra.mxu1 %v12383_v19  ;;  %4982 = vmatprep.mubr.bf16.mxu1 %v17539_v3 }
 0x3cd   : > { %v4057_v34 = vpack.c.bf16 %v3941_v25, %v3939_v24  ;;  %5455 = vmatprep.subr.bf16.mxu1 %v12388_v22  ;;  %v12908_v24 = vld [vmem:[%s13131_s0 + $0x18] sm:$0xff]  }
 0x3ce   : > { %v3660_v36 = vpop.f32.mrb[152].mxu1  ;;  %v4058_v37 = vpack.c.bf16 %v3942_v30, %v3940_v29  ;;  %v12404_v29 = vld [vmem:[%s17606_s8 + $0x70] ss:$8 sps:$4 sm:$0xff]  }
 0x3cf   : > { %v3661_v38 = vadd.f32 %v3660_v36, %v14050_v60  ;;  %v3662_v39 = vpop.f32.mrb[153].mxu1 }
 0x3d0   : > { %v3663_v40 = vadd.f32 %v3662_v39, %v14054_v43  ;;  %v3664_v41 = vpop.f32.mrb[154].mxu1  ;;  %4397 = vmatprep.mubr.bf16.mxu0 %v4058_v37  ;;  %5456 = vmatpush1.bf16.msra.mxu1 %v12386_v33  ;;  %v12409_v33 = vld [vmem:[%s17606_s8 + $0x84] ss:$8 sps:$4 sm:$0xff]  }
 0x3d1   : > { %v3665_v44 = vadd.f32 %v3664_v41, %v14050_v60  ;;  %v3666_v46 = vpop.f32.mrb[155].mxu1  ;;  %4398 = vmatmul.mubr.bf16.gmra.mrb[20].mxu0 %v4057_v34  ;;  %5457 = vmatprep.subr.bf16.mxu1 %v12391_v35  ;;  %v3943_v50 = vmax.f32 %v3661_v38, 0.0 }
 0x3d2   : > { %v3667_v48 = vadd.f32 %v3666_v46, %v14054_v43  ;;  %v3944_v54 = vmax.f32 %v3663_v40, 0.0  ;;  %v12407_v40 = vld [vmem:[%s17606_s8 + $0x80] ss:$8 sps:$4 sm:$0xff]  }
 0x3d3   : > { %v3945_v52 = vmax.f32 %v3665_v44, 0.0  ;;  %11441 = vmatmul.mubr.msk.bf16.gmra.mrb[4].mxu1 %vm1222_vm0, %v12906_v53  ;;  %v12412_v44 = vld [vmem:[%s17606_s8 + $0x94] ss:$8 sps:$4 sm:$0xff]  }
 0x3d4   : > { %v3946_v55 = vmax.f32 %v3667_v48, 0.0  ;;  %4992 = vmatprep.mubr.bf16.mxu1 %v17539_v3  ;;  %5458 = vmatpush1.bf16.msra.mxu1 %v12389_v42 }
 0x3d5   : > { %v4059_v56 = vpack.c.bf16 %v3945_v52, %v3943_v50  ;;  %5459 = vmatprep.subr.bf16.mxu1 %v12394_v47  ;;  %v12909_v50 = vld [vmem:[%s13131_s0 + $0x20] sm:$0xff]  }
 0x3d6   : > { %v3670_v32 = vpop.f32.mrb[156].mxu1  ;;  %v4060_v58 = vpack.c.bf16 %v3946_v55, %v3944_v54  ;;  %v12410_v54 = vld [vmem:[%s17606_s8 + $0x90] ss:$8 sps:$4 sm:$0xff]  }
 0x3d7   : > { %v3671_v59 = vadd.f32 %v3670_v32, %v14050_v60  ;;  %v3672_v61 = vpop.f32.mrb[157].mxu1 }
 0x3d8   : > { %v3673_v62 = vadd.f32 %v3672_v61, %v14054_v43  ;;  %v3674_v63 = vpop.f32.mrb[158].mxu1  ;;  %4407 = vmatprep.mubr.bf16.mxu0 %v4060_v58  ;;  %5460 = vmatpush1.bf16.msra.mxu1 %v12392_v31  ;;  %v12415_v31 = vld [vmem:[%s17606_s8 + $0xa4] ss:$8 sps:$4 sm:$0xff]  }
 0x3d9   : > { %v3675_v45 = vadd.f32 %v3674_v63, %v14050_v60  ;;  %v3676_v1 = vpop.f32.mrb[159].mxu1  ;;  %4408 = vmatmul.mubr.bf16.gmra.mrb[24].mxu0 %v4059_v56  ;;  %5461 = vmatprep.subr.bf16.mxu1 %v12397_v57  ;;  %v3947_v49 = vmax.f32 %v3671_v59, 0.0 }
 0x3da   : > { %v3677_v4 = vadd.f32 %v3676_v1, %v14054_v43  ;;  %v3948_v7 = vmax.f32 %v3673_v62, 0.0  ;;  %v12413_v62 = vld [vmem:[%s17606_s8 + $0xa0] ss:$8 sps:$4 sm:$0xff]  }
 0x3db   : > { %v3949_v5 = vmax.f32 %v3675_v45, 0.0  ;;  %11442 = vmatmul.mubr.msk.bf16.gmra.mrb[8].mxu1 %vm1222_vm0, %v12907_v6 }
 0x3dc   : > { %v3950_v51 = vmax.f32 %v3677_v4, 0.0  ;;  %5002 = vmatprep.mubr.bf16.mxu1 %v17539_v3  ;;  %5462 = vmatpush1.bf16.msra.mxu1 %v12395_v0  ;;  %v12910_v4 = vld [vmem:[%s13131_s0 + $0x28] sm:$0xff]  }
 0x3dd   : > { %v4061_v9 = vpack.c.bf16 %v3949_v5, %v3947_v49  ;;  %5463 = vmatprep.subr.bf16.mxu1 %v12400_v2 }
 0x3de   : > { %v3680_v11 = vpop.f32.mrb[160].mxu1  ;;  %v4062_v12 = vpack.c.bf16 %v3950_v51, %v3948_v7 }
 0x3df   : > { %v3681_v13 = vadd.f32 %v3680_v11, %v14050_v60  ;;  %v3682_v14 = vpop.f32.mrb[161].mxu1 }
 0x3e0   : > { %v3683_v15 = vadd.f32 %v3682_v14, %v14054_v43  ;;  %v3684_v16 = vpop.f32.mrb[162].mxu1  ;;  %4417 = vmatprep.mubr.bf16.mxu0 %v4062_v12  ;;  %5464 = vmatpush1.bf16.msra.mxu1 %v12398_v8 }
 0x3e1   : > { %v3685_v18 = vadd.f32 %v3684_v16, %v14050_v60  ;;  %v3686_v19 = vpop.f32.mrb[163].mxu1  ;;  %4418 = vmatmul.mubr.bf16.gmra.mrb[28].mxu0 %v4061_v9  ;;  %5465 = vmatprep.subr.bf16.mxu1 %v12403_v10  ;;  %v3951_v22 = vmax.f32 %v3681_v13, 0.0 }
 0x3e2   : > { %v3687_v21 = vadd.f32 %v3686_v19, %v14054_v43  ;;  %v3952_v25 = vmax.f32 %v3683_v15, 0.0 }
 0x3e3   : > { %v3953_v23 = vmax.f32 %v3685_v18, 0.0  ;;  %11443 = vmatmul.mubr.msk.bf16.gmra.mrb[12].mxu1 %vm1222_vm0, %v12908_v24 }
 0x3e4   : > { %v3954_v27 = vmax.f32 %v3687_v21, 0.0  ;;  %5012 = vmatprep.mubr.bf16.mxu1 %v17539_v3  ;;  %5466 = vmatpush1.bf16.msra.mxu1 %v12401_v17  ;;  %v12911_v17 = vld [vmem:[%s13131_s0 + $0x30] sm:$0xff]  }
 0x3e5   : > { %v4063_v30 = vpack.c.bf16 %v3953_v23, %v3951_v22  ;;  %5467 = vmatprep.subr.bf16.mxu1 %v12406_v20  ;;  %v12416_v21 = vld [vmem:[%s17606_s8 + $0xb0] ss:$8 sps:$4 sm:$0xff]   ;;  %v12418_v22 = vld [vmem:[%s17606_s8 + $0xb4] ss:$8 sps:$4 sm:$0xff]  }
 0x3e6   : > { %v3690_v34 = vpop.f32.mrb[164].mxu1  ;;  %v4064_v35 = vpack.c.bf16 %v3954_v27, %v3952_v25 }
 0x3e7   : > { %v3691_v36 = vadd.f32 %v3690_v34, %v14050_v60  ;;  %v3692_v37 = vpop.f32.mrb[165].mxu1 }
 0x3e8   : > { %v3693_v38 = vadd.f32 %v3692_v37, %v14054_v43  ;;  %v3694_v39 = vpop.f32.mrb[166].mxu1  ;;  %4427 = vmatprep.mubr.bf16.mxu0 %v4064_v35  ;;  %5468 = vmatpush1.bf16.msra.mxu1 %v12404_v29 }
 0x3e9   : > { %v3695_v41 = vadd.f32 %v3694_v39, %v14050_v60  ;;  %v3696_v42 = vpop.f32.mrb[167].mxu1  ;;  %4428 = vmatmul.mubr.bf16.gmra.mrb[32].mxu0 %v4063_v30  ;;  %5469 = vmatprep.subr.bf16.mxu1 %v12409_v33  ;;  %v3955_v47 = vmax.f32 %v3691_v36, 0.0 }
 0x3ea   : > { %v3697_v46 = vadd.f32 %v3696_v42, %v14054_v43  ;;  %v3956_v52 = vmax.f32 %v3693_v38, 0.0  ;;  %v12912_v38 = vld [vmem:[%s13131_s0 + $0x38] sm:$0xff]  }
 0x3eb   : > { %v3957_v48 = vmax.f32 %v3695_v41, 0.0  ;;  %11444 = vmatmul.mubr.msk.bf16.gmra.mrb[16].mxu1 %vm1222_vm0, %v12909_v50 }
 0x3ec   : > { %v3958_v53 = vmax.f32 %v3697_v46, 0.0  ;;  %5022 = vmatprep.mubr.bf16.mxu1 %v17539_v3  ;;  %5470 = vmatpush1.bf16.msra.mxu1 %v12407_v40 }
 0x3ed   : > { %v4065_v55 = vpack.c.bf16 %v3957_v48, %v3955_v47  ;;  %5471 = vmatprep.subr.bf16.mxu1 %v12412_v44 }
 0x3ee   : > { %v3700_v56 = vpop.f32.mrb[168].mxu1  ;;  %v4066_v57 = vpack.c.bf16 %v3958_v53, %v3956_v52 }
 0x3ef   : > { %v3701_v32 = vadd.f32 %v3700_v56, %v14050_v60  ;;  %v3702_v58 = vpop.f32.mrb[169].mxu1  ;;  %v12913_v56 = vld [vmem:[%s13131_s0 + $0x40] sm:$0xff]  }
 0x3f0   : > { %v3703_v59 = vadd.f32 %v3702_v58, %v14054_v43  ;;  %v3704_v61 = vpop.f32.mrb[170].mxu1  ;;  %4437 = vmatprep.mubr.bf16.mxu0 %v4066_v57  ;;  %5472 = vmatpush1.bf16.msra.mxu1 %v12410_v54 }
 0x3f1   : > { %v3705_v63 = vadd.f32 %v3704_v61, %v14050_v60  ;;  %v3706_v0 = vpop.f32.mrb[171].mxu1  ;;  %4438 = vmatmul.mubr.bf16.gmra.mrb[36].mxu0 %v4065_v55  ;;  %5473 = vmatprep.subr.bf16.mxu1 %v12415_v31  ;;  %v3959_v1 = vmax.f32 %v3701_v32, 0.0  ;;  %v12421_v61 = vld [vmem:[%s17606_s8 + $0xc4] ss:$8 sps:$4 sm:$0xff]  }
 0x3f2   : > { %v3707_v45 = vadd.f32 %v3706_v0, %v14054_v43  ;;  %v3960_v49 = vmax.f32 %v3703_v59, 0.0  ;;  %v12419_v59 = vld [vmem:[%s17606_s8 + $0xc0] ss:$8 sps:$4 sm:$0xff]  }
 0x3f3   : > { %v3961_v2 = vmax.f32 %v3705_v63, 0.0  ;;  %11445 = vmatmul.mubr.msk.bf16.gmra.mrb[20].mxu1 %vm1222_vm0, %v12910_v4 }
 0x3f4   : > { %v3962_v5 = vmax.f32 %v3707_v45, 0.0  ;;  %5032 = vmatprep.mubr.bf16.mxu1 %v17539_v3  ;;  %5474 = vmatpush1.bf16.msra.mxu1 %v12413_v62 }
 0x3f5   : > { %v4067_v6 = vpack.c.bf16 %v3961_v2, %v3959_v1  ;;  %5475 = vmatprep.subr.bf16.mxu1 %v12418_v22  ;;  %v12915_v22 = vld [vmem:[%s13131_s0 + $0x50] sm:$0xff]  }
 0x3f6   : > { %v3710_v7 = vpop.f32.mrb[172].mxu1  ;;  %v4068_v51 = vpack.c.bf16 %v3962_v5, %v3960_v49 }
 0x3f7   : > { %v3711_v8 = vadd.f32 %v3710_v7, %v14050_v60  ;;  %v3712_v9 = vpop.f32.mrb[173].mxu1 }
 0x3f8   : > { %v3713_v10 = vadd.f32 %v3712_v9, %v14054_v43  ;;  %v3714_v11 = vpop.f32.mrb[174].mxu1  ;;  %4447 = vmatprep.mubr.bf16.mxu0 %v4068_v51  ;;  %5476 = vmatpush1.bf16.msra.mxu1 %v12416_v21  ;;  %v12914_v51 = vld [vmem:[%s13131_s0 + $0x48] sm:$0xff]  }
 0x3f9   : > { %v3715_v12 = vadd.f32 %v3714_v11, %v14050_v60  ;;  %v3716_v13 = vpop.f32.mrb[175].mxu1  ;;  %4448 = vmatmul.mubr.bf16.gmra.mrb[40].mxu0 %v4067_v6  ;;  %v3963_v15 = vmax.f32 %v3711_v8, 0.0  ;;  %5477 = vmatprep.subr.bf16.mxu1 %v12421_v61  ;;  %v12917_v61 = vld [vmem:[%s13131_s0 + $0x60] sm:$0xff]  }
 0x3fa   : > { %v3717_v14 = vadd.f32 %v3716_v13, %v14054_v43  ;;  %v3964_v18 = vmax.f32 %v3713_v10, 0.0 }
 0x3fb   : > { %v3965_v16 = vmax.f32 %v3715_v12, 0.0  ;;  %11446 = vmatmul.mubr.msk.bf16.gmra.mrb[24].mxu1 %vm1222_vm0, %v12911_v17 }
 0x3fc   : > { %v3966_v19 = vmax.f32 %v3717_v14, 0.0  ;;  %5042 = vmatprep.mubr.bf16.mxu1 %v17539_v3  ;;  %5478 = vmatpush1.bf16.msra.mxu1 %v12419_v59 }
 0x3fd   : > { %v4069_v20 = vpack.c.bf16 %v3965_v16, %v3963_v15 }
 0x3fe   : > { %v3720_v23 = vpop.f32.mrb[176].mxu1  ;;  %v4070_v24 = vpack.c.bf16 %v3966_v19, %v3964_v18 }
 0x3ff   : > { %v3721_v25 = vadd.f32 %v3720_v23, %v14050_v60  ;;  %v3722_v27 = vpop.f32.mrb[177].mxu1 }
 0x400   : > { %v3723_v29 = vadd.f32 %v3722_v27, %v14054_v43  ;;  %v3724_v30 = vpop.f32.mrb[178].mxu1  ;;  %4457 = vmatprep.mubr.bf16.mxu0 %v4070_v24  ;;  %v12422_v27 = vld [vmem:[%s17606_s8 + $0xd0] ss:$8 sps:$4 sm:$0xff]  }
 0x401   : > { %v3725_v33 = vadd.f32 %v3724_v30, %v14050_v60  ;;  %v3726_v34 = vpop.f32.mrb[179].mxu1  ;;  %4458 = vmatmul.mubr.bf16.gmra.mrb[44].mxu0 %v4069_v20  ;;  %v3967_v36 = vmax.f32 %v3721_v25, 0.0 }
 0x402   : > { %v3727_v35 = vadd.f32 %v3726_v34, %v14054_v43  ;;  %v3968_v39 = vmax.f32 %v3723_v29, 0.0  ;;  %v12424_v29 = vld [vmem:[%s17606_s8 + $0xd4] ss:$8 sps:$4 sm:$0xff]  }
 0x403   : > { %v3969_v37 = vmax.f32 %v3725_v33, 0.0  ;;  %11447 = vmatmul.mubr.msk.bf16.gmra.mrb[28].mxu1 %vm1222_vm0, %v12912_v38  ;;  %5479 = vmatprep.subr.bf16.mxu1 %v12424_v29 }
 0x404   : > { %v3970_v40 = vmax.f32 %v3727_v35, 0.0  ;;  %5052 = vmatprep.mubr.bf16.mxu1 %v17539_v3  ;;  %5480 = vmatpush1.bf16.msra.mxu1 %v12422_v27 }
 0x405   : > { %v4071_v41 = vpack.c.bf16 %v3969_v37, %v3967_v36 }
 0x406   : > { %v3730_v42 = vpop.f32.mrb[180].mxu1  ;;  %v4072_v44 = vpack.c.bf16 %v3970_v40, %v3968_v39 }
 0x407   : > { %v3731_v46 = vadd.f32 %v3730_v42, %v14050_v60  ;;  %v3732_v47 = vpop.f32.mrb[181].mxu1 }
 0x408   : > { %v3733_v48 = vadd.f32 %v3732_v47, %v14054_v43  ;;  %v3734_v50 = vpop.f32.mrb[182].mxu1  ;;  %4467 = vmatprep.mubr.bf16.mxu0 %v4072_v44  ;;  %v12916_v44 = vld [vmem:[%s13131_s0 + $0x58] sm:$0xff]  }
 0x409   : > { %v3735_v52 = vadd.f32 %v3734_v50, %v14050_v60  ;;  %v3736_v53 = vpop.f32.mrb[183].mxu1  ;;  %4468 = vmatmul.mubr.bf16.gmra.mrb[48].mxu0 %v4071_v41  ;;  %v3971_v55 = vmax.f32 %v3731_v46, 0.0 }
 0x40a   : > { %v3737_v54 = vadd.f32 %v3736_v53, %v14054_v43  ;;  %v3972_v57 = vmax.f32 %v3733_v48, 0.0 }
 0x40b   : > { %v3973_v31 = vmax.f32 %v3735_v52, 0.0  ;;  %11448 = vmatmul.mubr.msk.bf16.gmra.mrb[32].mxu1 %vm1222_vm0, %v12913_v56 }
 0x40c   : > { %v3974_v32 = vmax.f32 %v3737_v54, 0.0  ;;  %5062 = vmatprep.mubr.bf16.mxu1 %v17539_v3 }
 0x40d   : > { %v4073_v58 = vpack.c.bf16 %v3973_v31, %v3971_v55 }
 0x40e   : > { %v3740_v62 = vpop.f32.mrb[184].mxu1  ;;  %v4074_v63 = vpack.c.bf16 %v3974_v32, %v3972_v57 }
 0x40f   : > { %v3741_v0 = vadd.f32 %v3740_v62, %v14050_v60  ;;  %v3742_v45 = vpop.f32.mrb[185].mxu1  ;;  %v12425_v62 = vld [vmem:[%s17516_s15] ss:$8 sps:$4 sm:$0xff]  }
 0x410   : > { %v3743_v1 = vadd.f32 %v3742_v45, %v14054_v43  ;;  %v3744_v2 = vpop.f32.mrb[186].mxu1  ;;  %4477 = vmatprep.mubr.bf16.mxu0 %v4074_v63  ;;  %v12427_v63 = vld [vmem:[%s17516_s15 + $0x4] ss:$8 sps:$4 sm:$0xff]  }
 0x411   : > { %v3745_v4 = vadd.f32 %v3744_v2, %v14050_v60  ;;  %v3746_v49 = vpop.f32.mrb[187].mxu1  ;;  %4478 = vmatmul.mubr.bf16.gmra.mrb[52].mxu0 %v4073_v58  ;;  %v3975_v6 = vmax.f32 %v3741_v0, 0.0  ;;  %v12430_v2 = vld [vmem:[%s17606_s8 + $0xe4] ss:$8 sps:$4 sm:$0xff]   ;;  %6342 = vmatprep.subr.bf16.mxu0 %v12427_v63 }
 0x412   : > { %v3747_v5 = vadd.f32 %v3746_v49, %v14054_v43  ;;  %v3976_v8 = vmax.f32 %v3743_v1, 0.0  ;;  %v12428_v1 = vld [vmem:[%s17606_s8 + $0xe0] ss:$8 sps:$4 sm:$0xff]   ;;  %6343 = vmatpush1.bf16.msra.mxu0 %v12425_v62  ;;  %5481 = vmatprep.subr.bf16.mxu1 %v12430_v2 }
 0x413   : > { %v3977_v7 = vmax.f32 %v3745_v4, 0.0  ;;  %11449 = vmatmul.mubr.msk.bf16.gmra.mrb[36].mxu1 %vm1222_vm0, %v12914_v51 }
 0x414   : > { %v3978_v9 = vmax.f32 %v3747_v5, 0.0  ;;  %5072 = vmatprep.mubr.bf16.mxu1 %v17539_v3  ;;  %5482 = vmatpush1.bf16.msra.mxu1 %v12428_v1 }
 0x415   : > { %v4075_v10 = vpack.c.bf16 %v3977_v7, %v3975_v6 }
 0x416   : > { %v3750_v11 = vpop.f32.mrb[188].mxu1  ;;  %v4076_v12 = vpack.c.bf16 %v3978_v9, %v3976_v8 }
 0x417   : > { %v3751_v13 = vadd.f32 %v3750_v11, %v14050_v60  ;;  %v3752_v14 = vpop.f32.mrb[189].mxu1 }
 0x418   : > { %v3753_v15 = vadd.f32 %v3752_v14, %v14054_v43  ;;  %v3754_v16 = vpop.f32.mrb[190].mxu1  ;;  %4487 = vmatprep.mubr.bf16.mxu0 %v4076_v12  ;;  %v12918_v14 = vld [vmem:[%s13131_s0 + $0x68] sm:$0xff]  }
 0x419   : > { %v3755_v17 = vadd.f32 %v3754_v16, %v14050_v60  ;;  %v3756_v18 = vpop.f32.mrb[191].mxu1  ;;  %4488 = vmatmul.mubr.bf16.gmra.mrb[56].mxu0 %v4075_v10  ;;  %v3979_v20 = vmax.f32 %v3751_v13, 0.0 }
 0x41a   : > { %v3757_v19 = vadd.f32 %v3756_v18, %v14054_v43  ;;  %v3980_v23 = vmax.f32 %v3753_v15, 0.0 }
 0x41b   : > { %v3981_v21 = vmax.f32 %v3755_v17, 0.0  ;;  %11450 = vmatmul.mubr.msk.bf16.gmra.mrb[40].mxu1 %vm1222_vm0, %v12915_v22 }
 0x41c   : > { %v3982_v24 = vmax.f32 %v3757_v19, 0.0  ;;  %5082 = vmatprep.mubr.bf16.mxu1 %v17539_v3 }
 0x41d   : > { %v4077_v25 = vpack.c.bf16 %v3981_v21, %v3979_v20 }
 0x41e   : > { %v3760_v30 = vpop.f32.mrb[192].mxu1  ;;  %v4078_v33 = vpack.c.bf16 %v3982_v24, %v3980_v23 }
 0x41f   : > { %v3761_v34 = vadd.f32 %v3760_v30, %v14050_v60  ;;  %v3762_v35 = vpop.f32.mrb[193].mxu1 }
 0x420   : > { %v3763_v36 = vadd.f32 %v3762_v35, %v14054_v43  ;;  %v3764_v37 = vpop.f32.mrb[194].mxu1  ;;  %4497 = vmatprep.mubr.bf16.mxu0 %v4078_v33  ;;  %v12919_v33 = vld [vmem:[%s13131_s0 + $0x70] sm:$0xff]  }
 0x421   : > { %v3765_v38 = vadd.f32 %v3764_v37, %v14050_v60  ;;  %v3766_v39 = vpop.f32.mrb[195].mxu1  ;;  %4498 = vmatmul.mubr.bf16.gmra.mrb[60].mxu0 %v4077_v25  ;;  %v3983_v41 = vmax.f32 %v3761_v34, 0.0  ;;  %v12431_v34 = vld [vmem:[%s17516_s15 + $0x10] ss:$8 sps:$4 sm:$0xff]   ;;  %v12433_v35 = vld [vmem:[%s17516_s15 + $0x14] ss:$8 sps:$4 sm:$0xff]  }
 0x422   : > { %v3767_v40 = vadd.f32 %v3766_v39, %v14054_v43  ;;  %v3984_v46 = vmax.f32 %v3763_v36, 0.0  ;;  %v12436_v39 = vld [vmem:[%s17606_s8 + $0xf4] ss:$8 sps:$4 sm:$0xff]   ;;  %6344 = vmatprep.subr.bf16.mxu0 %v12433_v35 }
 0x423   : > { %v3985_v42 = vmax.f32 %v3765_v38, 0.0  ;;  %11451 = vmatmul.mubr.msk.bf16.gmra.mrb[44].mxu1 %vm1222_vm0, %v12916_v44  ;;  %v12434_v38 = vld [vmem:[%s17606_s8 + $0xf0] ss:$8 sps:$4 sm:$0xff]   ;;  %6345 = vmatpush1.bf16.msra.mxu0 %v12431_v34 }
 0x424   : > { %v3986_v47 = vmax.f32 %v3767_v40, 0.0  ;;  %5092 = vmatprep.mubr.bf16.mxu1 %v17539_v3  ;;  %5483 = vmatprep.subr.bf16.mxu1 %v12436_v39 }
 0x425   : > { %v4079_v48 = vpack.c.bf16 %v3985_v42, %v3983_v41  ;;  %5484 = vmatpush1.bf16.msra.mxu1 %v12434_v38 }
 0x426   : > { %v3770_v50 = vpop.f32.mrb[196].mxu1  ;;  %v4080_v52 = vpack.c.bf16 %v3986_v47, %v3984_v46 }
 0x427   : > { %v3771_v53 = vadd.f32 %v3770_v50, %v14050_v60  ;;  %v3772_v54 = vpop.f32.mrb[197].mxu1 }
 0x428   : > { %v3773_v55 = vadd.f32 %v3772_v54, %v14054_v43  ;;  %v3774_v31 = vpop.f32.mrb[198].mxu1  ;;  %4507 = vmatprep.mubr.bf16.mxu0 %v4080_v52 }
 0x429   : > { %v3775_v56 = vadd.f32 %v3774_v31, %v14050_v60  ;;  %v3776_v57 = vpop.f32.mrb[199].mxu1  ;;  %4508 = vmatmul.mubr.bf16.gmra.mrb[64].mxu0 %v4079_v48  ;;  %v3987_v58 = vmax.f32 %v3771_v53, 0.0  ;;  %v12920_v31 = vld [vmem:[%s13131_s0 + $0x78] sm:$0xff]  }
 0x42a   : > { %v3777_v32 = vadd.f32 %v3776_v57, %v14054_v43  ;;  %v3988_v0 = vmax.f32 %v3773_v55, 0.0 }
 0x42b   : > { %v3989_v59 = vmax.f32 %v3775_v56, 0.0  ;;  %11452 = vmatmul.mubr.msk.bf16.gmra.mrb[48].mxu1 %vm1222_vm0, %v12917_v61 }
 0x42c   : > { %v3990_v45 = vmax.f32 %v3777_v32, 0.0  ;;  %5102 = vmatprep.mubr.bf16.mxu1 %v17539_v3 }
 0x42d   : > { %v4081_v4 = vpack.c.bf16 %v3989_v59, %v3987_v58 }
 0x42e   : > { %v3780_v49 = vpop.f32.mrb[200].mxu1  ;;  %v4082_v5 = vpack.c.bf16 %v3990_v45, %v3988_v0 }
 0x42f   : > { %v3781_v6 = vadd.f32 %v3780_v49, %v14050_v60  ;;  %v3782_v7 = vpop.f32.mrb[201].mxu1 }
 0x430   : > { %v3783_v51 = vadd.f32 %v3782_v7, %v14054_v43  ;;  %v3784_v8 = vpop.f32.mrb[202].mxu1  ;;  %4517 = vmatprep.mubr.bf16.mxu0 %v4082_v5  ;;  %v12921_v5 = vld [vmem:[%s13131_s0 + $0x80] sm:$0xff]  }
 0x431   : > { %v3785_v9 = vadd.f32 %v3784_v8, %v14050_v60  ;;  %v3786_v10 = vpop.f32.mrb[203].mxu1  ;;  %4518 = vmatmul.mubr.bf16.gmra.mrb[68].mxu0 %v4081_v4  ;;  %v3991_v12 = vmax.f32 %v3781_v6, 0.0  ;;  %v12437_v6 = vld [vmem:[%s17516_s15 + $0x20] ss:$8 sps:$4 sm:$0xff]   ;;  %v12439_v7 = vld [vmem:[%s17516_s15 + $0x24] ss:$8 sps:$4 sm:$0xff]  }
 0x432   : > { %v3787_v11 = vadd.f32 %v3786_v10, %v14054_v43  ;;  %v3992_v15 = vmax.f32 %v3783_v51, 0.0  ;;  %6346 = vmatprep.subr.bf16.mxu0 %v12439_v7 }
 0x433   : > { %v3993_v13 = vmax.f32 %v3785_v9, 0.0  ;;  %11453 = vmatmul.mubr.msk.bf16.gmra.mrb[52].mxu1 %vm1222_vm0, %v12918_v14  ;;  %6347 = vmatpush1.bf16.msra.mxu0 %v12437_v6 }
 0x434   : > { %v3994_v16 = vmax.f32 %v3787_v11, 0.0  ;;  %5112 = vmatprep.mubr.bf16.mxu1 %v17539_v3 }
 0x435   : > { %v4083_v17 = vpack.c.bf16 %v3993_v13, %v3991_v12 }
 0x436   : > { %v3790_v18 = vpop.f32.mrb[204].mxu1  ;;  %v4084_v19 = vpack.c.bf16 %v3994_v16, %v3992_v15 }
 0x437   : > { %v3791_v20 = vadd.f32 %v3790_v18, %v14050_v60  ;;  %v3792_v21 = vpop.f32.mrb[205].mxu1 }
 0x438   : > { %v3793_v22 = vadd.f32 %v3792_v21, %v14054_v43  ;;  %v3794_v23 = vpop.f32.mrb[206].mxu1  ;;  %4527 = vmatprep.mubr.bf16.mxu0 %v4084_v19  ;;  %v12922_v21 = vld [vmem:[%s13131_s0 + $0x88] sm:$0xff]  }
 0x439   : > { %v3795_v24 = vadd.f32 %v3794_v23, %v14050_v60  ;;  %v3796_v25 = vpop.f32.mrb[207].mxu1  ;;  %4528 = vmatmul.mubr.bf16.gmra.mrb[72].mxu0 %v4083_v17  ;;  %v3995_v29 = vmax.f32 %v3791_v20, 0.0 }
 0x43a   : > { %v3797_v27 = vadd.f32 %v3796_v25, %v14054_v43  ;;  %v3996_v36 = vmax.f32 %v3793_v22, 0.0 }
 0x43b   : > { %v3997_v30 = vmax.f32 %v3795_v24, 0.0  ;;  %11454 = vmatmul.mubr.msk.bf16.gmra.mrb[56].mxu1 %vm1222_vm0, %v12919_v33 }
 0x43c   : > { %v3998_v37 = vmax.f32 %v3797_v27, 0.0  ;;  %5122 = vmatprep.mubr.bf16.mxu1 %v17539_v3 }
 0x43d   : > { %v4085_v40 = vpack.c.bf16 %v3997_v30, %v3995_v29 }
 0x43e   : > { %v3800_v41 = vpop.f32.mrb[208].mxu1  ;;  %v4086_v42 = vpack.c.bf16 %v3998_v37, %v3996_v36 }
 0x43f   : > { %v3801_v44 = vadd.f32 %v3800_v41, %v14050_v60  ;;  %v3802_v46 = vpop.f32.mrb[209].mxu1  ;;  %v12440_v41 = vld [vmem:[%s17516_s15 + $0x30] ss:$8 sps:$4 sm:$0xff]  }
 0x440   : > { %v3803_v47 = vadd.f32 %v3802_v46, %v14054_v43  ;;  %v3804_v48 = vpop.f32.mrb[210].mxu1  ;;  %4537 = vmatprep.mubr.bf16.mxu0 %v4086_v42  ;;  %v12442_v42 = vld [vmem:[%s17516_s15 + $0x34] ss:$8 sps:$4 sm:$0xff]  }
 0x441   : > { %v3805_v50 = vadd.f32 %v3804_v48, %v14050_v60  ;;  %v3806_v52 = vpop.f32.mrb[211].mxu1  ;;  %4538 = vmatmul.mubr.bf16.gmra.mrb[76].mxu0 %v4085_v40  ;;  %v3999_v54 = vmax.f32 %v3801_v44, 0.0  ;;  %v12923_v40 = vld [vmem:[%s13131_s0 + $0x90] sm:$0xff]   ;;  %6348 = vmatprep.subr.bf16.mxu0 %v12442_v42 }
 0x442   : > { %v3807_v53 = vadd.f32 %v3806_v52, %v14054_v43  ;;  %v4000_v56 = vmax.f32 %v3803_v47, 0.0  ;;  %6349 = vmatpush1.bf16.msra.mxu0 %v12440_v41 }
 0x443   : > { %v4001_v55 = vmax.f32 %v3805_v50, 0.0  ;;  %11455 = vmatmul.mubr.msk.bf16.gmra.mrb[60].mxu1 %vm1222_vm0, %v12920_v31 }
 0x444   : > { %v4002_v57 = vmax.f32 %v3807_v53, 0.0  ;;  %5132 = vmatprep.mubr.bf16.mxu1 %v17539_v3 }
 0x445   : > { %v4087_v32 = vpack.c.bf16 %v4001_v55, %v3999_v54 }
 0x446   : > { %v3810_v58 = vpop.f32.mrb[212].mxu1  ;;  %v4088_v59 = vpack.c.bf16 %v4002_v57, %v4000_v56 }
 0x447   : > { %v3811_v61 = vadd.f32 %v3810_v58, %v14050_v60  ;;  %v3812_v62 = vpop.f32.mrb[213].mxu1 }
 0x448   : > { %v3813_v63 = vadd.f32 %v3812_v62, %v14054_v43  ;;  %v3814_v0 = vpop.f32.mrb[214].mxu1  ;;  %4547 = vmatprep.mubr.bf16.mxu0 %v4088_v59  ;;  %v12924_v59 = vld [vmem:[%s13131_s0 + $0x98] sm:$0xff]  }
 0x449   : > { %v3815_v45 = vadd.f32 %v3814_v0, %v14050_v60  ;;  %v3816_v1 = vpop.f32.mrb[215].mxu1  ;;  %4548 = vmatmul.mubr.bf16.gmra.mrb[80].mxu0 %v4087_v32  ;;  %v4003_v4 = vmax.f32 %v3811_v61, 0.0 }
 0x44a   : > { %v3817_v2 = vadd.f32 %v3816_v1, %v14054_v43  ;;  %v4004_v51 = vmax.f32 %v3813_v63, 0.0 }
 0x44b   : > { %v4005_v49 = vmax.f32 %v3815_v45, 0.0  ;;  %11456 = vmatmul.mubr.msk.bf16.gmra.mrb[64].mxu1 %vm1222_vm0, %v12921_v5 }
 0x44c   : > { %v4006_v8 = vmax.f32 %v3817_v2, 0.0  ;;  %5142 = vmatprep.mubr.bf16.mxu1 %v17539_v3 }
 0x44d   : > { %v4089_v9 = vpack.c.bf16 %v4005_v49, %v4003_v4 }
 0x44e   : > { %v3820_v10 = vpop.f32.mrb[216].mxu1  ;;  %v4090_v11 = vpack.c.bf16 %v4006_v8, %v4004_v51 }
 0x44f   : > { %v3821_v12 = vadd.f32 %v3820_v10, %v14050_v60  ;;  %v3822_v13 = vpop.f32.mrb[217].mxu1  ;;  %v12443_v10 = vld [vmem:[%s17516_s15 + $0x40] ss:$8 sps:$4 sm:$0xff]  }
 0x450   : > { %v3823_v14 = vadd.f32 %v3822_v13, %v14054_v43  ;;  %v3824_v15 = vpop.f32.mrb[218].mxu1  ;;  %4557 = vmatprep.mubr.bf16.mxu0 %v4090_v11  ;;  %v12445_v11 = vld [vmem:[%s17516_s15 + $0x44] ss:$8 sps:$4 sm:$0xff]  }
 0x451   : > { %v3825_v16 = vadd.f32 %v3824_v15, %v14050_v60  ;;  %v3826_v17 = vpop.f32.mrb[219].mxu1  ;;  %4558 = vmatmul.mubr.bf16.gmra.mrb[84].mxu0 %v4089_v9  ;;  %v4007_v19 = vmax.f32 %v3821_v12, 0.0  ;;  %v12925_v9 = vld [vmem:[%s13131_s0 + $0xa0] sm:$0xff]   ;;  %6350 = vmatprep.subr.bf16.mxu0 %v12445_v11 }
 0x452   : > { %v3827_v18 = vadd.f32 %v3826_v17, %v14054_v43  ;;  %v4008_v22 = vmax.f32 %v3823_v14, 0.0  ;;  %6351 = vmatpush1.bf16.msra.mxu0 %v12443_v10 }
 0x453   : > { %v4009_v20 = vmax.f32 %v3825_v16, 0.0  ;;  %11457 = vmatmul.mubr.msk.bf16.gmra.mrb[68].mxu1 %vm1222_vm0, %v12922_v21 }
 0x454   : > { %v4010_v23 = vmax.f32 %v3827_v18, 0.0  ;;  %5152 = vmatprep.mubr.bf16.mxu1 %v17539_v3 }
 0x455   : > { %v4091_v24 = vpack.c.bf16 %v4009_v20, %v4007_v19 }
 0x456   : > { %v3830_v25 = vpop.f32.mrb[220].mxu1  ;;  %v4092_v27 = vpack.c.bf16 %v4010_v23, %v4008_v22 }
 0x457   : > { %v3831_v29 = vadd.f32 %v3830_v25, %v14050_v60  ;;  %v3832_v30 = vpop.f32.mrb[221].mxu1 }
 0x458   : > { %v3833_v33 = vadd.f32 %v3832_v30, %v14054_v43  ;;  %v3834_v34 = vpop.f32.mrb[222].mxu1  ;;  %4567 = vmatprep.mubr.bf16.mxu0 %v4092_v27  ;;  %v12926_v27 = vld [vmem:[%s13131_s0 + $0xa8] sm:$0xff]  }
 0x459   : > { %v3835_v35 = vadd.f32 %v3834_v34, %v14050_v60  ;;  %v3836_v36 = vpop.f32.mrb[223].mxu1  ;;  %4568 = vmatmul.mubr.bf16.gmra.mrb[88].mxu0 %v4091_v24  ;;  %v4011_v38 = vmax.f32 %v3831_v29, 0.0 }
 0x45a   : > { %v3837_v37 = vadd.f32 %v3836_v36, %v14054_v43  ;;  %v4012_v44 = vmax.f32 %v3833_v33, 0.0  ;;  %v4143_v36 = vld [vmem:[%s17608_s30] sm:$0x3]  ;;  %s17812_s30 = sadd.s32 4294967295, %s12945_s9  }
 0x45b   : > { %v4013_v39 = vmax.f32 %v3835_v35, 0.0  ;;  %11458 = vmatmul.mubr.msk.bf16.gmra.mrb[72].mxu1 %vm1222_vm0, %v12923_v40 }
 0x45c   : > { %v4014_v46 = vmax.f32 %v3837_v37, 0.0  ;;  %5162 = vmatprep.mubr.bf16.mxu1 %v17539_v3 }
 0x45d   : > { %v4093_v47 = vpack.c.bf16 %v4013_v39, %v4011_v38 }
 0x45e   : > { %v3840_v48 = vpop.f32.mrb[224].mxu1  ;;  %v4094_v50 = vpack.c.bf16 %v4014_v46, %v4012_v44  ;;  %v14377_v44 = vrot.slane %v4143_v36, %v13371_v26 }
 0x45f   : > { %v3841_v52 = vadd.f32 %v3840_v48, %v14050_v60  ;;  %v3842_v53 = vpop.f32.mrb[225].mxu1 }
 0x460   : > { %v3843_v54 = vadd.f32 %v3842_v53, %v14054_v43  ;;  %v3844_v55 = vpop.f32.mrb[226].mxu1  ;;  %4577 = vmatprep.mubr.bf16.mxu0 %v4094_v50  ;;  %v12446_v53 = vld [vmem:[%s17516_s15 + $0x50] ss:$8 sps:$4 sm:$0xff]  }
 0x461   : > { %v3845_v31 = vadd.f32 %v3844_v55, %v14050_v60  ;;  %v3846_v56 = vpop.f32.mrb[227].mxu1  ;;  %4578 = vmatmul.mubr.bf16.gmra.mrb[92].mxu0 %v4093_v47  ;;  %v4015_v32 = vmax.f32 %v3841_v52, 0.0  ;;  %v14381_v47 = vrot.slane %v4143_v36, %v13376_v28  ;;  %v12927_v52 = vld [vmem:[%s13131_s0 + $0xb0] sm:$0xff]  }
 0x462   : > { %v3847_v57 = vadd.f32 %v3846_v56, %v14054_v43  ;;  %v4016_v61 = vmax.f32 %v3843_v54, 0.0  ;;  %v12448_v54 = vld [vmem:[%s17516_s15 + $0x54] ss:$8 sps:$4 sm:$0xff]  }
 0x463   : > { %v4017_v58 = vmax.f32 %v3845_v31, 0.0  ;;  %11459 = vmatmul.mubr.msk.bf16.gmra.mrb[76].mxu1 %vm1222_vm0, %v12924_v59  ;;  %6352 = vmatprep.subr.bf16.mxu0 %v12448_v54  ;;  %v12929_v54 = vld [vmem:[%s13131_s0 + $0xc0] sm:$0xff]  }
 0x464   : > { %v4018_v62 = vmax.f32 %v3847_v57, 0.0  ;;  %5172 = vmatprep.mubr.bf16.mxu1 %v17539_v3  ;;  %6353 = vmatpush1.bf16.msra.mxu0 %v12446_v53 }
 0x465   : > { %v4095_v63 = vpack.c.bf16 %v4017_v58, %v4015_v32 }
 0x466   : > { %v3850_v0 = vpop.f32.mrb[228].mxu1  ;;  %v4096_v45 = vpack.c.bf16 %v4018_v62, %v4016_v61 }
 0x467   : > { %v3851_v1 = vadd.f32 %v3850_v0, %v14050_v60  ;;  %v3852_v2 = vpop.f32.mrb[229].mxu1 }
 0x468   : > { %v3853_v4 = vadd.f32 %v3852_v2, %v14054_v43  ;;  %v3854_v49 = vpop.f32.mrb[230].mxu1  ;;  %4587 = vmatprep.mubr.bf16.mxu0 %v4096_v45 }
 0x469   : > { %v3855_v5 = vadd.f32 %v3854_v49, %v14050_v60  ;;  %v3856_v6 = vpop.f32.mrb[231].mxu1  ;;  %4588 = vmatmul.mubr.bf16.gmra.mrb[96].mxu0 %v4095_v63  ;;  %v4019_v51 = vmax.f32 %v3851_v1, 0.0 }
 0x46a   : > { %v3857_v7 = vadd.f32 %v3856_v6, %v14054_v43  ;;  %v4020_v12 = vmax.f32 %v3853_v4, 0.0 }
 0x46b   : > { %v4021_v8 = vmax.f32 %v3855_v5, 0.0  ;;  %11460 = vmatmul.mubr.msk.bf16.gmra.mrb[80].mxu1 %vm1222_vm0, %v12925_v9 }
 0x46c   : > { %v4022_v13 = vmax.f32 %v3857_v7, 0.0  ;;  %5182 = vmatprep.mubr.bf16.mxu1 %v17539_v3 }
 0x46d   : > { %v4097_v14 = vpack.c.bf16 %v4021_v8, %v4019_v51 }
 0x46e   : > { %v3860_v15 = vpop.f32.mrb[232].mxu1  ;;  %v4098_v16 = vpack.c.bf16 %v4022_v13, %v4020_v12 }
 0x46f   : > { %v3861_v17 = vadd.f32 %v3860_v15, %v14050_v60  ;;  %v3862_v18 = vpop.f32.mrb[233].mxu1  ;;  %v12928_v15 = vld [vmem:[%s13131_s0 + $0xb8] sm:$0xff]  }
 0x470   : > { %v3863_v19 = vadd.f32 %v3862_v18, %v14054_v43  ;;  %v3864_v20 = vpop.f32.mrb[234].mxu1  ;;  %4597 = vmatprep.mubr.bf16.mxu0 %v4098_v16 }
 0x471   : > { %v3865_v21 = vadd.f32 %v3864_v20, %v14050_v60  ;;  %v3866_v22 = vpop.f32.mrb[235].mxu1  ;;  %4598 = vmatmul.mubr.bf16.gmra.mrb[100].mxu0 %v4097_v14  ;;  %v4023_v24 = vmax.f32 %v3861_v17, 0.0 }
 0x472   : > { %v3867_v23 = vadd.f32 %v3866_v22, %v14054_v43  ;;  %v4024_v29 = vmax.f32 %v3863_v19, 0.0 }
 0x473   : > { %v4025_v25 = vmax.f32 %v3865_v21, 0.0  ;;  %11461 = vmatmul.mubr.msk.bf16.gmra.mrb[84].mxu1 %vm1222_vm0, %v12926_v27 }
 0x474   : > { %v4026_v30 = vmax.f32 %v3867_v23, 0.0  ;;  %5192 = vmatprep.mubr.bf16.mxu1 %v17539_v3 }
 0x475   : > { %v4099_v33 = vpack.c.bf16 %v4025_v25, %v4023_v24 }
 0x476   : > { %v3870_v34 = vpop.f32.mrb[236].mxu1  ;;  %v4100_v35 = vpack.c.bf16 %v4026_v30, %v4024_v29 }
 0x477   : > { %v3871_v37 = vadd.f32 %v3870_v34, %v14050_v60  ;;  %v3872_v38 = vpop.f32.mrb[237].mxu1 }
 0x478   : > { %v3873_v39 = vadd.f32 %v3872_v38, %v14054_v43  ;;  %v3874_v40 = vpop.f32.mrb[238].mxu1  ;;  %4607 = vmatprep.mubr.bf16.mxu0 %v4100_v35 }
 0x479   : > { %v3875_v41 = vadd.f32 %v3874_v40, %v14050_v60  ;;  %v3876_v42 = vpop.f32.mrb[239].mxu1  ;;  %4608 = vmatmul.mubr.bf16.gmra.mrb[104].mxu0 %v4099_v33  ;;  %v4027_v48 = vmax.f32 %v3871_v37, 0.0 }
 0x47a   : > { %v3877_v46 = vadd.f32 %v3876_v42, %v14054_v43  ;;  %v4028_v55 = vmax.f32 %v3873_v39, 0.0 }
 0x47b   : > { %v4029_v50 = vmax.f32 %v3875_v41, 0.0  ;;  %11462 = vmatmul.mubr.msk.bf16.gmra.mrb[88].mxu1 %vm1222_vm0, %v12927_v52 }
 0x47c   : > { %v4030_v31 = vmax.f32 %v3877_v46, 0.0  ;;  %v4349_v56 = vpop.f32.mrb[0].mxu0  ;;  %5202 = vmatprep.mubr.bf16.mxu1 %v17539_v3 }
 0x47d   : > { %v4101_v57 = vpack.c.bf16 %v4029_v50, %v4027_v48  ;;  %v4350_v32 = vadd.f32 %v4349_v56, %v14377_v44  ;;  %v4351_v58 = vpop.f32.mrb[1].mxu0 }
 0x47e   : > { %v4352_v59 = vadd.f32 %v4351_v58, %v14381_v47  ;;  %v3880_v61 = vpop.f32.mrb[240].mxu1  ;;  %v4353_v62 = vpop.f32.mrb[2].mxu0  ;;  %v4102_v63 = vpack.c.bf16 %v4030_v31, %v4028_v55  ;;  %v12449_v55 = vld [vmem:[%s17516_s15 + $0x60] ss:$8 sps:$4 sm:$0xff]   ;;  %v12451_v31 = vld [vmem:[%s17516_s15 + $0x64] ss:$8 sps:$4 sm:$0xff]  }
 0x47f   : > { %v3881_v0 = vadd.f32 %v3880_v61, %v14050_v60  ;;  %v4354_v45 = vadd.f32 %v4353_v62, %v14377_v44  ;;  %v3882_v1 = vpop.f32.mrb[241].mxu1  ;;  %v4355_v2 = vpop.f32.mrb[3].mxu0  ;;  %v4668_v6 = vmax.f32 %v4350_v32, 0.0  ;;  %6354 = vmatprep.subr.bf16.mxu0 %v12451_v31 }
 0x480   : > { %v3883_v4 = vadd.f32 %v3882_v1, %v14054_v43  ;;  %v4356_v49 = vadd.f32 %v4355_v2, %v14381_v47  ;;  %v3884_v5 = vpop.f32.mrb[242].mxu1  ;;  %4617 = vmatprep.mubr.bf16.mxu0 %v4102_v63  ;;  %v4669_v9 = vmax.f32 %v4352_v59, 0.0  ;;  %6355 = vmatpush1.bf16.msra.mxu0 %v12449_v55 }
 0x481   : > { %v4670_v7 = vmax.f32 %v4354_v45, 0.0  ;;  %v3885_v51 = vadd.f32 %v3884_v5, %v14050_v60  ;;  %v3886_v8 = vpop.f32.mrb[243].mxu1  ;;  %4618 = vmatmul.mubr.bf16.gmra.mrb[108].mxu0 %v4101_v57  ;;  %v4031_v12 = vmax.f32 %v3881_v0, 0.0 }
 0x482   : > { %v4671_v10 = vmax.f32 %v4356_v49, 0.0  ;;  %v3887_v11 = vadd.f32 %v3886_v8, %v14054_v43  ;;  %v4032_v16 = vmax.f32 %v3883_v4, 0.0 }
 0x483   : > { %v14400_v13 = vpack.c.bf16 %v4670_v7, %v4668_v6  ;;  %v4033_v14 = vmax.f32 %v3885_v51, 0.0  ;;  %11463 = vmatmul.mubr.msk.bf16.gmra.mrb[92].mxu1 %vm1222_vm0, %v12928_v15 }
 0x484   : > { %v4034_v17 = vmax.f32 %v3887_v11, 0.0  ;;  %v4359_v18 = vpop.f32.mrb[4].mxu0  ;;  %5212 = vmatprep.mubr.bf16.mxu1 %v17539_v3  ;;  %v14405_v19 = vpack.c.bf16 %v4671_v10, %v4669_v9 }
 0x485   : > { %v4103_v20 = vpack.c.bf16 %v4033_v14, %v4031_v12  ;;  %v4360_v21 = vadd.f32 %v4359_v18, %v14377_v44  ;;  %v4361_v22 = vpop.f32.mrb[5].mxu0 }
 0x486   : > { %v4362_v23 = vadd.f32 %v4361_v22, %v14381_v47  ;;  %v3890_v24 = vpop.f32.mrb[244].mxu1  ;;  %v4363_v25 = vpop.f32.mrb[6].mxu0  ;;  %v4104_v27 = vpack.c.bf16 %v4034_v17, %v4032_v16 }
 0x487   : > { %v3891_v29 = vadd.f32 %v3890_v24, %v14050_v60  ;;  %v4364_v30 = vadd.f32 %v4363_v25, %v14377_v44  ;;  %v3892_v33 = vpop.f32.mrb[245].mxu1  ;;  %v4365_v34 = vpop.f32.mrb[7].mxu0  ;;  %v4672_v38 = vmax.f32 %v4360_v21, 0.0 }
 0x488   : > { %v3893_v35 = vadd.f32 %v3892_v33, %v14054_v43  ;;  %v4366_v36 = vadd.f32 %v4365_v34, %v14381_v47  ;;  %v3894_v37 = vpop.f32.mrb[246].mxu1  ;;  %4627 = vmatprep.mubr.bf16.mxu0 %v4104_v27  ;;  %v4673_v42 = vmax.f32 %v4362_v23, 0.0 }
 0x489   : > { %v4674_v39 = vmax.f32 %v4364_v30, 0.0  ;;  %v3895_v40 = vadd.f32 %v3894_v37, %v14050_v60  ;;  %v3896_v41 = vpop.f32.mrb[247].mxu1  ;;  %4628 = vmatmul.mubr.bf16.gmra.mrb[112].mxu0 %v4103_v20  ;;  %v4035_v50 = vmax.f32 %v3891_v29, 0.0  ;;  %v12930_v20 = vld [vmem:[%s13131_s0 + $0xc8] sm:$0xff]  }
 0x48a   : > { %v4675_v46 = vmax.f32 %v4366_v36, 0.0  ;;  %v3897_v48 = vadd.f32 %v3896_v41, %v14054_v43  ;;  %v4036_v56 = vmax.f32 %v3893_v35, 0.0 }
 0x48b   : > { %v14415_v52 = vpack.c.bf16 %v4674_v39, %v4672_v38  ;;  %v4037_v53 = vmax.f32 %v3895_v40, 0.0  ;;  %11464 = vmatmul.mubr.msk.bf16.gmra.mrb[96].mxu1 %vm1222_vm0, %v12929_v54 }
 0x48c   : > { %v4038_v57 = vmax.f32 %v3897_v48, 0.0  ;;  %v4369_v32 = vpop.f32.mrb[8].mxu0  ;;  %5222 = vmatprep.mubr.bf16.mxu1 %v17539_v3  ;;  %v14426_v58 = vpack.c.bf16 %v4675_v46, %v4673_v42 }
 0x48d   : > { %v4105_v59 = vpack.c.bf16 %v4037_v53, %v4035_v50  ;;  %v4370_v61 = vadd.f32 %v4369_v32, %v14377_v44  ;;  %v4371_v62 = vpop.f32.mrb[9].mxu0 }
 0x48e   : > { %v4372_v63 = vadd.f32 %v4371_v62, %v14381_v47  ;;  %v3900_v0 = vpop.f32.mrb[248].mxu1  ;;  %v4373_v45 = vpop.f32.mrb[10].mxu0  ;;  %v4106_v1 = vpack.c.bf16 %v4038_v57, %v4036_v56 }
 0x48f   : > { %v3901_v2 = vadd.f32 %v3900_v0, %v14050_v60  ;;  %v4374_v4 = vadd.f32 %v4373_v45, %v14377_v44  ;;  %v3902_v49 = vpop.f32.mrb[249].mxu1  ;;  %v4375_v5 = vpop.f32.mrb[11].mxu0  ;;  %v4676_v8 = vmax.f32 %v4370_v61, 0.0  ;;  %v12452_v61 = vld [vmem:[%s17516_s15 + $0x70] ss:$8 sps:$4 sm:$0xff]  }
 0x490   : > { %v3903_v6 = vadd.f32 %v3902_v49, %v14054_v43  ;;  %v4376_v7 = vadd.f32 %v4375_v5, %v14381_v47  ;;  %v3904_v51 = vpop.f32.mrb[250].mxu1  ;;  %4637 = vmatprep.mubr.bf16.mxu0 %v4106_v1  ;;  %v4677_v12 = vmax.f32 %v4372_v63, 0.0 }
 0x491   : > { %v4678_v9 = vmax.f32 %v4374_v4, 0.0  ;;  %v3905_v10 = vadd.f32 %v3904_v51, %v14050_v60  ;;  %v3906_v11 = vpop.f32.mrb[251].mxu1  ;;  %4638 = vmatmul.mubr.bf16.gmra.mrb[116].mxu0 %v4105_v59  ;;  %v4039_v16 = vmax.f32 %v3901_v2, 0.0  ;;  %v12931_v59 = vld [vmem:[%s13131_s0 + $0xd0] sm:$0xff]  }
 0x492   : > { %v4679_v14 = vmax.f32 %v4376_v7, 0.0  ;;  %v3907_v15 = vadd.f32 %v3906_v11, %v14054_v43  ;;  %v4040_v21 = vmax.f32 %v3903_v6, 0.0 }
 0x493   : > { %v14436_v17 = vpack.c.bf16 %v4678_v9, %v4676_v8  ;;  %v4041_v18 = vmax.f32 %v3905_v10, 0.0  ;;  %11465 = vmatmul.mubr.msk.bf16.gmra.mrb[100].mxu1 %vm1222_vm0, %v12930_v20 }
 0x494   : > { %v4042_v22 = vmax.f32 %v3907_v15, 0.0  ;;  %v4379_v23 = vpop.f32.mrb[12].mxu0  ;;  %5232 = vmatprep.mubr.bf16.mxu1 %v17539_v3  ;;  %v14441_v24 = vpack.c.bf16 %v4679_v14, %v4677_v12  ;;  %v12932_v14 = vld [vmem:[%s13131_s0 + $0xd8] sm:$0xff]  }
 0x495   : > { %v4107_v25 = vpack.c.bf16 %v4041_v18, %v4039_v16  ;;  %v4380_v27 = vadd.f32 %v4379_v23, %v14377_v44  ;;  %v4381_v29 = vpop.f32.mrb[13].mxu0 }
 0x496   : > { %v4382_v30 = vadd.f32 %v4381_v29, %v14381_v47  ;;  %v3910_v33 = vpop.f32.mrb[252].mxu1  ;;  %v4383_v34 = vpop.f32.mrb[14].mxu0  ;;  %v4108_v35 = vpack.c.bf16 %v4042_v22, %v4040_v21 }
 0x497   : > { %v3911_v36 = vadd.f32 %v3910_v33, %v14050_v60  ;;  %v4384_v37 = vadd.f32 %v4383_v34, %v14377_v44  ;;  %v3912_v38 = vpop.f32.mrb[253].mxu1  ;;  %v4385_v39 = vpop.f32.mrb[15].mxu0  ;;  %v4680_v46 = vmax.f32 %v4380_v27, 0.0 }
 0x498   : > { %v3913_v40 = vadd.f32 %v3912_v38, %v14054_v43  ;;  %v4386_v41 = vadd.f32 %v4385_v39, %v14381_v47  ;;  %v3914_v42 = vpop.f32.mrb[254].mxu1  ;;  %4647 = vmatprep.mubr.bf16.mxu0 %v4108_v35  ;;  %v4681_v54 = vmax.f32 %v4382_v30, 0.0  ;;  %v12457_v38 = vld [vmem:[%s17516_s15 + $0x84] ss:$8 sps:$4 sm:$0xff]  }
 0x499   : > { %v4682_v48 = vmax.f32 %v4384_v37, 0.0  ;;  %v3915_v50 = vadd.f32 %v3914_v42, %v14050_v60  ;;  %v3916_v53 = vpop.f32.mrb[255].mxu1  ;;  %4648 = vmatmul.mubr.bf16.gmra.mrb[120].mxu0 %v4107_v25  ;;  %v4043_v56 = vmax.f32 %v3911_v36, 0.0  ;;  %v12454_v60 = vld [vmem:[%s17516_s15 + $0x74] ss:$8 sps:$4 sm:$0xff]   ;;  %v12933_v36 = vld [vmem:[%s13131_s0 + $0xe0] sm:$0xff]  }
 0x49a   : > { %v4683_v55 = vmax.f32 %v4386_v41, 0.0  ;;  %v3917_v31 = vadd.f32 %v3916_v53, %v14054_v43  ;;  %v4044_v62 = vmax.f32 %v3913_v40, 0.0  ;;  %6356 = vmatprep.subr.bf16.mxu0 %v12454_v60  ;;  %v12455_v37 = vld [vmem:[%s17516_s15 + $0x80] ss:$8 sps:$4 sm:$0xff]  }
 0x49b   : > { %v14451_v57 = vpack.c.bf16 %v4682_v48, %v4680_v46  ;;  %v4045_v32 = vmax.f32 %v3915_v50, 0.0  ;;  %11466 = vmatmul.mubr.msk.bf16.gmra.mrb[104].mxu1 %vm1222_vm0, %v12931_v59  ;;  %6357 = vmatpush1.bf16.msra.mxu0 %v12452_v61  ;;  %v12934_v61 = vld [vmem:[%s13131_s0 + $0xe8] sm:$0xff]  }
 0x49c   : > { %v4046_v63 = vmax.f32 %v3917_v31, 0.0  ;;  %v4389_v0 = vpop.f32.mrb[16].mxu0  ;;  %5242 = vmatprep.mubr.bf16.mxu1 %v17539_v3  ;;  %v14462_v43 = vpack.c.bf16 %v4683_v55, %v4681_v54  ;;  %6358 = vmatprep.subr.bf16.mxu0 %v12457_v38 }
 0x49d   : > { %v4109_v45 = vpack.c.bf16 %v4045_v32, %v4043_v56  ;;  %v4390_v1 = vadd.f32 %v4389_v0, %v14377_v44  ;;  %v4391_v2 = vpop.f32.mrb[17].mxu0 }
 0x49e   : > { %v4392_v4 = vadd.f32 %v4391_v2, %v14381_v47  ;;  %v4393_v49 = vpop.f32.mrb[18].mxu0  ;;  %v4110_v5 = vpack.c.bf16 %v4046_v63, %v4044_v62 }
 0x49f   : > { %v4394_v6 = vadd.f32 %v4393_v49, %v14377_v44  ;;  %v4395_v7 = vpop.f32.mrb[19].mxu0  ;;  %v4684_v8 = vmax.f32 %v4390_v1, 0.0  ;;  %6359 = vmatpush1.bf16.msra.mxu0 %v12455_v37  ;;  %v12936_v37 = vld [vmem:[%s13131_s0 + $0xf8] sm:$0xff]  }
 0x4a0   : > { %v4396_v51 = vadd.f32 %v4395_v7, %v14381_v47  ;;  %4657 = vmatprep.mubr.bf16.mxu0 %v4110_v5  ;;  %v4685_v10 = vmax.f32 %v4392_v4, 0.0 }
 0x4a1   : > { %v4686_v9 = vmax.f32 %v4394_v6, 0.0  ;;  %4658 = vmatmul.mubr.bf16.gmra.mrb[124].mxu0 %v4109_v45 }
 0x4a2   : > { %v4687_v11 = vmax.f32 %v4396_v51, 0.0 }
 0x4a3   : > { %v14468_v12 = vpack.c.bf16 %v4686_v9, %v4684_v8  ;;  %11467 = vmatmul.mubr.msk.bf16.gmra.mrb[108].mxu1 %vm1222_vm0, %v12932_v14  ;;  %v12935_v9 = vld [vmem:[%s13131_s0 + $0xf0] sm:$0xff]   ;;  %s15728_s0 = scalar_lea.vmem %s17610_s4, %s17609_s2  ;;  %s11230_s2 = sshll.u32 %s17812_s30, 2 }
 0x4a4   : > { %v4399_v15 = vpop.f32.mrb[20].mxu0  ;;  %5252 = vmatprep.mubr.bf16.mxu1 %v17539_v3  ;;  %v14473_v16 = vpack.c.bf16 %v4687_v11, %v4685_v10  ;;  %v12458_v10 = vld [vmem:[%s17516_s15 + $0x90] ss:$8 sps:$4 sm:$0xff]   ;;  %v12460_v11 = vld [vmem:[%s17516_s15 + $0x94] ss:$8 sps:$4 sm:$0xff]   ;;  %p868_p4 = scmp.lt.s32.totalorder %s11230_s2, 7 }
 0x4a5   : > { %v4400_v18 = vadd.f32 %v4399_v15, %v14377_v44  ;;  %v4401_v20 = vpop.f32.mrb[21].mxu0  ;;  %6360 = vmatprep.subr.bf16.mxu0 %v12460_v11 }
 0x4a6   : > { %v4402_v21 = vadd.f32 %v4401_v20, %v14381_v47  ;;  %v4403_v22 = vpop.f32.mrb[22].mxu0  ;;  %6361 = vmatpush1.bf16.msra.mxu0 %v12458_v10  ;;  %s17816_s2 = smov (!%p868_p4, %s11230_s2), 7 }
 0x4a7   : > { %v4404_v23 = vadd.f32 %v4403_v22, %v14377_v44  ;;  %v4405_v25 = vpop.f32.mrb[23].mxu0  ;;  %v4688_v29 = vmax.f32 %v4400_v18, 0.0  ;;  %s11231_s3 = sshll.u32 %s17816_s2, 3 }
 0x4a8   : > { %v4406_v27 = vadd.f32 %v4405_v25, %v14381_v47  ;;  %v4689_v33 = vmax.f32 %v4402_v21, 0.0  ;;  %s17363_s4 = scalar_lea.vmem %s17529_s28, %s11231_s3 }
 0x4a9   : > { %v4690_v30 = vmax.f32 %v4404_v23, 0.0 }
 0x4aa   : > { %v4691_v34 = vmax.f32 %v4406_v27, 0.0 }
 0x4ab   : > { %v14479_v35 = vpack.c.bf16 %v4690_v30, %v4688_v29  ;;  %11468 = vmatmul.mubr.msk.bf16.gmra.mrb[112].mxu1 %vm1222_vm0, %v12933_v36 }
 0x4ac   : > { %v4409_v39 = vpop.f32.mrb[24].mxu0  ;;  %5262 = vmatprep.mubr.bf16.mxu1 %v17539_v3  ;;  %v14490_v40 = vpack.c.bf16 %v4691_v34, %v4689_v33 }
 0x4ad   : > { %v4410_v41 = vadd.f32 %v4409_v39, %v14377_v44  ;;  %v4411_v42 = vpop.f32.mrb[25].mxu0 }
 0x4ae   : > { %v4412_v46 = vadd.f32 %v4411_v42, %v14381_v47  ;;  %v4413_v48 = vpop.f32.mrb[26].mxu0 }
 0x4af   : > { %v4414_v50 = vadd.f32 %v4413_v48, %v14377_v44  ;;  %v4415_v53 = vpop.f32.mrb[27].mxu0  ;;  %v4692_v55 = vmax.f32 %v4410_v41, 0.0 }
 0x4b0   : > { %v4416_v54 = vadd.f32 %v4415_v53, %v14381_v47  ;;  %v4693_v56 = vmax.f32 %v4412_v46, 0.0 }
 0x4b1   : > { %v4694_v31 = vmax.f32 %v4414_v50, 0.0 }
 0x4b2   : > { %v4695_v32 = vmax.f32 %v4416_v54, 0.0 }
 0x4b3   : > { %v14496_v59 = vpack.c.bf16 %v4694_v31, %v4692_v55  ;;  %11469 = vmatmul.mubr.msk.bf16.gmra.mrb[116].mxu1 %vm1222_vm0, %v12934_v61 }
 0x4b4   : > { %v4419_v60 = vpop.f32.mrb[28].mxu0  ;;  %5272 = vmatprep.mubr.bf16.mxu1 %v17539_v3  ;;  %v14501_v62 = vpack.c.bf16 %v4695_v32, %v4693_v56 }
 0x4b5   : > { %v4420_v63 = vadd.f32 %v4419_v60, %v14377_v44  ;;  %v4421_v0 = vpop.f32.mrb[29].mxu0  ;;  %v12463_v60 = vld [vmem:[%s17516_s15 + $0xa4] ss:$8 sps:$4 sm:$0xff]  }
 0x4b6   : > { %v4422_v45 = vadd.f32 %v4421_v0, %v14381_v47  ;;  %v4423_v1 = vpop.f32.mrb[30].mxu0  ;;  %6362 = vmatprep.subr.bf16.mxu0 %v12463_v60 }
 0x4b7   : > { %v4424_v2 = vadd.f32 %v4423_v1, %v14377_v44  ;;  %v4425_v4 = vpop.f32.mrb[31].mxu0  ;;  %v4696_v5 = vmax.f32 %v4420_v63, 0.0 }
 0x4b8   : > { %v4426_v49 = vadd.f32 %v4425_v4, %v14381_v47  ;;  %v4697_v7 = vmax.f32 %v4422_v45, 0.0 }
 0x4b9   : > { %v4698_v6 = vmax.f32 %v4424_v2, 0.0 }
 0x4ba   : > { %v4699_v51 = vmax.f32 %v4426_v49, 0.0 }
 0x4bb   : > { %v14507_v8 = vpack.c.bf16 %v4698_v6, %v4696_v5  ;;  %11470 = vmatmul.mubr.msk.bf16.gmra.mrb[120].mxu1 %vm1222_vm0, %v12935_v9 }
 0x4bc   : > { %v4429_v14 = vpop.f32.mrb[32].mxu0  ;;  %5282 = vmatprep.mubr.bf16.mxu1 %v17539_v3  ;;  %v14518_v15 = vpack.c.bf16 %v4699_v51, %v4697_v7 }
 0x4bd   : > { %v4430_v18 = vadd.f32 %v4429_v14, %v14377_v44  ;;  %v4431_v20 = vpop.f32.mrb[33].mxu0 }
 0x4be   : > { %v4432_v21 = vadd.f32 %v4431_v20, %v14381_v47  ;;  %v4433_v22 = vpop.f32.mrb[34].mxu0 }
 0x4bf   : > { %v4434_v23 = vadd.f32 %v4433_v22, %v14377_v44  ;;  %v4435_v25 = vpop.f32.mrb[35].mxu0  ;;  %v4700_v29 = vmax.f32 %v4430_v18, 0.0 }
 0x4c0   : > { %v4436_v27 = vadd.f32 %v4435_v25, %v14381_v47  ;;  %v4701_v33 = vmax.f32 %v4432_v21, 0.0 }
 0x4c1   : > { %v4702_v30 = vmax.f32 %v4434_v23, 0.0 }
 0x4c2   : > { %v4703_v34 = vmax.f32 %v4436_v27, 0.0 }
 0x4c3   : > { %v14524_v36 = vpack.c.bf16 %v4702_v30, %v4700_v29  ;;  %11471 = vmatmul.mubr.msk.bf16.gmra.mrb[124].mxu1 %vm1222_vm0, %v12936_v37 }
 0x4c4   : > { %v4439_v38 = vpop.f32.mrb[36].mxu0  ;;  %5485 = vmatprep.mubr.bf16.mxu1 %v14405_v19  ;;  %v14529_v39 = vpack.c.bf16 %v4703_v34, %v4701_v33  ;;  %v12461_v19 = vld [vmem:[%s17516_s15 + $0xa0] ss:$8 sps:$4 sm:$0xff]   ;;  %v12466_v34 = vld [vmem:[%s17516_s15 + $0xb4] ss:$8 sps:$4 sm:$0xff]  }
 0x4c5   : > { %v4440_v41 = vadd.f32 %v4439_v38, %v14377_v44  ;;  %v4441_v42 = vpop.f32.mrb[37].mxu0  ;;  %6363 = vmatpush1.bf16.msra.mxu0 %v12461_v19 }
 0x4c6   : > { %v4442_v46 = vadd.f32 %v4441_v42, %v14381_v47  ;;  %v4443_v48 = vpop.f32.mrb[38].mxu0  ;;  %6364 = vmatprep.subr.bf16.mxu0 %v12466_v34 }
 0x4c7   : > { %v4444_v50 = vadd.f32 %v4443_v48, %v14377_v44  ;;  %v4445_v53 = vpop.f32.mrb[39].mxu0  ;;  %v4704_v55 = vmax.f32 %v4440_v41, 0.0 }
 0x4c8   : > { %v4446_v54 = vadd.f32 %v4445_v53, %v14381_v47  ;;  %v4705_v56 = vmax.f32 %v4442_v46, 0.0 }
 0x4c9   : > { %v4706_v31 = vmax.f32 %v4444_v50, 0.0 }
 0x4ca   : > { %v4707_v32 = vmax.f32 %v4446_v54, 0.0 }
 0x4cb   : > { %v14535_v61 = vpack.c.bf16 %v4706_v31, %v4704_v55  ;;  %5486 = vmatmul.mubr.bf16.vlgmr.msra.gmra.mrb[0].mxu1 %v14400_v13 }
 0x4cc   : > { %v4449_v63 = vpop.f32.mrb[40].mxu0  ;;  %5495 = vmatprep.mubr.bf16.mxu1 %v14426_v58  ;;  %v14545_v0 = vpack.c.bf16 %v4707_v32, %v4705_v56 }
 0x4cd   : > { %v4450_v45 = vadd.f32 %v4449_v63, %v14377_v44  ;;  %v4451_v1 = vpop.f32.mrb[41].mxu0 }
 0x4ce   : > { %v4452_v2 = vadd.f32 %v4451_v1, %v14381_v47  ;;  %v4453_v13 = vpop.f32.mrb[42].mxu0 }
 0x4cf   : > { %v4454_v4 = vadd.f32 %v4453_v13, %v14377_v44  ;;  %v4455_v49 = vpop.f32.mrb[43].mxu0  ;;  %v4708_v6 = vmax.f32 %v4450_v45, 0.0 }
 0x4d0   : > { %v4456_v5 = vadd.f32 %v4455_v49, %v14381_v47  ;;  %v4709_v51 = vmax.f32 %v4452_v2, 0.0 }
 0x4d1   : > { %v4710_v7 = vmax.f32 %v4454_v4, 0.0 }
 0x4d2   : > { %v4711_v9 = vmax.f32 %v4456_v5, 0.0 }
 0x4d3   : > { %v14551_v58 = vpack.c.bf16 %v4710_v7, %v4708_v6  ;;  %5496 = vmatmul.mubr.bf16.gmra.mrb[4].mxu1 %v14415_v52 }
 0x4d4   : > { %v4459_v10 = vpop.f32.mrb[44].mxu0  ;;  %5505 = vmatprep.mubr.bf16.mxu1 %v14441_v24  ;;  %v14555_v11 = vpack.c.bf16 %v4711_v9, %v4709_v51  ;;  %v12464_v24 = vld [vmem:[%s17516_s15 + $0xb0] ss:$8 sps:$4 sm:$0xff]   ;;  %v12469_v51 = vld [vmem:[%s17516_s15 + $0xc4] ss:$8 sps:$4 sm:$0xff]  }
 0x4d5   : > { %v4460_v14 = vadd.f32 %v4459_v10, %v14377_v44  ;;  %v4461_v18 = vpop.f32.mrb[45].mxu0  ;;  %6365 = vmatpush1.bf16.msra.mxu0 %v12464_v24 }
 0x4d6   : > { %v4462_v20 = vadd.f32 %v4461_v18, %v14381_v47  ;;  %v4463_v21 = vpop.f32.mrb[46].mxu0  ;;  %6366 = vmatprep.subr.bf16.mxu0 %v12469_v51  ;;  %v12473_v51 = vld [vmem:[%s17516_s15 + $0xe0] ss:$8 sps:$4 sm:$0xff]  }
 0x4d7   : > { %v4464_v22 = vadd.f32 %v4463_v21, %v14377_v44  ;;  %v4465_v23 = vpop.f32.mrb[47].mxu0  ;;  %v4712_v27 = vmax.f32 %v4460_v14, 0.0 }
 0x4d8   : > { %v4466_v25 = vadd.f32 %v4465_v23, %v14381_v47  ;;  %v4713_v30 = vmax.f32 %v4462_v20, 0.0 }
 0x4d9   : > { %v4714_v29 = vmax.f32 %v4464_v22, 0.0 }
 0x4da   : > { %v4715_v52 = vmax.f32 %v4466_v25, 0.0 }
 0x4db   : > { %v14561_v33 = vpack.c.bf16 %v4714_v29, %v4712_v27  ;;  %5506 = vmatmul.mubr.bf16.gmra.mrb[8].mxu1 %v14436_v17 }
 0x4dc   : > { %v4469_v37 = vpop.f32.mrb[48].mxu0  ;;  %5515 = vmatprep.mubr.bf16.mxu1 %v14462_v43  ;;  %v14571_v38 = vpack.c.bf16 %v4715_v52, %v4713_v30 }
 0x4dd   : > { %v4470_v41 = vadd.f32 %v4469_v37, %v14377_v44  ;;  %v4471_v42 = vpop.f32.mrb[49].mxu0 }
 0x4de   : > { %v4472_v46 = vadd.f32 %v4471_v42, %v14381_v47  ;;  %v4473_v17 = vpop.f32.mrb[50].mxu0 }
 0x4df   : > { %v4474_v48 = vadd.f32 %v4473_v17, %v14377_v44  ;;  %v4475_v50 = vpop.f32.mrb[51].mxu0  ;;  %v4716_v54 = vmax.f32 %v4470_v41, 0.0 }
 0x4e0   : > { %v4476_v53 = vadd.f32 %v4475_v50, %v14381_v47  ;;  %v4717_v31 = vmax.f32 %v4472_v46, 0.0 }
 0x4e1   : > { %v4718_v55 = vmax.f32 %v4474_v48, 0.0 }
 0x4e2   : > { %v4719_v56 = vmax.f32 %v4476_v53, 0.0 }
 0x4e3   : > { %v14577_v43 = vpack.c.bf16 %v4718_v55, %v4716_v54  ;;  %5516 = vmatmul.mubr.bf16.gmra.mrb[12].mxu1 %v14451_v57 }
 0x4e4   : > { %v4479_v32 = vpop.f32.mrb[52].mxu0  ;;  %5525 = vmatprep.mubr.bf16.mxu1 %v14473_v16  ;;  %v14581_v19 = vpack.c.bf16 %v4719_v56, %v4717_v31  ;;  %v12467_v16 = vld [vmem:[%s17516_s15 + $0xc0] ss:$8 sps:$4 sm:$0xff]   ;;  %v12472_v31 = vld [vmem:[%s17516_s15 + $0xd4] ss:$8 sps:$4 sm:$0xff]  }
 0x4e5   : > { %v4480_v60 = vadd.f32 %v4479_v32, %v14377_v44  ;;  %v4481_v63 = vpop.f32.mrb[53].mxu0  ;;  %6367 = vmatpush1.bf16.msra.mxu0 %v12467_v16 }
 0x4e6   : > { %v4482_v45 = vadd.f32 %v4481_v63, %v14381_v47  ;;  %v4483_v1 = vpop.f32.mrb[54].mxu0  ;;  %6368 = vmatprep.subr.bf16.mxu0 %v12472_v31  ;;  %v12476_v31 = vld [vmem:[%s17516_s15 + $0xf0] ss:$8 sps:$4 sm:$0xff]  }
 0x4e7   : > { %v4484_v2 = vadd.f32 %v4483_v1, %v14377_v44  ;;  %v4485_v13 = vpop.f32.mrb[55].mxu0  ;;  %v4720_v49 = vmax.f32 %v4480_v60, 0.0 }
 0x4e8   : > { %v4486_v4 = vadd.f32 %v4485_v13, %v14381_v47  ;;  %v4721_v6 = vmax.f32 %v4482_v45, 0.0 }
 0x4e9   : > { %v4722_v5 = vmax.f32 %v4484_v2, 0.0 }
 0x4ea   : > { %v4723_v57 = vmax.f32 %v4486_v4, 0.0 }
 0x4eb   : > { %v14587_v7 = vpack.c.bf16 %v4722_v5, %v4720_v49  ;;  %5526 = vmatmul.mubr.bf16.gmra.mrb[16].mxu1 %v14468_v12 }
 0x4ec   : > { %v4489_v9 = vpop.f32.mrb[56].mxu0  ;;  %5535 = vmatprep.mubr.bf16.mxu1 %v14490_v40  ;;  %v14597_v10 = vpack.c.bf16 %v4723_v57, %v4721_v6 }
 0x4ed   : > { %v4490_v14 = vadd.f32 %v4489_v9, %v14377_v44  ;;  %v4491_v18 = vpop.f32.mrb[57].mxu0  ;;  %v12475_v9 = vld [vmem:[%s17516_s15 + $0xe4] ss:$8 sps:$4 sm:$0xff]  }
 0x4ee   : > { %v4492_v20 = vadd.f32 %v4491_v18, %v14381_v47  ;;  %v4493_v12 = vpop.f32.mrb[58].mxu0 }
 0x4ef   : > { %v4494_v21 = vadd.f32 %v4493_v12, %v14377_v44  ;;  %v4495_v22 = vpop.f32.mrb[59].mxu0  ;;  %v4724_v25 = vmax.f32 %v4490_v14, 0.0 }
 0x4f0   : > { %v4496_v23 = vadd.f32 %v4495_v22, %v14381_v47  ;;  %v4725_v29 = vmax.f32 %v4492_v20, 0.0 }
 0x4f1   : > { %v4726_v27 = vmax.f32 %v4494_v21, 0.0 }
 0x4f2   : > { %v4727_v30 = vmax.f32 %v4496_v23, 0.0 }
 0x4f3   : > { %v14603_v40 = vpack.c.bf16 %v4726_v27, %v4724_v25  ;;  %5536 = vmatmul.mubr.bf16.gmra.mrb[20].mxu1 %v14479_v35 }
 0x4f4   : > { %v4499_v52 = vpop.f32.mrb[60].mxu0  ;;  %5545 = vmatprep.mubr.bf16.mxu1 %v14501_v62  ;;  %v14607_v24 = vpack.c.bf16 %v4727_v30, %v4725_v29  ;;  %v12470_v62 = vld [vmem:[%s17516_s15 + $0xd0] ss:$8 sps:$4 sm:$0xff]  }
 0x4f5   : > { %v4500_v34 = vadd.f32 %v4499_v52, %v14377_v44  ;;  %v4501_v37 = vpop.f32.mrb[61].mxu0  ;;  %6369 = vmatpush1.bf16.msra.mxu0 %v12470_v62 }
 0x4f6   : > { %v4502_v41 = vadd.f32 %v4501_v37, %v14381_v47  ;;  %v4503_v42 = vpop.f32.mrb[62].mxu0  ;;  %6370 = vmatprep.subr.bf16.mxu0 %v12475_v9 }
 0x4f7   : > { %v4504_v46 = vadd.f32 %v4503_v42, %v14377_v44  ;;  %v4505_v17 = vpop.f32.mrb[63].mxu0  ;;  %v4728_v50 = vmax.f32 %v4500_v34, 0.0 }
 0x4f8   : > { %v4506_v48 = vadd.f32 %v4505_v17, %v14381_v47  ;;  %v4729_v54 = vmax.f32 %v4502_v41, 0.0 }
 0x4f9   : > { %v4730_v53 = vmax.f32 %v4504_v46, 0.0  ;;  %6371 = vmatpush1.bf16.msra.mxu0 %v12473_v51 }
 0x4fa   : > { %v4731_v35 = vmax.f32 %v4506_v48, 0.0 }
 0x4fb   : > { %v14613_v55 = vpack.c.bf16 %v4730_v53, %v4728_v50  ;;  %5546 = vmatmul.mubr.bf16.gmra.mrb[24].mxu1 %v14496_v59 }
 0x4fc   : > { %v4509_v56 = vpop.f32.mrb[64].mxu0  ;;  %5555 = vmatprep.mubr.bf16.mxu1 %v14518_v15  ;;  %v14623_v32 = vpack.c.bf16 %v4731_v35, %v4729_v54 }
 0x4fd   : > { %v4510_v60 = vadd.f32 %v4509_v56, %v14377_v44  ;;  %v4511_v63 = vpop.f32.mrb[65].mxu0  ;;  %v12478_v56 = vld [vmem:[%s17516_s15 + $0xf4] ss:$8 sps:$4 sm:$0xff]  }
 0x4fe   : > { %v4512_v45 = vadd.f32 %v4511_v63, %v14381_v47  ;;  %v4513_v59 = vpop.f32.mrb[66].mxu0  ;;  %6372 = vmatprep.subr.bf16.mxu0 %v12478_v56 }
 0x4ff   : > { %v4514_v1 = vadd.f32 %v4513_v59, %v14377_v44  ;;  %v4515_v2 = vpop.f32.mrb[67].mxu0  ;;  %v4732_v4 = vmax.f32 %v4510_v60, 0.0  ;;  %6373 = vmatpush1.bf16.msra.mxu0 %v12476_v31  ;;  %v12481_v31 = vld [vmem:[%s17518_s17 + $0x4] ss:$8 sps:$4 sm:$0xff]  }
 0x500   : > { %v4516_v13 = vadd.f32 %v4515_v2, %v14381_v47  ;;  %v4733_v5 = vmax.f32 %v4512_v45, 0.0  ;;  %7091 = vmatprep.subr.bf16.mxu0 %v12481_v31 }
 0x501   : > { %v4734_v49 = vmax.f32 %v4514_v1, 0.0 }
 0x502   : > { %v4735_v6 = vmax.f32 %v4516_v13, 0.0 }
 0x503   : > { %v14629_v15 = vpack.c.bf16 %v4734_v49, %v4732_v4  ;;  %5556 = vmatmul.mubr.bf16.gmra.mrb[28].mxu1 %v14507_v8 }
 0x504   : > { %v4519_v57 = vpop.f32.mrb[68].mxu0  ;;  %5565 = vmatprep.mubr.bf16.mxu1 %v14529_v39  ;;  %v14633_v16 = vpack.c.bf16 %v4735_v6, %v4733_v5 }
 0x505   : > { %v4520_v14 = vadd.f32 %v4519_v57, %v14377_v44  ;;  %v4521_v18 = vpop.f32.mrb[69].mxu0 }
 0x506   : > { %v4522_v20 = vadd.f32 %v4521_v18, %v14381_v47  ;;  %v4523_v12 = vpop.f32.mrb[70].mxu0 }
 0x507   : > { %v4524_v8 = vadd.f32 %v4523_v12, %v14377_v44  ;;  %v4525_v39 = vpop.f32.mrb[71].mxu0  ;;  %v4736_v22 = vmax.f32 %v4520_v14, 0.0 }
 0x508   : > { %v4526_v21 = vadd.f32 %v4525_v39, %v14381_v47  ;;  %v4737_v25 = vmax.f32 %v4522_v20, 0.0 }
 0x509   : > { %v4738_v23 = vmax.f32 %v4524_v8, 0.0 }
 0x50a   : > { %v4739_v27 = vmax.f32 %v4526_v21, 0.0 }
 0x50b   : > { %v14645_v29 = vpack.c.bf16 %v4738_v23, %v4736_v22  ;;  %5566 = vmatmul.mubr.bf16.gmra.mrb[32].mxu1 %v14524_v36 }
 0x50c   : > { %v4529_v30 = vpop.f32.mrb[72].mxu0  ;;  %5575 = vmatprep.mubr.bf16.mxu1 %v14545_v0  ;;  %v14649_v52 = vpack.c.bf16 %v4739_v27, %v4737_v25 }
 0x50d   : > { %v4530_v34 = vadd.f32 %v4529_v30, %v14377_v44  ;;  %v4531_v37 = vpop.f32.mrb[73].mxu0 }
 0x50e   : > { %v4532_v41 = vadd.f32 %v4531_v37, %v14381_v47  ;;  %v4533_v42 = vpop.f32.mrb[74].mxu0 }
 0x50f   : > { %v4534_v46 = vadd.f32 %v4533_v42, %v14377_v44  ;;  %v4535_v17 = vpop.f32.mrb[75].mxu0  ;;  %v4740_v50 = vmax.f32 %v4530_v34, 0.0 }
 0x510   : > { %v4536_v48 = vadd.f32 %v4535_v17, %v14381_v47  ;;  %v4741_v54 = vmax.f32 %v4532_v41, 0.0 }
 0x511   : > { %v4742_v53 = vmax.f32 %v4534_v46, 0.0 }
 0x512   : > { %v4743_v36 = vmax.f32 %v4536_v48, 0.0 }
 0x513   : > { %v14655_v35 = vpack.c.bf16 %v4742_v53, %v4740_v50  ;;  %5576 = vmatmul.mubr.bf16.gmra.mrb[36].mxu1 %v14535_v61 }
 0x514   : > { %v4539_v0 = vpop.f32.mrb[76].mxu0  ;;  %5585 = vmatprep.mubr.bf16.mxu1 %v14555_v11  ;;  %v14659_v62 = vpack.c.bf16 %v4743_v36, %v4741_v54 }
 0x515   : > { %v4540_v60 = vadd.f32 %v4539_v0, %v14377_v44  ;;  %v4541_v63 = vpop.f32.mrb[77].mxu0 }
 0x516   : > { %v4542_v45 = vadd.f32 %v4541_v63, %v14381_v47  ;;  %v4543_v59 = vpop.f32.mrb[78].mxu0 }
 0x517   : > { %v4544_v61 = vadd.f32 %v4543_v59, %v14377_v44  ;;  %v4545_v11 = vpop.f32.mrb[79].mxu0  ;;  %v4744_v2 = vmax.f32 %v4540_v60, 0.0 }
 0x518   : > { %v4546_v1 = vadd.f32 %v4545_v11, %v14381_v47  ;;  %v4745_v4 = vmax.f32 %v4542_v45, 0.0 }
 0x519   : > { %v4746_v13 = vmax.f32 %v4544_v61, 0.0 }
 0x51a   : > { %v4747_v49 = vmax.f32 %v4546_v1, 0.0 }
 0x51b   : > { %v14671_v5 = vpack.c.bf16 %v4746_v13, %v4744_v2  ;;  %5586 = vmatmul.mubr.bf16.gmra.mrb[40].mxu1 %v14551_v58 }
 0x51c   : > { %v4549_v6 = vpop.f32.mrb[80].mxu0  ;;  %5595 = vmatprep.mubr.bf16.mxu1 %v14571_v38  ;;  %v14675_v57 = vpack.c.bf16 %v4747_v49, %v4745_v4 }
 0x51d   : > { %v4550_v51 = vadd.f32 %v4549_v6, %v14377_v44  ;;  %v4551_v9 = vpop.f32.mrb[81].mxu0 }
 0x51e   : > { %v4552_v14 = vadd.f32 %v4551_v9, %v14381_v47  ;;  %v4553_v18 = vpop.f32.mrb[82].mxu0 }
 0x51f   : > { %v4554_v20 = vadd.f32 %v4553_v18, %v14377_v44  ;;  %v4555_v12 = vpop.f32.mrb[83].mxu0  ;;  %v4748_v39 = vmax.f32 %v4550_v51, 0.0 }
 0x520   : > { %v4556_v8 = vadd.f32 %v4555_v12, %v14381_v47  ;;  %v4749_v22 = vmax.f32 %v4552_v14, 0.0 }
 0x521   : > { %v4750_v21 = vmax.f32 %v4554_v20, 0.0 }
 0x522   : > { %v4751_v58 = vmax.f32 %v4556_v8, 0.0 }
 0x523   : > { %v14681_v23 = vpack.c.bf16 %v4750_v21, %v4748_v39  ;;  %5596 = vmatmul.mubr.bf16.gmra.mrb[44].mxu1 %v14561_v33 }
 0x524   : > { %v4559_v38 = vpop.f32.mrb[84].mxu0  ;;  %5605 = vmatprep.mubr.bf16.mxu1 %v14581_v19  ;;  %v14685_v25 = vpack.c.bf16 %v4751_v58, %v4749_v22 }
 0x525   : > { %v4560_v27 = vadd.f32 %v4559_v38, %v14377_v44  ;;  %v4561_v30 = vpop.f32.mrb[85].mxu0 }
 0x526   : > { %v4562_v34 = vadd.f32 %v4561_v30, %v14381_v47  ;;  %v4563_v37 = vpop.f32.mrb[86].mxu0 }
 0x527   : > { %v4564_v41 = vadd.f32 %v4563_v37, %v14377_v44  ;;  %v4565_v42 = vpop.f32.mrb[87].mxu0  ;;  %v4752_v17 = vmax.f32 %v4560_v27, 0.0 }
 0x528   : > { %v4566_v46 = vadd.f32 %v4565_v42, %v14381_v47  ;;  %v4753_v50 = vmax.f32 %v4562_v34, 0.0 }
 0x529   : > { %v4754_v48 = vmax.f32 %v4564_v41, 0.0 }
 0x52a   : > { %v4755_v33 = vmax.f32 %v4566_v46, 0.0 }
 0x52b   : > { %v14691_v53 = vpack.c.bf16 %v4754_v48, %v4752_v17  ;;  %5606 = vmatmul.mubr.bf16.gmra.mrb[48].mxu1 %v14577_v43 }
 0x52c   : > { %v4569_v19 = vpop.f32.mrb[88].mxu0  ;;  %5615 = vmatprep.mubr.bf16.mxu1 %v14597_v10  ;;  %v14695_v54 = vpack.c.bf16 %v4755_v33, %v4753_v50 }
 0x52d   : > { %v4570_v36 = vadd.f32 %v4569_v19, %v14377_v44  ;;  %v4571_v0 = vpop.f32.mrb[89].mxu0 }
 0x52e   : > { %v4572_v56 = vadd.f32 %v4571_v0, %v14381_v47  ;;  %v4573_v60 = vpop.f32.mrb[90].mxu0 }
 0x52f   : > { %v4574_v63 = vadd.f32 %v4573_v60, %v14377_v44  ;;  %v4575_v45 = vpop.f32.mrb[91].mxu0  ;;  %v4756_v59 = vmax.f32 %v4570_v36, 0.0 }
 0x530   : > { %v4576_v43 = vadd.f32 %v4575_v45, %v14381_v47  ;;  %v4757_v61 = vmax.f32 %v4572_v56, 0.0 }
 0x531   : > { %v4758_v10 = vmax.f32 %v4574_v63, 0.0 }
 0x532   : > { %v4759_v11 = vmax.f32 %v4576_v43, 0.0 }
 0x533   : > { %v14704_v1 = vpack.c.bf16 %v4758_v10, %v4756_v59  ;;  %5616 = vmatmul.mubr.bf16.gmra.mrb[52].mxu1 %v14587_v7 }
 0x534   : > { %v4579_v2 = vpop.f32.mrb[92].mxu0  ;;  %5625 = vmatprep.mubr.bf16.mxu1 %v14607_v24  ;;  %v14708_v13 = vpack.c.bf16 %v4759_v11, %v4757_v61 }
 0x535   : > { %v4580_v4 = vadd.f32 %v4579_v2, %v14377_v44  ;;  %v4581_v49 = vpop.f32.mrb[93].mxu0 }
 0x536   : > { %v4582_v6 = vadd.f32 %v4581_v49, %v14381_v47  ;;  %v4583_v51 = vpop.f32.mrb[94].mxu0 }
 0x537   : > { %v4584_v9 = vadd.f32 %v4583_v51, %v14377_v44  ;;  %v4585_v14 = vpop.f32.mrb[95].mxu0  ;;  %v4760_v20 = vmax.f32 %v4580_v4, 0.0 }
 0x538   : > { %v4586_v18 = vadd.f32 %v4585_v14, %v14381_v47  ;;  %v4761_v8 = vmax.f32 %v4582_v6, 0.0 }
 0x539   : > { %v4762_v12 = vmax.f32 %v4584_v9, 0.0 }
 0x53a   : > { %v4763_v7 = vmax.f32 %v4586_v18, 0.0 }
 0x53b   : > { %v14714_v39 = vpack.c.bf16 %v4762_v12, %v4760_v20  ;;  %5626 = vmatmul.mubr.bf16.gmra.mrb[56].mxu1 %v14603_v40 }
 0x53c   : > { %v4589_v24 = vpop.f32.mrb[96].mxu0  ;;  %5635 = vmatprep.mubr.bf16.mxu1 %v14623_v32  ;;  %v14718_v21 = vpack.c.bf16 %v4763_v7, %v4761_v8 }
 0x53d   : > { %v4590_v22 = vadd.f32 %v4589_v24, %v14377_v44  ;;  %v4591_v58 = vpop.f32.mrb[97].mxu0 }
 0x53e   : > { %v4592_v38 = vadd.f32 %v4591_v58, %v14381_v47  ;;  %v4593_v27 = vpop.f32.mrb[98].mxu0 }
 0x53f   : > { %v4594_v30 = vadd.f32 %v4593_v27, %v14377_v44  ;;  %v4595_v34 = vpop.f32.mrb[99].mxu0  ;;  %v4764_v41 = vmax.f32 %v4590_v22, 0.0 }
 0x540   : > { %v4596_v37 = vadd.f32 %v4595_v34, %v14381_v47  ;;  %v4765_v46 = vmax.f32 %v4592_v38, 0.0 }
 0x541   : > { %v4766_v42 = vmax.f32 %v4594_v30, 0.0 }
 0x542   : > { %v4767_v40 = vmax.f32 %v4596_v37, 0.0 }
 0x543   : > { %v14724_v17 = vpack.c.bf16 %v4766_v42, %v4764_v41  ;;  %5636 = vmatmul.mubr.bf16.gmra.mrb[60].mxu1 %v14613_v55 }
 0x544   : > { %v4599_v32 = vpop.f32.mrb[100].mxu0  ;;  %5645 = vmatprep.mubr.bf16.mxu1 %v14633_v16  ;;  %v14728_v48 = vpack.c.bf16 %v4767_v40, %v4765_v46 }
 0x545   : > { %v4600_v50 = vadd.f32 %v4599_v32, %v14377_v44  ;;  %v4601_v33 = vpop.f32.mrb[101].mxu0 }
 0x546   : > { %v4602_v19 = vadd.f32 %v4601_v33, %v14381_v47  ;;  %v4603_v36 = vpop.f32.mrb[102].mxu0 }
 0x547   : > { %v4604_v0 = vadd.f32 %v4603_v36, %v14377_v44  ;;  %v4605_v31 = vpop.f32.mrb[103].mxu0  ;;  %v4768_v60 = vmax.f32 %v4600_v50, 0.0 }
 0x548   : > { %v4606_v56 = vadd.f32 %v4605_v31, %v14381_v47  ;;  %v4769_v45 = vmax.f32 %v4602_v19, 0.0 }
 0x549   : > { %v4770_v63 = vmax.f32 %v4604_v0, 0.0 }
 0x54a   : > { %v4771_v55 = vmax.f32 %v4606_v56, 0.0 }
 0x54b   : > { %v14734_v43 = vpack.c.bf16 %v4770_v63, %v4768_v60  ;;  %5646 = vmatmul.mubr.bf16.gmra.mrb[64].mxu1 %v14629_v15 }
 0x54c   : > { %v4609_v16 = vpop.f32.mrb[104].mxu0  ;;  %5655 = vmatprep.mubr.bf16.mxu1 %v14649_v52  ;;  %v14738_v59 = vpack.c.bf16 %v4771_v55, %v4769_v45 }
 0x54d   : > { %v4610_v10 = vadd.f32 %v4609_v16, %v14377_v44  ;;  %v4611_v61 = vpop.f32.mrb[105].mxu0 }
 0x54e   : > { %v4612_v11 = vadd.f32 %v4611_v61, %v14381_v47  ;;  %v4613_v2 = vpop.f32.mrb[106].mxu0 }
 0x54f   : > { %v4614_v4 = vadd.f32 %v4613_v2, %v14377_v44  ;;  %v4615_v49 = vpop.f32.mrb[107].mxu0  ;;  %v4772_v51 = vmax.f32 %v4610_v10, 0.0 }
 0x550   : > { %v4616_v6 = vadd.f32 %v4615_v49, %v14381_v47  ;;  %v4773_v14 = vmax.f32 %v4612_v11, 0.0 }
 0x551   : > { %v4774_v9 = vmax.f32 %v4614_v4, 0.0 }
 0x552   : > { %v4775_v15 = vmax.f32 %v4616_v6, 0.0 }
 0x553   : > { %v14744_v18 = vpack.c.bf16 %v4774_v9, %v4772_v51  ;;  %5656 = vmatmul.mubr.bf16.gmra.mrb[68].mxu1 %v14645_v29 }
 0x554   : > { %v4619_v52 = vpop.f32.mrb[108].mxu0  ;;  %5665 = vmatprep.mubr.bf16.mxu1 %v14659_v62  ;;  %v14748_v20 = vpack.c.bf16 %v4775_v15, %v4773_v14 }
 0x555   : > { %v4620_v12 = vadd.f32 %v4619_v52, %v14377_v44  ;;  %v4621_v8 = vpop.f32.mrb[109].mxu0 }
 0x556   : > { %v4622_v7 = vadd.f32 %v4621_v8, %v14381_v47  ;;  %v4623_v24 = vpop.f32.mrb[110].mxu0 }
 0x557   : > { %v4624_v22 = vadd.f32 %v4623_v24, %v14377_v44  ;;  %v4625_v58 = vpop.f32.mrb[111].mxu0  ;;  %v4776_v27 = vmax.f32 %v4620_v12, 0.0 }
 0x558   : > { %v4626_v38 = vadd.f32 %v4625_v58, %v14381_v47  ;;  %v4777_v34 = vmax.f32 %v4622_v7, 0.0 }
 0x559   : > { %v4778_v30 = vmax.f32 %v4624_v22, 0.0 }
 0x55a   : > { %v4779_v29 = vmax.f32 %v4626_v38, 0.0 }
 0x55b   : > { %v14754_v37 = vpack.c.bf16 %v4778_v30, %v4776_v27  ;;  %5666 = vmatmul.mubr.bf16.gmra.mrb[72].mxu1 %v14655_v35 }
 0x55c   : > { %v4629_v62 = vpop.f32.mrb[112].mxu0  ;;  %5675 = vmatprep.mubr.bf16.mxu1 %v14675_v57  ;;  %v14758_v41 = vpack.c.bf16 %v4779_v29, %v4777_v34 }
 0x55d   : > { %v4630_v42 = vadd.f32 %v4629_v62, %v14377_v44  ;;  %v4631_v46 = vpop.f32.mrb[113].mxu0 }
 0x55e   : > { %v4632_v40 = vadd.f32 %v4631_v46, %v14381_v47  ;;  %v4633_v32 = vpop.f32.mrb[114].mxu0 }
 0x55f   : > { %v4634_v50 = vadd.f32 %v4633_v32, %v14377_v44  ;;  %v4635_v33 = vpop.f32.mrb[115].mxu0  ;;  %v4780_v36 = vmax.f32 %v4630_v42, 0.0 }
 0x560   : > { %v4636_v19 = vadd.f32 %v4635_v33, %v14381_v47  ;;  %v4781_v31 = vmax.f32 %v4632_v40, 0.0 }
 0x561   : > { %v4782_v0 = vmax.f32 %v4634_v50, 0.0 }
 0x562   : > { %v4783_v35 = vmax.f32 %v4636_v19, 0.0 }
 0x563   : > { %v14764_v56 = vpack.c.bf16 %v4782_v0, %v4780_v36  ;;  %5676 = vmatmul.mubr.bf16.gmra.mrb[76].mxu1 %v14671_v5 }
 0x564   : > { %v4639_v57 = vpop.f32.mrb[116].mxu0  ;;  %5685 = vmatprep.mubr.bf16.mxu1 %v14685_v25  ;;  %v14768_v60 = vpack.c.bf16 %v4783_v35, %v4781_v31 }
 0x565   : > { %v4640_v63 = vadd.f32 %v4639_v57, %v14377_v44  ;;  %v4641_v45 = vpop.f32.mrb[117].mxu0 }
 0x566   : > { %v4642_v55 = vadd.f32 %v4641_v45, %v14381_v47  ;;  %v4643_v16 = vpop.f32.mrb[118].mxu0  ;;  %v12479_v45 = vld [vmem:[%s17518_s17] ss:$8 sps:$4 sm:$0xff]  }
 0x567   : > { %v4644_v10 = vadd.f32 %v4643_v16, %v14377_v44  ;;  %v4645_v61 = vpop.f32.mrb[119].mxu0  ;;  %v4784_v2 = vmax.f32 %v4640_v63, 0.0 }
 0x568   : > { %v4646_v11 = vadd.f32 %v4645_v61, %v14381_v47  ;;  %v4785_v49 = vmax.f32 %v4642_v55, 0.0 }
 0x569   : > { %v4786_v4 = vmax.f32 %v4644_v10, 0.0  ;;  %v12484_v10 = vld [vmem:[%s17518_s17 + $0x14] ss:$8 sps:$4 sm:$0xff]  }
 0x56a   : > { %v4787_v5 = vmax.f32 %v4646_v11, 0.0 }
 0x56b   : > { %v14774_v6 = vpack.c.bf16 %v4786_v4, %v4784_v2  ;;  %5686 = vmatmul.mubr.bf16.gmra.mrb[80].mxu1 %v14681_v23  ;;  %v12482_v4 = vld [vmem:[%s17518_s17 + $0x10] ss:$8 sps:$4 sm:$0xff]  }
 0x56c   : > { %v4649_v25 = vpop.f32.mrb[120].mxu0  ;;  %5695 = vmatprep.mubr.bf16.mxu1 %v14695_v54  ;;  %v14778_v51 = vpack.c.bf16 %v4787_v5, %v4785_v49 }
 0x56d   : > { %v4650_v9 = vadd.f32 %v4649_v25, %v14377_v44  ;;  %v4651_v14 = vpop.f32.mrb[121].mxu0  ;;  %v12487_v25 = vld [vmem:[%s17518_s17 + $0x24] ss:$8 sps:$4 sm:$0xff]  }
 0x56e   : > { %v4652_v15 = vadd.f32 %v4651_v14, %v14381_v47  ;;  %v4653_v52 = vpop.f32.mrb[122].mxu0 }
 0x56f   : > { %v4654_v12 = vadd.f32 %v4653_v52, %v14377_v44  ;;  %v4655_v8 = vpop.f32.mrb[123].mxu0  ;;  %v4788_v24 = vmax.f32 %v4650_v9, 0.0 }
 0x570   : > { %v4656_v7 = vadd.f32 %v4655_v8, %v14381_v47  ;;  %v4789_v58 = vmax.f32 %v4652_v15, 0.0  ;;  %v12485_v8 = vld [vmem:[%s17518_s17 + $0x20] ss:$8 sps:$4 sm:$0xff]  }
 0x571   : > { %v4790_v22 = vmax.f32 %v4654_v12, 0.0 }
 0x572   : > { %v4791_v23 = vmax.f32 %v4656_v7, 0.0 }
 0x573   : > { %v14784_v38 = vpack.c.bf16 %v4790_v22, %v4788_v24  ;;  %5696 = vmatmul.mubr.bf16.gmra.mrb[84].mxu1 %v14691_v53  ;;  %v12490_v24 = vld [vmem:[%s17518_s17 + $0x34] ss:$8 sps:$4 sm:$0xff]  }
 0x574   : > { %v4659_v54 = vpop.f32.mrb[124].mxu0  ;;  %5705 = vmatprep.mubr.bf16.mxu1 %v14708_v13  ;;  %v14788_v27 = vpack.c.bf16 %v4791_v23, %v4789_v58 }
 0x575   : > { %v4660_v30 = vadd.f32 %v4659_v54, %v14377_v44  ;;  %v4661_v34 = vpop.f32.mrb[125].mxu0 }
 0x576   : > { %v4662_v29 = vadd.f32 %v4661_v34, %v14381_v47  ;;  %v4663_v62 = vpop.f32.mrb[126].mxu0 }
 0x577   : > { %v4664_v42 = vadd.f32 %v4663_v62, %v14377_v44  ;;  %v4665_v46 = vpop.f32.mrb[127].mxu0  ;;  %v4792_v32 = vmax.f32 %v4660_v30, 0.0  ;;  %v5806_v44 = vld [vmem:[%s17515_s14] sm:$0x3]  ;;  %v12488_v30 = vld [vmem:[%s17518_s17 + $0x30] ss:$8 sps:$4 sm:$0xff]  }
 0x578   : > { %v4666_v40 = vadd.f32 %v4665_v46, %v14381_v47  ;;  %v4793_v33 = vmax.f32 %v4662_v29, 0.0  ;;  %v14811_v47 = vrot.slane %v5806_v44, %v13371_v26  ;;  %v12493_v62 = vld [vmem:[%s17518_s17 + $0x44] ss:$8 sps:$4 sm:$0xff]  }
 0x579   : > { %v4794_v50 = vmax.f32 %v4664_v42, 0.0 }
 0x57a   : > { %v4795_v53 = vmax.f32 %v4666_v40, 0.0 }
 0x57b   : > { %v14794_v19 = vpack.c.bf16 %v4794_v50, %v4792_v32  ;;  %5706 = vmatmul.mubr.bf16.gmra.mrb[88].mxu1 %v14704_v1  ;;  %v14815_v1 = vrot.slane %v5806_v44, %v13376_v28  ;;  %v12496_v44 = vld [vmem:[%s17518_s17 + $0x54] ss:$8 sps:$4 sm:$0xff]  }
 0x57c   : > { %5715 = vmatprep.mubr.bf16.mxu1 %v14718_v21  ;;  %v14798_v13 = vpack.c.bf16 %v4795_v53, %v4793_v33  ;;  %v12491_v33 = vld [vmem:[%s17518_s17 + $0x40] ss:$8 sps:$4 sm:$0xff]  }
 0x583   : > { %5716 = vmatmul.mubr.bf16.gmra.mrb[92].mxu1 %v14714_v39 }
 0x584   : > { %5725 = vmatprep.mubr.bf16.mxu1 %v14728_v48 }
 0x58b   : > { %5726 = vmatmul.mubr.bf16.gmra.mrb[96].mxu1 %v14724_v17 }
 0x58c   : > { %5735 = vmatprep.mubr.bf16.mxu1 %v14738_v59 }
 0x593   : > { %5736 = vmatmul.mubr.bf16.gmra.mrb[100].mxu1 %v14734_v43 }
 0x594   : > { %5745 = vmatprep.mubr.bf16.mxu1 %v14748_v20 }
 0x59b   : > { %5746 = vmatmul.mubr.bf16.gmra.mrb[104].mxu1 %v14744_v18 }
 0x59c   : > { %5755 = vmatprep.mubr.bf16.mxu1 %v14758_v41 }
 0x59e   : > { %v5487_v39 = vpop.f32.mrb[0].mxu1 }
 0x59f   : > { %v5818_v21 = vadd.f32 %v14811_v47, %v5487_v39  ;;  %v5489_v17 = vpop.f32.mrb[1].mxu1 }
 0x5a0   : > { %v5819_v48 = vadd.f32 %v14815_v1, %v5489_v17  ;;  %v5491_v43 = vpop.f32.mrb[2].mxu1 }
 0x5a1   : > { %v5820_v59 = vadd.f32 %v14811_v47, %v5491_v43  ;;  %v5493_v20 = vpop.f32.mrb[3].mxu1  ;;  %v5946_v36 = vmax.f32 %v5818_v21, 0.0  ;;  %v12494_v43 = vld [vmem:[%s17518_s17 + $0x50] ss:$8 sps:$4 sm:$0xff]  }
 0x5a2   : > { %v5821_v18 = vadd.f32 %v14815_v1, %v5493_v20  ;;  %v5947_v41 = vmax.f32 %v5819_v48, 0.0 }
 0x5a3   : > { %v5948_v0 = vmax.f32 %v5820_v59, 0.0  ;;  %5756 = vmatmul.mubr.bf16.gmra.mrb[108].mxu1 %v14754_v37 }
 0x5a4   : > { %v5949_v31 = vmax.f32 %v5821_v18, 0.0  ;;  %5765 = vmatprep.mubr.bf16.mxu1 %v14768_v60  ;;  %v12499_v18 = vld [vmem:[%s17518_s17 + $0x64] ss:$8 sps:$4 sm:$0xff]  }
 0x5a5   : > { %v6074_v35 = vpack.c.bf16 %v5948_v0, %v5946_v36 }
 0x5a6   : > { %v5497_v57 = vpop.f32.mrb[4].mxu1  ;;  %v6075_v63 = vpack.c.bf16 %v5949_v31, %v5947_v41 }
 0x5a7   : > { %v5822_v55 = vadd.f32 %v14811_v47, %v5497_v57  ;;  %v5499_v16 = vpop.f32.mrb[5].mxu1  ;;  %v12497_v57 = vld [vmem:[%s17518_s17 + $0x60] ss:$8 sps:$4 sm:$0xff]  }
 0x5a8   : > { %v5823_v37 = vadd.f32 %v14815_v1, %v5499_v16  ;;  %v5501_v61 = vpop.f32.mrb[6].mxu1  ;;  %6374 = vmatprep.mubr.bf16.mxu0 %v6075_v63 }
 0x5a9   : > { %v5824_v60 = vadd.f32 %v14811_v47, %v5501_v61  ;;  %v5503_v11 = vpop.f32.mrb[7].mxu1  ;;  %6375 = vmatmul.mubr.bf16.vlgmr.msra.gmra.mrb[128].mxu0 %v6074_v35  ;;  %v5950_v49 = vmax.f32 %v5822_v55, 0.0  ;;  %v12500_v61 = vld [vmem:[%s17518_s17 + $0x70] ss:$8 sps:$4 sm:$0xff]  }
 0x5aa   : > { %v5825_v2 = vadd.f32 %v14815_v1, %v5503_v11  ;;  %7092 = vmatpush1.bf16.msra.mxu0 %v12479_v45  ;;  %v5951_v9 = vmax.f32 %v5823_v37, 0.0  ;;  %v12502_v45 = vld [vmem:[%s17518_s17 + $0x74] ss:$8 sps:$4 sm:$0xff]  }
 0x5ab   : > { %v5952_v5 = vmax.f32 %v5824_v60, 0.0  ;;  %5766 = vmatmul.mubr.bf16.gmra.mrb[112].mxu1 %v14764_v56  ;;  %7093 = vmatprep.subr.bf16.mxu0 %v12484_v10 }
 0x5ac   : > { %v5953_v14 = vmax.f32 %v5825_v2, 0.0  ;;  %5775 = vmatprep.mubr.bf16.mxu1 %v14778_v51  ;;  %v12505_v2 = vld [vmem:[%s17518_s17 + $0x84] ss:$8 sps:$4 sm:$0xff]  }
 0x5ad   : > { %v6076_v15 = vpack.c.bf16 %v5952_v5, %v5950_v49 }
 0x5ae   : > { %v5507_v52 = vpop.f32.mrb[8].mxu1  ;;  %v6077_v12 = vpack.c.bf16 %v5953_v14, %v5951_v9  ;;  %7094 = vmatpush1.bf16.msra.mxu0 %v12482_v4  ;;  %v12503_v14 = vld [vmem:[%s17518_s17 + $0x80] ss:$8 sps:$4 sm:$0xff]  }
 0x5af   : > { %v5826_v7 = vadd.f32 %v14811_v47, %v5507_v52  ;;  %v5509_v56 = vpop.f32.mrb[9].mxu1  ;;  %7095 = vmatprep.subr.bf16.mxu0 %v12487_v25 }
 0x5b0   : > { %v5827_v22 = vadd.f32 %v14815_v1, %v5509_v56  ;;  %v5511_v58 = vpop.f32.mrb[10].mxu1  ;;  %6384 = vmatprep.mubr.bf16.mxu0 %v6077_v12 }
 0x5b1   : > { %v5828_v51 = vadd.f32 %v14811_v47, %v5511_v58  ;;  %v5513_v23 = vpop.f32.mrb[11].mxu1  ;;  %6385 = vmatmul.mubr.bf16.gmra.mrb[132].mxu0 %v6076_v15  ;;  %v5954_v34 = vmax.f32 %v5826_v7, 0.0 }
 0x5b2   : > { %v5829_v54 = vadd.f32 %v14815_v1, %v5513_v23  ;;  %7096 = vmatpush1.bf16.msra.mxu0 %v12485_v8  ;;  %v5955_v42 = vmax.f32 %v5827_v22, 0.0  ;;  %v12506_v22 = vld [vmem:[%s17518_s17 + $0x90] ss:$8 sps:$4 sm:$0xff]  }
 0x5b3   : > { %v5956_v29 = vmax.f32 %v5828_v51, 0.0  ;;  %5776 = vmatmul.mubr.bf16.gmra.mrb[116].mxu1 %v14774_v6  ;;  %7097 = vmatprep.subr.bf16.mxu0 %v12490_v24 }
 0x5b4   : > { %v5957_v46 = vmax.f32 %v5829_v54, 0.0  ;;  %5785 = vmatprep.mubr.bf16.mxu1 %v14788_v27 }
 0x5b5   : > { %v6078_v40 = vpack.c.bf16 %v5956_v29, %v5954_v34  ;;  %v12511_v34 = vld [vmem:[%s17518_s17 + $0xa4] ss:$8 sps:$4 sm:$0xff]  }
 0x5b6   : > { %v5517_v32 = vpop.f32.mrb[12].mxu1  ;;  %v6079_v50 = vpack.c.bf16 %v5957_v46, %v5955_v42  ;;  %7098 = vmatpush1.bf16.msra.mxu0 %v12488_v30  ;;  %v12509_v42 = vld [vmem:[%s17518_s17 + $0xa0] ss:$8 sps:$4 sm:$0xff]  }
 0x5b7   : > { %v5830_v53 = vadd.f32 %v14811_v47, %v5517_v32  ;;  %v5519_v6 = vpop.f32.mrb[13].mxu1  ;;  %7099 = vmatprep.subr.bf16.mxu0 %v12493_v62 }
 0x5b8   : > { %v5831_v39 = vadd.f32 %v14815_v1, %v5519_v6  ;;  %v5521_v21 = vpop.f32.mrb[14].mxu1  ;;  %6394 = vmatprep.mubr.bf16.mxu0 %v6079_v50 }
 0x5b9   : > { %v5832_v27 = vadd.f32 %v14811_v47, %v5521_v21  ;;  %v5523_v17 = vpop.f32.mrb[15].mxu1  ;;  %6395 = vmatmul.mubr.bf16.gmra.mrb[136].mxu0 %v6078_v40  ;;  %v5958_v59 = vmax.f32 %v5830_v53, 0.0 }
 0x5ba   : > { %v5833_v48 = vadd.f32 %v14815_v1, %v5523_v17  ;;  %7100 = vmatpush1.bf16.msra.mxu0 %v12491_v33  ;;  %v5959_v36 = vmax.f32 %v5831_v39, 0.0 }
 0x5bb   : > { %v5960_v20 = vmax.f32 %v5832_v27, 0.0  ;;  %5786 = vmatmul.mubr.bf16.gmra.mrb[120].mxu1 %v14784_v38  ;;  %7101 = vmatprep.subr.bf16.mxu0 %v12496_v44 }
 0x5bc   : > { %v5961_v0 = vmax.f32 %v5833_v48, 0.0  ;;  %5795 = vmatprep.mubr.bf16.mxu1 %v14798_v13 }
 0x5bd   : > { %v6080_v41 = vpack.c.bf16 %v5960_v20, %v5958_v59 }
 0x5be   : > { %v5527_v31 = vpop.f32.mrb[16].mxu1  ;;  %v6081_v35 = vpack.c.bf16 %v5961_v0, %v5959_v36  ;;  %7102 = vmatpush1.bf16.msra.mxu0 %v12494_v43 }
 0x5bf   : > { %v5834_v63 = vadd.f32 %v14811_v47, %v5527_v31  ;;  %v5529_v38 = vpop.f32.mrb[17].mxu1  ;;  %7103 = vmatprep.subr.bf16.mxu0 %v12499_v18 }
 0x5c0   : > { %v5835_v55 = vadd.f32 %v14815_v1, %v5529_v38  ;;  %v5531_v16 = vpop.f32.mrb[18].mxu1  ;;  %6404 = vmatprep.mubr.bf16.mxu0 %v6081_v35 }
 0x5c1   : > { %v5836_v13 = vadd.f32 %v14811_v47, %v5531_v16  ;;  %v5533_v10 = vpop.f32.mrb[19].mxu1  ;;  %6405 = vmatmul.mubr.bf16.gmra.mrb[140].mxu0 %v6080_v41  ;;  %v5962_v60 = vmax.f32 %v5834_v63, 0.0  ;;  %v12514_v16 = vld [vmem:[%s17518_s17 + $0xb4] ss:$8 sps:$4 sm:$0xff]  }
 0x5c2   : > { %v5837_v37 = vadd.f32 %v14815_v1, %v5533_v10  ;;  %7104 = vmatpush1.bf16.msra.mxu0 %v12497_v57  ;;  %v5963_v4 = vmax.f32 %v5835_v55, 0.0  ;;  %v12512_v55 = vld [vmem:[%s17518_s17 + $0xb0] ss:$8 sps:$4 sm:$0xff]  }
 0x5c3   : > { %v5964_v11 = vmax.f32 %v5836_v13, 0.0  ;;  %5796 = vmatmul.mubr.bf16.gmra.mrb[124].mxu1 %v14794_v19  ;;  %7105 = vmatprep.subr.bf16.mxu0 %v12502_v45  ;;  %v12508_v19 = vld [vmem:[%s17518_s17 + $0x94] ss:$8 sps:$4 sm:$0xff]  }
 0x5c4   : > { %v5965_v49 = vmax.f32 %v5837_v37, 0.0 }
 0x5c5   : > { %v6082_v5 = vpack.c.bf16 %v5964_v11, %v5962_v60 }
 0x5c6   : > { %v5537_v25 = vpop.f32.mrb[20].mxu1  ;;  %v6083_v9 = vpack.c.bf16 %v5965_v49, %v5963_v4  ;;  %7106 = vmatpush1.bf16.msra.mxu0 %v12500_v61 }
 0x5c7   : > { %v5838_v15 = vadd.f32 %v14811_v47, %v5537_v25  ;;  %v5539_v52 = vpop.f32.mrb[21].mxu1  ;;  %7107 = vmatprep.subr.bf16.mxu0 %v12505_v2 }
 0x5c8   : > { %v5839_v12 = vadd.f32 %v14815_v1, %v5539_v52  ;;  %v5541_v8 = vpop.f32.mrb[22].mxu1  ;;  %6414 = vmatprep.mubr.bf16.mxu0 %v6083_v9 }
 0x5c9   : > { %v5840_v7 = vadd.f32 %v14811_v47, %v5541_v8  ;;  %v5543_v56 = vpop.f32.mrb[23].mxu1  ;;  %6415 = vmatmul.mubr.bf16.gmra.mrb[144].mxu0 %v6082_v5  ;;  %v5966_v58 = vmax.f32 %v5838_v15, 0.0 }
 0x5ca   : > { %v5841_v24 = vadd.f32 %v14815_v1, %v5543_v56  ;;  %7108 = vmatpush1.bf16.msra.mxu0 %v12503_v14  ;;  %v5967_v23 = vmax.f32 %v5839_v12, 0.0 }
 0x5cb   : > { %v5968_v51 = vmax.f32 %v5840_v7, 0.0  ;;  %7109 = vmatprep.subr.bf16.mxu0 %v12508_v19 }
 0x5cc   : > { %v5969_v54 = vmax.f32 %v5841_v24, 0.0 }
 0x5cd   : > { %v6084_v30 = vpack.c.bf16 %v5968_v51, %v5966_v58 }
 0x5ce   : > { %v5547_v29 = vpop.f32.mrb[24].mxu1  ;;  %v6085_v62 = vpack.c.bf16 %v5969_v54, %v5967_v23  ;;  %7110 = vmatpush1.bf16.msra.mxu0 %v12506_v22 }
 0x5cf   : > { %v5842_v46 = vadd.f32 %v14811_v47, %v5547_v29  ;;  %v5549_v40 = vpop.f32.mrb[25].mxu1  ;;  %7111 = vmatprep.subr.bf16.mxu0 %v12511_v34  ;;  %v12515_v29 = vld [vmem:[%s17518_s17 + $0xc0] ss:$8 sps:$4 sm:$0xff]  }
 0x5d0   : > { %v5843_v32 = vadd.f32 %v14815_v1, %v5549_v40  ;;  %v5551_v50 = vpop.f32.mrb[26].mxu1  ;;  %6424 = vmatprep.mubr.bf16.mxu0 %v6085_v62  ;;  %v12517_v62 = vld [vmem:[%s17518_s17 + $0xc4] ss:$8 sps:$4 sm:$0xff]  }
 0x5d1   : > { %v5844_v33 = vadd.f32 %v14811_v47, %v5551_v50  ;;  %v5553_v53 = vpop.f32.mrb[27].mxu1  ;;  %6425 = vmatmul.mubr.bf16.gmra.mrb[148].mxu0 %v6084_v30  ;;  %v5970_v44 = vmax.f32 %v5842_v46, 0.0 }
 0x5d2   : > { %v5845_v6 = vadd.f32 %v14815_v1, %v5553_v53  ;;  %7112 = vmatpush1.bf16.msra.mxu0 %v12509_v42  ;;  %v5971_v21 = vmax.f32 %v5843_v32, 0.0 }
 0x5d3   : > { %v5972_v39 = vmax.f32 %v5844_v33, 0.0  ;;  %7113 = vmatprep.subr.bf16.mxu0 %v12514_v16  ;;  %v12518_v16 = vld [vmem:[%s17518_s17 + $0xd0] ss:$8 sps:$4 sm:$0xff]  }
 0x5d4   : > { %v5973_v27 = vmax.f32 %v5845_v6, 0.0 }
 0x5d5   : > { %v6086_v17 = vpack.c.bf16 %v5972_v39, %v5970_v44 }
 0x5d6   : > { %v5557_v48 = vpop.f32.mrb[28].mxu1  ;;  %v6087_v43 = vpack.c.bf16 %v5973_v27, %v5971_v21  ;;  %7114 = vmatpush1.bf16.msra.mxu0 %v12512_v55 }
 0x5d7   : > { %v5846_v59 = vadd.f32 %v14811_v47, %v5557_v48  ;;  %v5559_v20 = vpop.f32.mrb[29].mxu1  ;;  %7115 = vmatprep.subr.bf16.mxu0 %v12517_v62 }
 0x5d8   : > { %v5847_v18 = vadd.f32 %v14815_v1, %v5559_v20  ;;  %v5561_v36 = vpop.f32.mrb[30].mxu1  ;;  %6434 = vmatprep.mubr.bf16.mxu0 %v6087_v43 }
 0x5d9   : > { %v5848_v0 = vadd.f32 %v14811_v47, %v5561_v36  ;;  %v5563_v41 = vpop.f32.mrb[31].mxu1  ;;  %6435 = vmatmul.mubr.bf16.gmra.mrb[152].mxu0 %v6086_v17  ;;  %v5974_v35 = vmax.f32 %v5846_v59, 0.0 }
 0x5da   : > { %v5849_v31 = vadd.f32 %v14815_v1, %v5563_v41  ;;  %v5975_v63 = vmax.f32 %v5847_v18, 0.0  ;;  %7116 = vmatpush1.bf16.msra.mxu0 %v12515_v29 }
 0x5db   : > { %v5976_v57 = vmax.f32 %v5848_v0, 0.0 }
 0x5dc   : > { %v5977_v38 = vmax.f32 %v5849_v31, 0.0 }
 0x5dd   : > { %v6088_v45 = vpack.c.bf16 %v5976_v57, %v5974_v35 }
 0x5de   : > { %v5567_v13 = vpop.f32.mrb[32].mxu1  ;;  %v6089_v10 = vpack.c.bf16 %v5977_v38, %v5975_v63 }
 0x5df   : > { %v5850_v37 = vadd.f32 %v14811_v47, %v5567_v13  ;;  %v5569_v61 = vpop.f32.mrb[33].mxu1  ;;  %v12520_v13 = vld [vmem:[%s17518_s17 + $0xd4] ss:$8 sps:$4 sm:$0xff]  }
 0x5e0   : > { %v5851_v60 = vadd.f32 %v14815_v1, %v5569_v61  ;;  %v5571_v11 = vpop.f32.mrb[34].mxu1  ;;  %6444 = vmatprep.mubr.bf16.mxu0 %v6089_v10  ;;  %7117 = vmatprep.subr.bf16.mxu0 %v12520_v13  ;;  %v12529_v13 = vld [vmem:[%s17520_s19 + $0x14] ss:$8 sps:$4 sm:$0xff]  }
 0x5e1   : > { %v5852_v2 = vadd.f32 %v14811_v47, %v5571_v11  ;;  %v5573_v4 = vpop.f32.mrb[35].mxu1  ;;  %6445 = vmatmul.mubr.bf16.gmra.mrb[156].mxu0 %v6088_v45  ;;  %v5978_v5 = vmax.f32 %v5850_v37, 0.0 }
 0x5e2   : > { %v5853_v49 = vadd.f32 %v14815_v1, %v5573_v4  ;;  %v5979_v9 = vmax.f32 %v5851_v60, 0.0  ;;  %7118 = vmatpush1.bf16.msra.mxu0 %v12518_v16  ;;  %v12527_v16 = vld [vmem:[%s17520_s19 + $0x10] ss:$8 sps:$4 sm:$0xff]  }
 0x5e3   : > { %v5980_v25 = vmax.f32 %v5852_v2, 0.0 }
 0x5e4   : > { %v5981_v14 = vmax.f32 %v5853_v49, 0.0 }
 0x5e5   : > { %v6090_v15 = vpack.c.bf16 %v5980_v25, %v5978_v5 }
 0x5e6   : > { %v5577_v52 = vpop.f32.mrb[36].mxu1  ;;  %v6091_v19 = vpack.c.bf16 %v5981_v14, %v5979_v9 }
 0x5e7   : > { %v5854_v12 = vadd.f32 %v14811_v47, %v5577_v52  ;;  %v5579_v8 = vpop.f32.mrb[37].mxu1 }
 0x5e8   : > { %v5855_v7 = vadd.f32 %v14815_v1, %v5579_v8  ;;  %v5581_v56 = vpop.f32.mrb[38].mxu1  ;;  %6454 = vmatprep.mubr.bf16.mxu0 %v6091_v19 }
 0x5e9   : > { %v5856_v24 = vadd.f32 %v14811_v47, %v5581_v56  ;;  %v5583_v22 = vpop.f32.mrb[39].mxu1  ;;  %6455 = vmatmul.mubr.bf16.gmra.mrb[160].mxu0 %v6090_v15  ;;  %v5982_v51 = vmax.f32 %v5854_v12, 0.0 }
 0x5ea   : > { %v5857_v58 = vadd.f32 %v14815_v1, %v5583_v22  ;;  %v5983_v54 = vmax.f32 %v5855_v7, 0.0 }
 0x5eb   : > { %v5984_v23 = vmax.f32 %v5856_v24, 0.0 }
 0x5ec   : > { %v5985_v30 = vmax.f32 %v5857_v58, 0.0 }
 0x5ed   : > { %v6092_v34 = vpack.c.bf16 %v5984_v23, %v5982_v51 }
 0x5ee   : > { %v5587_v42 = vpop.f32.mrb[40].mxu1  ;;  %v6093_v46 = vpack.c.bf16 %v5985_v30, %v5983_v54  ;;  %v12521_v30 = vld [vmem:[%s17520_s19] ss:$8 sps:$4 sm:$0xff]  }
 0x5ef   : > { %v5858_v40 = vadd.f32 %v14811_v47, %v5587_v42  ;;  %v5589_v32 = vpop.f32.mrb[41].mxu1 }
 0x5f0   : > { %v5859_v50 = vadd.f32 %v14815_v1, %v5589_v32  ;;  %v5591_v33 = vpop.f32.mrb[42].mxu1  ;;  %6464 = vmatprep.mubr.bf16.mxu0 %v6093_v46  ;;  %v12524_v46 = vld [vmem:[%s17518_s17 + $0xe0] ss:$8 sps:$4 sm:$0xff]  }
 0x5f1   : > { %v5860_v53 = vadd.f32 %v14811_v47, %v5591_v33  ;;  %v5593_v6 = vpop.f32.mrb[43].mxu1  ;;  %6465 = vmatmul.mubr.bf16.gmra.mrb[164].mxu0 %v6092_v34  ;;  %v5986_v39 = vmax.f32 %v5858_v40, 0.0  ;;  %v12523_v34 = vld [vmem:[%s17520_s19 + $0x4] ss:$8 sps:$4 sm:$0xff]  }
 0x5f2   : > { %v5861_v44 = vadd.f32 %v14815_v1, %v5593_v6  ;;  %v5987_v27 = vmax.f32 %v5859_v50, 0.0  ;;  %7840 = vmatprep.subr.bf16.mxu1 %v12523_v34  ;;  %v12526_v40 = vld [vmem:[%s17518_s17 + $0xe4] ss:$8 sps:$4 sm:$0xff]  }
 0x5f3   : > { %v5988_v21 = vmax.f32 %v5860_v53, 0.0  ;;  %7841 = vmatpush1.bf16.msra.mxu1 %v12521_v30  ;;  %7119 = vmatprep.subr.bf16.mxu0 %v12526_v40  ;;  %v12535_v40 = vld [vmem:[%s17520_s19 + $0x24] ss:$8 sps:$4 sm:$0xff]  }
 0x5f4   : > { %v5989_v17 = vmax.f32 %v5861_v44, 0.0  ;;  %7120 = vmatpush1.bf16.msra.mxu0 %v12524_v46  ;;  %7842 = vmatprep.subr.bf16.mxu1 %v12529_v13  ;;  %v12533_v46 = vld [vmem:[%s17520_s19 + $0x20] ss:$8 sps:$4 sm:$0xff]  }
 0x5f5   : > { %v6094_v48 = vpack.c.bf16 %v5988_v21, %v5986_v39 }
 0x5f6   : > { %v5597_v43 = vpop.f32.mrb[44].mxu1  ;;  %v6095_v59 = vpack.c.bf16 %v5989_v17, %v5987_v27 }
 0x5f7   : > { %v5862_v20 = vadd.f32 %v14811_v47, %v5597_v43  ;;  %v5599_v18 = vpop.f32.mrb[45].mxu1  ;;  %7843 = vmatpush1.bf16.msra.mxu1 %v12527_v16 }
 0x5f8   : > { %v5863_v36 = vadd.f32 %v14815_v1, %v5599_v18  ;;  %v5601_v0 = vpop.f32.mrb[46].mxu1  ;;  %6474 = vmatprep.mubr.bf16.mxu0 %v6095_v59  ;;  %7844 = vmatprep.subr.bf16.mxu1 %v12535_v40  ;;  %v12539_v40 = vld [vmem:[%s17520_s19 + $0x40] ss:$8 sps:$4 sm:$0xff]  }
 0x5f9   : > { %v5864_v41 = vadd.f32 %v14811_v47, %v5601_v0  ;;  %v5603_v31 = vpop.f32.mrb[47].mxu1  ;;  %6475 = vmatmul.mubr.bf16.gmra.mrb[168].mxu0 %v6094_v48  ;;  %v5990_v57 = vmax.f32 %v5862_v20, 0.0 }
 0x5fa   : > { %v5865_v35 = vadd.f32 %v14815_v1, %v5603_v31  ;;  %v5991_v38 = vmax.f32 %v5863_v36, 0.0 }
 0x5fb   : > { %v5992_v63 = vmax.f32 %v5864_v41, 0.0  ;;  %7845 = vmatpush1.bf16.msra.mxu1 %v12533_v46 }
 0x5fc   : > { %v5993_v45 = vmax.f32 %v5865_v35, 0.0 }
 0x5fd   : > { %v6096_v55 = vpack.c.bf16 %v5992_v63, %v5990_v57 }
 0x5fe   : > { %v5607_v10 = vpop.f32.mrb[48].mxu1  ;;  %v6097_v37 = vpack.c.bf16 %v5993_v45, %v5991_v38 }
 0x5ff   : > { %v5866_v61 = vadd.f32 %v14811_v47, %v5607_v10  ;;  %v5609_v60 = vpop.f32.mrb[49].mxu1 }
 0x600   : > { %v5867_v11 = vadd.f32 %v14815_v1, %v5609_v60  ;;  %v5611_v2 = vpop.f32.mrb[50].mxu1  ;;  %6484 = vmatprep.mubr.bf16.mxu0 %v6097_v37  ;;  %v12530_v60 = vld [vmem:[%s17518_s17 + $0xf0] ss:$8 sps:$4 sm:$0xff]  }
 0x601   : > { %v5868_v4 = vadd.f32 %v14811_v47, %v5611_v2  ;;  %v5613_v49 = vpop.f32.mrb[51].mxu1  ;;  %6485 = vmatmul.mubr.bf16.gmra.mrb[172].mxu0 %v6096_v55  ;;  %v5994_v25 = vmax.f32 %v5866_v61, 0.0 }
 0x602   : > { %v5869_v5 = vadd.f32 %v14815_v1, %v5613_v49  ;;  %v5995_v14 = vmax.f32 %v5867_v11, 0.0  ;;  %v12532_v11 = vld [vmem:[%s17518_s17 + $0xf4] ss:$8 sps:$4 sm:$0xff]  }
 0x603   : > { %v5996_v9 = vmax.f32 %v5868_v4, 0.0  ;;  %7121 = vmatprep.subr.bf16.mxu0 %v12532_v11 }
 0x604   : > { %v5997_v15 = vmax.f32 %v5869_v5, 0.0  ;;  %7122 = vmatpush1.bf16.msra.mxu0 %v12530_v60 }
 0x605   : > { %v6098_v52 = vpack.c.bf16 %v5996_v9, %v5994_v25  ;;  %8392 = vmatprep.subr.bf16.mxu0 %v17539_v3 }
 0x606   : > { %v5617_v19 = vpop.f32.mrb[52].mxu1  ;;  %v6099_v12 = vpack.c.bf16 %v5997_v15, %v5995_v14 }
 0x607   : > { %v5870_v8 = vadd.f32 %v14811_v47, %v5617_v19  ;;  %v5619_v7 = vpop.f32.mrb[53].mxu1 }
 0x608   : > { %v5871_v56 = vadd.f32 %v14815_v1, %v5619_v7  ;;  %v5621_v24 = vpop.f32.mrb[54].mxu1  ;;  %6494 = vmatprep.mubr.bf16.mxu0 %v6099_v12 }
 0x609   : > { %v5872_v22 = vadd.f32 %v14811_v47, %v5621_v24  ;;  %v5623_v58 = vpop.f32.mrb[55].mxu1  ;;  %6495 = vmatmul.mubr.bf16.gmra.mrb[176].mxu0 %v6098_v52  ;;  %v5998_v23 = vmax.f32 %v5870_v8, 0.0 }
 0x60a   : > { %v5873_v51 = vadd.f32 %v14815_v1, %v5623_v58  ;;  %v5999_v29 = vmax.f32 %v5871_v56, 0.0 }
 0x60b   : > { %v6000_v54 = vmax.f32 %v5872_v22, 0.0 }
 0x60c   : > { %v6001_v62 = vmax.f32 %v5873_v51, 0.0 }
 0x60d   : > { %v6100_v42 = vpack.c.bf16 %v6000_v54, %v5998_v23 }
 0x60e   : > { %v5627_v32 = vpop.f32.mrb[56].mxu1  ;;  %v6101_v50 = vpack.c.bf16 %v6001_v62, %v5999_v29 }
 0x60f   : > { %v5874_v33 = vadd.f32 %v14811_v47, %v5627_v32  ;;  %v5629_v53 = vpop.f32.mrb[57].mxu1 }
 0x610   : > { %v5875_v6 = vadd.f32 %v14815_v1, %v5629_v53  ;;  %v5631_v44 = vpop.f32.mrb[58].mxu1  ;;  %6504 = vmatprep.mubr.bf16.mxu0 %v6101_v50 }
 0x611   : > { %v5876_v39 = vadd.f32 %v14811_v47, %v5631_v44  ;;  %v5633_v21 = vpop.f32.mrb[59].mxu1  ;;  %6505 = vmatmul.mubr.bf16.gmra.mrb[180].mxu0 %v6100_v42  ;;  %v6002_v17 = vmax.f32 %v5874_v33, 0.0 }
 0x612   : > { %v5877_v27 = vadd.f32 %v14815_v1, %v5633_v21  ;;  %v6003_v43 = vmax.f32 %v5875_v6, 0.0 }
 0x613   : > { %v6004_v48 = vmax.f32 %v5876_v39, 0.0 }
 0x614   : > { %v6005_v59 = vmax.f32 %v5877_v27, 0.0 }
 0x615   : > { %v6102_v20 = vpack.c.bf16 %v6004_v48, %v6002_v17 }
 0x616   : > { %v5637_v18 = vpop.f32.mrb[60].mxu1  ;;  %v6103_v36 = vpack.c.bf16 %v6005_v59, %v6003_v43 }
 0x617   : > { %v5878_v0 = vadd.f32 %v14811_v47, %v5637_v18  ;;  %v5639_v41 = vpop.f32.mrb[61].mxu1 }
 0x618   : > { %v5879_v31 = vadd.f32 %v14815_v1, %v5639_v41  ;;  %v5641_v35 = vpop.f32.mrb[62].mxu1  ;;  %6514 = vmatprep.mubr.bf16.mxu0 %v6103_v36 }
 0x619   : > { %v5880_v57 = vadd.f32 %v14811_v47, %v5641_v35  ;;  %v5643_v63 = vpop.f32.mrb[63].mxu1  ;;  %6515 = vmatmul.mubr.bf16.gmra.mrb[184].mxu0 %v6102_v20  ;;  %v6006_v45 = vmax.f32 %v5878_v0, 0.0 }
 0x61a   : > { %v5881_v38 = vadd.f32 %v14815_v1, %v5643_v63  ;;  %v6007_v10 = vmax.f32 %v5879_v31, 0.0 }
 0x61b   : > { %v6008_v55 = vmax.f32 %v5880_v57, 0.0 }
 0x61c   : > { %v6009_v37 = vmax.f32 %v5881_v38, 0.0 }
 0x61d   : > { %v6104_v61 = vpack.c.bf16 %v6008_v55, %v6006_v45 }
 0x61e   : > { %v5647_v2 = vpop.f32.mrb[64].mxu1  ;;  %v6105_v4 = vpack.c.bf16 %v6009_v37, %v6007_v10  ;;  %v12536_v37 = vld [vmem:[%s17520_s19 + $0x30] ss:$8 sps:$4 sm:$0xff]  }
 0x61f   : > { %v5882_v49 = vadd.f32 %v14811_v47, %v5647_v2  ;;  %v5649_v5 = vpop.f32.mrb[65].mxu1 }
 0x620   : > { %v5883_v25 = vadd.f32 %v14815_v1, %v5649_v5  ;;  %v5651_v9 = vpop.f32.mrb[66].mxu1  ;;  %6524 = vmatprep.mubr.bf16.mxu0 %v6105_v4 }
 0x621   : > { %v5884_v14 = vadd.f32 %v14811_v47, %v5651_v9  ;;  %v5653_v15 = vpop.f32.mrb[67].mxu1  ;;  %6525 = vmatmul.mubr.bf16.gmra.mrb[188].mxu0 %v6104_v61  ;;  %v6010_v19 = vmax.f32 %v5882_v49, 0.0  ;;  %v12538_v61 = vld [vmem:[%s17520_s19 + $0x34] ss:$8 sps:$4 sm:$0xff]  }
 0x622   : > { %v5885_v52 = vadd.f32 %v14815_v1, %v5653_v15  ;;  %v6011_v8 = vmax.f32 %v5883_v25, 0.0  ;;  %7846 = vmatprep.subr.bf16.mxu1 %v12538_v61  ;;  %v12542_v61 = vld [vmem:[%s17520_s19 + $0x50] ss:$8 sps:$4 sm:$0xff]  }
 0x623   : > { %v6012_v12 = vmax.f32 %v5884_v14, 0.0  ;;  %7847 = vmatpush1.bf16.msra.mxu1 %v12536_v37 }
 0x624   : > { %v6013_v7 = vmax.f32 %v5885_v52, 0.0 }
 0x625   : > { %v6106_v56 = vpack.c.bf16 %v6012_v12, %v6010_v19 }
 0x626   : > { %v5657_v24 = vpop.f32.mrb[68].mxu1  ;;  %v6107_v22 = vpack.c.bf16 %v6013_v7, %v6011_v8 }
 0x627   : > { %v5886_v58 = vadd.f32 %v14811_v47, %v5657_v24  ;;  %v5659_v51 = vpop.f32.mrb[69].mxu1 }
 0x628   : > { %v5887_v23 = vadd.f32 %v14815_v1, %v5659_v51  ;;  %v5661_v54 = vpop.f32.mrb[70].mxu1  ;;  %6534 = vmatprep.mubr.bf16.mxu0 %v6107_v22 }
 0x629   : > { %v5888_v30 = vadd.f32 %v14811_v47, %v5661_v54  ;;  %v5663_v34 = vpop.f32.mrb[71].mxu1  ;;  %6535 = vmatmul.mubr.bf16.gmra.mrb[192].mxu0 %v6106_v56  ;;  %v6014_v62 = vmax.f32 %v5886_v58, 0.0 }
 0x62a   : > { %v5889_v29 = vadd.f32 %v14815_v1, %v5663_v34  ;;  %v6015_v32 = vmax.f32 %v5887_v23, 0.0 }
 0x62b   : > { %v6016_v42 = vmax.f32 %v5888_v30, 0.0 }
 0x62c   : > { %v6017_v50 = vmax.f32 %v5889_v29, 0.0 }
 0x62d   : > { %v6108_v33 = vpack.c.bf16 %v6016_v42, %v6014_v62 }
 0x62e   : > { %v5667_v53 = vpop.f32.mrb[72].mxu1  ;;  %v6109_v6 = vpack.c.bf16 %v6017_v50, %v6015_v32  ;;  %v12541_v32 = vld [vmem:[%s17520_s19 + $0x44] ss:$8 sps:$4 sm:$0xff]  }
 0x62f   : > { %v5890_v44 = vadd.f32 %v14811_v47, %v5667_v53  ;;  %v5669_v39 = vpop.f32.mrb[73].mxu1  ;;  %7848 = vmatprep.subr.bf16.mxu1 %v12541_v32  ;;  %v12545_v32 = vld [vmem:[%s17520_s19 + $0x60] ss:$8 sps:$4 sm:$0xff]  }
 0x630   : > { %v5891_v21 = vadd.f32 %v14815_v1, %v5669_v39  ;;  %v5671_v27 = vpop.f32.mrb[74].mxu1  ;;  %6544 = vmatprep.mubr.bf16.mxu0 %v6109_v6  ;;  %7849 = vmatpush1.bf16.msra.mxu1 %v12539_v40 }
 0x631   : > { %v5892_v17 = vadd.f32 %v14811_v47, %v5671_v27  ;;  %v5673_v48 = vpop.f32.mrb[75].mxu1  ;;  %6545 = vmatmul.mubr.bf16.gmra.mrb[196].mxu0 %v6108_v33  ;;  %v6018_v59 = vmax.f32 %v5890_v44, 0.0 }
 0x632   : > { %v5893_v43 = vadd.f32 %v14815_v1, %v5673_v48  ;;  %v6019_v18 = vmax.f32 %v5891_v21, 0.0 }
 0x633   : > { %v6020_v20 = vmax.f32 %v5892_v17, 0.0 }
 0x634   : > { %v6021_v36 = vmax.f32 %v5893_v43, 0.0 }
 0x635   : > { %v6110_v0 = vpack.c.bf16 %v6020_v20, %v6018_v59 }
 0x636   : > { %v5677_v41 = vpop.f32.mrb[76].mxu1  ;;  %v6111_v31 = vpack.c.bf16 %v6021_v36, %v6019_v18 }
 0x637   : > { %v5894_v35 = vadd.f32 %v14811_v47, %v5677_v41  ;;  %v5679_v57 = vpop.f32.mrb[77].mxu1 }
 0x638   : > { %v5895_v63 = vadd.f32 %v14815_v1, %v5679_v57  ;;  %v5681_v38 = vpop.f32.mrb[78].mxu1  ;;  %6554 = vmatprep.mubr.bf16.mxu0 %v6111_v31 }
 0x639   : > { %v5896_v45 = vadd.f32 %v14811_v47, %v5681_v38  ;;  %v5683_v55 = vpop.f32.mrb[79].mxu1  ;;  %6555 = vmatmul.mubr.bf16.gmra.mrb[200].mxu0 %v6110_v0  ;;  %v6022_v13 = vmax.f32 %v5894_v35, 0.0 }
 0x63a   : > { %v5897_v16 = vadd.f32 %v14815_v1, %v5683_v55  ;;  %v6023_v60 = vmax.f32 %v5895_v63, 0.0 }
 0x63b   : > { %v6024_v10 = vmax.f32 %v5896_v45, 0.0 }
 0x63c   : > { %v6025_v11 = vmax.f32 %v5897_v16, 0.0 }
 0x63d   : > { %v6112_v2 = vpack.c.bf16 %v6024_v10, %v6022_v13 }
 0x63e   : > { %v5687_v4 = vpop.f32.mrb[80].mxu1  ;;  %v6113_v49 = vpack.c.bf16 %v6025_v11, %v6023_v60  ;;  %v12544_v60 = vld [vmem:[%s17520_s19 + $0x54] ss:$8 sps:$4 sm:$0xff]  }
 0x63f   : > { %v5898_v5 = vadd.f32 %v14811_v47, %v5687_v4  ;;  %v5689_v25 = vpop.f32.mrb[81].mxu1  ;;  %7850 = vmatprep.subr.bf16.mxu1 %v12544_v60 }
 0x640   : > { %v5899_v9 = vadd.f32 %v14815_v1, %v5689_v25  ;;  %v5691_v14 = vpop.f32.mrb[82].mxu1  ;;  %6564 = vmatprep.mubr.bf16.mxu0 %v6113_v49  ;;  %7851 = vmatpush1.bf16.msra.mxu1 %v12542_v61 }
 0x641   : > { %v5900_v15 = vadd.f32 %v14811_v47, %v5691_v14  ;;  %v5693_v52 = vpop.f32.mrb[83].mxu1  ;;  %6565 = vmatmul.mubr.bf16.gmra.mrb[204].mxu0 %v6112_v2  ;;  %v6026_v12 = vmax.f32 %v5898_v5, 0.0 }
 0x642   : > { %v5901_v19 = vadd.f32 %v14815_v1, %v5693_v52  ;;  %v6027_v7 = vmax.f32 %v5899_v9, 0.0 }
 0x643   : > { %v6028_v8 = vmax.f32 %v5900_v15, 0.0 }
 0x644   : > { %v6029_v56 = vmax.f32 %v5901_v19, 0.0 }
 0x645   : > { %v6114_v24 = vpack.c.bf16 %v6028_v8, %v6026_v12 }
 0x646   : > { %v5697_v22 = vpop.f32.mrb[84].mxu1  ;;  %v6115_v58 = vpack.c.bf16 %v6029_v56, %v6027_v7 }
 0x647   : > { %v5902_v51 = vadd.f32 %v14811_v47, %v5697_v22  ;;  %v5699_v23 = vpop.f32.mrb[85].mxu1 }
 0x648   : > { %v5903_v54 = vadd.f32 %v14815_v1, %v5699_v23  ;;  %v5701_v30 = vpop.f32.mrb[86].mxu1  ;;  %6574 = vmatprep.mubr.bf16.mxu0 %v6115_v58 }
 0x649   : > { %v5904_v34 = vadd.f32 %v14811_v47, %v5701_v30  ;;  %v5703_v29 = vpop.f32.mrb[87].mxu1  ;;  %6575 = vmatmul.mubr.bf16.gmra.mrb[208].mxu0 %v6114_v24  ;;  %v6030_v42 = vmax.f32 %v5902_v51, 0.0 }
 0x64a   : > { %v5905_v62 = vadd.f32 %v14815_v1, %v5703_v29  ;;  %v6031_v50 = vmax.f32 %v5903_v54, 0.0 }
 0x64b   : > { %v6032_v46 = vmax.f32 %v5904_v34, 0.0 }
 0x64c   : > { %v6033_v33 = vmax.f32 %v5905_v62, 0.0 }
 0x64d   : > { %v6116_v53 = vpack.c.bf16 %v6032_v46, %v6030_v42 }
 0x64e   : > { %v5707_v6 = vpop.f32.mrb[88].mxu1  ;;  %v6117_v44 = vpack.c.bf16 %v6033_v33, %v6031_v50  ;;  %v12547_v50 = vld [vmem:[%s17520_s19 + $0x64] ss:$8 sps:$4 sm:$0xff]  }
 0x64f   : > { %v5906_v39 = vadd.f32 %v14811_v47, %v5707_v6  ;;  %v5709_v21 = vpop.f32.mrb[89].mxu1  ;;  %7852 = vmatprep.subr.bf16.mxu1 %v12547_v50 }
 0x650   : > { %v5907_v27 = vadd.f32 %v14815_v1, %v5709_v21  ;;  %v5711_v17 = vpop.f32.mrb[90].mxu1  ;;  %6584 = vmatprep.mubr.bf16.mxu0 %v6117_v44  ;;  %7853 = vmatpush1.bf16.msra.mxu1 %v12545_v32 }
 0x651   : > { %v5908_v48 = vadd.f32 %v14811_v47, %v5711_v17  ;;  %v5713_v43 = vpop.f32.mrb[91].mxu1  ;;  %6585 = vmatmul.mubr.bf16.gmra.mrb[212].mxu0 %v6116_v53  ;;  %v6034_v20 = vmax.f32 %v5906_v39, 0.0 }
 0x652   : > { %v5909_v59 = vadd.f32 %v14815_v1, %v5713_v43  ;;  %v6035_v36 = vmax.f32 %v5907_v27, 0.0 }
 0x653   : > { %v6036_v18 = vmax.f32 %v5908_v48, 0.0 }
 0x654   : > { %v6037_v0 = vmax.f32 %v5909_v59, 0.0 }
 0x655   : > { %v6118_v41 = vpack.c.bf16 %v6036_v18, %v6034_v20 }
 0x656   : > { %v5717_v31 = vpop.f32.mrb[92].mxu1  ;;  %v6119_v35 = vpack.c.bf16 %v6037_v0, %v6035_v36 }
 0x657   : > { %v5910_v57 = vadd.f32 %v14811_v47, %v5717_v31  ;;  %v5719_v63 = vpop.f32.mrb[93].mxu1 }
 0x658   : > { %v5911_v38 = vadd.f32 %v14815_v1, %v5719_v63  ;;  %v5721_v45 = vpop.f32.mrb[94].mxu1  ;;  %6594 = vmatprep.mubr.bf16.mxu0 %v6119_v35  ;;  %v6170_v63 = vld [vmem:[%s17517_s16] sm:$0x3] }
 0x659   : > { %v5912_v55 = vadd.f32 %v14811_v47, %v5721_v45  ;;  %v5723_v16 = vpop.f32.mrb[95].mxu1  ;;  %6595 = vmatmul.mubr.bf16.gmra.mrb[216].mxu0 %v6118_v41  ;;  %v6038_v10 = vmax.f32 %v5910_v57, 0.0  ;;  %v15081_v60 = vrot.slane %v6170_v63, %v13376_v28 }
 0x65a   : > { %v5913_v13 = vadd.f32 %v14815_v1, %v5723_v16  ;;  %v6039_v11 = vmax.f32 %v5911_v38, 0.0 }
 0x65b   : > { %v6040_v37 = vmax.f32 %v5912_v55, 0.0 }
 0x65c   : > { %v6041_v2 = vmax.f32 %v5913_v13, 0.0 }
 0x65d   : > { %v6120_v4 = vpack.c.bf16 %v6040_v37, %v6038_v10  ;;  %v15077_v37 = vrot.slane %v6170_v63, %v13371_v26 }
 0x65e   : > { %v5727_v49 = vpop.f32.mrb[96].mxu1  ;;  %v6121_v5 = vpack.c.bf16 %v6041_v2, %v6039_v11 }
 0x65f   : > { %v5914_v25 = vadd.f32 %v14811_v47, %v5727_v49  ;;  %v5729_v9 = vpop.f32.mrb[97].mxu1  ;;  %v12550_v49 = vld [vmem:[%s17520_s19 + $0x74] ss:$8 sps:$4 sm:$0xff]  }
 0x660   : > { %v5915_v14 = vadd.f32 %v14815_v1, %v5729_v9  ;;  %v5731_v15 = vpop.f32.mrb[98].mxu1  ;;  %6604 = vmatprep.mubr.bf16.mxu0 %v6121_v5  ;;  %7854 = vmatprep.subr.bf16.mxu1 %v12550_v49  ;;  %v12553_v49 = vld [vmem:[%s17520_s19 + $0x84] ss:$8 sps:$4 sm:$0xff]  }
 0x661   : > { %v5916_v52 = vadd.f32 %v14811_v47, %v5731_v15  ;;  %v5733_v19 = vpop.f32.mrb[99].mxu1  ;;  %6605 = vmatmul.mubr.bf16.gmra.mrb[220].mxu0 %v6120_v4  ;;  %v6042_v8 = vmax.f32 %v5914_v25, 0.0  ;;  %v12548_v4 = vld [vmem:[%s17520_s19 + $0x70] ss:$8 sps:$4 sm:$0xff]  }
 0x662   : > { %v5917_v12 = vadd.f32 %v14815_v1, %v5733_v19  ;;  %v6043_v56 = vmax.f32 %v5915_v14, 0.0  ;;  %7855 = vmatpush1.bf16.msra.mxu1 %v12548_v4  ;;  %v12551_v4 = vld [vmem:[%s17520_s19 + $0x80] ss:$8 sps:$4 sm:$0xff]  }
 0x663   : > { %v6044_v7 = vmax.f32 %v5916_v52, 0.0  ;;  %7856 = vmatprep.subr.bf16.mxu1 %v12553_v49 }
 0x664   : > { %v6045_v24 = vmax.f32 %v5917_v12, 0.0 }
 0x665   : > { %v6122_v22 = vpack.c.bf16 %v6044_v7, %v6042_v8 }
 0x666   : > { %v5737_v58 = vpop.f32.mrb[100].mxu1  ;;  %v6123_v51 = vpack.c.bf16 %v6045_v24, %v6043_v56  ;;  %7857 = vmatpush1.bf16.msra.mxu1 %v12551_v4 }
 0x667   : > { %v5918_v23 = vadd.f32 %v14811_v47, %v5737_v58  ;;  %v5739_v54 = vpop.f32.mrb[101].mxu1 }
 0x668   : > { %v5919_v30 = vadd.f32 %v14815_v1, %v5739_v54  ;;  %v5741_v34 = vpop.f32.mrb[102].mxu1  ;;  %6614 = vmatprep.mubr.bf16.mxu0 %v6123_v51 }
 0x669   : > { %v5920_v29 = vadd.f32 %v14811_v47, %v5741_v34  ;;  %v5743_v62 = vpop.f32.mrb[103].mxu1  ;;  %6615 = vmatmul.mubr.bf16.gmra.mrb[224].mxu0 %v6122_v22  ;;  %v6046_v46 = vmax.f32 %v5918_v23, 0.0 }
 0x66a   : > { %v5921_v42 = vadd.f32 %v14815_v1, %v5743_v62  ;;  %v6047_v33 = vmax.f32 %v5919_v30, 0.0 }
 0x66b   : > { %v6048_v40 = vmax.f32 %v5920_v29, 0.0 }
 0x66c   : > { %v6049_v53 = vmax.f32 %v5921_v42, 0.0 }
 0x66d   : > { %v6124_v6 = vpack.c.bf16 %v6048_v40, %v6046_v46 }
 0x66e   : > { %v5747_v44 = vpop.f32.mrb[104].mxu1  ;;  %v6125_v39 = vpack.c.bf16 %v6049_v53, %v6047_v33 }
 0x66f   : > { %v5922_v21 = vadd.f32 %v14811_v47, %v5747_v44  ;;  %v5749_v27 = vpop.f32.mrb[105].mxu1 }
 0x670   : > { %v5923_v17 = vadd.f32 %v14815_v1, %v5749_v27  ;;  %v5751_v48 = vpop.f32.mrb[106].mxu1  ;;  %6624 = vmatprep.mubr.bf16.mxu0 %v6125_v39 }
 0x671   : > { %v5924_v43 = vadd.f32 %v14811_v47, %v5751_v48  ;;  %v5753_v59 = vpop.f32.mrb[107].mxu1  ;;  %6625 = vmatmul.mubr.bf16.gmra.mrb[228].mxu0 %v6124_v6  ;;  %v6050_v18 = vmax.f32 %v5922_v21, 0.0 }
 0x672   : > { %v5925_v20 = vadd.f32 %v14815_v1, %v5753_v59  ;;  %v6051_v0 = vmax.f32 %v5923_v17, 0.0 }
 0x673   : > { %v6052_v36 = vmax.f32 %v5924_v43, 0.0 }
 0x674   : > { %v6053_v41 = vmax.f32 %v5925_v20, 0.0 }
 0x675   : > { %v6126_v31 = vpack.c.bf16 %v6052_v36, %v6050_v18 }
 0x676   : > { %v5757_v35 = vpop.f32.mrb[108].mxu1  ;;  %v6127_v57 = vpack.c.bf16 %v6053_v41, %v6051_v0 }
 0x677   : > { %v5926_v38 = vadd.f32 %v14811_v47, %v5757_v35  ;;  %v5759_v45 = vpop.f32.mrb[109].mxu1 }
 0x678   : > { %v5927_v55 = vadd.f32 %v14815_v1, %v5759_v45  ;;  %v5761_v16 = vpop.f32.mrb[110].mxu1  ;;  %6634 = vmatprep.mubr.bf16.mxu0 %v6127_v57 }
 0x679   : > { %v5928_v13 = vadd.f32 %v14811_v47, %v5761_v16  ;;  %v5763_v10 = vpop.f32.mrb[111].mxu1  ;;  %6635 = vmatmul.mubr.bf16.gmra.mrb[232].mxu0 %v6126_v31  ;;  %v6054_v11 = vmax.f32 %v5926_v38, 0.0 }
 0x67a   : > { %v5929_v61 = vadd.f32 %v14815_v1, %v5763_v10  ;;  %v6055_v5 = vmax.f32 %v5927_v55, 0.0 }
 0x67b   : > { %v6056_v2 = vmax.f32 %v5928_v13, 0.0 }
 0x67c   : > { %v6057_v25 = vmax.f32 %v5929_v61, 0.0  ;;  %v6376_v9 = vpop.f32.mrb[128].mxu0 }
 0x67d   : > { %v6128_v14 = vpack.c.bf16 %v6056_v2, %v6054_v11  ;;  %v6377_v15 = vadd.f32 %v6376_v9, %v15077_v37  ;;  %v6378_v52 = vpop.f32.mrb[129].mxu0 }
 0x67e   : > { %v6379_v19 = vadd.f32 %v6378_v52, %v15081_v60  ;;  %v5767_v12 = vpop.f32.mrb[112].mxu1  ;;  %v6380_v8 = vpop.f32.mrb[130].mxu0  ;;  %v6129_v7 = vpack.c.bf16 %v6057_v25, %v6055_v5 }
 0x67f   : > { %v5930_v56 = vadd.f32 %v14811_v47, %v5767_v12  ;;  %v6381_v24 = vadd.f32 %v6380_v8, %v15077_v37  ;;  %v5769_v22 = vpop.f32.mrb[113].mxu1  ;;  %v6382_v58 = vpop.f32.mrb[131].mxu0  ;;  %v6695_v30 = vmax.f32 %v6377_v15, 0.0 }
 0x680   : > { %v5931_v51 = vadd.f32 %v14815_v1, %v5769_v22  ;;  %v6383_v23 = vadd.f32 %v6382_v58, %v15081_v60  ;;  %v5771_v54 = vpop.f32.mrb[114].mxu1  ;;  %6644 = vmatprep.mubr.bf16.mxu0 %v6129_v7  ;;  %v6696_v42 = vmax.f32 %v6379_v19, 0.0 }
 0x681   : > { %v6697_v34 = vmax.f32 %v6381_v24, 0.0  ;;  %v5932_v29 = vadd.f32 %v14811_v47, %v5771_v54  ;;  %v5773_v62 = vpop.f32.mrb[115].mxu1  ;;  %6645 = vmatmul.mubr.bf16.gmra.mrb[236].mxu0 %v6128_v14  ;;  %v6058_v32 = vmax.f32 %v5930_v56, 0.0 }
 0x682   : > { %v6698_v46 = vmax.f32 %v6383_v23, 0.0  ;;  %v5933_v40 = vadd.f32 %v14815_v1, %v5773_v62  ;;  %v6059_v53 = vmax.f32 %v5931_v51, 0.0 }
 0x683   : > { %v15097_v50 = vpack.c.bf16 %v6697_v34, %v6695_v30  ;;  %v6060_v33 = vmax.f32 %v5932_v29, 0.0 }
 0x684   : > { %v6061_v6 = vmax.f32 %v5933_v40, 0.0  ;;  %v6386_v44 = vpop.f32.mrb[132].mxu0  ;;  %v15099_v39 = vpack.c.bf16 %v6698_v46, %v6696_v42 }
 0x685   : > { %v6130_v21 = vpack.c.bf16 %v6060_v33, %v6058_v32  ;;  %v6387_v27 = vadd.f32 %v6386_v44, %v15077_v37  ;;  %v6388_v17 = vpop.f32.mrb[133].mxu0 }
 0x686   : > { %v6389_v48 = vadd.f32 %v6388_v17, %v15081_v60  ;;  %v5777_v43 = vpop.f32.mrb[116].mxu1  ;;  %v6390_v59 = vpop.f32.mrb[134].mxu0  ;;  %v6131_v20 = vpack.c.bf16 %v6061_v6, %v6059_v53 }
 0x687   : > { %v5934_v18 = vadd.f32 %v14811_v47, %v5777_v43  ;;  %v6391_v36 = vadd.f32 %v6390_v59, %v15077_v37  ;;  %v5779_v0 = vpop.f32.mrb[117].mxu1  ;;  %v6392_v41 = vpop.f32.mrb[135].mxu0  ;;  %v6699_v63 = vmax.f32 %v6387_v27, 0.0 }
 0x688   : > { %v5935_v31 = vadd.f32 %v14815_v1, %v5779_v0  ;;  %v6393_v35 = vadd.f32 %v6392_v41, %v15081_v60  ;;  %v5781_v57 = vpop.f32.mrb[118].mxu1  ;;  %6654 = vmatprep.mubr.bf16.mxu0 %v6131_v20  ;;  %v6700_v16 = vmax.f32 %v6389_v48, 0.0 }
 0x689   : > { %v6701_v38 = vmax.f32 %v6391_v36, 0.0  ;;  %v5936_v45 = vadd.f32 %v14811_v47, %v5781_v57  ;;  %v5783_v55 = vpop.f32.mrb[119].mxu1  ;;  %6655 = vmatmul.mubr.bf16.gmra.mrb[240].mxu0 %v6130_v21  ;;  %v6062_v61 = vmax.f32 %v5934_v18, 0.0 }
 0x68a   : > { %v6702_v13 = vmax.f32 %v6393_v35, 0.0  ;;  %v5937_v10 = vadd.f32 %v14815_v1, %v5783_v55  ;;  %v6063_v5 = vmax.f32 %v5935_v31, 0.0 }
 0x68b   : > { %v15109_v11 = vpack.c.bf16 %v6701_v38, %v6699_v63  ;;  %v6064_v2 = vmax.f32 %v5936_v45, 0.0 }
 0x68c   : > { %v6065_v25 = vmax.f32 %v5937_v10, 0.0  ;;  %v6396_v9 = vpop.f32.mrb[136].mxu0  ;;  %v15117_v14 = vpack.c.bf16 %v6702_v13, %v6700_v16 }
 0x68d   : > { %v6132_v15 = vpack.c.bf16 %v6064_v2, %v6062_v61  ;;  %v6397_v52 = vadd.f32 %v6396_v9, %v15077_v37  ;;  %v6398_v19 = vpop.f32.mrb[137].mxu0  ;;  %v12554_v9 = vld [vmem:[%s17520_s19 + $0x90] ss:$8 sps:$4 sm:$0xff]  }
 0x68e   : > { %v6399_v12 = vadd.f32 %v6398_v19, %v15081_v60  ;;  %v5787_v8 = vpop.f32.mrb[120].mxu1  ;;  %v6400_v7 = vpop.f32.mrb[138].mxu0  ;;  %v6133_v56 = vpack.c.bf16 %v6065_v25, %v6063_v5 }
 0x68f   : > { %v5938_v24 = vadd.f32 %v14811_v47, %v5787_v8  ;;  %v6401_v22 = vadd.f32 %v6400_v7, %v15077_v37  ;;  %v5789_v58 = vpop.f32.mrb[121].mxu1  ;;  %v6402_v51 = vpop.f32.mrb[139].mxu0  ;;  %v6703_v34 = vmax.f32 %v6397_v52, 0.0 }
 0x690   : > { %v5939_v23 = vadd.f32 %v14815_v1, %v5789_v58  ;;  %v6403_v54 = vadd.f32 %v6402_v51, %v15081_v60  ;;  %v5791_v30 = vpop.f32.mrb[122].mxu1  ;;  %6664 = vmatprep.mubr.bf16.mxu0 %v6133_v56  ;;  %v6704_v46 = vmax.f32 %v6399_v12, 0.0 }
 0x691   : > { %v6705_v29 = vmax.f32 %v6401_v22, 0.0  ;;  %v5940_v62 = vadd.f32 %v14811_v47, %v5791_v30  ;;  %v5793_v42 = vpop.f32.mrb[123].mxu1  ;;  %6665 = vmatmul.mubr.bf16.gmra.mrb[244].mxu0 %v6132_v15  ;;  %v6066_v33 = vmax.f32 %v5938_v24, 0.0  ;;  %v12556_v15 = vld [vmem:[%s17520_s19 + $0x94] ss:$8 sps:$4 sm:$0xff]  }
 0x692   : > { %v6706_v40 = vmax.f32 %v6403_v54, 0.0  ;;  %v5941_v32 = vadd.f32 %v14815_v1, %v5793_v42  ;;  %v6067_v44 = vmax.f32 %v5939_v23, 0.0  ;;  %7858 = vmatprep.subr.bf16.mxu1 %v12556_v15 }
 0x693   : > { %v15127_v53 = vpack.c.bf16 %v6705_v29, %v6703_v34  ;;  %v6068_v6 = vmax.f32 %v5940_v62, 0.0  ;;  %7859 = vmatpush1.bf16.msra.mxu1 %v12554_v9 }
 0x694   : > { %v6069_v21 = vmax.f32 %v5941_v32, 0.0  ;;  %v6406_v27 = vpop.f32.mrb[140].mxu0  ;;  %v15129_v17 = vpack.c.bf16 %v6706_v40, %v6704_v46 }
 0x695   : > { %v6134_v48 = vpack.c.bf16 %v6068_v6, %v6066_v33  ;;  %v6407_v43 = vadd.f32 %v6406_v27, %v15077_v37  ;;  %v6408_v59 = vpop.f32.mrb[141].mxu0 }
 0x696   : > { %v6409_v20 = vadd.f32 %v6408_v59, %v15081_v60  ;;  %v5797_v18 = vpop.f32.mrb[124].mxu1  ;;  %v6410_v36 = vpop.f32.mrb[142].mxu0  ;;  %v6135_v0 = vpack.c.bf16 %v6069_v21, %v6067_v44 }
 0x697   : > { %v5942_v41 = vadd.f32 %v14811_v47, %v5797_v18  ;;  %v6411_v31 = vadd.f32 %v6410_v36, %v15077_v37  ;;  %v5799_v35 = vpop.f32.mrb[125].mxu1  ;;  %v6412_v57 = vpop.f32.mrb[143].mxu0  ;;  %v6707_v55 = vmax.f32 %v6407_v43, 0.0  ;;  %v12557_v18 = vld [vmem:[%s17520_s19 + $0xa0] ss:$8 sps:$4 sm:$0xff]  }
 0x698   : > { %v5943_v63 = vadd.f32 %v14815_v1, %v5799_v35  ;;  %v6413_v38 = vadd.f32 %v6412_v57, %v15081_v60  ;;  %v5801_v45 = vpop.f32.mrb[126].mxu1  ;;  %6674 = vmatprep.mubr.bf16.mxu0 %v6135_v0  ;;  %v6708_v61 = vmax.f32 %v6409_v20, 0.0  ;;  %v12559_v36 = vld [vmem:[%s17520_s19 + $0xa4] ss:$8 sps:$4 sm:$0xff]  }
 0x699   : > { %v6709_v16 = vmax.f32 %v6411_v31, 0.0  ;;  %v5944_v13 = vadd.f32 %v14811_v47, %v5801_v45  ;;  %v5803_v10 = vpop.f32.mrb[127].mxu1  ;;  %6675 = vmatmul.mubr.bf16.gmra.mrb[248].mxu0 %v6134_v48  ;;  %v6070_v49 = vmax.f32 %v5942_v41, 0.0  ;;  %7860 = vmatprep.subr.bf16.mxu1 %v12559_v36 }
 0x69a   : > { %v6710_v2 = vmax.f32 %v6413_v38, 0.0  ;;  %v5945_v4 = vadd.f32 %v14815_v1, %v5803_v10  ;;  %v6071_v52 = vmax.f32 %v5943_v63, 0.0  ;;  %7861 = vmatpush1.bf16.msra.mxu1 %v12557_v18 }
 0x69b   : > { %v15139_v5 = vpack.c.bf16 %v6709_v16, %v6707_v55  ;;  %v6072_v25 = vmax.f32 %v5944_v13, 0.0 }
 0x69c   : > { %v6073_v47 = vmax.f32 %v5945_v4, 0.0  ;;  %v6416_v19 = vpop.f32.mrb[144].mxu0  ;;  %v15147_v12 = vpack.c.bf16 %v6710_v2, %v6708_v61 }
 0x69d   : > { %v6136_v8 = vpack.c.bf16 %v6072_v25, %v6070_v49  ;;  %v6417_v1 = vadd.f32 %v6416_v19, %v15077_v37  ;;  %v6418_v7 = vpop.f32.mrb[145].mxu0 }
 0x69e   : > { %v6419_v56 = vadd.f32 %v6418_v7, %v15081_v60  ;;  %v6420_v24 = vpop.f32.mrb[146].mxu0  ;;  %v6137_v22 = vpack.c.bf16 %v6073_v47, %v6071_v52  ;;  %v12560_v7 = vld [vmem:[%s17520_s19 + $0xb0] ss:$8 sps:$4 sm:$0xff]  }
 0x69f   : > { %v6421_v58 = vadd.f32 %v6420_v24, %v15077_v37  ;;  %v6422_v51 = vpop.f32.mrb[147].mxu0  ;;  %v6711_v54 = vmax.f32 %v6417_v1, 0.0 }
 0x6a0   : > { %v6423_v23 = vadd.f32 %v6422_v51, %v15081_v60  ;;  %6684 = vmatprep.mubr.bf16.mxu0 %v6137_v22  ;;  %v6712_v34 = vmax.f32 %v6419_v56, 0.0  ;;  %v12562_v56 = vld [vmem:[%s17520_s19 + $0xb4] ss:$8 sps:$4 sm:$0xff]  }
 0x6a1   : > { %v6713_v30 = vmax.f32 %v6421_v58, 0.0  ;;  %6685 = vmatmul.mubr.bf16.gmra.mrb[252].mxu0 %v6136_v8  ;;  %7862 = vmatprep.subr.bf16.mxu1 %v12562_v56 }
 0x6a2   : > { %v6714_v29 = vmax.f32 %v6423_v23, 0.0  ;;  %7123 = vmatprep.mubr.bf16.mxu0 %v15099_v39  ;;  %7863 = vmatpush1.bf16.msra.mxu1 %v12560_v7 }
 0x6a3   : > { %v15154_v62 = vpack.c.bf16 %v6713_v30, %v6711_v54 }
 0x6a4   : > { %v6426_v42 = vpop.f32.mrb[148].mxu0  ;;  %v15156_v46 = vpack.c.bf16 %v6714_v29, %v6712_v34 }
 0x6a5   : > { %v6427_v40 = vadd.f32 %v6426_v42, %v15077_v37  ;;  %v6428_v32 = vpop.f32.mrb[149].mxu0 }
 0x6a6   : > { %v6429_v33 = vadd.f32 %v6428_v32, %v15081_v60  ;;  %v6430_v6 = vpop.f32.mrb[150].mxu0 }
 0x6a7   : > { %v6431_v44 = vadd.f32 %v6430_v6, %v15077_v37  ;;  %v6432_v21 = vpop.f32.mrb[151].mxu0  ;;  %v6715_v48 = vmax.f32 %v6427_v40, 0.0 }
 0x6a8   : > { %v6433_v27 = vadd.f32 %v6432_v21, %v15081_v60  ;;  %v6716_v39 = vmax.f32 %v6429_v33, 0.0 }
 0x6a9   : > { %v6717_v43 = vmax.f32 %v6431_v44, 0.0  ;;  %7124 = vmatmul.mubr.bf16.vlgmr.msra.gmra.mrb[0].mxu0 %v15097_v50 }
 0x6aa   : > { %v6718_v59 = vmax.f32 %v6433_v27, 0.0  ;;  %7133 = vmatprep.mubr.bf16.mxu0 %v15117_v14 }
 0x6ab   : > { %v15164_v20 = vpack.c.bf16 %v6717_v43, %v6715_v48 }
 0x6ac   : > { %v6436_v0 = vpop.f32.mrb[152].mxu0  ;;  %v15172_v41 = vpack.c.bf16 %v6718_v59, %v6716_v39 }
 0x6ad   : > { %v6437_v31 = vadd.f32 %v6436_v0, %v15077_v37  ;;  %v6438_v50 = vpop.f32.mrb[153].mxu0 }
 0x6ae   : > { %v6439_v35 = vadd.f32 %v6438_v50, %v15081_v60  ;;  %v6440_v14 = vpop.f32.mrb[154].mxu0  ;;  %v12565_v50 = vld [vmem:[%s17520_s19 + $0xc4] ss:$8 sps:$4 sm:$0xff]  }
 0x6af   : > { %v6441_v57 = vadd.f32 %v6440_v14, %v15077_v37  ;;  %v6442_v63 = vpop.f32.mrb[155].mxu0  ;;  %v6719_v45 = vmax.f32 %v6437_v31, 0.0  ;;  %v12563_v31 = vld [vmem:[%s17520_s19 + $0xc0] ss:$8 sps:$4 sm:$0xff]   ;;  %7864 = vmatprep.subr.bf16.mxu1 %v12565_v50 }
 0x6b0   : > { %v6443_v38 = vadd.f32 %v6442_v63, %v15081_v60  ;;  %v6720_v16 = vmax.f32 %v6439_v35, 0.0  ;;  %7865 = vmatpush1.bf16.msra.mxu1 %v12563_v31 }
 0x6b1   : > { %v6721_v55 = vmax.f32 %v6441_v57, 0.0  ;;  %7134 = vmatmul.mubr.bf16.gmra.mrb[4].mxu0 %v15109_v11 }
 0x6b2   : > { %v6722_v13 = vmax.f32 %v6443_v38, 0.0  ;;  %7143 = vmatprep.mubr.bf16.mxu0 %v15129_v17 }
 0x6b3   : > { %v15180_v10 = vpack.c.bf16 %v6721_v55, %v6719_v45 }
 0x6b4   : > { %v6446_v61 = vpop.f32.mrb[156].mxu0  ;;  %v15182_v2 = vpack.c.bf16 %v6722_v13, %v6720_v16 }
 0x6b5   : > { %v6447_v4 = vadd.f32 %v6446_v61, %v15077_v37  ;;  %v6448_v49 = vpop.f32.mrb[157].mxu0 }
 0x6b6   : > { %v6449_v25 = vadd.f32 %v6448_v49, %v15081_v60  ;;  %v6450_v9 = vpop.f32.mrb[158].mxu0 }
 0x6b7   : > { %v6451_v15 = vadd.f32 %v6450_v9, %v15077_v37  ;;  %v6452_v52 = vpop.f32.mrb[159].mxu0  ;;  %v6723_v47 = vmax.f32 %v6447_v4, 0.0 }
 0x6b8   : > { %v6453_v11 = vadd.f32 %v6452_v52, %v15081_v60  ;;  %v6724_v17 = vmax.f32 %v6449_v25, 0.0 }
 0x6b9   : > { %v6725_v19 = vmax.f32 %v6451_v15, 0.0  ;;  %7144 = vmatmul.mubr.bf16.gmra.mrb[8].mxu0 %v15127_v53 }
 0x6ba   : > { %v6726_v8 = vmax.f32 %v6453_v11, 0.0  ;;  %7153 = vmatprep.mubr.bf16.mxu0 %v15147_v12 }
 0x6bb   : > { %v15190_v1 = vpack.c.bf16 %v6725_v19, %v6723_v47 }
 0x6bc   : > { %v6456_v24 = vpop.f32.mrb[160].mxu0  ;;  %v15198_v22 = vpack.c.bf16 %v6726_v8, %v6724_v17 }
 0x6bd   : > { %v6457_v58 = vadd.f32 %v6456_v24, %v15077_v37  ;;  %v6458_v53 = vpop.f32.mrb[161].mxu0 }
 0x6be   : > { %v6459_v51 = vadd.f32 %v6458_v53, %v15081_v60  ;;  %v6460_v12 = vpop.f32.mrb[162].mxu0  ;;  %v12568_v53 = vld [vmem:[%s17520_s19 + $0xd4] ss:$8 sps:$4 sm:$0xff]  }
 0x6bf   : > { %v6461_v23 = vadd.f32 %v6460_v12, %v15077_v37  ;;  %v6462_v54 = vpop.f32.mrb[163].mxu0  ;;  %v6727_v34 = vmax.f32 %v6457_v58, 0.0  ;;  %v12566_v58 = vld [vmem:[%s17520_s19 + $0xd0] ss:$8 sps:$4 sm:$0xff]   ;;  %7866 = vmatprep.subr.bf16.mxu1 %v12568_v53 }
 0x6c0   : > { %v6463_v30 = vadd.f32 %v6462_v54, %v15081_v60  ;;  %v6728_v42 = vmax.f32 %v6459_v51, 0.0  ;;  %7867 = vmatpush1.bf16.msra.mxu1 %v12566_v58 }
 0x6c1   : > { %v6729_v29 = vmax.f32 %v6461_v23, 0.0  ;;  %7154 = vmatmul.mubr.bf16.gmra.mrb[12].mxu0 %v15139_v5 }
 0x6c2   : > { %v6730_v40 = vmax.f32 %v6463_v30, 0.0  ;;  %7163 = vmatprep.mubr.bf16.mxu0 %v15156_v46 }
 0x6c3   : > { %v15206_v32 = vpack.c.bf16 %v6729_v29, %v6727_v34 }
 0x6c4   : > { %v6466_v33 = vpop.f32.mrb[164].mxu0  ;;  %v15208_v6 = vpack.c.bf16 %v6730_v40, %v6728_v42 }
 0x6c5   : > { %v6467_v44 = vadd.f32 %v6466_v33, %v15077_v37  ;;  %v6468_v21 = vpop.f32.mrb[165].mxu0 }
 0x6c6   : > { %v6469_v27 = vadd.f32 %v6468_v21, %v15081_v60  ;;  %v6470_v48 = vpop.f32.mrb[166].mxu0 }
 0x6c7   : > { %v6471_v43 = vadd.f32 %v6470_v48, %v15077_v37  ;;  %v6472_v39 = vpop.f32.mrb[167].mxu0  ;;  %v6731_v59 = vmax.f32 %v6467_v44, 0.0 }
 0x6c8   : > { %v6473_v5 = vadd.f32 %v6472_v39, %v15081_v60  ;;  %v6732_v46 = vmax.f32 %v6469_v27, 0.0 }
 0x6c9   : > { %v6733_v18 = vmax.f32 %v6471_v43, 0.0  ;;  %7164 = vmatmul.mubr.bf16.gmra.mrb[16].mxu0 %v15154_v62 }
 0x6ca   : > { %v6734_v36 = vmax.f32 %v6473_v5, 0.0  ;;  %7173 = vmatprep.mubr.bf16.mxu0 %v15172_v41 }
 0x6cb   : > { %v15216_v0 = vpack.c.bf16 %v6733_v18, %v6731_v59 }
 0x6cc   : > { %v6476_v35 = vpop.f32.mrb[168].mxu0  ;;  %v15224_v14 = vpack.c.bf16 %v6734_v36, %v6732_v46 }
 0x6cd   : > { %v6477_v57 = vadd.f32 %v6476_v35, %v15077_v37  ;;  %v6478_v62 = vpop.f32.mrb[169].mxu0 }
 0x6ce   : > { %v6479_v63 = vadd.f32 %v6478_v62, %v15081_v60  ;;  %v6480_v41 = vpop.f32.mrb[170].mxu0  ;;  %v12569_v62 = vld [vmem:[%s17520_s19 + $0xe0] ss:$8 sps:$4 sm:$0xff]  }
 0x6cf   : > { %v6481_v38 = vadd.f32 %v6480_v41, %v15077_v37  ;;  %v6482_v45 = vpop.f32.mrb[171].mxu0  ;;  %v6735_v16 = vmax.f32 %v6477_v57, 0.0 }
 0x6d0   : > { %v6483_v55 = vadd.f32 %v6482_v45, %v15081_v60  ;;  %v6736_v61 = vmax.f32 %v6479_v63, 0.0  ;;  %v12571_v63 = vld [vmem:[%s17520_s19 + $0xe4] ss:$8 sps:$4 sm:$0xff]  }
 0x6d1   : > { %v6737_v13 = vmax.f32 %v6481_v38, 0.0  ;;  %7174 = vmatmul.mubr.bf16.gmra.mrb[20].mxu0 %v15164_v20  ;;  %7868 = vmatprep.subr.bf16.mxu1 %v12571_v63 }
 0x6d2   : > { %v6738_v4 = vmax.f32 %v6483_v55, 0.0  ;;  %7183 = vmatprep.mubr.bf16.mxu0 %v15182_v2  ;;  %7869 = vmatpush1.bf16.msra.mxu1 %v12569_v62 }
 0x6d3   : > { %v15232_v49 = vpack.c.bf16 %v6737_v13, %v6735_v16 }
 0x6d4   : > { %v6486_v25 = vpop.f32.mrb[172].mxu0  ;;  %v15234_v9 = vpack.c.bf16 %v6738_v4, %v6736_v61 }
 0x6d5   : > { %v6487_v15 = vadd.f32 %v6486_v25, %v15077_v37  ;;  %v6488_v52 = vpop.f32.mrb[173].mxu0  ;;  %v12574_v25 = vld [vmem:[%s17522_s21 + $0x10] sm:$0xff]  }
 0x6d6   : > { %v6489_v11 = vadd.f32 %v6488_v52, %v15081_v60  ;;  %v6490_v47 = vpop.f32.mrb[174].mxu0 }
 0x6d7   : > { %v6491_v19 = vadd.f32 %v6490_v47, %v15077_v37  ;;  %v6492_v17 = vpop.f32.mrb[175].mxu0  ;;  %v6739_v8 = vmax.f32 %v6487_v15, 0.0 }
 0x6d8   : > { %v6493_v20 = vadd.f32 %v6492_v17, %v15081_v60  ;;  %v6740_v2 = vmax.f32 %v6489_v11, 0.0 }
 0x6d9   : > { %v6741_v7 = vmax.f32 %v6491_v19, 0.0  ;;  %7184 = vmatmul.mubr.bf16.gmra.mrb[24].mxu0 %v15180_v10 }
 0x6da   : > { %v6742_v56 = vmax.f32 %v6493_v20, 0.0  ;;  %7193 = vmatprep.mubr.bf16.mxu0 %v15198_v22 }
 0x6db   : > { %v15242_v24 = vpack.c.bf16 %v6741_v7, %v6739_v8  ;;  %v12578_v8 = vld [vmem:[%s17522_s21 + $0x18] sm:$0xff]  }
 0x6dc   : > { %v6496_v51 = vpop.f32.mrb[176].mxu0  ;;  %v15250_v12 = vpack.c.bf16 %v6742_v56, %v6740_v2 }
 0x6dd   : > { %v6497_v23 = vadd.f32 %v6496_v51, %v15077_v37  ;;  %v6498_v10 = vpop.f32.mrb[177].mxu0  ;;  %v12579_v51 = vld [vmem:[%s17522_s21 + $0x20] sm:$0xff]  }
 0x6de   : > { %v6499_v54 = vadd.f32 %v6498_v10, %v15081_v60  ;;  %v6500_v22 = vpop.f32.mrb[178].mxu0 }
 0x6df   : > { %v6501_v30 = vadd.f32 %v6500_v22, %v15077_v37  ;;  %v6502_v34 = vpop.f32.mrb[179].mxu0  ;;  %v6743_v42 = vmax.f32 %v6497_v23, 0.0 }
 0x6e0   : > { %v6503_v29 = vadd.f32 %v6502_v34, %v15081_v60  ;;  %v6744_v33 = vmax.f32 %v6499_v54, 0.0  ;;  %v12575_v34 = vld [vmem:[%s17520_s19 + $0xf0] ss:$8 sps:$4 sm:$0xff]  }
 0x6e1   : > { %v6745_v40 = vmax.f32 %v6501_v30, 0.0  ;;  %7194 = vmatmul.mubr.bf16.gmra.mrb[28].mxu0 %v15190_v1 }
 0x6e2   : > { %v6746_v44 = vmax.f32 %v6503_v29, 0.0  ;;  %7203 = vmatprep.mubr.bf16.mxu0 %v15208_v6  ;;  %v12572_v6 = vld [vmem:[%s17522_s21] sm:$0xff]   ;;  %v12577_v29 = vld [vmem:[%s17520_s19 + $0xf4] ss:$8 sps:$4 sm:$0xff]  }
 0x6e3   : > { %v15258_v21 = vpack.c.bf16 %v6745_v40, %v6743_v42  ;;  %8393 = vmatpush1.bf16.msra.mxu0 %v12572_v6  ;;  %7870 = vmatprep.subr.bf16.mxu1 %v12577_v29 }
 0x6e4   : > { %v6506_v27 = vpop.f32.mrb[180].mxu0  ;;  %v15260_v48 = vpack.c.bf16 %v6746_v44, %v6744_v33  ;;  %8394 = vmatprep.subr.bf16.mxu0 %v17539_v3  ;;  %7871 = vmatpush1.bf16.msra.mxu1 %v12575_v34 }
 0x6e5   : > { %v6507_v43 = vadd.f32 %v6506_v27, %v15077_v37  ;;  %v6508_v39 = vpop.f32.mrb[181].mxu0 }
 0x6e6   : > { %v6509_v5 = vadd.f32 %v6508_v39, %v15081_v60  ;;  %v6510_v59 = vpop.f32.mrb[182].mxu0 }
 0x6e7   : > { %v6511_v18 = vadd.f32 %v6510_v59, %v15077_v37  ;;  %v6512_v46 = vpop.f32.mrb[183].mxu0  ;;  %v6747_v36 = vmax.f32 %v6507_v43, 0.0  ;;  %v12581_v59 = vld [vmem:[%s17522_s21 + $0x30] sm:$0xff]  }
 0x6e8   : > { %v6513_v1 = vadd.f32 %v6512_v46, %v15081_v60  ;;  %v6748_v50 = vmax.f32 %v6509_v5, 0.0 }
 0x6e9   : > { %v6749_v31 = vmax.f32 %v6511_v18, 0.0  ;;  %7204 = vmatmul.mubr.bf16.gmra.mrb[32].mxu0 %v15206_v32  ;;  %v12573_v32 = vld [vmem:[%s17522_s21 + $0x8] sm:$0xff]  }
 0x6ea   : > { %v6750_v35 = vmax.f32 %v6513_v1, 0.0  ;;  %7213 = vmatprep.mubr.bf16.mxu0 %v15224_v14  ;;  %8395 = vmatpush1.bf16.msra.mxu0 %v12573_v32 }
 0x6eb   : > { %v15271_v57 = vpack.c.bf16 %v6749_v31, %v6747_v36  ;;  %8396 = vmatprep.subr.bf16.mxu0 %v17539_v3 }
 0x6ec   : > { %v6516_v41 = vpop.f32.mrb[184].mxu0  ;;  %v15280_v38 = vpack.c.bf16 %v6750_v35, %v6748_v50  ;;  %v12582_v35 = vld [vmem:[%s17522_s21 + $0x38] sm:$0xff]  }
 0x6ed   : > { %v6517_v14 = vadd.f32 %v6516_v41, %v15077_v37  ;;  %v6518_v45 = vpop.f32.mrb[185].mxu0 }
 0x6ee   : > { %v6519_v55 = vadd.f32 %v6518_v45, %v15081_v60  ;;  %v6520_v16 = vpop.f32.mrb[186].mxu0  ;;  %8397 = vmatpush1.bf16.msra.mxu0 %v12574_v25  ;;  %v12584_v45 = vld [vmem:[%s17522_s21 + $0x40] sm:$0xff]  }
 0x6ef   : > { %v6521_v13 = vadd.f32 %v6520_v16, %v15077_v37  ;;  %v6522_v61 = vpop.f32.mrb[187].mxu0  ;;  %v6751_v15 = vmax.f32 %v6517_v14, 0.0  ;;  %8398 = vmatprep.subr.bf16.mxu0 %v17539_v3  ;;  %v15360_v25 = vld [vmem:[%s17525_s24] sm:$0xff]  }
 0x6f0   : > { %v6523_v4 = vadd.f32 %v6522_v61, %v15081_v60  ;;  %v6752_v11 = vmax.f32 %v6519_v55, 0.0  ;;  %11849 = vmatprep.subr.bf16.mxu1 %v15360_v25 }
 0x6f1   : > { %v6753_v52 = vmax.f32 %v6521_v13, 0.0  ;;  %7214 = vmatmul.mubr.bf16.gmra.mrb[36].mxu0 %v15216_v0 }
 0x6f2   : > { %v6754_v47 = vmax.f32 %v6523_v4, 0.0  ;;  %7223 = vmatprep.mubr.bf16.mxu0 %v15234_v9  ;;  %8399 = vmatpush1.bf16.msra.mxu0 %v12578_v8 }
 0x6f3   : > { %v15295_v19 = vpack.c.bf16 %v6753_v52, %v6751_v15  ;;  %8400 = vmatprep.subr.bf16.mxu0 %v17539_v3 }
 0x6f4   : > { %v6526_v17 = vpop.f32.mrb[188].mxu0  ;;  %v15298_v20 = vpack.c.bf16 %v6754_v47, %v6752_v11 }
 0x6f5   : > { %v6527_v7 = vadd.f32 %v6526_v17, %v15077_v37  ;;  %v6528_v2 = vpop.f32.mrb[189].mxu0 }
 0x6f6   : > { %v6529_v0 = vadd.f32 %v6528_v2, %v15081_v60  ;;  %v6530_v56 = vpop.f32.mrb[190].mxu0  ;;  %8401 = vmatpush1.bf16.msra.mxu0 %v12579_v51 }
 0x6f7   : > { %v6531_v9 = vadd.f32 %v6530_v56, %v15077_v37  ;;  %v6532_v58 = vpop.f32.mrb[191].mxu0  ;;  %v6755_v23 = vmax.f32 %v6527_v7, 0.0  ;;  %8402 = vmatprep.subr.bf16.mxu0 %v17539_v3 }
 0x6f8   : > { %v6533_v53 = vadd.f32 %v6532_v58, %v15081_v60  ;;  %v6756_v54 = vmax.f32 %v6529_v0, 0.0  ;;  %v12586_v0 = vld [vmem:[%s17522_s21 + $0x50] sm:$0xff]  }
 0x6f9   : > { %v6757_v10 = vmax.f32 %v6531_v9, 0.0  ;;  %7224 = vmatmul.mubr.bf16.gmra.mrb[40].mxu0 %v15232_v49  ;;  %v12580_v49 = vld [vmem:[%s17522_s21 + $0x28] sm:$0xff]  }
 0x6fa   : > { %v6758_v22 = vmax.f32 %v6533_v53, 0.0  ;;  %7233 = vmatprep.mubr.bf16.mxu0 %v15250_v12  ;;  %8403 = vmatpush1.bf16.msra.mxu0 %v12580_v49 }
 0x6fb   : > { %v15313_v30 = vpack.c.bf16 %v6757_v10, %v6755_v23  ;;  %8404 = vmatprep.subr.bf16.mxu0 %v17539_v3 }
 0x6fc   : > { %v6536_v42 = vpop.f32.mrb[192].mxu0  ;;  %v15322_v40 = vpack.c.bf16 %v6758_v22, %v6756_v54  ;;  %v12587_v54 = vld [vmem:[%s17522_s21 + $0x58] sm:$0xff]  }
 0x6fd   : > { %v6537_v12 = vadd.f32 %v6536_v42, %v15077_v37  ;;  %v6538_v33 = vpop.f32.mrb[193].mxu0 }
 0x6fe   : > { %v6539_v44 = vadd.f32 %v6538_v33, %v15081_v60  ;;  %v6540_v27 = vpop.f32.mrb[194].mxu0  ;;  %8405 = vmatpush1.bf16.msra.mxu0 %v12581_v59 }
 0x6ff   : > { %v6541_v43 = vadd.f32 %v6540_v27, %v15077_v37  ;;  %v6542_v39 = vpop.f32.mrb[195].mxu0  ;;  %v6759_v18 = vmax.f32 %v6537_v12, 0.0  ;;  %8406 = vmatprep.subr.bf16.mxu0 %v17539_v3  ;;  %v12588_v12 = vld [vmem:[%s17522_s21 + $0x60] sm:$0xff]  }
 0x700   : > { %v6543_v5 = vadd.f32 %v6542_v39, %v15081_v60  ;;  %v6760_v1 = vmax.f32 %v6539_v44, 0.0 }
 0x701   : > { %v6761_v46 = vmax.f32 %v6541_v43, 0.0  ;;  %7234 = vmatmul.mubr.bf16.gmra.mrb[44].mxu0 %v15242_v24 }
 0x702   : > { %v6762_v6 = vmax.f32 %v6543_v5, 0.0  ;;  %7243 = vmatprep.mubr.bf16.mxu0 %v15260_v48  ;;  %8407 = vmatpush1.bf16.msra.mxu0 %v12582_v35 }
 0x703   : > { %v15337_v36 = vpack.c.bf16 %v6761_v46, %v6759_v18  ;;  %8408 = vmatprep.subr.bf16.mxu0 %v17539_v3  ;;  %v12589_v18 = vld [vmem:[%s17522_s21 + $0x68] sm:$0xff]  }
 0x704   : > { %v6546_v31 = vpop.f32.mrb[196].mxu0  ;;  %v15340_v50 = vpack.c.bf16 %v6762_v6, %v6760_v1 }
 0x705   : > { %v6547_v62 = vadd.f32 %v6546_v31, %v15077_v37  ;;  %v6548_v63 = vpop.f32.mrb[197].mxu0 }
 0x706   : > { %v6549_v24 = vadd.f32 %v6548_v63, %v15081_v60  ;;  %v6550_v41 = vpop.f32.mrb[198].mxu0  ;;  %8409 = vmatpush1.bf16.msra.mxu0 %v12584_v45 }
 0x707   : > { %v6551_v48 = vadd.f32 %v6550_v41, %v15077_v37  ;;  %v6552_v32 = vpop.f32.mrb[199].mxu0  ;;  %v6763_v55 = vmax.f32 %v6547_v62, 0.0  ;;  %8410 = vmatprep.subr.bf16.mxu0 %v17539_v3  ;;  %v12590_v62 = vld [vmem:[%s17522_s21 + $0x70] sm:$0xff]  }
 0x708   : > { %v6553_v14 = vadd.f32 %v6552_v32, %v15081_v60  ;;  %v6764_v13 = vmax.f32 %v6549_v24, 0.0 }
 0x709   : > { %v6765_v16 = vmax.f32 %v6551_v48, 0.0  ;;  %7244 = vmatmul.mubr.bf16.gmra.mrb[48].mxu0 %v15258_v21  ;;  %v12585_v21 = vld [vmem:[%s17522_s21 + $0x48] sm:$0xff]  }
 0x70a   : > { %v6766_v61 = vmax.f32 %v6553_v14, 0.0  ;;  %7253 = vmatprep.mubr.bf16.mxu0 %v15280_v38  ;;  %8411 = vmatpush1.bf16.msra.mxu0 %v12585_v21 }
 0x70b   : > { %v15355_v4 = vpack.c.bf16 %v6765_v16, %v6763_v55  ;;  %8412 = vmatprep.subr.bf16.mxu0 %v17539_v3  ;;  %v12591_v55 = vld [vmem:[%s17522_s21 + $0x78] sm:$0xff]  }
 0x70c   : > { %v6556_v15 = vpop.f32.mrb[200].mxu0  ;;  %v15363_v52 = vpack.c.bf16 %v6766_v61, %v6764_v13 }
 0x70d   : > { %v6557_v11 = vadd.f32 %v6556_v15, %v15077_v37  ;;  %v6558_v38 = vpop.f32.mrb[201].mxu0 }
 0x70e   : > { %v6559_v47 = vadd.f32 %v6558_v38, %v15081_v60  ;;  %v6560_v17 = vpop.f32.mrb[202].mxu0  ;;  %8413 = vmatpush1.bf16.msra.mxu0 %v12586_v0 }
 0x70f   : > { %v6561_v8 = vadd.f32 %v6560_v17, %v15077_v37  ;;  %v6562_v7 = vpop.f32.mrb[203].mxu0  ;;  %v6767_v56 = vmax.f32 %v6557_v11, 0.0  ;;  %8414 = vmatprep.subr.bf16.mxu0 %v17539_v3 }
 0x710   : > { %v6563_v2 = vadd.f32 %v6562_v7, %v15081_v60  ;;  %v6768_v58 = vmax.f32 %v6559_v47, 0.0 }
 0x711   : > { %v6769_v9 = vmax.f32 %v6561_v8, 0.0  ;;  %7254 = vmatmul.mubr.bf16.gmra.mrb[52].mxu0 %v15271_v57 }
 0x712   : > { %v6770_v53 = vmax.f32 %v6563_v2, 0.0  ;;  %7263 = vmatprep.mubr.bf16.mxu0 %v15298_v20  ;;  %8415 = vmatpush1.bf16.msra.mxu0 %v12587_v54 }
 0x713   : > { %v15379_v51 = vpack.c.bf16 %v6769_v9, %v6767_v56  ;;  %8416 = vmatprep.subr.bf16.mxu0 %v17539_v3 }
 0x714   : > { %v6566_v23 = vpop.f32.mrb[204].mxu0  ;;  %v15382_v10 = vpack.c.bf16 %v6770_v53, %v6768_v58 }
 0x715   : > { %v6567_v22 = vadd.f32 %v6566_v23, %v15077_v37  ;;  %v6568_v34 = vpop.f32.mrb[205].mxu0 }
 0x716   : > { %v6569_v57 = vadd.f32 %v6568_v34, %v15081_v60  ;;  %v6570_v29 = vpop.f32.mrb[206].mxu0  ;;  %8417 = vmatpush1.bf16.msra.mxu0 %v12588_v12 }
 0x717   : > { %v6571_v20 = vadd.f32 %v6570_v29, %v15077_v37  ;;  %v6572_v42 = vpop.f32.mrb[207].mxu0  ;;  %v6771_v33 = vmax.f32 %v6567_v22, 0.0  ;;  %8418 = vmatprep.subr.bf16.mxu0 %v17539_v3 }
 0x718   : > { %v6573_v49 = vadd.f32 %v6572_v42, %v15081_v60  ;;  %v6772_v27 = vmax.f32 %v6569_v57, 0.0 }
 0x719   : > { %v6773_v44 = vmax.f32 %v6571_v20, 0.0  ;;  %7264 = vmatmul.mubr.bf16.gmra.mrb[56].mxu0 %v15295_v19 }
 0x71a   : > { %v6774_v43 = vmax.f32 %v6573_v49, 0.0  ;;  %7273 = vmatprep.mubr.bf16.mxu0 %v15322_v40  ;;  %8419 = vmatpush1.bf16.msra.mxu0 %v12589_v18 }
 0x71b   : > { %v15397_v39 = vpack.c.bf16 %v6773_v44, %v6771_v33  ;;  %8420 = vmatprep.subr.bf16.mxu0 %v17539_v3 }
 0x71c   : > { %v6576_v5 = vpop.f32.mrb[208].mxu0  ;;  %v15400_v59 = vpack.c.bf16 %v6774_v43, %v6772_v27 }
 0x71d   : > { %v6577_v46 = vadd.f32 %v6576_v5, %v15077_v37  ;;  %v6578_v1 = vpop.f32.mrb[209].mxu0 }
 0x71e   : > { %v6579_v19 = vadd.f32 %v6578_v1, %v15081_v60  ;;  %v6580_v6 = vpop.f32.mrb[210].mxu0  ;;  %8421 = vmatpush1.bf16.msra.mxu0 %v12590_v62 }
 0x71f   : > { %v6581_v40 = vadd.f32 %v6580_v6, %v15077_v37  ;;  %v6582_v31 = vpop.f32.mrb[211].mxu0  ;;  %v6775_v63 = vmax.f32 %v6577_v46, 0.0  ;;  %8422 = vmatprep.subr.bf16.mxu0 %v17539_v3 }
 0x720   : > { %v6583_v35 = vadd.f32 %v6582_v31, %v15081_v60  ;;  %v6776_v41 = vmax.f32 %v6579_v19, 0.0 }
 0x721   : > { %v6777_v24 = vmax.f32 %v6581_v40, 0.0  ;;  %7274 = vmatmul.mubr.bf16.gmra.mrb[60].mxu0 %v15313_v30 }
 0x722   : > { %v6778_v48 = vmax.f32 %v6583_v35, 0.0  ;;  %7283 = vmatprep.mubr.bf16.mxu0 %v15340_v50  ;;  %8423 = vmatpush1.bf16.msra.mxu0 %v12591_v55 }
 0x723   : > { %v15415_v32 = vpack.c.bf16 %v6777_v24, %v6775_v63 }
 0x724   : > { %v6586_v14 = vpop.f32.mrb[212].mxu0  ;;  %v6864_v45 = vpack.c.bf16 %v6778_v48, %v6776_v41 }
 0x725   : > { %v6587_v16 = vadd.f32 %v6586_v14, %v15077_v37  ;;  %v6588_v13 = vpop.f32.mrb[213].mxu0 }
 0x726   : > { %v6589_v30 = vadd.f32 %v6588_v13, %v15081_v60  ;;  %v6590_v61 = vpop.f32.mrb[214].mxu0 }
 0x727   : > { %v6591_v50 = vadd.f32 %v6590_v61, %v15077_v37  ;;  %v6592_v15 = vpop.f32.mrb[215].mxu0  ;;  %v6779_v11 = vmax.f32 %v6587_v16, 0.0 }
 0x728   : > { %v6593_v21 = vadd.f32 %v6592_v15, %v15081_v60  ;;  %v6780_v47 = vmax.f32 %v6589_v30, 0.0 }
 0x729   : > { %v6781_v38 = vmax.f32 %v6591_v50, 0.0  ;;  %7284 = vmatmul.mubr.bf16.gmra.mrb[64].mxu0 %v15337_v36 }
 0x72a   : > { %v6782_v17 = vmax.f32 %v6593_v21, 0.0  ;;  %7293 = vmatprep.mubr.bf16.mxu0 %v15363_v52 }
 0x72b   : > { %v15427_v8 = vpack.c.bf16 %v6781_v38, %v6779_v11 }
 0x72c   : > { %v6596_v7 = vpop.f32.mrb[216].mxu0  ;;  %v6866_v2 = vpack.c.bf16 %v6782_v17, %v6780_v47 }
 0x72d   : > { %v6597_v0 = vadd.f32 %v6596_v7, %v15077_v37  ;;  %v6598_v56 = vpop.f32.mrb[217].mxu0 }
 0x72e   : > { %v6599_v9 = vadd.f32 %v6598_v56, %v15081_v60  ;;  %v6600_v58 = vpop.f32.mrb[218].mxu0 }
 0x72f   : > { %v6601_v53 = vadd.f32 %v6600_v58, %v15077_v37  ;;  %v6602_v23 = vpop.f32.mrb[219].mxu0  ;;  %v6783_v36 = vmax.f32 %v6597_v0, 0.0 }
 0x730   : > { %v6603_v54 = vadd.f32 %v6602_v23, %v15081_v60  ;;  %v6784_v52 = vmax.f32 %v6599_v9, 0.0 }
 0x731   : > { %v6785_v22 = vmax.f32 %v6601_v53, 0.0  ;;  %7294 = vmatmul.mubr.bf16.gmra.mrb[68].mxu0 %v15355_v4 }
 0x732   : > { %v6786_v34 = vmax.f32 %v6603_v54, 0.0  ;;  %7303 = vmatprep.mubr.bf16.mxu0 %v15382_v10 }
 0x733   : > { %v15435_v57 = vpack.c.bf16 %v6785_v22, %v6783_v36 }
 0x734   : > { %v6606_v29 = vpop.f32.mrb[220].mxu0  ;;  %v6868_v20 = vpack.c.bf16 %v6786_v34, %v6784_v52 }
 0x735   : > { %v6607_v42 = vadd.f32 %v6606_v29, %v15077_v37  ;;  %v6608_v49 = vpop.f32.mrb[221].mxu0 }
 0x736   : > { %v6609_v12 = vadd.f32 %v6608_v49, %v15081_v60  ;;  %v6610_v33 = vpop.f32.mrb[222].mxu0 }
 0x737   : > { %v6611_v44 = vadd.f32 %v6610_v33, %v15077_v37  ;;  %v6612_v27 = vpop.f32.mrb[223].mxu0  ;;  %v6787_v4 = vmax.f32 %v6607_v42, 0.0 }
 0x738   : > { %v6613_v43 = vadd.f32 %v6612_v27, %v15081_v60  ;;  %v6788_v10 = vmax.f32 %v6609_v12, 0.0 }
 0x739   : > { %v6789_v5 = vmax.f32 %v6611_v44, 0.0  ;;  %7304 = vmatmul.mubr.bf16.gmra.mrb[72].mxu0 %v15379_v51 }
 0x73a   : > { %v6790_v18 = vmax.f32 %v6613_v43, 0.0  ;;  %7313 = vmatprep.mubr.bf16.mxu0 %v15400_v59 }
 0x73b   : > { %v15443_v46 = vpack.c.bf16 %v6789_v5, %v6787_v4 }
 0x73c   : > { %v6616_v1 = vpop.f32.mrb[224].mxu0  ;;  %v6870_v19 = vpack.c.bf16 %v6790_v18, %v6788_v10 }
 0x73d   : > { %v6617_v6 = vadd.f32 %v6616_v1, %v15077_v37  ;;  %v6618_v40 = vpop.f32.mrb[225].mxu0 }
 0x73e   : > { %v6619_v31 = vadd.f32 %v6618_v40, %v15081_v60  ;;  %v6620_v35 = vpop.f32.mrb[226].mxu0 }
 0x73f   : > { %v6621_v62 = vadd.f32 %v6620_v35, %v15077_v37  ;;  %v6622_v63 = vpop.f32.mrb[227].mxu0  ;;  %v6791_v51 = vmax.f32 %v6617_v6, 0.0 }
 0x740   : > { %v6623_v24 = vadd.f32 %v6622_v63, %v15081_v60  ;;  %v6792_v59 = vmax.f32 %v6619_v31, 0.0 }
 0x741   : > { %v6793_v41 = vmax.f32 %v6621_v62, 0.0  ;;  %7314 = vmatmul.mubr.bf16.gmra.mrb[76].mxu0 %v15397_v39 }
 0x742   : > { %v6794_v48 = vmax.f32 %v6623_v24, 0.0  ;;  %7323 = vmatprep.mubr.bf16.mxu0 %v6864_v45 }
 0x743   : > { %v15450_v14 = vpack.c.bf16 %v6793_v41, %v6791_v51 }
 0x744   : > { %v6626_v55 = vpop.f32.mrb[228].mxu0  ;;  %v6872_v16 = vpack.c.bf16 %v6794_v48, %v6792_v59 }
 0x745   : > { %v6627_v13 = vadd.f32 %v6626_v55, %v15077_v37  ;;  %v6628_v30 = vpop.f32.mrb[229].mxu0 }
 0x746   : > { %v6629_v61 = vadd.f32 %v6628_v30, %v15081_v60  ;;  %v6630_v50 = vpop.f32.mrb[230].mxu0 }
 0x747   : > { %v6631_v15 = vadd.f32 %v6630_v50, %v15077_v37  ;;  %v6632_v21 = vpop.f32.mrb[231].mxu0  ;;  %v6795_v38 = vmax.f32 %v6627_v13, 0.0 }
 0x748   : > { %v6633_v11 = vadd.f32 %v6632_v21, %v15081_v60  ;;  %v6796_v45 = vmax.f32 %v6629_v61, 0.0 }
 0x749   : > { %v6797_v39 = vmax.f32 %v6631_v15, 0.0  ;;  %7324 = vmatmul.mubr.bf16.gmra.mrb[80].mxu0 %v15415_v32 }
 0x74a   : > { %v6798_v47 = vmax.f32 %v6633_v11, 0.0  ;;  %7333 = vmatprep.mubr.bf16.mxu0 %v6866_v2 }
 0x74b   : > { %v15457_v17 = vpack.c.bf16 %v6797_v39, %v6795_v38 }
 0x74c   : > { %v6636_v7 = vpop.f32.mrb[232].mxu0  ;;  %v6874_v0 = vpack.c.bf16 %v6798_v47, %v6796_v45 }
 0x74d   : > { %v6637_v56 = vadd.f32 %v6636_v7, %v15077_v37  ;;  %v6638_v9 = vpop.f32.mrb[233].mxu0 }
 0x74e   : > { %v6639_v58 = vadd.f32 %v6638_v9, %v15081_v60  ;;  %v6640_v53 = vpop.f32.mrb[234].mxu0 }
 0x74f   : > { %v6641_v23 = vadd.f32 %v6640_v53, %v15077_v37  ;;  %v6642_v54 = vpop.f32.mrb[235].mxu0  ;;  %v6799_v22 = vmax.f32 %v6637_v56, 0.0 }
 0x750   : > { %v6643_v36 = vadd.f32 %v6642_v54, %v15081_v60  ;;  %v6800_v2 = vmax.f32 %v6639_v58, 0.0 }
 0x751   : > { %v6801_v32 = vmax.f32 %v6641_v23, 0.0  ;;  %7334 = vmatmul.mubr.bf16.gmra.mrb[84].mxu0 %v15427_v8 }
 0x752   : > { %v6802_v52 = vmax.f32 %v6643_v36, 0.0  ;;  %7343 = vmatprep.mubr.bf16.mxu0 %v6868_v20 }
 0x753   : > { %v15464_v34 = vpack.c.bf16 %v6801_v32, %v6799_v22 }
 0x754   : > { %v6646_v29 = vpop.f32.mrb[236].mxu0  ;;  %v6876_v42 = vpack.c.bf16 %v6802_v52, %v6800_v2 }
 0x755   : > { %v6647_v49 = vadd.f32 %v6646_v29, %v15077_v37  ;;  %v6648_v12 = vpop.f32.mrb[237].mxu0 }
 0x756   : > { %v6649_v33 = vadd.f32 %v6648_v12, %v15081_v60  ;;  %v6650_v44 = vpop.f32.mrb[238].mxu0 }
 0x757   : > { %v6651_v27 = vadd.f32 %v6650_v44, %v15077_v37  ;;  %v6652_v43 = vpop.f32.mrb[239].mxu0  ;;  %v6803_v5 = vmax.f32 %v6647_v49, 0.0 }
 0x758   : > { %v6653_v4 = vadd.f32 %v6652_v43, %v15081_v60  ;;  %v6804_v20 = vmax.f32 %v6649_v33, 0.0  ;;  %v6919_v43 = vld [vmem:[%s17519_s18] sm:$0x3] }
 0x759   : > { %v6805_v8 = vmax.f32 %v6651_v27, 0.0  ;;  %7344 = vmatmul.mubr.bf16.gmra.mrb[88].mxu0 %v15435_v57 }
 0x75a   : > { %v6806_v10 = vmax.f32 %v6653_v4, 0.0  ;;  %7353 = vmatprep.mubr.bf16.mxu0 %v6870_v19 }
 0x75b   : > { %v15471_v18 = vpack.c.bf16 %v6805_v8, %v6803_v5 }
 0x75c   : > { %v6656_v1 = vpop.f32.mrb[240].mxu0  ;;  %v6878_v6 = vpack.c.bf16 %v6806_v10, %v6804_v20  ;;  %v15509_v20 = vrot.slane %v6919_v43, %v13371_v26 }
 0x75d   : > { %v6657_v40 = vadd.f32 %v6656_v1, %v15077_v37  ;;  %v6658_v31 = vpop.f32.mrb[241].mxu0 }
 0x75e   : > { %v6659_v35 = vadd.f32 %v6658_v31, %v15081_v60  ;;  %v6660_v62 = vpop.f32.mrb[242].mxu0 }
 0x75f   : > { %v6661_v63 = vadd.f32 %v6660_v62, %v15077_v37  ;;  %v6662_v24 = vpop.f32.mrb[243].mxu0  ;;  %v6807_v41 = vmax.f32 %v6657_v40, 0.0  ;;  %v15512_v40 = vrot.slane %v6919_v43, %v13376_v28 }
 0x760   : > { %v6663_v51 = vadd.f32 %v6662_v24, %v15081_v60  ;;  %v6808_v19 = vmax.f32 %v6659_v35, 0.0 }
 0x761   : > { %v6809_v57 = vmax.f32 %v6661_v63, 0.0  ;;  %7354 = vmatmul.mubr.bf16.gmra.mrb[92].mxu0 %v15443_v46 }
 0x762   : > { %v6810_v59 = vmax.f32 %v6663_v51, 0.0  ;;  %7363 = vmatprep.mubr.bf16.mxu0 %v6872_v16 }
 0x763   : > { %v15478_v48 = vpack.c.bf16 %v6809_v57, %v6807_v41 }
 0x764   : > { %v6666_v55 = vpop.f32.mrb[244].mxu0  ;;  %v15480_v13 = vpack.c.bf16 %v6810_v59, %v6808_v19 }
 0x765   : > { %v6667_v30 = vadd.f32 %v6666_v55, %v15077_v37  ;;  %v6668_v61 = vpop.f32.mrb[245].mxu0 }
 0x766   : > { %v6669_v50 = vadd.f32 %v6668_v61, %v15081_v60  ;;  %v6670_v15 = vpop.f32.mrb[246].mxu0 }
 0x767   : > { %v6671_v21 = vadd.f32 %v6670_v15, %v15077_v37  ;;  %v6672_v11 = vpop.f32.mrb[247].mxu0  ;;  %v6811_v46 = vmax.f32 %v6667_v30, 0.0 }
 0x768   : > { %v6673_v38 = vadd.f32 %v6672_v11, %v15081_v60  ;;  %v6812_v16 = vmax.f32 %v6669_v50, 0.0 }
 0x769   : > { %v6813_v39 = vmax.f32 %v6671_v21, 0.0  ;;  %7364 = vmatmul.mubr.bf16.gmra.mrb[96].mxu0 %v15450_v14 }
 0x76a   : > { %v6814_v45 = vmax.f32 %v6673_v38, 0.0  ;;  %7373 = vmatprep.mubr.bf16.mxu0 %v6874_v0 }
 0x76b   : > { %v15487_v47 = vpack.c.bf16 %v6813_v39, %v6811_v46 }
 0x76c   : > { %v6676_v7 = vpop.f32.mrb[248].mxu0  ;;  %v15489_v56 = vpack.c.bf16 %v6814_v45, %v6812_v16 }
 0x76d   : > { %v6677_v9 = vadd.f32 %v6676_v7, %v15077_v37  ;;  %v6678_v58 = vpop.f32.mrb[249].mxu0 }
 0x76e   : > { %v6679_v53 = vadd.f32 %v6678_v58, %v15081_v60  ;;  %v6680_v23 = vpop.f32.mrb[250].mxu0 }
 0x76f   : > { %v6681_v54 = vadd.f32 %v6680_v23, %v15077_v37  ;;  %v6682_v36 = vpop.f32.mrb[251].mxu0  ;;  %v6815_v14 = vmax.f32 %v6677_v9, 0.0  ;;  %v12592_v9 = vld [vmem:[%s17525_s24 + $0x8] sm:$0xff]  }
 0x770   : > { %v6683_v22 = vadd.f32 %v6682_v36, %v15081_v60  ;;  %v6816_v0 = vmax.f32 %v6679_v53, 0.0 }
 0x771   : > { %v6817_v32 = vmax.f32 %v6681_v54, 0.0  ;;  %7374 = vmatmul.mubr.bf16.gmra.mrb[100].mxu0 %v15457_v17 }
 0x772   : > { %v6818_v2 = vmax.f32 %v6683_v22, 0.0  ;;  %7383 = vmatprep.mubr.bf16.mxu0 %v6876_v42 }
 0x773   : > { %v15496_v52 = vpack.c.bf16 %v6817_v32, %v6815_v14 }
 0x774   : > { %v6686_v29 = vpop.f32.mrb[252].mxu0  ;;  %v15498_v49 = vpack.c.bf16 %v6818_v2, %v6816_v0 }
 0x775   : > { %v6687_v12 = vadd.f32 %v6686_v29, %v15077_v37  ;;  %v6688_v33 = vpop.f32.mrb[253].mxu0 }
 0x776   : > { %v6689_v44 = vadd.f32 %v6688_v33, %v15081_v60  ;;  %v6690_v27 = vpop.f32.mrb[254].mxu0 }
 0x777   : > { %v6691_v17 = vadd.f32 %v6690_v27, %v15077_v37  ;;  %v6692_v4 = vpop.f32.mrb[255].mxu0  ;;  %v6819_v5 = vmax.f32 %v6687_v12, 0.0 }
 0x778   : > { %v6693_v42 = vadd.f32 %v6692_v4, %v15081_v60  ;;  %v6820_v10 = vmax.f32 %v6689_v44, 0.0 }
 0x779   : > { %v6821_v8 = vmax.f32 %v6691_v17, 0.0  ;;  %7384 = vmatmul.mubr.bf16.gmra.mrb[104].mxu0 %v15464_v34 }
 0x77a   : > { %v6822_v1 = vmax.f32 %v6693_v42, 0.0  ;;  %7393 = vmatprep.mubr.bf16.mxu0 %v6878_v6 }
 0x77b   : > { %v15514_v31 = vpack.c.bf16 %v6821_v8, %v6819_v5 }
 0x77c   : > { %v7125_v35 = vpop.f32.mrb[0].mxu0  ;;  %v15516_v37 = vpack.c.bf16 %v6822_v1, %v6820_v10 }
 0x77d   : > { %v7126_v60 = vadd.f32 %v7125_v35, %v15509_v20  ;;  %v7127_v62 = vpop.f32.mrb[1].mxu0 }
 0x77e   : > { %v7128_v63 = vadd.f32 %v7127_v62, %v15512_v40  ;;  %v7129_v34 = vpop.f32.mrb[2].mxu0 }
 0x77f   : > { %v7130_v24 = vadd.f32 %v7129_v34, %v15509_v20  ;;  %v7131_v51 = vpop.f32.mrb[3].mxu0  ;;  %v7444_v6 = vmax.f32 %v7126_v60, 0.0 }
 0x780   : > { %v7132_v41 = vadd.f32 %v7131_v51, %v15512_v40  ;;  %v7445_v19 = vmax.f32 %v7128_v63, 0.0 }
 0x781   : > { %v7446_v57 = vmax.f32 %v7130_v24, 0.0  ;;  %7394 = vmatmul.mubr.bf16.gmra.mrb[108].mxu0 %v15471_v18 }
 0x782   : > { %v7447_v59 = vmax.f32 %v7132_v41, 0.0  ;;  %7403 = vmatprep.mubr.bf16.mxu0 %v15480_v13 }
 0x783   : > { %v15524_v55 = vpack.c.bf16 %v7446_v57, %v7444_v6 }
 0x784   : > { %v7135_v30 = vpop.f32.mrb[4].mxu0  ;;  %v15526_v61 = vpack.c.bf16 %v7447_v59, %v7445_v19 }
 0x785   : > { %v7136_v50 = vadd.f32 %v7135_v30, %v15509_v20  ;;  %v7137_v15 = vpop.f32.mrb[5].mxu0 }
 0x786   : > { %v7138_v21 = vadd.f32 %v7137_v15, %v15512_v40  ;;  %v7139_v11 = vpop.f32.mrb[6].mxu0  ;;  %7872 = vmatprep.mubr.bf16.mxu1 %v15526_v61 }
 0x787   : > { %v7140_v38 = vadd.f32 %v7139_v11, %v15509_v20  ;;  %v7141_v18 = vpop.f32.mrb[7].mxu0  ;;  %7873 = vmatmul.mubr.bf16.vlgmr.msra.gmra.mrb[128].mxu1 %v15524_v55  ;;  %v7448_v46 = vmax.f32 %v7136_v50, 0.0 }
 0x788   : > { %v7142_v13 = vadd.f32 %v7141_v18, %v15512_v40  ;;  %11850 = vmatpush3.bf16.msra.mxu1 %v15360_v25  ;;  %v7449_v16 = vmax.f32 %v7138_v21, 0.0 }
 0x789   : > { %v7450_v39 = vmax.f32 %v7140_v38, 0.0  ;;  %7404 = vmatmul.mubr.bf16.gmra.mrb[112].mxu0 %v15478_v48  ;;  %11851 = vmatprep.subr.bf16.mxu1 %v12592_v9 }
 0x78a   : > { %v7451_v45 = vmax.f32 %v7142_v13, 0.0  ;;  %7413 = vmatprep.mubr.bf16.mxu0 %v15489_v56 }
 0x78b   : > { %v15537_v7 = vpack.c.bf16 %v7450_v39, %v7448_v46 }
 0x78c   : > { %v7145_v58 = vpop.f32.mrb[8].mxu0  ;;  %v15542_v53 = vpack.c.bf16 %v7451_v45, %v7449_v16  ;;  %11852 = vmatpush3.bf16.msra.mxu1 %v12592_v9 }
 0x78d   : > { %v7146_v23 = vadd.f32 %v7145_v58, %v15509_v20  ;;  %v7147_v25 = vpop.f32.mrb[9].mxu0  ;;  %9371 = vmatprep.subr.bf16.mxu1 %v17539_v3 }
 0x78e   : > { %v7148_v54 = vadd.f32 %v7147_v25, %v15512_v40  ;;  %v7149_v48 = vpop.f32.mrb[10].mxu0  ;;  %7882 = vmatprep.mubr.bf16.mxu1 %v15542_v53 }
 0x78f   : > { %v7150_v56 = vadd.f32 %v7149_v48, %v15509_v20  ;;  %v7151_v36 = vpop.f32.mrb[11].mxu0  ;;  %7883 = vmatmul.mubr.bf16.gmra.mrb[132].mxu1 %v15537_v7  ;;  %v7452_v14 = vmax.f32 %v7146_v23, 0.0 }
 0x790   : > { %v7152_v22 = vadd.f32 %v7151_v36, %v15512_v40  ;;  %v7453_v0 = vmax.f32 %v7148_v54, 0.0 }
 0x791   : > { %v7454_v32 = vmax.f32 %v7150_v56, 0.0  ;;  %7414 = vmatmul.mubr.bf16.gmra.mrb[116].mxu0 %v15487_v47 }
 0x792   : > { %v7455_v2 = vmax.f32 %v7152_v22, 0.0  ;;  %7423 = vmatprep.mubr.bf16.mxu0 %v15498_v49 }
 0x793   : > { %v15553_v29 = vpack.c.bf16 %v7454_v32, %v7452_v14 }
 0x794   : > { %v7155_v12 = vpop.f32.mrb[12].mxu0  ;;  %v15555_v33 = vpack.c.bf16 %v7455_v2, %v7453_v0 }
 0x795   : > { %v7156_v44 = vadd.f32 %v7155_v12, %v15509_v20  ;;  %v7157_v27 = vpop.f32.mrb[13].mxu0 }
 0x796   : > { %v7158_v43 = vadd.f32 %v7157_v27, %v15512_v40  ;;  %v7159_v17 = vpop.f32.mrb[14].mxu0  ;;  %7892 = vmatprep.mubr.bf16.mxu1 %v15555_v33 }
 0x797   : > { %v7160_v4 = vadd.f32 %v7159_v17, %v15509_v20  ;;  %v7161_v47 = vpop.f32.mrb[15].mxu0  ;;  %7893 = vmatmul.mubr.bf16.gmra.mrb[136].mxu1 %v15553_v29  ;;  %v7456_v42 = vmax.f32 %v7156_v44, 0.0 }
 0x798   : > { %v7162_v49 = vadd.f32 %v7161_v47, %v15512_v40  ;;  %v7457_v8 = vmax.f32 %v7158_v43, 0.0 }
 0x799   : > { %v7458_v5 = vmax.f32 %v7160_v4, 0.0  ;;  %7424 = vmatmul.mubr.bf16.gmra.mrb[120].mxu0 %v15496_v52 }
 0x79a   : > { %v7459_v10 = vmax.f32 %v7162_v49, 0.0  ;;  %7433 = vmatprep.mubr.bf16.mxu0 %v15516_v37 }
 0x79b   : > { %v15565_v1 = vpack.c.bf16 %v7458_v5, %v7456_v42 }
 0x79c   : > { %v7165_v35 = vpop.f32.mrb[16].mxu0  ;;  %v15567_v60 = vpack.c.bf16 %v7459_v10, %v7457_v8 }
 0x79d   : > { %v7166_v62 = vadd.f32 %v7165_v35, %v15509_v20  ;;  %v7167_v63 = vpop.f32.mrb[17].mxu0 }
 0x79e   : > { %v7168_v34 = vadd.f32 %v7167_v63, %v15512_v40  ;;  %v7169_v24 = vpop.f32.mrb[18].mxu0  ;;  %7902 = vmatprep.mubr.bf16.mxu1 %v15567_v60 }
 0x79f   : > { %v7170_v51 = vadd.f32 %v7169_v24, %v15509_v20  ;;  %v7171_v52 = vpop.f32.mrb[19].mxu0  ;;  %7903 = vmatmul.mubr.bf16.gmra.mrb[140].mxu1 %v15565_v1  ;;  %v7460_v41 = vmax.f32 %v7166_v62, 0.0 }
 0x7a0   : > { %v7172_v37 = vadd.f32 %v7171_v52, %v15512_v40  ;;  %v7461_v57 = vmax.f32 %v7168_v34, 0.0 }
 0x7a1   : > { %v7462_v6 = vmax.f32 %v7170_v51, 0.0  ;;  %7434 = vmatmul.mubr.bf16.gmra.mrb[124].mxu0 %v15514_v31 }
 0x7a2   : > { %v7463_v19 = vmax.f32 %v7172_v37, 0.0  ;;  %8424 = vmatprep.mubr.bf16.mxu0 %v15526_v61 }
 0x7a3   : > { %v15577_v59 = vpack.c.bf16 %v7462_v6, %v7460_v41 }
 0x7a4   : > { %v7175_v30 = vpop.f32.mrb[20].mxu0  ;;  %v15579_v50 = vpack.c.bf16 %v7463_v19, %v7461_v57 }
 0x7a5   : > { %v7176_v15 = vadd.f32 %v7175_v30, %v15509_v20  ;;  %v7177_v21 = vpop.f32.mrb[21].mxu0 }
 0x7a6   : > { %v7178_v11 = vadd.f32 %v7177_v21, %v15512_v40  ;;  %v7179_v38 = vpop.f32.mrb[22].mxu0  ;;  %7912 = vmatprep.mubr.bf16.mxu1 %v15579_v50 }
 0x7a7   : > { %v7180_v18 = vadd.f32 %v7179_v38, %v15509_v20  ;;  %v7181_v31 = vpop.f32.mrb[23].mxu0  ;;  %7913 = vmatmul.mubr.bf16.gmra.mrb[144].mxu1 %v15577_v59  ;;  %v7464_v13 = vmax.f32 %v7176_v15, 0.0 }
 0x7a8   : > { %v7182_v61 = vadd.f32 %v7181_v31, %v15512_v40  ;;  %v7465_v39 = vmax.f32 %v7178_v11, 0.0 }
 0x7a9   : > { %v7466_v46 = vmax.f32 %v7180_v18, 0.0  ;;  %8425 = vmatmul.mubr.bf16.vlgmr.msra.gmra.mrb[128].mxu0 %v15524_v55 }
 0x7aa   : > { %v7467_v16 = vmax.f32 %v7182_v61, 0.0  ;;  %8432 = vmatprep.mubr.bf16.mxu0 %v15542_v53 }
 0x7ab   : > { %v15589_v45 = vpack.c.bf16 %v7466_v46, %v7464_v13 }
 0x7ac   : > { %v7185_v9 = vpop.f32.mrb[24].mxu0  ;;  %v15591_v58 = vpack.c.bf16 %v7467_v16, %v7465_v39 }
 0x7ad   : > { %v7186_v23 = vadd.f32 %v7185_v9, %v15509_v20  ;;  %v7187_v25 = vpop.f32.mrb[25].mxu0 }
 0x7ae   : > { %v7188_v54 = vadd.f32 %v7187_v25, %v15512_v40  ;;  %v7189_v48 = vpop.f32.mrb[26].mxu0  ;;  %7922 = vmatprep.mubr.bf16.mxu1 %v15591_v58 }
 0x7af   : > { %v7190_v56 = vadd.f32 %v7189_v48, %v15509_v20  ;;  %v7191_v55 = vpop.f32.mrb[27].mxu0  ;;  %7923 = vmatmul.mubr.bf16.gmra.mrb[148].mxu1 %v15589_v45  ;;  %v7468_v36 = vmax.f32 %v7186_v23, 0.0 }
 0x7b0   : > { %v7192_v53 = vadd.f32 %v7191_v55, %v15512_v40  ;;  %v7469_v14 = vmax.f32 %v7188_v54, 0.0 }
 0x7b1   : > { %v7470_v22 = vmax.f32 %v7190_v56, 0.0  ;;  %8433 = vmatmul.mubr.bf16.gmra.mrb[132].mxu0 %v15537_v7 }
 0x7b2   : > { %v7471_v32 = vmax.f32 %v7192_v53, 0.0  ;;  %8440 = vmatprep.mubr.bf16.mxu0 %v15555_v33 }
 0x7b3   : > { %v15601_v0 = vpack.c.bf16 %v7470_v22, %v7468_v36 }
 0x7b4   : > { %v7195_v2 = vpop.f32.mrb[28].mxu0  ;;  %v15603_v12 = vpack.c.bf16 %v7471_v32, %v7469_v14 }
 0x7b5   : > { %v7196_v44 = vadd.f32 %v7195_v2, %v15509_v20  ;;  %v7197_v27 = vpop.f32.mrb[29].mxu0 }
 0x7b6   : > { %v7198_v43 = vadd.f32 %v7197_v27, %v15512_v40  ;;  %v7199_v17 = vpop.f32.mrb[30].mxu0  ;;  %7932 = vmatprep.mubr.bf16.mxu1 %v15603_v12 }
 0x7b7   : > { %v7200_v4 = vadd.f32 %v7199_v17, %v15509_v20  ;;  %v7201_v7 = vpop.f32.mrb[31].mxu0  ;;  %7933 = vmatmul.mubr.bf16.gmra.mrb[152].mxu1 %v15601_v0  ;;  %v7472_v47 = vmax.f32 %v7196_v44, 0.0 }
 0x7b8   : > { %v7202_v33 = vadd.f32 %v7201_v7, %v15512_v40  ;;  %v7473_v42 = vmax.f32 %v7198_v43, 0.0 }
 0x7b9   : > { %v7474_v49 = vmax.f32 %v7200_v4, 0.0  ;;  %8441 = vmatmul.mubr.bf16.gmra.mrb[136].mxu0 %v15553_v29 }
 0x7ba   : > { %v7475_v5 = vmax.f32 %v7202_v33, 0.0  ;;  %8448 = vmatprep.mubr.bf16.mxu0 %v15567_v60 }
 0x7bb   : > { %v15613_v8 = vpack.c.bf16 %v7474_v49, %v7472_v47 }
 0x7bc   : > { %v7205_v10 = vpop.f32.mrb[32].mxu0  ;;  %v15615_v35 = vpack.c.bf16 %v7475_v5, %v7473_v42 }
 0x7bd   : > { %v7206_v62 = vadd.f32 %v7205_v10, %v15509_v20  ;;  %v7207_v63 = vpop.f32.mrb[33].mxu0 }
 0x7be   : > { %v7208_v34 = vadd.f32 %v7207_v63, %v15512_v40  ;;  %v7209_v24 = vpop.f32.mrb[34].mxu0  ;;  %7942 = vmatprep.mubr.bf16.mxu1 %v15615_v35 }
 0x7bf   : > { %v7210_v51 = vadd.f32 %v7209_v24, %v15509_v20  ;;  %v7211_v29 = vpop.f32.mrb[35].mxu0  ;;  %7943 = vmatmul.mubr.bf16.gmra.mrb[156].mxu1 %v15613_v8  ;;  %v7476_v52 = vmax.f32 %v7206_v62, 0.0 }
 0x7c0   : > { %v7212_v60 = vadd.f32 %v7211_v29, %v15512_v40  ;;  %v7477_v41 = vmax.f32 %v7208_v34, 0.0 }
 0x7c1   : > { %v7478_v37 = vmax.f32 %v7210_v51, 0.0  ;;  %8449 = vmatmul.mubr.bf16.gmra.mrb[140].mxu0 %v15565_v1 }
 0x7c2   : > { %v7479_v6 = vmax.f32 %v7212_v60, 0.0  ;;  %8456 = vmatprep.mubr.bf16.mxu0 %v15579_v50 }
 0x7c3   : > { %v15625_v57 = vpack.c.bf16 %v7478_v37, %v7476_v52 }
 0x7c4   : > { %v7215_v19 = vpop.f32.mrb[36].mxu0  ;;  %v15627_v30 = vpack.c.bf16 %v7479_v6, %v7477_v41 }
 0x7c5   : > { %v7216_v15 = vadd.f32 %v7215_v19, %v15509_v20  ;;  %v7217_v21 = vpop.f32.mrb[37].mxu0 }
 0x7c6   : > { %v7218_v11 = vadd.f32 %v7217_v21, %v15512_v40  ;;  %v7219_v38 = vpop.f32.mrb[38].mxu0  ;;  %7952 = vmatprep.mubr.bf16.mxu1 %v15627_v30 }
 0x7c7   : > { %v7220_v18 = vadd.f32 %v7219_v38, %v15509_v20  ;;  %v7221_v1 = vpop.f32.mrb[39].mxu0  ;;  %7953 = vmatmul.mubr.bf16.gmra.mrb[160].mxu1 %v15625_v57  ;;  %v7480_v31 = vmax.f32 %v7216_v15, 0.0 }
 0x7c8   : > { %v7222_v50 = vadd.f32 %v7221_v1, %v15512_v40  ;;  %v7481_v13 = vmax.f32 %v7218_v11, 0.0 }
 0x7c9   : > { %v7482_v61 = vmax.f32 %v7220_v18, 0.0  ;;  %8457 = vmatmul.mubr.bf16.gmra.mrb[144].mxu0 %v15577_v59 }
 0x7ca   : > { %v7483_v46 = vmax.f32 %v7222_v50, 0.0  ;;  %8464 = vmatprep.mubr.bf16.mxu0 %v15591_v58 }
 0x7cb   : > { %v15637_v39 = vpack.c.bf16 %v7482_v61, %v7480_v31 }
 0x7cc   : > { %v7225_v16 = vpop.f32.mrb[40].mxu0  ;;  %v15639_v9 = vpack.c.bf16 %v7483_v46, %v7481_v13 }
 0x7cd   : > { %v7226_v23 = vadd.f32 %v7225_v16, %v15509_v20  ;;  %v7227_v25 = vpop.f32.mrb[41].mxu0 }
 0x7ce   : > { %v7228_v54 = vadd.f32 %v7227_v25, %v15512_v40  ;;  %v7229_v48 = vpop.f32.mrb[42].mxu0  ;;  %7962 = vmatprep.mubr.bf16.mxu1 %v15639_v9 }
 0x7cf   : > { %v7230_v56 = vadd.f32 %v7229_v48, %v15509_v20  ;;  %v7231_v59 = vpop.f32.mrb[43].mxu0  ;;  %7963 = vmatmul.mubr.bf16.gmra.mrb[164].mxu1 %v15637_v39  ;;  %v7484_v55 = vmax.f32 %v7226_v23, 0.0 }
 0x7d0   : > { %v7232_v58 = vadd.f32 %v7231_v59, %v15512_v40  ;;  %v7485_v36 = vmax.f32 %v7228_v54, 0.0 }
 0x7d1   : > { %v7486_v53 = vmax.f32 %v7230_v56, 0.0  ;;  %8465 = vmatmul.mubr.bf16.gmra.mrb[148].mxu0 %v15589_v45 }
 0x7d2   : > { %v7487_v22 = vmax.f32 %v7232_v58, 0.0  ;;  %8472 = vmatprep.mubr.bf16.mxu0 %v15603_v12 }
 0x7d3   : > { %v15649_v14 = vpack.c.bf16 %v7486_v53, %v7484_v55 }
 0x7d4   : > { %v7235_v32 = vpop.f32.mrb[44].mxu0  ;;  %v15651_v2 = vpack.c.bf16 %v7487_v22, %v7485_v36 }
 0x7d5   : > { %v7236_v44 = vadd.f32 %v7235_v32, %v15509_v20  ;;  %v7237_v27 = vpop.f32.mrb[45].mxu0 }
 0x7d6   : > { %v7238_v43 = vadd.f32 %v7237_v27, %v15512_v40  ;;  %v7239_v17 = vpop.f32.mrb[46].mxu0  ;;  %7972 = vmatprep.mubr.bf16.mxu1 %v15651_v2 }
 0x7d7   : > { %v7240_v4 = vadd.f32 %v7239_v17, %v15509_v20  ;;  %v7241_v45 = vpop.f32.mrb[47].mxu0  ;;  %7973 = vmatmul.mubr.bf16.gmra.mrb[168].mxu1 %v15649_v14  ;;  %v7488_v7 = vmax.f32 %v7236_v44, 0.0 }
 0x7d8   : > { %v7242_v12 = vadd.f32 %v7241_v45, %v15512_v40  ;;  %v7489_v47 = vmax.f32 %v7238_v43, 0.0 }
 0x7d9   : > { %v7490_v33 = vmax.f32 %v7240_v4, 0.0  ;;  %8473 = vmatmul.mubr.bf16.gmra.mrb[152].mxu0 %v15601_v0 }
 0x7da   : > { %v7491_v49 = vmax.f32 %v7242_v12, 0.0  ;;  %8480 = vmatprep.mubr.bf16.mxu0 %v15615_v35 }
 0x7db   : > { %v15661_v42 = vpack.c.bf16 %v7490_v33, %v7488_v7 }
 0x7dc   : > { %v7245_v5 = vpop.f32.mrb[48].mxu0  ;;  %v15663_v10 = vpack.c.bf16 %v7491_v49, %v7489_v47 }
 0x7dd   : > { %v7246_v62 = vadd.f32 %v7245_v5, %v15509_v20  ;;  %v7247_v63 = vpop.f32.mrb[49].mxu0 }
 0x7de   : > { %v7248_v34 = vadd.f32 %v7247_v63, %v15512_v40  ;;  %v7249_v24 = vpop.f32.mrb[50].mxu0  ;;  %7982 = vmatprep.mubr.bf16.mxu1 %v15663_v10 }
 0x7df   : > { %v7250_v51 = vadd.f32 %v7249_v24, %v15509_v20  ;;  %v7251_v0 = vpop.f32.mrb[51].mxu0  ;;  %7983 = vmatmul.mubr.bf16.gmra.mrb[172].mxu1 %v15661_v42  ;;  %v7492_v29 = vmax.f32 %v7246_v62, 0.0 }
 0x7e0   : > { %v7252_v35 = vadd.f32 %v7251_v0, %v15512_v40  ;;  %v7493_v52 = vmax.f32 %v7248_v34, 0.0 }
 0x7e1   : > { %v7494_v60 = vmax.f32 %v7250_v51, 0.0  ;;  %8481 = vmatmul.mubr.bf16.gmra.mrb[156].mxu0 %v15613_v8 }
 0x7e2   : > { %v7495_v37 = vmax.f32 %v7252_v35, 0.0  ;;  %8488 = vmatprep.mubr.bf16.mxu0 %v15627_v30 }
 0x7e3   : > { %v15673_v41 = vpack.c.bf16 %v7494_v60, %v7492_v29 }
 0x7e4   : > { %v7255_v6 = vpop.f32.mrb[52].mxu0  ;;  %v15675_v19 = vpack.c.bf16 %v7495_v37, %v7493_v52 }
 0x7e5   : > { %v7256_v15 = vadd.f32 %v7255_v6, %v15509_v20  ;;  %v7257_v21 = vpop.f32.mrb[53].mxu0 }
 0x7e6   : > { %v7258_v11 = vadd.f32 %v7257_v21, %v15512_v40  ;;  %v7259_v38 = vpop.f32.mrb[54].mxu0  ;;  %7992 = vmatprep.mubr.bf16.mxu1 %v15675_v19 }
 0x7e7   : > { %v7260_v18 = vadd.f32 %v7259_v38, %v15509_v20  ;;  %v7261_v8 = vpop.f32.mrb[55].mxu0  ;;  %7993 = vmatmul.mubr.bf16.gmra.mrb[176].mxu1 %v15673_v41  ;;  %v7496_v1 = vmax.f32 %v7256_v15, 0.0 }
 0x7e8   : > { %v7262_v30 = vadd.f32 %v7261_v8, %v15512_v40  ;;  %v7497_v31 = vmax.f32 %v7258_v11, 0.0 }
 0x7e9   : > { %v7498_v50 = vmax.f32 %v7260_v18, 0.0  ;;  %8489 = vmatmul.mubr.bf16.gmra.mrb[160].mxu0 %v15625_v57 }
 0x7ea   : > { %v7499_v61 = vmax.f32 %v7262_v30, 0.0  ;;  %8496 = vmatprep.mubr.bf16.mxu0 %v15639_v9 }
 0x7eb   : > { %v15685_v13 = vpack.c.bf16 %v7498_v50, %v7496_v1 }
 0x7ec   : > { %v7265_v46 = vpop.f32.mrb[56].mxu0  ;;  %v15687_v16 = vpack.c.bf16 %v7499_v61, %v7497_v31 }
 0x7ed   : > { %v7266_v23 = vadd.f32 %v7265_v46, %v15509_v20  ;;  %v7267_v25 = vpop.f32.mrb[57].mxu0 }
 0x7ee   : > { %v7268_v54 = vadd.f32 %v7267_v25, %v15512_v40  ;;  %v7269_v48 = vpop.f32.mrb[58].mxu0  ;;  %8002 = vmatprep.mubr.bf16.mxu1 %v15687_v16 }
 0x7ef   : > { %v7270_v56 = vadd.f32 %v7269_v48, %v15509_v20  ;;  %v7271_v57 = vpop.f32.mrb[59].mxu0  ;;  %8003 = vmatmul.mubr.bf16.gmra.mrb[180].mxu1 %v15685_v13  ;;  %v7500_v59 = vmax.f32 %v7266_v23, 0.0 }
 0x7f0   : > { %v7272_v9 = vadd.f32 %v7271_v57, %v15512_v40  ;;  %v7501_v55 = vmax.f32 %v7268_v54, 0.0 }
 0x7f1   : > { %v7502_v58 = vmax.f32 %v7270_v56, 0.0  ;;  %8497 = vmatmul.mubr.bf16.gmra.mrb[164].mxu0 %v15637_v39 }
 0x7f2   : > { %v7503_v53 = vmax.f32 %v7272_v9, 0.0  ;;  %8504 = vmatprep.mubr.bf16.mxu0 %v15651_v2 }
 0x7f3   : > { %v15697_v36 = vpack.c.bf16 %v7502_v58, %v7500_v59 }
 0x7f4   : > { %v7275_v22 = vpop.f32.mrb[60].mxu0  ;;  %v15699_v32 = vpack.c.bf16 %v7503_v53, %v7501_v55 }
 0x7f5   : > { %v7276_v44 = vadd.f32 %v7275_v22, %v15509_v20  ;;  %v7277_v27 = vpop.f32.mrb[61].mxu0 }
 0x7f6   : > { %v7278_v43 = vadd.f32 %v7277_v27, %v15512_v40  ;;  %v7279_v17 = vpop.f32.mrb[62].mxu0  ;;  %8012 = vmatprep.mubr.bf16.mxu1 %v15699_v32 }
 0x7f7   : > { %v7280_v4 = vadd.f32 %v7279_v17, %v15509_v20  ;;  %v7281_v39 = vpop.f32.mrb[63].mxu0  ;;  %8013 = vmatmul.mubr.bf16.gmra.mrb[184].mxu1 %v15697_v36  ;;  %v7504_v45 = vmax.f32 %v7276_v44, 0.0 }
 0x7f8   : > { %v7282_v2 = vadd.f32 %v7281_v39, %v15512_v40  ;;  %v7505_v7 = vmax.f32 %v7278_v43, 0.0 }
 0x7f9   : > { %v7506_v12 = vmax.f32 %v7280_v4, 0.0  ;;  %8505 = vmatmul.mubr.bf16.gmra.mrb[168].mxu0 %v15649_v14 }
 0x7fa   : > { %v7507_v33 = vmax.f32 %v7282_v2, 0.0  ;;  %8512 = vmatprep.mubr.bf16.mxu0 %v15663_v10 }
 0x7fb   : > { %v15709_v47 = vpack.c.bf16 %v7506_v12, %v7504_v45 }
 0x7fc   : > { %v7285_v49 = vpop.f32.mrb[64].mxu0  ;;  %v15711_v5 = vpack.c.bf16 %v7507_v33, %v7505_v7 }
 0x7fd   : > { %v7286_v62 = vadd.f32 %v7285_v49, %v15509_v20  ;;  %v7287_v63 = vpop.f32.mrb[65].mxu0 }
 0x7fe   : > { %v7288_v34 = vadd.f32 %v7287_v63, %v15512_v40  ;;  %v7289_v24 = vpop.f32.mrb[66].mxu0  ;;  %8022 = vmatprep.mubr.bf16.mxu1 %v15711_v5 }
 0x7ff   : > { %v7290_v14 = vadd.f32 %v7289_v24, %v15509_v20  ;;  %v7291_v51 = vpop.f32.mrb[67].mxu0  ;;  %8023 = vmatmul.mubr.bf16.gmra.mrb[188].mxu1 %v15709_v47  ;;  %v7508_v0 = vmax.f32 %v7286_v62, 0.0 }
 0x800   : > { %v7292_v10 = vadd.f32 %v7291_v51, %v15512_v40  ;;  %v7509_v29 = vmax.f32 %v7288_v34, 0.0 }
 0x801   : > { %v7510_v35 = vmax.f32 %v7290_v14, 0.0  ;;  %8513 = vmatmul.mubr.bf16.gmra.mrb[172].mxu0 %v15661_v42 }
 0x802   : > { %v7511_v60 = vmax.f32 %v7292_v10, 0.0  ;;  %8520 = vmatprep.mubr.bf16.mxu0 %v15675_v19 }
 0x803   : > { %v15721_v52 = vpack.c.bf16 %v7510_v35, %v7508_v0 }
 0x804   : > { %v15730_v37 = vpack.c.bf16 %v7511_v60, %v7509_v29  ;;  %v7295_v6 = vpop.f32.mrb[68].mxu0 }
 0x805   : > { %v7296_v15 = vadd.f32 %v7295_v6, %v15509_v20  ;;  %v7297_v21 = vpop.f32.mrb[69].mxu0 }
 0x806   : > { %v7298_v42 = vadd.f32 %v7297_v21, %v15512_v40  ;;  %v7299_v11 = vpop.f32.mrb[70].mxu0  ;;  %8032 = vmatprep.mubr.bf16.mxu1 %v15730_v37 }
 0x807   : > { %v7300_v19 = vadd.f32 %v7299_v11, %v15509_v20  ;;  %v7301_v38 = vpop.f32.mrb[71].mxu0  ;;  %8033 = vmatmul.mubr.bf16.gmra.mrb[192].mxu1 %v15721_v52  ;;  %v7512_v8 = vmax.f32 %v7296_v15, 0.0 }
 0x808   : > { %v7302_v18 = vadd.f32 %v7301_v38, %v15512_v40  ;;  %v7513_v1 = vmax.f32 %v7298_v42, 0.0 }
 0x809   : > { %v7514_v30 = vmax.f32 %v7300_v19, 0.0  ;;  %8521 = vmatmul.mubr.bf16.gmra.mrb[176].mxu0 %v15673_v41 }
 0x80a   : > { %v7515_v50 = vmax.f32 %v7302_v18, 0.0  ;;  %8528 = vmatprep.mubr.bf16.mxu0 %v15687_v16 }
 0x80b   : > { %v15740_v31 = vpack.c.bf16 %v7514_v30, %v7512_v8 }
 0x80c   : > { %v15742_v61 = vpack.c.bf16 %v7515_v50, %v7513_v1  ;;  %v7305_v46 = vpop.f32.mrb[72].mxu0 }
 0x80d   : > { %v7306_v23 = vadd.f32 %v7305_v46, %v15509_v20  ;;  %v7307_v25 = vpop.f32.mrb[73].mxu0 }
 0x80e   : > { %v7308_v54 = vadd.f32 %v7307_v25, %v15512_v40  ;;  %v7309_v48 = vpop.f32.mrb[74].mxu0  ;;  %8042 = vmatprep.mubr.bf16.mxu1 %v15742_v61 }
 0x80f   : > { %v7310_v56 = vadd.f32 %v7309_v48, %v15509_v20  ;;  %v7311_v41 = vpop.f32.mrb[75].mxu0  ;;  %8043 = vmatmul.mubr.bf16.gmra.mrb[196].mxu1 %v15740_v31  ;;  %v7516_v57 = vmax.f32 %v7306_v23, 0.0 }
 0x810   : > { %v7312_v16 = vadd.f32 %v7311_v41, %v15512_v40  ;;  %v7517_v59 = vmax.f32 %v7308_v54, 0.0 }
 0x811   : > { %v7518_v9 = vmax.f32 %v7310_v56, 0.0  ;;  %8529 = vmatmul.mubr.bf16.gmra.mrb[180].mxu0 %v15685_v13 }
 0x812   : > { %v7519_v58 = vmax.f32 %v7312_v16, 0.0  ;;  %8536 = vmatprep.mubr.bf16.mxu0 %v15699_v32 }
 0x813   : > { %v15752_v55 = vpack.c.bf16 %v7518_v9, %v7516_v57 }
 0x814   : > { %v15754_v53 = vpack.c.bf16 %v7519_v58, %v7517_v59  ;;  %v7315_v22 = vpop.f32.mrb[76].mxu0 }
 0x815   : > { %v7316_v44 = vadd.f32 %v7315_v22, %v15509_v20  ;;  %v7317_v27 = vpop.f32.mrb[77].mxu0 }
 0x816   : > { %v7318_v43 = vadd.f32 %v7317_v27, %v15512_v40  ;;  %v7319_v17 = vpop.f32.mrb[78].mxu0  ;;  %8052 = vmatprep.mubr.bf16.mxu1 %v15754_v53 }
 0x817   : > { %v7320_v4 = vadd.f32 %v7319_v17, %v15509_v20  ;;  %v7321_v13 = vpop.f32.mrb[79].mxu0  ;;  %8053 = vmatmul.mubr.bf16.gmra.mrb[200].mxu1 %v15752_v55  ;;  %v7520_v39 = vmax.f32 %v7316_v44, 0.0 }
 0x818   : > { %v7322_v32 = vadd.f32 %v7321_v13, %v15512_v40  ;;  %v7521_v45 = vmax.f32 %v7318_v43, 0.0 }
 0x819   : > { %v7522_v2 = vmax.f32 %v7320_v4, 0.0  ;;  %8537 = vmatmul.mubr.bf16.gmra.mrb[184].mxu0 %v15697_v36 }
 0x81a   : > { %v7523_v12 = vmax.f32 %v7322_v32, 0.0  ;;  %8544 = vmatprep.mubr.bf16.mxu0 %v15711_v5 }
 0x81b   : > { %v15764_v7 = vpack.c.bf16 %v7522_v2, %v7520_v39 }
 0x81c   : > { %v15766_v33 = vpack.c.bf16 %v7523_v12, %v7521_v45  ;;  %v7325_v49 = vpop.f32.mrb[80].mxu0 }
 0x81d   : > { %v7326_v62 = vadd.f32 %v7325_v49, %v15509_v20  ;;  %v7327_v63 = vpop.f32.mrb[81].mxu0 }
 0x81e   : > { %v7328_v34 = vadd.f32 %v7327_v63, %v15512_v40  ;;  %v7329_v24 = vpop.f32.mrb[82].mxu0  ;;  %8062 = vmatprep.mubr.bf16.mxu1 %v15766_v33 }
 0x81f   : > { %v7330_v14 = vadd.f32 %v7329_v24, %v15509_v20  ;;  %v7331_v36 = vpop.f32.mrb[83].mxu0  ;;  %8063 = vmatmul.mubr.bf16.gmra.mrb[204].mxu1 %v15764_v7  ;;  %v7524_v51 = vmax.f32 %v7326_v62, 0.0 }
 0x820   : > { %v7332_v5 = vadd.f32 %v7331_v36, %v15512_v40  ;;  %v7525_v0 = vmax.f32 %v7328_v34, 0.0 }
 0x821   : > { %v7526_v10 = vmax.f32 %v7330_v14, 0.0  ;;  %8545 = vmatmul.mubr.bf16.gmra.mrb[188].mxu0 %v15709_v47 }
 0x822   : > { %v7527_v35 = vmax.f32 %v7332_v5, 0.0  ;;  %8552 = vmatprep.mubr.bf16.mxu0 %v15730_v37 }
 0x823   : > { %v15776_v29 = vpack.c.bf16 %v7526_v10, %v7524_v51 }
 0x824   : > { %v15778_v60 = vpack.c.bf16 %v7527_v35, %v7525_v0  ;;  %v7335_v6 = vpop.f32.mrb[84].mxu0 }
 0x825   : > { %v7336_v15 = vadd.f32 %v7335_v6, %v15509_v20  ;;  %v7337_v21 = vpop.f32.mrb[85].mxu0 }
 0x826   : > { %v7338_v42 = vadd.f32 %v7337_v21, %v15512_v40  ;;  %v7339_v11 = vpop.f32.mrb[86].mxu0  ;;  %8072 = vmatprep.mubr.bf16.mxu1 %v15778_v60 }
 0x827   : > { %v7340_v19 = vadd.f32 %v7339_v11, %v15509_v20  ;;  %v7341_v47 = vpop.f32.mrb[87].mxu0  ;;  %8073 = vmatmul.mubr.bf16.gmra.mrb[208].mxu1 %v15776_v29  ;;  %v7528_v38 = vmax.f32 %v7336_v15, 0.0 }
 0x828   : > { %v7342_v37 = vadd.f32 %v7341_v47, %v15512_v40  ;;  %v7529_v8 = vmax.f32 %v7338_v42, 0.0 }
 0x829   : > { %v7530_v18 = vmax.f32 %v7340_v19, 0.0  ;;  %8553 = vmatmul.mubr.bf16.gmra.mrb[192].mxu0 %v15721_v52 }
 0x82a   : > { %v7531_v30 = vmax.f32 %v7342_v37, 0.0  ;;  %8560 = vmatprep.mubr.bf16.mxu0 %v15742_v61 }
 0x82b   : > { %v15788_v1 = vpack.c.bf16 %v7530_v18, %v7528_v38 }
 0x82c   : > { %v15790_v50 = vpack.c.bf16 %v7531_v30, %v7529_v8  ;;  %v7345_v46 = vpop.f32.mrb[88].mxu0 }
 0x82d   : > { %v7346_v23 = vadd.f32 %v7345_v46, %v15509_v20  ;;  %v7347_v25 = vpop.f32.mrb[89].mxu0 }
 0x82e   : > { %v7348_v54 = vadd.f32 %v7347_v25, %v15512_v40  ;;  %v7349_v48 = vpop.f32.mrb[90].mxu0  ;;  %8082 = vmatprep.mubr.bf16.mxu1 %v15790_v50 }
 0x82f   : > { %v7350_v56 = vadd.f32 %v7349_v48, %v15509_v20  ;;  %v7351_v52 = vpop.f32.mrb[91].mxu0  ;;  %8083 = vmatmul.mubr.bf16.gmra.mrb[212].mxu1 %v15788_v1  ;;  %v7532_v41 = vmax.f32 %v7346_v23, 0.0 }
 0x830   : > { %v7352_v61 = vadd.f32 %v7351_v52, %v15512_v40  ;;  %v7533_v57 = vmax.f32 %v7348_v54, 0.0 }
 0x831   : > { %v7534_v16 = vmax.f32 %v7350_v56, 0.0  ;;  %8561 = vmatmul.mubr.bf16.gmra.mrb[196].mxu0 %v15740_v31 }
 0x832   : > { %v7535_v9 = vmax.f32 %v7352_v61, 0.0  ;;  %8568 = vmatprep.mubr.bf16.mxu0 %v15754_v53 }
 0x833   : > { %v15800_v59 = vpack.c.bf16 %v7534_v16, %v7532_v41 }
 0x834   : > { %v15802_v58 = vpack.c.bf16 %v7535_v9, %v7533_v57  ;;  %v7355_v22 = vpop.f32.mrb[92].mxu0 }
 0x835   : > { %v7356_v44 = vadd.f32 %v7355_v22, %v15509_v20  ;;  %v7357_v27 = vpop.f32.mrb[93].mxu0 }
 0x836   : > { %v7358_v43 = vadd.f32 %v7357_v27, %v15512_v40  ;;  %v7359_v17 = vpop.f32.mrb[94].mxu0  ;;  %8092 = vmatprep.mubr.bf16.mxu1 %v15802_v58 }
 0x837   : > { %v7360_v4 = vadd.f32 %v7359_v17, %v15509_v20  ;;  %v7361_v31 = vpop.f32.mrb[95].mxu0  ;;  %8093 = vmatmul.mubr.bf16.gmra.mrb[216].mxu1 %v15800_v59  ;;  %v7536_v13 = vmax.f32 %v7356_v44, 0.0 }
 0x838   : > { %v7362_v53 = vadd.f32 %v7361_v31, %v15512_v40  ;;  %v7537_v39 = vmax.f32 %v7358_v43, 0.0 }
 0x839   : > { %v7538_v32 = vmax.f32 %v7360_v4, 0.0  ;;  %8569 = vmatmul.mubr.bf16.gmra.mrb[200].mxu0 %v15752_v55 }
 0x83a   : > { %v7539_v2 = vmax.f32 %v7362_v53, 0.0  ;;  %8576 = vmatprep.mubr.bf16.mxu0 %v15766_v33 }
 0x83b   : > { %v15812_v45 = vpack.c.bf16 %v7538_v32, %v7536_v13 }
 0x83c   : > { %v15814_v12 = vpack.c.bf16 %v7539_v2, %v7537_v39  ;;  %v7365_v49 = vpop.f32.mrb[96].mxu0 }
 0x83d   : > { %v7366_v62 = vadd.f32 %v7365_v49, %v15509_v20  ;;  %v7367_v63 = vpop.f32.mrb[97].mxu0 }
 0x83e   : > { %v7368_v34 = vadd.f32 %v7367_v63, %v15512_v40  ;;  %v7369_v24 = vpop.f32.mrb[98].mxu0  ;;  %8102 = vmatprep.mubr.bf16.mxu1 %v15814_v12 }
 0x83f   : > { %v7370_v14 = vadd.f32 %v7369_v24, %v15509_v20  ;;  %v7371_v55 = vpop.f32.mrb[99].mxu0  ;;  %8103 = vmatmul.mubr.bf16.gmra.mrb[220].mxu1 %v15812_v45  ;;  %v7540_v36 = vmax.f32 %v7366_v62, 0.0 }
 0x840   : > { %v7372_v33 = vadd.f32 %v7371_v55, %v15512_v40  ;;  %v7541_v51 = vmax.f32 %v7368_v34, 0.0 }
 0x841   : > { %v7542_v5 = vmax.f32 %v7370_v14, 0.0  ;;  %8577 = vmatmul.mubr.bf16.gmra.mrb[204].mxu0 %v15764_v7 }
 0x842   : > { %v7543_v10 = vmax.f32 %v7372_v33, 0.0  ;;  %8584 = vmatprep.mubr.bf16.mxu0 %v15778_v60 }
 0x843   : > { %v15824_v0 = vpack.c.bf16 %v7542_v5, %v7540_v36 }
 0x844   : > { %v15826_v35 = vpack.c.bf16 %v7543_v10, %v7541_v51  ;;  %v7375_v6 = vpop.f32.mrb[100].mxu0 }
 0x845   : > { %v7376_v15 = vadd.f32 %v7375_v6, %v15509_v20  ;;  %v7377_v21 = vpop.f32.mrb[101].mxu0 }
 0x846   : > { %v7378_v42 = vadd.f32 %v7377_v21, %v15512_v40  ;;  %v7379_v11 = vpop.f32.mrb[102].mxu0  ;;  %8112 = vmatprep.mubr.bf16.mxu1 %v15826_v35 }
 0x847   : > { %v7380_v19 = vadd.f32 %v7379_v11, %v15509_v20  ;;  %v7381_v7 = vpop.f32.mrb[103].mxu0  ;;  %8113 = vmatmul.mubr.bf16.gmra.mrb[224].mxu1 %v15824_v0  ;;  %v7544_v47 = vmax.f32 %v7376_v15, 0.0 }
 0x848   : > { %v7382_v60 = vadd.f32 %v7381_v7, %v15512_v40  ;;  %v7545_v38 = vmax.f32 %v7378_v42, 0.0 }
 0x849   : > { %v7546_v37 = vmax.f32 %v7380_v19, 0.0  ;;  %8585 = vmatmul.mubr.bf16.gmra.mrb[208].mxu0 %v15776_v29 }
 0x84a   : > { %v7547_v18 = vmax.f32 %v7382_v60, 0.0  ;;  %8592 = vmatprep.mubr.bf16.mxu0 %v15790_v50 }
 0x84b   : > { %v15836_v8 = vpack.c.bf16 %v7546_v37, %v7544_v47 }
 0x84c   : > { %v15838_v30 = vpack.c.bf16 %v7547_v18, %v7545_v38  ;;  %v7385_v46 = vpop.f32.mrb[104].mxu0 }
 0x84d   : > { %v7386_v23 = vadd.f32 %v7385_v46, %v15509_v20  ;;  %v7387_v25 = vpop.f32.mrb[105].mxu0 }
 0x84e   : > { %v7388_v54 = vadd.f32 %v7387_v25, %v15512_v40  ;;  %v7389_v48 = vpop.f32.mrb[106].mxu0  ;;  %8122 = vmatprep.mubr.bf16.mxu1 %v15838_v30 }
 0x84f   : > { %v7390_v56 = vadd.f32 %v7389_v48, %v15509_v20  ;;  %v7391_v29 = vpop.f32.mrb[107].mxu0  ;;  %8123 = vmatmul.mubr.bf16.gmra.mrb[228].mxu1 %v15836_v8  ;;  %v7548_v52 = vmax.f32 %v7386_v23, 0.0 }
 0x850   : > { %v7392_v50 = vadd.f32 %v7391_v29, %v15512_v40  ;;  %v7549_v41 = vmax.f32 %v7388_v54, 0.0 }
 0x851   : > { %v7550_v61 = vmax.f32 %v7390_v56, 0.0  ;;  %8593 = vmatmul.mubr.bf16.gmra.mrb[212].mxu0 %v15788_v1  ;;  %v7668_v1 = vld [vmem:[%s17521_s20] sm:$0x3] }
 0x852   : > { %v7551_v16 = vmax.f32 %v7392_v50, 0.0  ;;  %8600 = vmatprep.mubr.bf16.mxu0 %v15802_v58  ;;  %v15863_v32 = vrot.slane %v7668_v1, %v13371_v26  ;;  %v15867_v62 = vrot.slane %v7668_v1, %v13376_v28 }
 0x853   : > { %v15848_v57 = vpack.c.bf16 %v7550_v61, %v7548_v52 }
 0x854   : > { %v15850_v9 = vpack.c.bf16 %v7551_v16, %v7549_v41  ;;  %v7395_v22 = vpop.f32.mrb[108].mxu0 }
 0x855   : > { %v7396_v44 = vadd.f32 %v7395_v22, %v15509_v20  ;;  %v7397_v27 = vpop.f32.mrb[109].mxu0 }
 0x856   : > { %v7398_v43 = vadd.f32 %v7397_v27, %v15512_v40  ;;  %v7399_v17 = vpop.f32.mrb[110].mxu0  ;;  %8132 = vmatprep.mubr.bf16.mxu1 %v15850_v9 }
 0x857   : > { %v7400_v4 = vadd.f32 %v7399_v17, %v15509_v20  ;;  %v7401_v58 = vpop.f32.mrb[111].mxu0  ;;  %8133 = vmatmul.mubr.bf16.gmra.mrb[232].mxu1 %v15848_v57  ;;  %v7552_v53 = vmax.f32 %v7396_v44, 0.0 }
 0x858   : > { %v7402_v31 = vadd.f32 %v7401_v58, %v15512_v40  ;;  %v7553_v39 = vmax.f32 %v7398_v43, 0.0 }
 0x859   : > { %v7554_v13 = vmax.f32 %v7400_v4, 0.0  ;;  %8601 = vmatmul.mubr.bf16.gmra.mrb[216].mxu0 %v15800_v59 }
 0x85a   : > { %v7555_v2 = vmax.f32 %v7402_v31, 0.0  ;;  %v7874_v49 = vpop.f32.mrb[128].mxu1  ;;  %8608 = vmatprep.mubr.bf16.mxu0 %v15814_v12 }
 0x85b   : > { %v15869_v63 = vpack.c.bf16 %v7554_v13, %v7552_v53  ;;  %v7876_v34 = vpop.f32.mrb[129].mxu1  ;;  %v15874_v59 = vadd.f32 %v7874_v49, %v15863_v32 }
 0x85c   : > { %v15871_v24 = vpack.c.bf16 %v7555_v2, %v7553_v39  ;;  %v7405_v14 = vpop.f32.mrb[112].mxu0  ;;  %v7878_v55 = vpop.f32.mrb[130].mxu1  ;;  %v15881_v28 = vadd.f32 %v7876_v34, %v15867_v62 }
 0x85d   : > { %v7406_v26 = vadd.f32 %v7405_v14, %v15509_v20  ;;  %v15878_v33 = vadd.f32 %v7878_v55, %v15863_v32  ;;  %v7407_v36 = vpop.f32.mrb[113].mxu0  ;;  %v7880_v12 = vpop.f32.mrb[131].mxu1 }
 0x85e   : > { %v7408_v5 = vadd.f32 %v7407_v36, %v15512_v40  ;;  %v15885_v51 = vadd.f32 %v7880_v12, %v15867_v62  ;;  %v7409_v10 = vpop.f32.mrb[114].mxu0  ;;  %8142 = vmatprep.mubr.bf16.mxu1 %v15871_v24 }
 0x85f   : > { %v7410_v15 = vadd.f32 %v7409_v10, %v15509_v20  ;;  %v7411_v21 = vpop.f32.mrb[115].mxu0  ;;  %8143 = vmatmul.mubr.bf16.gmra.mrb[236].mxu1 %v15869_v63  ;;  %v7556_v19 = vmax.f32 %v7406_v26, 0.0 }
 0x860   : > { %v7412_v42 = vadd.f32 %v7411_v21, %v15512_v40  ;;  %v7557_v60 = vmax.f32 %v7408_v5, 0.0 }
 0x861   : > { %v7558_v7 = vmax.f32 %v7410_v15, 0.0  ;;  %8609 = vmatmul.mubr.bf16.gmra.mrb[220].mxu0 %v15812_v45 }
 0x862   : > { %v7559_v47 = vmax.f32 %v7412_v42, 0.0  ;;  %v7884_v37 = vpop.f32.mrb[132].mxu1  ;;  %8616 = vmatprep.mubr.bf16.mxu0 %v15826_v35 }
 0x863   : > { %v15897_v38 = vpack.c.bf16 %v7558_v7, %v7556_v19  ;;  %v7886_v18 = vpop.f32.mrb[133].mxu1  ;;  %v15902_v54 = vadd.f32 %v7884_v37, %v15863_v32 }
 0x864   : > { %v15899_v46 = vpack.c.bf16 %v7559_v47, %v7557_v60  ;;  %v7415_v23 = vpop.f32.mrb[116].mxu0  ;;  %v7888_v25 = vpop.f32.mrb[134].mxu1  ;;  %v15909_v50 = vadd.f32 %v7886_v18, %v15867_v62 }
 0x865   : > { %v7416_v48 = vadd.f32 %v7415_v23, %v15509_v20  ;;  %v15906_v56 = vadd.f32 %v7888_v25, %v15863_v32  ;;  %v7417_v45 = vpop.f32.mrb[117].mxu0  ;;  %v7890_v29 = vpop.f32.mrb[135].mxu1 }
 0x866   : > { %v7418_v35 = vadd.f32 %v7417_v45, %v15512_v40  ;;  %v15913_v52 = vadd.f32 %v7890_v29, %v15867_v62  ;;  %v7419_v61 = vpop.f32.mrb[118].mxu0  ;;  %8152 = vmatprep.mubr.bf16.mxu1 %v15899_v46 }
 0x867   : > { %v7420_v16 = vadd.f32 %v7419_v61, %v15509_v20  ;;  %v7421_v22 = vpop.f32.mrb[119].mxu0  ;;  %8153 = vmatmul.mubr.bf16.gmra.mrb[240].mxu1 %v15897_v38  ;;  %v7560_v43 = vmax.f32 %v7416_v48, 0.0 }
 0x868   : > { %v7422_v44 = vadd.f32 %v7421_v22, %v15512_v40  ;;  %v7561_v1 = vmax.f32 %v7418_v35, 0.0 }
 0x869   : > { %v7562_v17 = vmax.f32 %v7420_v16, 0.0  ;;  %8617 = vmatmul.mubr.bf16.gmra.mrb[224].mxu0 %v15824_v0 }
 0x86a   : > { %v7563_v4 = vmax.f32 %v7422_v44, 0.0  ;;  %v7894_v58 = vpop.f32.mrb[136].mxu1  ;;  %8624 = vmatprep.mubr.bf16.mxu0 %v15838_v30 }
 0x86b   : > { %v15925_v31 = vpack.c.bf16 %v7562_v17, %v7560_v43  ;;  %v7896_v53 = vpop.f32.mrb[137].mxu1  ;;  %v15930_v49 = vadd.f32 %v7894_v58, %v15863_v32 }
 0x86c   : > { %v15927_v13 = vpack.c.bf16 %v7563_v4, %v7561_v1  ;;  %v7425_v39 = vpop.f32.mrb[120].mxu0  ;;  %v7898_v2 = vpop.f32.mrb[138].mxu1  ;;  %v15937_v26 = vadd.f32 %v7896_v53, %v15867_v62 }
 0x86d   : > { %v7426_v34 = vadd.f32 %v7425_v39, %v15509_v20  ;;  %v15934_v14 = vadd.f32 %v7898_v2, %v15863_v32  ;;  %v7427_v0 = vpop.f32.mrb[121].mxu0  ;;  %v7900_v55 = vpop.f32.mrb[139].mxu1 }
 0x86e   : > { %v7428_v30 = vadd.f32 %v7427_v0, %v15512_v40  ;;  %v15941_v36 = vadd.f32 %v7900_v55, %v15867_v62  ;;  %v7429_v12 = vpop.f32.mrb[122].mxu0  ;;  %8162 = vmatprep.mubr.bf16.mxu1 %v15927_v13 }
 0x86f   : > { %v7430_v10 = vadd.f32 %v7429_v12, %v15509_v20  ;;  %v7431_v15 = vpop.f32.mrb[123].mxu0  ;;  %8163 = vmatmul.mubr.bf16.gmra.mrb[244].mxu1 %v15925_v31  ;;  %v7564_v19 = vmax.f32 %v7426_v34, 0.0 }
 0x870   : > { %v7432_v21 = vadd.f32 %v7431_v15, %v15512_v40  ;;  %v7565_v60 = vmax.f32 %v7428_v30, 0.0  ;;  %v15981_v30 = vld [vmem:[#allocation2] ss:$0 sm:$0xff] }
 0x871   : > { %v7566_v7 = vmax.f32 %v7430_v10, 0.0  ;;  %8625 = vmatmul.mubr.bf16.gmra.mrb[228].mxu0 %v15836_v8 }
 0x872   : > { %v7567_v47 = vmax.f32 %v7432_v21, 0.0  ;;  %v7904_v37 = vpop.f32.mrb[140].mxu1  ;;  %8632 = vmatprep.mubr.bf16.mxu0 %v15850_v9  ;;  %v12593_v21 = vld [vmem:[%s15728_s0] sm:$0xff]  }
 0x873   : > { %v15953_v18 = vpack.c.bf16 %v7566_v7, %v7564_v19  ;;  %v7906_v23 = vpop.f32.mrb[141].mxu1  ;;  %v15958_v29 = vadd.f32 %v7904_v37, %v15863_v32 }
 0x874   : > { %v15955_v25 = vpack.c.bf16 %v7567_v47, %v7565_v60  ;;  %v7435_v48 = vpop.f32.mrb[124].mxu0  ;;  %v7908_v45 = vpop.f32.mrb[142].mxu1  ;;  %v15965_v22 = vadd.f32 %v7906_v23, %v15867_v62 }
 0x875   : > { %v7436_v35 = vadd.f32 %v7435_v48, %v15509_v20  ;;  %v15962_v61 = vadd.f32 %v7908_v45, %v15863_v32  ;;  %v7437_v8 = vpop.f32.mrb[125].mxu0  ;;  %v7910_v16 = vpop.f32.mrb[143].mxu1 }
 0x876   : > { %v7438_v9 = vadd.f32 %v7437_v8, %v15512_v40  ;;  %v15969_v44 = vadd.f32 %v7910_v16, %v15867_v62  ;;  %v7439_v43 = vpop.f32.mrb[126].mxu0  ;;  %8172 = vmatprep.mubr.bf16.mxu1 %v15955_v25 }
 0x877   : > { %v7440_v1 = vadd.f32 %v7439_v43, %v15509_v20  ;;  %v7441_v4 = vpop.f32.mrb[127].mxu0  ;;  %8173 = vmatmul.mubr.bf16.gmra.mrb[248].mxu1 %v15953_v18  ;;  %v7568_v39 = vmax.f32 %v7436_v35, 0.0 }
 0x878   : > { %v7442_v58 = vadd.f32 %v7441_v4, %v15512_v40  ;;  %v7569_v34 = vmax.f32 %v7438_v9, 0.0  ;;  %v12594_v4 = vld [vmem:[%s15728_s0 + $0x8] sm:$0xff]  }
 0x879   : > { %v7570_v2 = vmax.f32 %v7440_v1, 0.0  ;;  %8633 = vmatmul.mubr.bf16.gmra.mrb[232].mxu0 %v15848_v57 }
 0x87a   : > { %v7571_v0 = vmax.f32 %v7442_v58, 0.0  ;;  %v7914_v55 = vpop.f32.mrb[144].mxu1  ;;  %8640 = vmatprep.mubr.bf16.mxu0 %v15871_v24 }
 0x87b   : > { %v15983_v20 = vpack.c.bf16 %v7570_v2, %v7568_v39  ;;  %v7916_v12 = vpop.f32.mrb[145].mxu1  ;;  %v15989_v19 = vadd.f32 %v7914_v55, %v15863_v32  ;;  %v12595_v2 = vld [vmem:[%s17524_s23] sm:$0xff]  }
 0x87c   : > { %v15985_v10 = vpack.c.bf16 %v7571_v0, %v7569_v34  ;;  %v7918_v40 = vpop.f32.mrb[146].mxu1  ;;  %v8426_v15 = vpop.f32.mrb[128].mxu0  ;;  %v15996_v47 = vadd.f32 %v7916_v12, %v15867_v62  ;;  %v12596_v34 = vld [vmem:[%s15728_s0 + $0x10] sm:$0xff]  }
 0x87d   : > { %v15992_v57 = vadd.f32 %v7918_v40, %v15863_v32  ;;  %v8427_v7 = vadd.f32 %v15981_v30, %v8426_v15  ;;  %v7920_v60 = vpop.f32.mrb[147].mxu1  ;;  %v8428_v24 = vpop.f32.mrb[129].mxu0 }
 0x87e   : > { %v15999_v37 = vadd.f32 %v7920_v60, %v15867_v62  ;;  %8182 = vmatprep.mubr.bf16.mxu1 %v15985_v10  ;;  %v8429_v23 = vpop.f32.mrb[130].mxu0 }
 0x87f   : > { %v10571_v45 = vmax.f32 %v8427_v7, 0.0  ;;  %v8430_v35 = vadd.f32 %v15981_v30, %v8429_v23  ;;  %8183 = vmatmul.mubr.bf16.gmra.mrb[252].mxu1 %v15983_v20  ;;  %v8431_v8 = vpop.f32.mrb[131].mxu0 }
 0x880   : > { %11853 = vmatprep.mubr.msk.bf16.mxu1 %vm8889_vm1, %v12593_v21 }
 0x881   : > { %8641 = vmatmul.mubr.bf16.gmra.mrb[236].mxu0 %v15869_v63  ;;  %10699 = vrot.lane.b32.xlu0 %v10571_v45, %s12948_s6  ;;  %v10572_v43 = vmax.f32 %v8430_v35, 0.0  ;;  %v12598_v45 = vld [vmem:[%s17524_s23 + $0x8] sm:$0xff]  }
 0x882   : > { %v7924_v9 = vpop.f32.mrb[148].mxu1  ;;  %8648 = vmatprep.mubr.bf16.mxu0 %v15899_v46 }
 0x883   : > { %v7926_v1 = vpop.f32.mrb[149].mxu1  ;;  %v16018_v0 = vadd.f32 %v7924_v9, %v15863_v32 }
 0x884   : > { %v7928_v58 = vpop.f32.mrb[150].mxu1  ;;  %v8434_v39 = vpop.f32.mrb[132].mxu0  ;;  %v16026_v40 = vadd.f32 %v7926_v1, %v15867_v62  ;;  %v12597_v1 = vld [vmem:[%s15728_s0 + $0x18] sm:$0xff]  }
 0x885   : > { %v16021_v63 = vadd.f32 %v7928_v58, %v15863_v32  ;;  %v8435_v55 = vadd.f32 %v15981_v30, %v8434_v39  ;;  %v7930_v12 = vpop.f32.mrb[151].mxu1  ;;  %v8436_v46 = vpop.f32.mrb[133].mxu0  ;;  %10701 = vrot.lane.b32.xlu0 %v10572_v43, %s12948_s6  ;;  %v12599_v39 = vld [vmem:[%s15728_s0 + $0x20] sm:$0xff]  }
 0x886   : > { %v16029_v15 = vadd.f32 %v7930_v12, %v15867_v62  ;;  %v8437_v21 = vpop.f32.mrb[134].mxu0 }
 0x887   : > { %v10573_v60 = vmax.f32 %v8435_v55, 0.0  ;;  %v8438_v24 = vadd.f32 %v15981_v30, %v8437_v21  ;;  %v8439_v23 = vpop.f32.mrb[135].mxu0  ;;  %11854 = vmatmul.mubr.msk.bf16.vlgmr.msra.gmra.mrb[0].mxu1 %vm8889_vm1, %v12594_v4 }
 0x888   : > { %9372 = vmatpush1.bf16.msra.mxu1 %v12595_v2  ;;  %11857 = vmatprep.mubr.msk.bf16.mxu1 %vm8889_vm1, %v12596_v34  ;;  %v12601_v2 = vld [vmem:[%s17524_s23 + $0x10] sm:$0xff]  }
 0x889   : > { %8649 = vmatmul.mubr.bf16.gmra.mrb[240].mxu0 %v15897_v38  ;;  %10703 = vrot.lane.b32.xlu1 %v10573_v60, %s12948_s6  ;;  %v10574_v9 = vmax.f32 %v8438_v24, 0.0 }
 0x88a   : > { %v7934_v8 = vpop.f32.mrb[152].mxu1  ;;  %8656 = vmatprep.mubr.bf16.mxu0 %v15927_v13  ;;  %9373 = vmatprep.subr.bf16.mxu1 %v17539_v3 }
 0x88b   : > { %v7936_v43 = vpop.f32.mrb[153].mxu1  ;;  %v16051_v38 = vadd.f32 %v7934_v8, %v15863_v32 }
 0x88c   : > { %v7938_v4 = vpop.f32.mrb[154].mxu1  ;;  %v8442_v58 = vpop.f32.mrb[136].mxu0  ;;  %9374 = vmatpush1.bf16.msra.mxu1 %v12598_v45  ;;  %v16060_v46 = vadd.f32 %v7936_v43, %v15867_v62 }
 0x88d   : > { %v16054_v34 = vadd.f32 %v7938_v4, %v15863_v32  ;;  %v8443_v13 = vadd.f32 %v15981_v30, %v8442_v58  ;;  %v7940_v55 = vpop.f32.mrb[155].mxu1  ;;  %v8444_v12 = vpop.f32.mrb[137].mxu0  ;;  %10705 = vrot.lane.b32.xlu1 %v10574_v9, %s12948_s6  ;;  %9375 = vmatprep.subr.bf16.mxu1 %v17539_v3  ;;  %v12604_v9 = vld [vmem:[%s17524_s23 + $0x18] sm:$0xff]  }
 0x88e   : > { %v16063_v21 = vadd.f32 %v7940_v55, %v15867_v62  ;;  %v8445_v60 = vpop.f32.mrb[138].mxu0  ;;  %v12602_v55 = vld [vmem:[%s15728_s0 + $0x30] sm:$0xff]   ;;  %v12607_v12 = vld [vmem:[%s17524_s23 + $0x20] sm:$0xff]  }
 0x88f   : > { %v10575_v23 = vmax.f32 %v8443_v13, 0.0  ;;  %v8446_v45 = vadd.f32 %v15981_v30, %v8445_v60  ;;  %v8447_v8 = vpop.f32.mrb[139].mxu0  ;;  %11858 = vmatmul.mubr.msk.bf16.gmra.mrb[4].mxu1 %vm8889_vm1, %v12597_v1 }
 0x890   : > { %11861 = vmatprep.mubr.msk.bf16.mxu1 %vm8889_vm1, %v12599_v39  ;;  %9376 = vmatpush1.bf16.msra.mxu1 %v12601_v2  ;;  %v12600_v39 = vld [vmem:[%s15728_s0 + $0x28] sm:$0xff]  }
 0x891   : > { %v10576_v4 = vmax.f32 %v8446_v45, 0.0  ;;  %8657 = vmatmul.mubr.bf16.gmra.mrb[244].mxu0 %v15925_v31  ;;  %10707 = vrot.lane.b32.xlu0 %v10575_v23, %s12948_s6 }
 0x892   : > { %v7944_v58 = vpop.f32.mrb[156].mxu1  ;;  %8664 = vmatprep.mubr.bf16.mxu0 %v15955_v25  ;;  %9377 = vmatprep.subr.bf16.mxu1 %v17539_v3 }
 0x893   : > { %v7946_v1 = vpop.f32.mrb[157].mxu1  ;;  %10709 = vrot.lane.b32.xlu1 %v10576_v4, %s12948_s6  ;;  %v16086_v31 = vadd.f32 %v7944_v58, %v15863_v32 }
 0x894   : > { %v7948_v2 = vpop.f32.mrb[158].mxu1  ;;  %v8450_v13 = vpop.f32.mrb[140].mxu0  ;;  %9378 = vmatpush1.bf16.msra.mxu1 %v12604_v9  ;;  %v16094_v8 = vadd.f32 %v7946_v1, %v15867_v62  ;;  %v12610_v1 = vld [vmem:[%s17524_s23 + $0x28] sm:$0xff]  }
 0x895   : > { %v16089_v60 = vadd.f32 %v7948_v2, %v15863_v32  ;;  %v8451_v25 = vadd.f32 %v15981_v30, %v8450_v13  ;;  %v7950_v23 = vpop.f32.mrb[159].mxu1  ;;  %v8452_v45 = vpop.f32.mrb[141].mxu0  ;;  %9379 = vmatprep.subr.bf16.mxu1 %v17539_v3 }
 0x896   : > { %v16097_v9 = vadd.f32 %v7950_v23, %v15867_v62  ;;  %v8453_v4 = vpop.f32.mrb[142].mxu0  ;;  %v12605_v45 = vld [vmem:[%s15728_s0 + $0x40] sm:$0xff]  }
 0x897   : > { %v10577_v24 = vmax.f32 %v8451_v25, 0.0  ;;  %v8454_v2 = vadd.f32 %v15981_v30, %v8453_v4  ;;  %v8455_v43 = vpop.f32.mrb[143].mxu0  ;;  %11862 = vmatmul.mubr.msk.bf16.gmra.mrb[8].mxu1 %vm8889_vm1, %v12600_v39  ;;  %v12603_v39 = vld [vmem:[%s15728_s0 + $0x38] sm:$0xff]   ;;  %v12613_v4 = vld [vmem:[%s17524_s23 + $0x30] sm:$0xff]  }
 0x898   : > { %11865 = vmatprep.mubr.msk.bf16.mxu1 %vm8889_vm1, %v12602_v55  ;;  %9380 = vmatpush1.bf16.msra.mxu1 %v12607_v12 }
 0x899   : > { %v10578_v23 = vmax.f32 %v8454_v2, 0.0  ;;  %8665 = vmatmul.mubr.bf16.gmra.mrb[248].mxu0 %v15953_v18  ;;  %10711 = vrot.lane.b32.xlu0 %v10577_v24, %s12948_s6 }
 0x89a   : > { %v7954_v25 = vpop.f32.mrb[160].mxu1  ;;  %8672 = vmatprep.mubr.bf16.mxu0 %v15985_v10  ;;  %9381 = vmatprep.subr.bf16.mxu1 %v17539_v3 }
 0x89b   : > { %v7956_v43 = vpop.f32.mrb[161].mxu1  ;;  %10713 = vrot.lane.b32.xlu1 %v10578_v23, %s12948_s6  ;;  %v16120_v18 = vadd.f32 %v7954_v25, %v15863_v32 }
 0x89c   : > { %v7958_v55 = vpop.f32.mrb[162].mxu1  ;;  %v8458_v12 = vpop.f32.mrb[144].mxu0  ;;  %9382 = vmatpush1.bf16.msra.mxu1 %v12610_v1  ;;  %v16128_v23 = vadd.f32 %v7956_v43, %v15867_v62 }
 0x89d   : > { %v16123_v24 = vadd.f32 %v7958_v55, %v15863_v32  ;;  %v8459_v10 = vadd.f32 %v15981_v30, %v8458_v12  ;;  %v7960_v2 = vpop.f32.mrb[163].mxu1  ;;  %v8460_v58 = vpop.f32.mrb[145].mxu0  ;;  %9383 = vmatprep.subr.bf16.mxu1 %v17539_v3 }
 0x89e   : > { %v16131_v1 = vadd.f32 %v7960_v2, %v15867_v62  ;;  %v8461_v13 = vpop.f32.mrb[146].mxu0  ;;  %v12616_v58 = vld [vmem:[%s17524_s23 + $0x38] sm:$0xff]   ;;  %v12619_v2 = vld [vmem:[%s17524_s23 + $0x40] sm:$0xff]  }
 0x89f   : > { %v10579_v7 = vmax.f32 %v8459_v10, 0.0  ;;  %v8462_v55 = vadd.f32 %v15981_v30, %v8461_v13  ;;  %v8463_v35 = vpop.f32.mrb[147].mxu0  ;;  %11866 = vmatmul.mubr.msk.bf16.gmra.mrb[12].mxu1 %vm8889_vm1, %v12603_v39  ;;  %v12606_v39 = vld [vmem:[%s15728_s0 + $0x48] sm:$0xff]   ;;  %v12608_v10 = vld [vmem:[%s15728_s0 + $0x50] sm:$0xff]  }
 0x8a0   : > { %11869 = vmatprep.mubr.msk.bf16.mxu1 %vm8889_vm1, %v12605_v45  ;;  %9384 = vmatpush1.bf16.msra.mxu1 %v12613_v4 }
 0x8a1   : > { %v10580_v12 = vmax.f32 %v8462_v55, 0.0  ;;  %10715 = vrot.lane.b32.xlu0 %v10579_v7, %s12948_s6  ;;  %8673 = vmatmul.mubr.bf16.gmra.mrb[252].mxu0 %v15983_v20 }
 0x8a2   : > { %v7964_v13 = vpop.f32.mrb[164].mxu1  ;;  %9385 = vmatprep.subr.bf16.mxu1 %v17539_v3 }
 0x8a3   : > { %v7966_v35 = vpop.f32.mrb[165].mxu1  ;;  %10717 = vrot.lane.b32.xlu1 %v10580_v12, %s12948_s6  ;;  %v16153_v55 = vadd.f32 %v7964_v13, %v15863_v32  ;;  %v12625_v13 = vld [vmem:[%s17524_s23 + $0x50] sm:$0xff]  }
 0x8a4   : > { %v7968_v45 = vpop.f32.mrb[166].mxu1  ;;  %v8466_v4 = vpop.f32.mrb[148].mxu0  ;;  %9386 = vmatpush1.bf16.msra.mxu1 %v12616_v58  ;;  %v16161_v12 = vadd.f32 %v7966_v35, %v15867_v62 }
 0x8a5   : > { %v16156_v20 = vadd.f32 %v7968_v45, %v15863_v32  ;;  %v8467_v7 = vadd.f32 %v15981_v30, %v8466_v4  ;;  %v7970_v25 = vpop.f32.mrb[167].mxu1  ;;  %v8468_v43 = vpop.f32.mrb[149].mxu0  ;;  %9387 = vmatprep.subr.bf16.mxu1 %v17539_v3 }
 0x8a6   : > { %v16164_v58 = vadd.f32 %v7970_v25, %v15867_v62  ;;  %v8469_v48 = vpop.f32.mrb[150].mxu0  ;;  %v12622_v25 = vld [vmem:[%s17524_s23 + $0x48] sm:$0xff]  }
 0x8a7   : > { %v10581_v16 = vmax.f32 %v8467_v7, 0.0  ;;  %v8470_v45 = vadd.f32 %v15981_v30, %v8469_v48  ;;  %v8471_v4 = vpop.f32.mrb[151].mxu0  ;;  %11870 = vmatmul.mubr.msk.bf16.gmra.mrb[16].mxu1 %vm8889_vm1, %v12606_v39  ;;  %v12609_v39 = vld [vmem:[%s15728_s0 + $0x58] sm:$0xff]  }
 0x8a8   : > { %11873 = vmatprep.mubr.msk.bf16.mxu1 %vm8889_vm1, %v12608_v10  ;;  %9388 = vmatpush1.bf16.msra.mxu1 %v12619_v2  ;;  %v12611_v2 = vld [vmem:[%s15728_s0 + $0x60] sm:$0xff]  }
 0x8a9   : > { %v10582_v35 = vmax.f32 %v8470_v45, 0.0  ;;  %10719 = vrot.lane.b32.xlu0 %v10581_v16, %s12948_s6  ;;  %9389 = vmatprep.subr.bf16.mxu1 %v17539_v3 }
 0x8aa   : > { %v7974_v48 = vpop.f32.mrb[168].mxu1 }
 0x8ab   : > { %v7976_v7 = vpop.f32.mrb[169].mxu1  ;;  %10721 = vrot.lane.b32.xlu1 %v10582_v35, %s12948_s6  ;;  %v16185_v43 = vadd.f32 %v7974_v48, %v15863_v32  ;;  %v12631_v48 = vld [vmem:[%s17524_s23 + $0x60] sm:$0xff]  }
 0x8ac   : > { %v7978_v4 = vpop.f32.mrb[170].mxu1  ;;  %v8474_v10 = vpop.f32.mrb[152].mxu0  ;;  %9390 = vmatpush1.bf16.msra.mxu1 %v12622_v25  ;;  %v16193_v35 = vadd.f32 %v7976_v7, %v15867_v62 }
 0x8ad   : > { %v16188_v16 = vadd.f32 %v7978_v4, %v15863_v32  ;;  %v8475_v45 = vadd.f32 %v15981_v30, %v8474_v10  ;;  %v7980_v17 = vpop.f32.mrb[171].mxu1  ;;  %v8476_v53 = vpop.f32.mrb[153].mxu0  ;;  %9391 = vmatprep.subr.bf16.mxu1 %v17539_v3 }
 0x8ae   : > { %v16196_v25 = vadd.f32 %v7980_v17, %v15867_v62  ;;  %v8477_v5 = vpop.f32.mrb[154].mxu0  ;;  %v12628_v17 = vld [vmem:[%s17524_s23 + $0x58] sm:$0xff]  }
 0x8af   : > { %v10583_v42 = vmax.f32 %v8475_v45, 0.0  ;;  %v8478_v4 = vadd.f32 %v15981_v30, %v8477_v5  ;;  %v8479_v10 = vpop.f32.mrb[155].mxu0  ;;  %11874 = vmatmul.mubr.msk.bf16.gmra.mrb[20].mxu1 %vm8889_vm1, %v12609_v39  ;;  %v12612_v39 = vld [vmem:[%s15728_s0 + $0x68] sm:$0xff]  }
 0x8b0   : > { %11877 = vmatprep.mubr.msk.bf16.mxu1 %vm8889_vm1, %v12611_v2  ;;  %9392 = vmatpush1.bf16.msra.mxu1 %v12625_v13  ;;  %v12614_v13 = vld [vmem:[%s15728_s0 + $0x70] sm:$0xff]  }
 0x8b1   : > { %v10584_v7 = vmax.f32 %v8478_v4, 0.0  ;;  %10723 = vrot.lane.b32.xlu0 %v10583_v42, %s12948_s6  ;;  %9393 = vmatprep.subr.bf16.mxu1 %v17539_v3 }
 0x8b2   : > { %v7984_v5 = vpop.f32.mrb[172].mxu1 }
 0x8b3   : > { %v7986_v45 = vpop.f32.mrb[173].mxu1  ;;  %10725 = vrot.lane.b32.xlu1 %v10584_v7, %s12948_s6  ;;  %v16217_v53 = vadd.f32 %v7984_v5, %v15863_v32  ;;  %v12637_v5 = vld [vmem:[%s17524_s23 + $0x70] sm:$0xff]  }
 0x8b4   : > { %v7988_v10 = vpop.f32.mrb[174].mxu1  ;;  %v8482_v2 = vpop.f32.mrb[156].mxu0  ;;  %9394 = vmatpush1.bf16.msra.mxu1 %v12628_v17  ;;  %v16225_v7 = vadd.f32 %v7986_v45, %v15867_v62 }
 0x8b5   : > { %17611 = vst [vmem:[#allocation3_spill] sm:$0xff] %v16217_v53  ;;  %v16220_v42 = vadd.f32 %v7988_v10, %v15863_v32  ;;  %v8483_v4 = vadd.f32 %v15981_v30, %v8482_v2  ;;  %v7990_v41 = vpop.f32.mrb[175].mxu1  ;;  %v8484_v27 = vpop.f32.mrb[157].mxu0  ;;  %9395 = vmatprep.subr.bf16.mxu1 %v17539_v3 }
 0x8b6   : > { %17613 = vst [vmem:[#allocation5_spill] sm:$0xff] %v16225_v7  ;;  %v16228_v17 = vadd.f32 %v7990_v41, %v15867_v62  ;;  %v8485_v6 = vpop.f32.mrb[158].mxu0  ;;  %v12634_v41 = vld [vmem:[%s17524_s23 + $0x68] sm:$0xff]  }
 0x8b7   : > { %17612 = vst [vmem:[#allocation4_spill] sm:$0xff] %v16220_v42  ;;  %v10585_v11 = vmax.f32 %v8483_v4, 0.0  ;;  %v8486_v10 = vadd.f32 %v15981_v30, %v8485_v6  ;;  %v8487_v2 = vpop.f32.mrb[159].mxu0  ;;  %11878 = vmatmul.mubr.msk.bf16.gmra.mrb[24].mxu1 %vm8889_vm1, %v12612_v39  ;;  %v12615_v39 = vld [vmem:[%s15728_s0 + $0x78] sm:$0xff]  }
 0x8b8   : > { %17614 = vst [vmem:[#allocation6_spill] sm:$0xff] %v16228_v17  ;;  %11881 = vmatprep.mubr.msk.bf16.mxu1 %vm8889_vm1, %v12614_v13  ;;  %9396 = vmatpush1.bf16.msra.mxu1 %v12631_v48  ;;  %v12617_v48 = vld [vmem:[%s15728_s0 + $0x80] sm:$0xff]  }
 0x8b9   : > { %v10586_v45 = vmax.f32 %v8486_v10, 0.0  ;;  %10727 = vrot.lane.b32.xlu0 %v10585_v11, %s12948_s6  ;;  %9397 = vmatprep.subr.bf16.mxu1 %v17539_v3 }
 0x8ba   : > { %v7994_v6 = vpop.f32.mrb[176].mxu1 }
 0x8bb   : > { %v7996_v4 = vpop.f32.mrb[177].mxu1  ;;  %10729 = vrot.lane.b32.xlu1 %v10586_v45, %s12948_s6  ;;  %v16249_v27 = vadd.f32 %v7994_v6, %v15863_v32  ;;  %v17617_v45 = vmov 0  }
 0x8bc   : > { %v7998_v2 = vpop.f32.mrb[178].mxu1  ;;  %v8490_v13 = vpop.f32.mrb[160].mxu0  ;;  %9398 = vmatpush1.bf16.msra.mxu1 %v12634_v41  ;;  %v16257_v42 = vadd.f32 %v7996_v4, %v15867_v62 }
 0x8bd   : > { %17615 = vst [vmem:[#allocation7_spill] sm:$0xff] %v16249_v27  ;;  %v16252_v11 = vadd.f32 %v7998_v2, %v15863_v32  ;;  %v8491_v10 = vadd.f32 %v15981_v30, %v8490_v13  ;;  %v8000_v3 = vpop.f32.mrb[179].mxu1  ;;  %v8492_v53 = vpop.f32.mrb[161].mxu0  ;;  %9399 = vmatprep.subr.bf16.mxu1 %v17617_v45 }
 0x8be   : > { %17618 = vst [vmem:[#allocation9_spill] sm:$0xff] %v16257_v42  ;;  %v16260_v41 = vadd.f32 %v8000_v3, %v15867_v62  ;;  %v8493_v7 = vpop.f32.mrb[162].mxu0  ;;  %v12640_v3 = vld [vmem:[%s17524_s23 + $0x78] sm:$0xff]  }
 0x8bf   : > { %17616 = vst [vmem:[#allocation8_spill] sm:$0xff] %v16252_v11  ;;  %v10587_v17 = vmax.f32 %v8491_v10, 0.0  ;;  %v8494_v2 = vadd.f32 %v15981_v30, %v8493_v7  ;;  %v8495_v13 = vpop.f32.mrb[163].mxu0  ;;  %11882 = vmatmul.mubr.msk.bf16.gmra.mrb[28].mxu1 %vm8889_vm1, %v12615_v39  ;;  %v12618_v39 = vld [vmem:[%s15728_s0 + $0x88] sm:$0xff]  }
 0x8c0   : > { %17619 = vst [vmem:[#allocation10_spill] sm:$0xff] %v16260_v41  ;;  %11885 = vmatprep.mubr.msk.bf16.mxu1 %vm8889_vm1, %v12617_v48  ;;  %9400 = vmatpush1.bf16.msra.mxu1 %v12637_v5  ;;  %v12620_v5 = vld [vmem:[%s15728_s0 + $0x90] sm:$0xff]   ;;  %v12621_v41 = vld [vmem:[%s15728_s0 + $0x98] sm:$0xff]  }
 0x8c1   : > { %v10588_v4 = vmax.f32 %v8494_v2, 0.0  ;;  %10731 = vrot.lane.b32.xlu0 %v10587_v17, %s12948_s6  ;;  %9401 = vmatprep.subr.bf16.mxu1 %v17617_v45 }
 0x8c2   : > { %v8004_v7 = vpop.f32.mrb[180].mxu1 }
 0x8c3   : > { %v8006_v10 = vpop.f32.mrb[181].mxu1  ;;  %10733 = vrot.lane.b32.xlu1 %v10588_v4, %s12948_s6  ;;  %v16278_v6 = vadd.f32 %v8004_v7, %v15863_v32 }
 0x8c4   : > { %v8008_v13 = vpop.f32.mrb[182].mxu1  ;;  %v8498_v48 = vpop.f32.mrb[164].mxu0  ;;  %9402 = vmatpush1.bf16.msra.mxu1 %v12640_v3  ;;  %v16285_v45 = vadd.f32 %v8006_v10, %v15867_v62 }
 0x8c5   : > { %17620 = vst [vmem:[#allocation11_spill] sm:$0xff] %v16278_v6  ;;  %v16281_v27 = vadd.f32 %v8008_v13, %v15863_v32  ;;  %v8499_v2 = vadd.f32 %v15981_v30, %v8498_v48  ;;  %v8010_v17 = vpop.f32.mrb[183].mxu1  ;;  %v8500_v53 = vpop.f32.mrb[165].mxu0  ;;  %v12623_v6 = vld [vmem:[%s15728_s0 + $0xa0] sm:$0xff]  }
 0x8c6   : > { %17622 = vst [vmem:[#allocation13_spill] sm:$0xff] %v16285_v45  ;;  %v16288_v4 = vadd.f32 %v8010_v17, %v15867_v62  ;;  %v8501_v11 = vpop.f32.mrb[166].mxu0 }
 0x8c7   : > { %17621 = vst [vmem:[#allocation12_spill] sm:$0xff] %v16281_v27  ;;  %v10589_v7 = vmax.f32 %v8499_v2, 0.0  ;;  %v8502_v13 = vadd.f32 %v15981_v30, %v8501_v11  ;;  %v8503_v42 = vpop.f32.mrb[167].mxu0  ;;  %11886 = vmatmul.mubr.msk.bf16.gmra.mrb[32].mxu1 %vm8889_vm1, %v12618_v39  ;;  %v12626_v27 = vld [vmem:[%s15728_s0 + $0xb0] sm:$0xff]  }
 0x8c8   : > { %17623 = vst [vmem:[#allocation14_spill] sm:$0xff] %v16288_v4  ;;  %11889 = vmatprep.mubr.msk.bf16.mxu1 %vm8889_vm1, %v12620_v5  ;;  %v12627_v4 = vld [vmem:[%s15728_s0 + $0xb8] sm:$0xff]  }
 0x8c9   : > { %v10590_v10 = vmax.f32 %v8502_v13, 0.0  ;;  %10735 = vrot.lane.b32.xlu0 %v10589_v7, %s12948_s6 }
 0x8ca   : > { %v8014_v48 = vpop.f32.mrb[184].mxu1 }
 0x8cb   : > { %v8016_v17 = vpop.f32.mrb[185].mxu1  ;;  %10737 = vrot.lane.b32.xlu1 %v10590_v10, %s12948_s6  ;;  %v16302_v42 = vadd.f32 %v8014_v48, %v15863_v32 }
 0x8cc   : > { %v8018_v3 = vpop.f32.mrb[186].mxu1  ;;  %v8506_v2 = vpop.f32.mrb[168].mxu0  ;;  %v16309_v7 = vadd.f32 %v8016_v17, %v15867_v62  ;;  %v12641_v17 = vld [vmem:[%s17527_s26] sm:$0xff]  }
 0x8cd   : > { %17624 = vst [vmem:[#allocation15_spill] sm:$0xff] %v16302_v42  ;;  %v16305_v11 = vadd.f32 %v8018_v3, %v15863_v32  ;;  %v8507_v39 = vadd.f32 %v15981_v30, %v8506_v2  ;;  %v8020_v5 = vpop.f32.mrb[187].mxu1  ;;  %v8508_v13 = vpop.f32.mrb[169].mxu0  ;;  %11917 = vmatprep.subr.bf16.mxu0 %v12641_v17 }
 0x8ce   : > { %17626 = vst [vmem:[#allocation17_spill] sm:$0xff] %v16309_v7  ;;  %v16312_v53 = vadd.f32 %v8020_v5, %v15867_v62  ;;  %v8509_v10 = vpop.f32.mrb[170].mxu0  ;;  %11918 = vmatpush3.bf16.msra.mxu0 %v12641_v17 }
 0x8cf   : > { %17625 = vst [vmem:[#allocation16_spill] sm:$0xff] %v16305_v11  ;;  %v10591_v48 = vmax.f32 %v8507_v39, 0.0  ;;  %v8510_v45 = vadd.f32 %v15981_v30, %v8509_v10  ;;  %v8511_v3 = vpop.f32.mrb[171].mxu0  ;;  %11890 = vmatmul.mubr.msk.bf16.gmra.mrb[36].mxu1 %vm8889_vm1, %v12621_v41  ;;  %v12624_v10 = vld [vmem:[%s15728_s0 + $0xa8] sm:$0xff]  }
 0x8d0   : > { %17627 = vst [vmem:[#allocation18_spill] sm:$0xff] %v16312_v53  ;;  %11893 = vmatprep.mubr.msk.bf16.mxu1 %vm8889_vm1, %v12623_v6 }
 0x8d1   : > { %v10592_v5 = vmax.f32 %v8510_v45, 0.0  ;;  %10739 = vrot.lane.b32.xlu0 %v10591_v48, %s12948_s6 }
 0x8d2   : > { %v8024_v39 = vpop.f32.mrb[188].mxu1 }
 0x8d3   : > { %v8026_v13 = vpop.f32.mrb[189].mxu1  ;;  %10741 = vrot.lane.b32.xlu1 %v10592_v5, %s12948_s6  ;;  %v16329_v42 = vadd.f32 %v8024_v39, %v15863_v32 }
 0x8d4   : > { %v8028_v41 = vpop.f32.mrb[190].mxu1  ;;  %v8514_v3 = vpop.f32.mrb[172].mxu0  ;;  %v16336_v17 = vadd.f32 %v8026_v13, %v15867_v62 }
 0x8d5   : > { %17628 = vst [vmem:[#allocation19_spill] sm:$0xff] %v16329_v42  ;;  %v16332_v6 = vadd.f32 %v8028_v41, %v15863_v32  ;;  %v8515_v45 = vadd.f32 %v15981_v30, %v8514_v3  ;;  %v8030_v2 = vpop.f32.mrb[191].mxu1  ;;  %v8516_v48 = vpop.f32.mrb[173].mxu0  ;;  %v12629_v42 = vld [vmem:[%s15728_s0 + $0xc0] sm:$0xff]  }
 0x8d6   : > { %17630 = vst [vmem:[#allocation21_spill] sm:$0xff] %v16336_v17  ;;  %v16339_v5 = vadd.f32 %v8030_v2, %v15867_v62  ;;  %v8517_v11 = vpop.f32.mrb[174].mxu0 }
 0x8d7   : > { %17629 = vst [vmem:[#allocation20_spill] sm:$0xff] %v16332_v6  ;;  %v10593_v7 = vmax.f32 %v8515_v45, 0.0  ;;  %v8518_v41 = vadd.f32 %v15981_v30, %v8517_v11  ;;  %v8519_v53 = vpop.f32.mrb[175].mxu0  ;;  %11894 = vmatmul.mubr.msk.bf16.gmra.mrb[40].mxu1 %vm8889_vm1, %v12624_v10 }
 0x8d8   : > { %17631 = vst [vmem:[#allocation22_spill] sm:$0xff] %v16339_v5  ;;  %11897 = vmatprep.mubr.msk.bf16.mxu1 %vm8889_vm1, %v12626_v27  ;;  %v12630_v5 = vld [vmem:[%s15728_s0 + $0xc8] sm:$0xff]  }
 0x8d9   : > { %v10594_v3 = vmax.f32 %v8518_v41, 0.0  ;;  %10743 = vrot.lane.b32.xlu0 %v10593_v7, %s12948_s6 }
 0x8da   : > { %v8034_v2 = vpop.f32.mrb[192].mxu1 }
 0x8db   : > { %v8036_v48 = vpop.f32.mrb[193].mxu1  ;;  %10745 = vrot.lane.b32.xlu1 %v10594_v3, %s12948_s6  ;;  %v16353_v53 = vadd.f32 %v8034_v2, %v15863_v32 }
 0x8dc   : > { %v8038_v39 = vpop.f32.mrb[194].mxu1  ;;  %v8522_v45 = vpop.f32.mrb[176].mxu0  ;;  %v16360_v7 = vadd.f32 %v8036_v48, %v15867_v62 }
 0x8dd   : > { %17632 = vst [vmem:[#allocation23_spill] sm:$0xff] %v16353_v53  ;;  %v16356_v11 = vadd.f32 %v8038_v39, %v15863_v32  ;;  %v8523_v27 = vadd.f32 %v15981_v30, %v8522_v45  ;;  %v8040_v10 = vpop.f32.mrb[195].mxu1  ;;  %v8524_v41 = vpop.f32.mrb[177].mxu0  ;;  %v12632_v53 = vld [vmem:[%s15728_s0 + $0xd0] sm:$0xff]  }
 0x8de   : > { %17634 = vst [vmem:[#allocation25_spill] sm:$0xff] %v16360_v7  ;;  %v16363_v3 = vadd.f32 %v8040_v10, %v15867_v62  ;;  %v8525_v13 = vpop.f32.mrb[178].mxu0 }
 0x8df   : > { %17633 = vst [vmem:[#allocation24_spill] sm:$0xff] %v16356_v11  ;;  %v10595_v6 = vmax.f32 %v8523_v27, 0.0  ;;  %v8526_v39 = vadd.f32 %v15981_v30, %v8525_v13  ;;  %v8527_v17 = vpop.f32.mrb[179].mxu0  ;;  %11898 = vmatmul.mubr.msk.bf16.gmra.mrb[44].mxu1 %vm8889_vm1, %v12627_v4 }
 0x8e0   : > { %17635 = vst [vmem:[#allocation26_spill] sm:$0xff] %v16363_v3  ;;  %11901 = vmatprep.mubr.msk.bf16.mxu1 %vm8889_vm1, %v12629_v42  ;;  %v12633_v3 = vld [vmem:[%s15728_s0 + $0xd8] sm:$0xff]  }
 0x8e1   : > { %v10596_v48 = vmax.f32 %v8526_v39, 0.0  ;;  %10747 = vrot.lane.b32.xlu0 %v10595_v6, %s12948_s6 }
 0x8e2   : > { %v8044_v10 = vpop.f32.mrb[196].mxu1 }
 0x8e3   : > { %v8046_v41 = vpop.f32.mrb[197].mxu1  ;;  %10749 = vrot.lane.b32.xlu1 %v10596_v48, %s12948_s6  ;;  %v16377_v17 = vadd.f32 %v8044_v10, %v15863_v32 }
 0x8e4   : > { %v8048_v2 = vpop.f32.mrb[198].mxu1  ;;  %v8530_v27 = vpop.f32.mrb[180].mxu0  ;;  %v16384_v6 = vadd.f32 %v8046_v41, %v15867_v62 }
 0x8e5   : > { %17636 = vst [vmem:[#allocation27_spill] sm:$0xff] %v16377_v17  ;;  %v16380_v4 = vadd.f32 %v8048_v2, %v15863_v32  ;;  %v8531_v13 = vadd.f32 %v15981_v30, %v8530_v27  ;;  %v8050_v42 = vpop.f32.mrb[199].mxu1  ;;  %v8532_v39 = vpop.f32.mrb[181].mxu0  ;;  %v12635_v17 = vld [vmem:[%s15728_s0 + $0xe0] sm:$0xff]  }
 0x8e6   : > { %17638 = vst [vmem:[#allocation29_spill] sm:$0xff] %v16384_v6  ;;  %v16387_v48 = vadd.f32 %v8050_v42, %v15867_v62  ;;  %v8533_v45 = vpop.f32.mrb[182].mxu0 }
 0x8e7   : > { %17637 = vst [vmem:[#allocation28_spill] sm:$0xff] %v16380_v4  ;;  %v10597_v11 = vmax.f32 %v8531_v13, 0.0  ;;  %v8534_v2 = vadd.f32 %v15981_v30, %v8533_v45  ;;  %v8535_v7 = vpop.f32.mrb[183].mxu0  ;;  %11902 = vmatmul.mubr.msk.bf16.gmra.mrb[48].mxu1 %vm8889_vm1, %v12630_v5  ;;  %v12638_v4 = vld [vmem:[%s15728_s0 + $0xf0] sm:$0xff]  }
 0x8e8   : > { %17639 = vst [vmem:[#allocation30_spill] sm:$0xff] %v16387_v48  ;;  %11905 = vmatprep.mubr.msk.bf16.mxu1 %vm8889_vm1, %v12632_v53  ;;  %v12639_v48 = vld [vmem:[%s15728_s0 + $0xf8] sm:$0xff]  }
 0x8e9   : > { %v10598_v41 = vmax.f32 %v8534_v2, 0.0  ;;  %10751 = vrot.lane.b32.xlu0 %v10597_v11, %s12948_s6 }
 0x8ea   : > { %v8054_v42 = vpop.f32.mrb[200].mxu1 }
 0x8eb   : > { %v8056_v39 = vpop.f32.mrb[201].mxu1  ;;  %10753 = vrot.lane.b32.xlu1 %v10598_v41, %s12948_s6  ;;  %v16401_v7 = vadd.f32 %v8054_v42, %v15863_v32 }
 0x8ec   : > { %v8058_v10 = vpop.f32.mrb[202].mxu1  ;;  %v8538_v13 = vpop.f32.mrb[184].mxu0  ;;  %v16408_v11 = vadd.f32 %v8056_v39, %v15867_v62  ;;  %v12642_v39 = vld [vmem:[%s17527_s26 + $0x8] sm:$0xff]  }
 0x8ed   : > { %17640 = vst [vmem:[#allocation31_spill] sm:$0xff] %v16401_v7  ;;  %v16404_v5 = vadd.f32 %v8058_v10, %v15863_v32  ;;  %v8539_v45 = vadd.f32 %v15981_v30, %v8538_v13  ;;  %v8060_v53 = vpop.f32.mrb[203].mxu1  ;;  %v8540_v2 = vpop.f32.mrb[185].mxu0  ;;  %11919 = vmatprep.subr.bf16.mxu0 %v12642_v39 }
 0x8ee   : > { %17642 = vst [vmem:[#allocation33_spill] sm:$0xff] %v16408_v11  ;;  %v16411_v27 = vadd.f32 %v8060_v53, %v15867_v62  ;;  %v8541_v41 = vpop.f32.mrb[186].mxu0  ;;  %11920 = vmatpush3.bf16.msra.mxu0 %v12642_v39 }
 0x8ef   : > { %17641 = vst [vmem:[#allocation32_spill] sm:$0xff] %v16404_v5  ;;  %v10599_v42 = vmax.f32 %v8539_v45, 0.0  ;;  %v8542_v6 = vadd.f32 %v15981_v30, %v8541_v41  ;;  %v8543_v10 = vpop.f32.mrb[187].mxu0  ;;  %11906 = vmatmul.mubr.msk.bf16.gmra.mrb[52].mxu1 %vm8889_vm1, %v12633_v3  ;;  %v12636_v41 = vld [vmem:[%s15728_s0 + $0xe8] sm:$0xff]  }
 0x8f0   : > { %17643 = vst [vmem:[#allocation34_spill] sm:$0xff] %v16411_v27  ;;  %11909 = vmatprep.mubr.msk.bf16.mxu1 %vm8889_vm1, %v12635_v17 }
 0x8f1   : > { %v10600_v53 = vmax.f32 %v8542_v6, 0.0  ;;  %10755 = vrot.lane.b32.xlu0 %v10599_v42, %s12948_s6 }
 0x8f2   : > { %v8064_v45 = vpop.f32.mrb[204].mxu1 }
 0x8f3   : > { %v8066_v2 = vpop.f32.mrb[205].mxu1  ;;  %10757 = vrot.lane.b32.xlu1 %v10600_v53, %s12948_s6  ;;  %v16428_v7 = vadd.f32 %v8064_v45, %v15863_v32 }
 0x8f4   : > { %v8068_v3 = vpop.f32.mrb[206].mxu1  ;;  %v8546_v10 = vpop.f32.mrb[188].mxu0  ;;  %v16435_v39 = vadd.f32 %v8066_v2, %v15867_v62 }
 0x8f5   : > { %17644 = vst [vmem:[#allocation35_spill] sm:$0xff] %v16428_v7  ;;  %v16431_v13 = vadd.f32 %v8068_v3, %v15863_v32  ;;  %v8547_v17 = vadd.f32 %v15981_v30, %v8546_v10  ;;  %v8070_v6 = vpop.f32.mrb[207].mxu1  ;;  %v8548_v42 = vpop.f32.mrb[189].mxu0 }
 0x8f6   : > { %17646 = vst [vmem:[#allocation37_spill] sm:$0xff] %v16435_v39  ;;  %v16438_v53 = vadd.f32 %v8070_v6, %v15867_v62  ;;  %v8549_v5 = vpop.f32.mrb[190].mxu0 }
 0x8f7   : > { %17645 = vst [vmem:[#allocation36_spill] sm:$0xff] %v16431_v13  ;;  %v10601_v45 = vmax.f32 %v8547_v17, 0.0  ;;  %v8550_v27 = vadd.f32 %v15981_v30, %v8549_v5  ;;  %v8551_v3 = vpop.f32.mrb[191].mxu0  ;;  %11910 = vmatmul.mubr.msk.bf16.gmra.mrb[56].mxu1 %vm8889_vm1, %v12636_v41 }
 0x8f8   : > { %11913 = vmatprep.mubr.msk.bf16.mxu1 %vm8889_vm1, %v12638_v4 }
 0x8f9   : > { %v10602_v2 = vmax.f32 %v8550_v27, 0.0  ;;  %10759 = vrot.lane.b32.xlu0 %v10601_v45, %s12948_s6 }
 0x8fa   : > { %v8074_v6 = vpop.f32.mrb[208].mxu1 }
 0x8fb   : > { %v8076_v42 = vpop.f32.mrb[209].mxu1  ;;  %10761 = vrot.lane.b32.xlu1 %v10602_v2, %s12948_s6  ;;  %v16451_v5 = vadd.f32 %v8074_v6, %v15863_v32 }
 0x8fc   : > { %v8078_v11 = vpop.f32.mrb[210].mxu1  ;;  %v8554_v17 = vpop.f32.mrb[192].mxu0  ;;  %v16458_v27 = vadd.f32 %v8076_v42, %v15867_v62  ;;  %v17648_v42 = vpack.c.bf16 %v15885_v51, %v15881_v28 }
 0x8fd   : > { %17647 = vst [vmem:[#allocation38_spill] sm:$0xff] %v16451_v5  ;;  %v16454_v41 = vadd.f32 %v8078_v11, %v15863_v32  ;;  %v8555_v3 = vadd.f32 %v15981_v30, %v8554_v17  ;;  %v8080_v10 = vpop.f32.mrb[211].mxu1  ;;  %v8556_v4 = vpop.f32.mrb[193].mxu0 }
 0x8fe   : > { %v16461_v45 = vadd.f32 %v8080_v10, %v15867_v62  ;;  %v8557_v2 = vpop.f32.mrb[194].mxu0 }
 0x8ff   : > { %v10603_v13 = vmax.f32 %v8555_v3, 0.0  ;;  %v8558_v6 = vadd.f32 %v15981_v30, %v8557_v2  ;;  %v8559_v39 = vpop.f32.mrb[195].mxu0  ;;  %11914 = vmatmul.mubr.msk.bf16.gmra.mrb[60].mxu1 %vm8889_vm1, %v12639_v48 }
 0x900   : > { %9403 = vmatprep.mubr.bf16.mxu1 %v17648_v42 }
 0x901   : > { %v10604_v17 = vmax.f32 %v8558_v6, 0.0  ;;  %10763 = vrot.lane.b32.xlu0 %v10603_v13, %s12948_s6 }
 0x902   : > { %v8084_v10 = vpop.f32.mrb[212].mxu1 }
 0x903   : > { %v8086_v4 = vpop.f32.mrb[213].mxu1  ;;  %10765 = vrot.lane.b32.xlu1 %v10604_v17, %s12948_s6  ;;  %v16475_v39 = vadd.f32 %v8084_v10, %v15863_v32 }
 0x904   : > { %v8088_v3 = vpop.f32.mrb[214].mxu1  ;;  %v8562_v7 = vpop.f32.mrb[196].mxu0  ;;  %v16482_v51 = vadd.f32 %v8086_v4, %v15867_v62  ;;  %v17650_v4 = vpack.c.bf16 %v15913_v52, %v15909_v50 }
 0x905   : > { %v16478_v48 = vadd.f32 %v8088_v3, %v15863_v32  ;;  %v8563_v2 = vadd.f32 %v15981_v30, %v8562_v7  ;;  %v8090_v11 = vpop.f32.mrb[215].mxu1  ;;  %v8564_v28 = vpop.f32.mrb[197].mxu0  ;;  %v17649_v3 = vpack.c.bf16 %v15878_v33, %v15874_v59  ;;  %v12643_v59 = vld [vmem:[%s17527_s26 + $0x10] sm:$0xff]  }
 0x906   : > { %v16485_v13 = vadd.f32 %v8090_v11, %v15867_v62  ;;  %v8565_v6 = vpop.f32.mrb[198].mxu0  ;;  %11921 = vmatprep.subr.bf16.mxu0 %v12643_v59 }
 0x907   : > { %v10605_v17 = vmax.f32 %v8563_v2, 0.0  ;;  %v8566_v10 = vadd.f32 %v15981_v30, %v8565_v6  ;;  %v8567_v5 = vpop.f32.mrb[199].mxu0  ;;  %9404 = vmatmul.mubr.bf16.vlgmr.msra.gmra.mrb[64].mxu1 %v17649_v3  ;;  %11922 = vmatpush3.bf16.msra.mxu0 %v12643_v59  ;;  %v16535_v59 = vld [vmem:[#allocation2] ss:$0 sm:$0xff] }
 0x908   : > { %9411 = vmatprep.mubr.bf16.mxu1 %v17650_v4 }
 0x909   : > { %v10606_v11 = vmax.f32 %v8566_v10, 0.0  ;;  %10767 = vrot.lane.b32.xlu0 %v10605_v17, %s12948_s6 }
 0x90a   : > { %v8094_v28 = vpop.f32.mrb[216].mxu1 }
 0x90b   : > { %v8096_v42 = vpop.f32.mrb[217].mxu1  ;;  %10769 = vrot.lane.b32.xlu1 %v10606_v11, %s12948_s6  ;;  %v16504_v33 = vadd.f32 %v8094_v28, %v15863_v32 }
 0x90c   : > { %v8098_v2 = vpop.f32.mrb[218].mxu1  ;;  %v8570_v5 = vpop.f32.mrb[200].mxu0  ;;  %v16511_v10 = vadd.f32 %v8096_v42, %v15867_v62  ;;  %v17653_v42 = vpack.c.bf16 %v15934_v14, %v15930_v49 }
 0x90d   : > { %v16507_v6 = vadd.f32 %v8098_v2, %v15863_v32  ;;  %v8571_v50 = vadd.f32 %v15981_v30, %v8570_v5  ;;  %v8100_v52 = vpop.f32.mrb[219].mxu1  ;;  %v8572_v17 = vpop.f32.mrb[201].mxu0  ;;  %v17651_v5 = vpack.c.bf16 %v15906_v56, %v15902_v54 }
 0x90e   : > { %v16514_v3 = vadd.f32 %v8100_v52, %v15867_v62  ;;  %v8573_v4 = vpop.f32.mrb[202].mxu0  ;;  %v17652_v52 = vpack.c.bf16 %v15941_v36, %v15937_v26 }
 0x90f   : > { %v10607_v28 = vmax.f32 %v8571_v50, 0.0  ;;  %v8574_v7 = vadd.f32 %v15981_v30, %v8573_v4  ;;  %v8575_v2 = vpop.f32.mrb[203].mxu0  ;;  %9412 = vmatmul.mubr.bf16.gmra.mrb[68].mxu1 %v17651_v5 }
 0x910   : > { %9419 = vmatprep.mubr.bf16.mxu1 %v17652_v52 }
 0x911   : > { %v10608_v17 = vmax.f32 %v8574_v7, 0.0  ;;  %10771 = vrot.lane.b32.xlu0 %v10607_v28, %s12948_s6 }
 0x912   : > { %v8104_v11 = vpop.f32.mrb[220].mxu1 }
 0x913   : > { %v8106_v50 = vpop.f32.mrb[221].mxu1  ;;  %10773 = vrot.lane.b32.xlu1 %v10608_v17, %s12948_s6  ;;  %v16530_v54 = vadd.f32 %v8104_v11, %v15863_v32 }
 0x914   : > { %v8108_v30 = vpop.f32.mrb[222].mxu1  ;;  %v8578_v4 = vpop.f32.mrb[204].mxu0  ;;  %v16539_v28 = vadd.f32 %v8106_v50, %v15867_v62  ;;  %v17654_v50 = vpack.c.bf16 %v15969_v44, %v15965_v22 }
 0x915   : > { %v16533_v56 = vadd.f32 %v8108_v30, %v15863_v32  ;;  %v8579_v26 = vadd.f32 %v16535_v59, %v8578_v4  ;;  %v8110_v36 = vpop.f32.mrb[223].mxu1  ;;  %v8580_v7 = vpop.f32.mrb[205].mxu0 }
 0x916   : > { %v16542_v2 = vadd.f32 %v8110_v36, %v15867_v62  ;;  %v8581_v5 = vpop.f32.mrb[206].mxu0 }
 0x917   : > { %v10609_v52 = vmax.f32 %v8579_v26, 0.0  ;;  %v8582_v17 = vadd.f32 %v16535_v59, %v8581_v5  ;;  %v8583_v30 = vpop.f32.mrb[207].mxu0  ;;  %9420 = vmatmul.mubr.bf16.gmra.mrb[72].mxu1 %v17653_v42 }
 0x918   : > { %9427 = vmatprep.mubr.bf16.mxu1 %v17654_v50 }
 0x919   : > { %v10610_v36 = vmax.f32 %v8582_v17, 0.0  ;;  %10775 = vrot.lane.b32.xlu0 %v10609_v52, %s12948_s6 }
 0x91a   : > { %v8114_v7 = vpop.f32.mrb[224].mxu1 }
 0x91b   : > { %v8116_v11 = vpop.f32.mrb[225].mxu1  ;;  %10777 = vrot.lane.b32.xlu1 %v10610_v36, %s12948_s6  ;;  %v16558_v30 = vadd.f32 %v8114_v7, %v15863_v32 }
 0x91c   : > { %v8118_v26 = vpop.f32.mrb[226].mxu1  ;;  %v8586_v5 = vpop.f32.mrb[208].mxu0  ;;  %v16565_v44 = vadd.f32 %v8116_v11, %v15867_v62  ;;  %v17656_v11 = vpack.c.bf16 %v15999_v37, %v15996_v47 }
 0x91d   : > { %v16561_v49 = vadd.f32 %v8118_v26, %v15863_v32  ;;  %v8587_v14 = vadd.f32 %v16535_v59, %v8586_v5  ;;  %v8120_v42 = vpop.f32.mrb[227].mxu1  ;;  %v8588_v22 = vpop.f32.mrb[209].mxu0  ;;  %v17655_v26 = vpack.c.bf16 %v15962_v61, %v15958_v29 }
 0x91e   : > { %v16568_v52 = vadd.f32 %v8120_v42, %v15867_v62  ;;  %v8589_v17 = vpop.f32.mrb[210].mxu0 }
 0x91f   : > { %v10611_v36 = vmax.f32 %v8587_v14, 0.0  ;;  %v8590_v7 = vadd.f32 %v16535_v59, %v8589_v17  ;;  %v8591_v4 = vpop.f32.mrb[211].mxu0  ;;  %9428 = vmatmul.mubr.bf16.gmra.mrb[76].mxu1 %v17655_v26 }
 0x920   : > { %9435 = vmatprep.mubr.bf16.mxu1 %v17656_v11 }
 0x921   : > { %v10612_v42 = vmax.f32 %v8590_v7, 0.0  ;;  %10779 = vrot.lane.b32.xlu0 %v10611_v36, %s12948_s6 }
 0x922   : > { %v8124_v22 = vpop.f32.mrb[228].mxu1 }
 0x923   : > { %v8126_v50 = vpop.f32.mrb[229].mxu1  ;;  %10781 = vrot.lane.b32.xlu1 %v10612_v42, %s12948_s6  ;;  %v16584_v17 = vadd.f32 %v8124_v22, %v15863_v32 }
 0x924   : > { %v8128_v14 = vpop.f32.mrb[230].mxu1  ;;  %v8594_v4 = vpop.f32.mrb[212].mxu0  ;;  %v16591_v37 = vadd.f32 %v8126_v50, %v15867_v62  ;;  %v17658_v50 = vpack.c.bf16 %v16029_v15, %v16026_v40 }
 0x925   : > { %v16587_v29 = vadd.f32 %v8128_v14, %v15863_v32  ;;  %v8595_v61 = vadd.f32 %v16535_v59, %v8594_v4  ;;  %v8130_v26 = vpop.f32.mrb[231].mxu1  ;;  %v8596_v47 = vpop.f32.mrb[213].mxu0  ;;  %v17657_v14 = vpack.c.bf16 %v15992_v57, %v15989_v19  ;;  %v12644_v19 = vld [vmem:[%s17527_s26 + $0x18] sm:$0xff]  }
 0x926   : > { %v16594_v36 = vadd.f32 %v8130_v26, %v15867_v62  ;;  %v8597_v7 = vpop.f32.mrb[214].mxu0  ;;  %11923 = vmatprep.subr.bf16.mxu0 %v12644_v19 }
 0x927   : > { %v10613_v42 = vmax.f32 %v8595_v61, 0.0  ;;  %v8598_v22 = vadd.f32 %v16535_v59, %v8597_v7  ;;  %v8599_v5 = vpop.f32.mrb[215].mxu0  ;;  %9436 = vmatmul.mubr.bf16.gmra.mrb[80].mxu1 %v17657_v14  ;;  %11924 = vmatpush3.bf16.msra.mxu0 %v12644_v19 }
 0x928   : > { %9443 = vmatprep.mubr.bf16.mxu1 %v17658_v50 }
 0x929   : > { %v10614_v26 = vmax.f32 %v8598_v22, 0.0  ;;  %10783 = vrot.lane.b32.xlu0 %v10613_v42, %s12948_s6 }
 0x92a   : > { %v8134_v47 = vpop.f32.mrb[232].mxu1 }
 0x92b   : > { %v8136_v11 = vpop.f32.mrb[233].mxu1  ;;  %10785 = vrot.lane.b32.xlu1 %v10614_v26, %s12948_s6  ;;  %v16613_v57 = vadd.f32 %v8134_v47, %v15863_v32 }
 0x92c   : > { %v8138_v61 = vpop.f32.mrb[234].mxu1  ;;  %v8602_v5 = vpop.f32.mrb[216].mxu0  ;;  %v16620_v22 = vadd.f32 %v8136_v11, %v15867_v62 }
 0x92d   : > { %v16616_v7 = vadd.f32 %v8138_v61, %v15863_v32  ;;  %v8603_v40 = vadd.f32 %v16535_v59, %v8602_v5  ;;  %v8140_v15 = vpop.f32.mrb[235].mxu1  ;;  %v8604_v42 = vpop.f32.mrb[217].mxu0  ;;  %v17659_v5 = vpack.c.bf16 %v16021_v63, %v16018_v0 }
 0x92e   : > { %v16623_v14 = vadd.f32 %v8140_v15, %v15867_v62  ;;  %v8605_v50 = vpop.f32.mrb[218].mxu0  ;;  %v17660_v15 = vpack.c.bf16 %v16063_v21, %v16060_v46 }
 0x92f   : > { %v10615_v47 = vmax.f32 %v8603_v40, 0.0  ;;  %v8606_v4 = vadd.f32 %v16535_v59, %v8605_v50  ;;  %v8607_v61 = vpop.f32.mrb[219].mxu0  ;;  %9444 = vmatmul.mubr.bf16.gmra.mrb[84].mxu1 %v17659_v5 }
 0x930   : > { %9451 = vmatprep.mubr.bf16.mxu1 %v17660_v15 }
 0x931   : > { %v10616_v42 = vmax.f32 %v8606_v4, 0.0  ;;  %10787 = vrot.lane.b32.xlu0 %v10615_v47, %s12948_s6 }
 0x932   : > { %v8144_v26 = vpop.f32.mrb[236].mxu1 }
 0x933   : > { %v8146_v40 = vpop.f32.mrb[237].mxu1  ;;  %10789 = vrot.lane.b32.xlu1 %v10616_v42, %s12948_s6  ;;  %v16639_v0 = vadd.f32 %v8144_v26, %v15863_v32 }
 0x934   : > { %v8148_v50 = vpop.f32.mrb[238].mxu1  ;;  %v8610_v61 = vpop.f32.mrb[220].mxu0  ;;  %v16646_v21 = vadd.f32 %v8146_v40, %v15867_v62  ;;  %v17662_v40 = vpack.c.bf16 %v16097_v9, %v16094_v8 }
 0x935   : > { %v16642_v63 = vadd.f32 %v8148_v50, %v15863_v32  ;;  %v8611_v19 = vadd.f32 %v16535_v59, %v8610_v61  ;;  %v8150_v5 = vpop.f32.mrb[239].mxu1  ;;  %v8612_v46 = vpop.f32.mrb[221].mxu0  ;;  %v17661_v50 = vpack.c.bf16 %v16054_v34, %v16051_v38 }
 0x936   : > { %v16649_v4 = vadd.f32 %v8150_v5, %v15867_v62  ;;  %v8613_v47 = vpop.f32.mrb[222].mxu0 }
 0x937   : > { %v10617_v42 = vmax.f32 %v8611_v19, 0.0  ;;  %v8614_v26 = vadd.f32 %v16535_v59, %v8613_v47  ;;  %v8615_v11 = vpop.f32.mrb[223].mxu0  ;;  %9452 = vmatmul.mubr.bf16.gmra.mrb[88].mxu1 %v17661_v50 }
 0x938   : > { %9459 = vmatprep.mubr.bf16.mxu1 %v17662_v40 }
 0x939   : > { %v10618_v5 = vmax.f32 %v8614_v26, 0.0  ;;  %10791 = vrot.lane.b32.xlu0 %v10617_v42, %s12948_s6 }
 0x93a   : > { %v8154_v46 = vpop.f32.mrb[240].mxu1 }
 0x93b   : > { %v8156_v15 = vpop.f32.mrb[241].mxu1  ;;  %10793 = vrot.lane.b32.xlu1 %v10618_v5, %s12948_s6  ;;  %v16665_v47 = vadd.f32 %v8154_v46, %v15863_v32 }
 0x93c   : > { %v8158_v19 = vpop.f32.mrb[242].mxu1  ;;  %v8618_v11 = vpop.f32.mrb[224].mxu0  ;;  %v16672_v9 = vadd.f32 %v8156_v15, %v15867_v62  ;;  %v17664_v15 = vpack.c.bf16 %v16131_v1, %v16128_v23 }
 0x93d   : > { %v16668_v38 = vadd.f32 %v8158_v19, %v15863_v32  ;;  %v8619_v34 = vadd.f32 %v16535_v59, %v8618_v11  ;;  %v8160_v50 = vpop.f32.mrb[243].mxu1  ;;  %v8620_v8 = vpop.f32.mrb[225].mxu0  ;;  %v17663_v19 = vpack.c.bf16 %v16089_v60, %v16086_v31 }
 0x93e   : > { %v16675_v42 = vadd.f32 %v8160_v50, %v15867_v62  ;;  %v8621_v26 = vpop.f32.mrb[226].mxu0 }
 0x93f   : > { %v10619_v5 = vmax.f32 %v8619_v34, 0.0  ;;  %v8622_v46 = vadd.f32 %v16535_v59, %v8621_v26  ;;  %v8623_v61 = vpop.f32.mrb[227].mxu0  ;;  %9460 = vmatmul.mubr.bf16.gmra.mrb[92].mxu1 %v17663_v19 }
 0x940   : > { %9467 = vmatprep.mubr.bf16.mxu1 %v17664_v15 }
 0x941   : > { %v10620_v50 = vmax.f32 %v8622_v46, 0.0  ;;  %10795 = vrot.lane.b32.xlu0 %v10619_v5, %s12948_s6 }
 0x942   : > { %v8164_v8 = vpop.f32.mrb[244].mxu1 }
 0x943   : > { %v8166_v40 = vpop.f32.mrb[245].mxu1  ;;  %10797 = vrot.lane.b32.xlu1 %v10620_v50, %s12948_s6  ;;  %v16691_v26 = vadd.f32 %v8164_v8, %v15863_v32 }
 0x944   : > { %v8168_v34 = vpop.f32.mrb[246].mxu1  ;;  %v8626_v61 = vpop.f32.mrb[228].mxu0  ;;  %v16698_v1 = vadd.f32 %v8166_v40, %v15867_v62  ;;  %v17666_v40 = vpack.c.bf16 %v16164_v58, %v16161_v12 }
 0x945   : > { %v16694_v31 = vadd.f32 %v8168_v34, %v15863_v32  ;;  %v8627_v60 = vadd.f32 %v16535_v59, %v8626_v61  ;;  %v8170_v19 = vpop.f32.mrb[247].mxu1  ;;  %v8628_v23 = vpop.f32.mrb[229].mxu0  ;;  %v17665_v34 = vpack.c.bf16 %v16123_v24, %v16120_v18  ;;  %v12645_v18 = vld [vmem:[%s17527_s26 + $0x20] sm:$0xff]  }
 0x946   : > { %v16701_v5 = vadd.f32 %v8170_v19, %v15867_v62  ;;  %v8629_v46 = vpop.f32.mrb[230].mxu0  ;;  %11925 = vmatprep.subr.bf16.mxu0 %v12645_v18 }
 0x947   : > { %v10621_v50 = vmax.f32 %v8627_v60, 0.0  ;;  %v8630_v8 = vadd.f32 %v16535_v59, %v8629_v46  ;;  %v8631_v11 = vpop.f32.mrb[231].mxu0  ;;  %9468 = vmatmul.mubr.bf16.gmra.mrb[96].mxu1 %v17665_v34  ;;  %11926 = vmatpush3.bf16.msra.mxu0 %v12645_v18 }
 0x948   : > { %9475 = vmatprep.mubr.bf16.mxu1 %v17666_v40 }
 0x949   : > { %v10622_v19 = vmax.f32 %v8630_v8, 0.0  ;;  %10799 = vrot.lane.b32.xlu0 %v10621_v50, %s12948_s6 }
 0x94a   : > { %v8174_v23 = vpop.f32.mrb[248].mxu1 }
 0x94b   : > { %v8176_v15 = vpop.f32.mrb[249].mxu1  ;;  %10801 = vrot.lane.b32.xlu1 %v10622_v19, %s12948_s6  ;;  %v16720_v24 = vadd.f32 %v8174_v23, %v15863_v32 }
 0x94c   : > { %v8178_v60 = vpop.f32.mrb[250].mxu1  ;;  %v8634_v11 = vpop.f32.mrb[232].mxu0  ;;  %v16727_v8 = vadd.f32 %v8176_v15, %v15867_v62 }
 0x94d   : > { %17667 = vst [vmem:[#allocation39_spill] sm:$0xff] %v16720_v24  ;;  %v16723_v46 = vadd.f32 %v8178_v60, %v15863_v32  ;;  %v8635_v12 = vadd.f32 %v16535_v59, %v8634_v11  ;;  %v8180_v58 = vpop.f32.mrb[251].mxu1  ;;  %v8636_v50 = vpop.f32.mrb[233].mxu0  ;;  %v17670_v11 = vpack.c.bf16 %v16156_v20, %v16153_v55 }
 0x94e   : > { %17669 = vst [vmem:[#allocation41_spill] sm:$0xff] %v16727_v8  ;;  %v16730_v34 = vadd.f32 %v8180_v58, %v15867_v62  ;;  %v8637_v40 = vpop.f32.mrb[234].mxu0  ;;  %v17671_v58 = vpack.c.bf16 %v16196_v25, %v16193_v35 }
 0x94f   : > { %17668 = vst [vmem:[#allocation40_spill] sm:$0xff] %v16723_v46  ;;  %v10623_v23 = vmax.f32 %v8635_v12, 0.0  ;;  %v8638_v61 = vadd.f32 %v16535_v59, %v8637_v40  ;;  %v8639_v60 = vpop.f32.mrb[235].mxu0  ;;  %9476 = vmatmul.mubr.bf16.gmra.mrb[100].mxu1 %v17670_v11  ;;  %v17692_v46 = vld [vmem:[#allocation13_spill] sm:$0xff] }
 0x950   : > { %9483 = vmatprep.mubr.bf16.mxu1 %v17671_v58 }
 0x951   : > { %v10624_v50 = vmax.f32 %v8638_v61, 0.0  ;;  %10803 = vrot.lane.b32.xlu0 %v10623_v23, %s12948_s6 }
 0x952   : > { %v8184_v19 = vpop.f32.mrb[252].mxu1 }
 0x953   : > { %10805 = vrot.lane.b32.xlu1 %v10624_v50, %s12948_s6  ;;  %v8186_v12 = vpop.f32.mrb[253].mxu1  ;;  %v16746_v55 = vadd.f32 %v8184_v19, %v15863_v32 }
 0x954   : > { %v8188_v40 = vpop.f32.mrb[254].mxu1  ;;  %v8642_v60 = vpop.f32.mrb[236].mxu0  ;;  %v16753_v35 = vadd.f32 %v8186_v12, %v15867_v62 }
 0x955   : > { %17672 = vst [vmem:[#allocation42_spill] sm:$0xff] %v16746_v55  ;;  %v16749_v20 = vadd.f32 %v8188_v40, %v15863_v32  ;;  %v8643_v18 = vadd.f32 %v16535_v59, %v8642_v60  ;;  %v8644_v11 = vpop.f32.mrb[237].mxu0  ;;  %v8190_v25 = vpop.f32.mrb[255].mxu1  ;;  %v17676_v32 = vpack.c.bf16 %v16188_v16, %v16185_v43  ;;  %v17677_v40 = vld [vmem:[#allocation6_spill] sm:$0xff]  ;;  %v17678_v60 = vld [vmem:[#allocation5_spill] sm:$0xff] }
 0x956   : > { %17674 = vst [vmem:[#allocation44_spill] sm:$0xff] %v16753_v35  ;;  %v8645_v61 = vpop.f32.mrb[238].mxu0  ;;  %v16758_v50 = vadd.f32 %v8190_v25, %v15867_v62  ;;  %v17679_v12 = vpack.c.bf16 %v17677_v40, %v17678_v60  ;;  %v17684_v11 = vld [vmem:[#allocation9_spill] sm:$0xff] }
 0x957   : > { %17673 = vst [vmem:[#allocation43_spill] sm:$0xff] %v16749_v20  ;;  %v10625_v58 = vmax.f32 %v8643_v18, 0.0  ;;  %v8646_v19 = vadd.f32 %v16535_v59, %v8645_v61  ;;  %v8647_v15 = vpop.f32.mrb[239].mxu0  ;;  %9484 = vmatmul.mubr.bf16.gmra.mrb[104].mxu1 %v17676_v32 }
 0x958   : > { %17675 = vst [vmem:[#allocation45_spill] sm:$0xff] %v16758_v50  ;;  %9491 = vmatprep.mubr.bf16.mxu1 %v17679_v12  ;;  %v17681_v12 = vld [vmem:[#allocation3_spill] sm:$0xff]  ;;  %v17691_v50 = vld [vmem:[#allocation14_spill] sm:$0xff] }
 0x959   : > { %v10626_v24 = vmax.f32 %v8646_v19, 0.0  ;;  %10807 = vrot.lane.b32.xlu0 %v10625_v58, %s12948_s6  ;;  %v17680_v58 = vld [vmem:[#allocation4_spill] sm:$0xff] }
 0x95a   : > { %v16770_v18 = vpop.f32.mrb[0].mxu1  ;;  %v17682_v23 = vpack.c.bf16 %v17680_v58, %v17681_v12 }
 0x95b   : > { %10809 = vrot.lane.b32.xlu1 %v10626_v24, %s12948_s6  ;;  %v16773_v62 = vpop.f32.mrb[1].mxu1  ;;  %v17683_v24 = vld [vmem:[#allocation10_spill] sm:$0xff] }
 0x95c   : > { %v8650_v15 = vpop.f32.mrb[240].mxu0  ;;  %v16775_v25 = vpop.f32.mrb[2].mxu1  ;;  %v17685_v55 = vpack.c.bf16 %v17683_v24, %v17684_v11 }
 0x95d   : > { %v8651_v43 = vadd.f32 %v16535_v59, %v8650_v15  ;;  %v8652_v16 = vpop.f32.mrb[241].mxu0  ;;  %v16778_v61 = vpop.f32.mrb[3].mxu1  ;;  %v12646_v15 = vld [vmem:[%s17527_s26 + $0x28] sm:$0xff]  }
 0x95e   : > { %v8653_v32 = vpop.f32.mrb[242].mxu0  ;;  %11927 = vmatprep.subr.bf16.mxu0 %v12646_v15 }
 0x95f   : > { %v10627_v40 = vmax.f32 %v8651_v43, 0.0  ;;  %v8654_v19 = vadd.f32 %v16535_v59, %v8653_v32  ;;  %v8655_v60 = vpop.f32.mrb[243].mxu0  ;;  %9492 = vmatmul.mubr.bf16.gmra.mrb[108].mxu1 %v17682_v23  ;;  %11928 = vmatpush3.bf16.msra.mxu0 %v12646_v15  ;;  %v17689_v15 = vld [vmem:[#allocation7_spill] sm:$0xff] }
 0x960   : > { %9499 = vmatprep.mubr.bf16.mxu1 %v17685_v55  ;;  %v12647_v55 = vld [vmem:[%s17527_s26 + $0x30] sm:$0xff]  }
 0x961   : > { %v10628_v16 = vmax.f32 %v8654_v19, 0.0  ;;  %10811 = vrot.lane.b32.xlu0 %v10627_v40, %s12948_s6  ;;  %11929 = vmatprep.subr.bf16.mxu0 %v12647_v55 }
 0x962   : > { %v16791_v20 = vpop.f32.mrb[4].mxu1 }
 0x963   : > { %17686 = vst [vmem:[#allocation6_spill] sm:$0xff] %v16791_v20  ;;  %10813 = vrot.lane.b32.xlu1 %v10628_v16, %s12948_s6  ;;  %v16794_v43 = vpop.f32.mrb[5].mxu1  ;;  %v17688_v16 = vld [vmem:[#allocation8_spill] sm:$0xff]  ;;  %11930 = vmatpush3.bf16.msra.mxu0 %v12647_v55 }
 0x964   : > { %v8658_v23 = vpop.f32.mrb[244].mxu0  ;;  %v16796_v32 = vpop.f32.mrb[6].mxu1  ;;  %v17690_v35 = vpack.c.bf16 %v17688_v16, %v17689_v15  ;;  %v17698_v15 = vld [vmem:[#allocation12_spill] sm:$0xff] }
 0x965   : > { %17687 = vst [vmem:[#allocation5_spill] sm:$0xff] %v16796_v32  ;;  %v8659_v11 = vadd.f32 %v16535_v59, %v8658_v23  ;;  %v8660_v19 = vpop.f32.mrb[245].mxu0  ;;  %v16802_v60 = vpop.f32.mrb[7].mxu1  ;;  %v17693_v32 = vpack.c.bf16 %v17691_v50, %v17692_v46  ;;  %v12648_v23 = vld [vmem:[%s17527_s26 + $0x38] sm:$0xff]  }
 0x966   : > { %v8661_v40 = vpop.f32.mrb[246].mxu0  ;;  %11931 = vmatprep.subr.bf16.mxu0 %v12648_v23 }
 0x967   : > { %v10629_v58 = vmax.f32 %v8659_v11, 0.0  ;;  %v8662_v12 = vadd.f32 %v16535_v59, %v8661_v40  ;;  %v8663_v24 = vpop.f32.mrb[247].mxu0  ;;  %9500 = vmatmul.mubr.bf16.gmra.mrb[112].mxu1 %v17690_v35  ;;  %11932 = vmatpush3.bf16.msra.mxu0 %v12648_v23 }
 0x968   : > { %9507 = vmatprep.mubr.bf16.mxu1 %v17693_v32 }
 0x969   : > { %v10630_v19 = vmax.f32 %v8662_v12, 0.0  ;;  %10815 = vrot.lane.b32.xlu0 %v10629_v58, %s12948_s6 }
 0x96a   : > { %v16815_v11 = vpop.f32.mrb[8].mxu1 }
 0x96b   : > { %17694 = vst [vmem:[#allocation4_spill] sm:$0xff] %v16815_v11  ;;  %10817 = vrot.lane.b32.xlu1 %v10630_v19, %s12948_s6  ;;  %v16818_v40 = vpop.f32.mrb[9].mxu1  ;;  %v17699_v11 = vld [vmem:[#allocation11_spill] sm:$0xff]  ;;  %v17701_v19 = vld [vmem:[#allocation18_spill] sm:$0xff] }
 0x96c   : > { %17695 = vst [vmem:[#allocation3_spill] sm:$0xff] %v16818_v40  ;;  %v8666_v35 = vpop.f32.mrb[248].mxu0  ;;  %v16820_v55 = vpop.f32.mrb[10].mxu1  ;;  %v17700_v20 = vpack.c.bf16 %v17698_v15, %v17699_v11  ;;  %v17702_v40 = vld [vmem:[#allocation17_spill] sm:$0xff] }
 0x96d   : > { %17696 = vst [vmem:[#allocation10_spill] sm:$0xff] %v16820_v55  ;;  %v8667_v46 = vadd.f32 %v16535_v59, %v8666_v35  ;;  %v8668_v50 = vpop.f32.mrb[249].mxu0  ;;  %v16823_v32 = vpop.f32.mrb[11].mxu1  ;;  %v17703_v23 = vpack.c.bf16 %v17701_v19, %v17702_v40  ;;  %v17710_v55 = vld [vmem:[#allocation21_spill] sm:$0xff] }
 0x96e   : > { %17697 = vst [vmem:[#allocation9_spill] sm:$0xff] %v16823_v32  ;;  %v8669_v24 = vpop.f32.mrb[250].mxu0 }
 0x96f   : > { %v10631_v12 = vmax.f32 %v8667_v46, 0.0  ;;  %v8670_v58 = vadd.f32 %v16535_v59, %v8669_v24  ;;  %v8671_v16 = vpop.f32.mrb[251].mxu0  ;;  %9508 = vmatmul.mubr.bf16.gmra.mrb[116].mxu1 %v17700_v20 }
 0x970   : > { %9515 = vmatprep.mubr.bf16.mxu1 %v17703_v23  ;;  %v17707_v23 = vld [vmem:[#allocation15_spill] sm:$0xff] }
 0x971   : > { %v10632_v8 = vmax.f32 %v8670_v58, 0.0  ;;  %10819 = vrot.lane.b32.xlu0 %v10631_v12, %s12948_s6  ;;  %v17706_v12 = vld [vmem:[#allocation16_spill] sm:$0xff] }
 0x972   : > { %v16833_v35 = vpop.f32.mrb[12].mxu1 }
 0x973   : > { %17704 = vst [vmem:[#allocation8_spill] sm:$0xff] %v16833_v35  ;;  %10821 = vrot.lane.b32.xlu1 %v10632_v8, %s12948_s6  ;;  %v16836_v50 = vpop.f32.mrb[13].mxu1  ;;  %v17708_v35 = vpack.c.bf16 %v17706_v12, %v17707_v23  ;;  %v17709_v8 = vld [vmem:[#allocation22_spill] sm:$0xff] }
 0x974   : > { %17705 = vst [vmem:[#allocation7_spill] sm:$0xff] %v16836_v50  ;;  %v8674_v46 = vpop.f32.mrb[252].mxu0  ;;  %v16838_v24 = vpop.f32.mrb[14].mxu1  ;;  %v17711_v50 = vpack.c.bf16 %v17709_v8, %v17710_v55  ;;  %v17719_v12 = vld [vmem:[#allocation26_spill] sm:$0xff]  ;;  %v17720_v55 = vld [vmem:[#allocation25_spill] sm:$0xff]  ;;  %v17726_v8 = vld [vmem:[#allocation24_spill] sm:$0xff] }
 0x975   : > { %v8675_v16 = vadd.f32 %v16535_v59, %v8674_v46  ;;  %v8676_v11 = vpop.f32.mrb[253].mxu0  ;;  %v16841_v20 = vpop.f32.mrb[15].mxu1 }
 0x976   : > { %v8677_v15 = vpop.f32.mrb[254].mxu0 }
 0x977   : > { %v10633_v40 = vmax.f32 %v8675_v16, 0.0  ;;  %v8678_v58 = vadd.f32 %v16535_v59, %v8677_v15  ;;  %v8679_v19 = vpop.f32.mrb[255].mxu0  ;;  %9516 = vmatmul.mubr.bf16.gmra.mrb[120].mxu1 %v17708_v35  ;;  %v17716_v15 = vld [vmem:[#allocation20_spill] sm:$0xff] }
 0x978   : > { %9523 = vmatprep.mubr.bf16.mxu1 %v17711_v50  ;;  %v17717_v19 = vld [vmem:[#allocation19_spill] sm:$0xff]  ;;  %v17721_v50 = vpack.c.bf16 %v17719_v12, %v17720_v55 }
 0x979   : > { %v10634_v32 = vmax.f32 %v8678_v58, 0.0  ;;  %10823 = vrot.lane.b32.xlu0 %v10633_v40, %s12948_s6  ;;  %v17718_v35 = vpack.c.bf16 %v17716_v15, %v17717_v19 }
 0x97a   : > { %v16851_v46 = vpop.f32.mrb[16].mxu1 }
 0x97b   : > { %17712 = vst [vmem:[#allocation14_spill] sm:$0xff] %v16851_v46  ;;  %10825 = vrot.lane.b32.xlu1 %v10634_v32, %s12948_s6  ;;  %v16854_v11 = vpop.f32.mrb[17].mxu1 }
 0x97c   : > { %17713 = vst [vmem:[#allocation13_spill] sm:$0xff] %v16854_v11  ;;  %v16856_v16 = vpop.f32.mrb[18].mxu1  ;;  %v17730_v11 = vld [vmem:[#allocation29_spill] sm:$0xff] }
 0x97d   : > { %17714 = vst [vmem:[#allocation12_spill] sm:$0xff] %v16856_v16  ;;  %v16858_v59 = vpop.f32.mrb[19].mxu1  ;;  %v17727_v16 = vld [vmem:[#allocation23_spill] sm:$0xff] }
 0x97e   : > { %17715 = vst [vmem:[#allocation11_spill] sm:$0xff] %v16858_v59  ;;  %v17728_v46 = vpack.c.bf16 %v17726_v8, %v17727_v16  ;;  %v17729_v59 = vld [vmem:[#allocation30_spill] sm:$0xff] }
 0x97f   : > { %9524 = vmatmul.mubr.bf16.gmra.mrb[124].mxu1 %v17718_v35  ;;  %v17731_v15 = vpack.c.bf16 %v17729_v59, %v17730_v11 }
 0x980   : > { %9531 = vmatprep.mubr.bf16.mxu1 %v17721_v50  ;;  %v17735_v50 = vld [vmem:[#allocation28_spill] sm:$0xff] }
 0x982   : > { %v16866_v58 = vpop.f32.mrb[20].mxu1 }
 0x983   : > { %17722 = vst [vmem:[#allocation18_spill] sm:$0xff] %v16866_v58  ;;  %v16868_v40 = vpop.f32.mrb[21].mxu1 }
 0x984   : > { %17723 = vst [vmem:[#allocation17_spill] sm:$0xff] %v16868_v40  ;;  %v16870_v23 = vpop.f32.mrb[22].mxu1  ;;  %v17739_v40 = vld [vmem:[#allocation33_spill] sm:$0xff] }
 0x985   : > { %17724 = vst [vmem:[#allocation16_spill] sm:$0xff] %v16870_v23  ;;  %v16872_v32 = vpop.f32.mrb[23].mxu1  ;;  %v17736_v23 = vld [vmem:[#allocation27_spill] sm:$0xff] }
 0x986   : > { %17725 = vst [vmem:[#allocation15_spill] sm:$0xff] %v16872_v32  ;;  %v17737_v58 = vpack.c.bf16 %v17735_v50, %v17736_v23  ;;  %v17738_v32 = vld [vmem:[#allocation34_spill] sm:$0xff] }
 0x987   : > { %9532 = vmatmul.mubr.bf16.gmra.mrb[128].mxu1 %v17728_v46  ;;  %v17740_v16 = vpack.c.bf16 %v17738_v32, %v17739_v40 }
 0x988   : > { %9539 = vmatprep.mubr.bf16.mxu1 %v17731_v15  ;;  %v17743_v15 = vld [vmem:[#allocation32_spill] sm:$0xff] }
 0x98a   : > { %v16880_v19 = vpop.f32.mrb[24].mxu1 }
 0x98b   : > { %17732 = vst [vmem:[#allocation22_spill] sm:$0xff] %v16880_v19  ;;  %v16882_v35 = vpop.f32.mrb[25].mxu1 }
 0x98c   : > { %v16884_v12 = vpop.f32.mrb[26].mxu1 }
 0x98d   : > { %17733 = vst [vmem:[#allocation21_spill] sm:$0xff] %v16884_v12  ;;  %v16886_v55 = vpop.f32.mrb[27].mxu1  ;;  %v17744_v12 = vld [vmem:[#allocation31_spill] sm:$0xff] }
 0x98e   : > { %17734 = vst [vmem:[#allocation20_spill] sm:$0xff] %v16886_v55  ;;  %v17745_v19 = vpack.c.bf16 %v17743_v15, %v17744_v12  ;;  %v17746_v55 = vld [vmem:[#allocation37_spill] sm:$0xff]  ;;  %v17752_v12 = vpack.c.bf16 %v16461_v45, %v16458_v27 }
 0x98f   : > { %9540 = vmatmul.mubr.bf16.gmra.mrb[132].mxu1 %v17737_v58  ;;  %v17747_v23 = vpack.c.bf16 %v16438_v53, %v17746_v55 }
 0x990   : > { %9547 = vmatprep.mubr.bf16.mxu1 %v17740_v16  ;;  %v17749_v16 = vld [vmem:[#allocation36_spill] sm:$0xff] }
 0x992   : > { %v16894_v46 = vpop.f32.mrb[28].mxu1 }
 0x993   : > { %17741 = vst [vmem:[#allocation19_spill] sm:$0xff] %v16894_v46  ;;  %v16896_v11 = vpop.f32.mrb[29].mxu1 }
 0x994   : > { %v16898_v59 = vpop.f32.mrb[30].mxu1 }
 0x995   : > { %17742 = vst [vmem:[#allocation26_spill] sm:$0xff] %v16898_v59  ;;  %v16900_v8 = vpop.f32.mrb[31].mxu1  ;;  %v17750_v59 = vld [vmem:[#allocation35_spill] sm:$0xff] }
 0x996   : > { %v17751_v46 = vpack.c.bf16 %v17749_v16, %v17750_v59  ;;  %v17755_v59 = vpack.c.bf16 %v16485_v13, %v16482_v51 }
 0x997   : > { %9548 = vmatmul.mubr.bf16.gmra.mrb[136].mxu1 %v17745_v19 }
 0x998   : > { %9555 = vmatprep.mubr.bf16.mxu1 %v17747_v23  ;;  %v17753_v23 = vld [vmem:[#allocation38_spill] sm:$0xff] }
 0x99a   : > { %v16908_v58 = vpop.f32.mrb[32].mxu1 }
 0x99b   : > { %v16910_v40 = vpop.f32.mrb[33].mxu1 }
 0x99c   : > { %v16912_v32 = vpop.f32.mrb[34].mxu1 }
 0x99d   : > { %17748 = vst [vmem:[#allocation25_spill] sm:$0xff] %v16912_v32  ;;  %v16914_v50 = vpop.f32.mrb[35].mxu1  ;;  %v17754_v32 = vpack.c.bf16 %v16454_v41, %v17753_v23  ;;  %v17757_v41 = vpack.c.bf16 %v16514_v3, %v16511_v10 }
 0x99f   : > { %9556 = vmatmul.mubr.bf16.gmra.mrb[140].mxu1 %v17751_v46 }
 0x9a0   : > { %9563 = vmatprep.mubr.bf16.mxu1 %v17752_v12  ;;  %v17756_v12 = vpack.c.bf16 %v16478_v48, %v16475_v39  ;;  %v17759_v39 = vpack.c.bf16 %v16542_v2, %v16539_v28 }
 0x9a2   : > { %v16922_v19 = vpop.f32.mrb[36].mxu1 }
 0x9a3   : > { %v16924_v53 = vpop.f32.mrb[37].mxu1 }
 0x9a4   : > { %v16926_v55 = vpop.f32.mrb[38].mxu1 }
 0x9a5   : > { %v16928_v15 = vpop.f32.mrb[39].mxu1 }
 0x9a7   : > { %9564 = vmatmul.mubr.bf16.gmra.mrb[144].mxu1 %v17754_v32 }
 0x9a8   : > { %9571 = vmatprep.mubr.bf16.mxu1 %v17755_v59  ;;  %v17758_v59 = vpack.c.bf16 %v16507_v6, %v16504_v33  ;;  %v17761_v33 = vpack.c.bf16 %v16568_v52, %v16565_v44 }
 0x9aa   : > { %v16936_v46 = vpop.f32.mrb[40].mxu1 }
 0x9ab   : > { %v16938_v27 = vpop.f32.mrb[41].mxu1 }
 0x9ac   : > { %v16940_v45 = vpop.f32.mrb[42].mxu1 }
 0x9ad   : > { %v16942_v16 = vpop.f32.mrb[43].mxu1 }
 0x9af   : > { %9572 = vmatmul.mubr.bf16.gmra.mrb[148].mxu1 %v17756_v12 }
 0x9b0   : > { %9579 = vmatprep.mubr.bf16.mxu1 %v17757_v41  ;;  %v17760_v41 = vpack.c.bf16 %v16533_v56, %v16530_v54  ;;  %v17763_v54 = vpack.c.bf16 %v16594_v36, %v16591_v37 }
 0x9b2   : > { %v16950_v32 = vpop.f32.mrb[44].mxu1 }
 0x9b3   : > { %v16952_v51 = vpop.f32.mrb[45].mxu1 }
 0x9b4   : > { %v16954_v13 = vpop.f32.mrb[46].mxu1 }
 0x9b5   : > { %v16956_v23 = vpop.f32.mrb[47].mxu1 }
 0x9b7   : > { %9580 = vmatmul.mubr.bf16.gmra.mrb[152].mxu1 %v17758_v59 }
 0x9b8   : > { %9587 = vmatprep.mubr.bf16.mxu1 %v17759_v39  ;;  %v17762_v39 = vpack.c.bf16 %v16561_v49, %v16558_v30  ;;  %v17765_v30 = vpack.c.bf16 %v16623_v14, %v16620_v22  ;;  %v17023_v22 = vld [vmem:[%s17526_s25] ss:$0 sm:$0xff] }
 0x9ba   : > { %v16964_v48 = vpop.f32.mrb[48].mxu1 }
 0x9bb   : > { %v16966_v10 = vpop.f32.mrb[49].mxu1 }
 0x9bc   : > { %v16968_v3 = vpop.f32.mrb[50].mxu1 }
 0x9bd   : > { %v16970_v12 = vpop.f32.mrb[51].mxu1 }
 0x9bf   : > { %9588 = vmatmul.mubr.bf16.gmra.mrb[156].mxu1 %v17760_v41 }
 0x9c0   : > { %9595 = vmatprep.mubr.bf16.mxu1 %v17761_v33  ;;  %v17764_v33 = vpack.c.bf16 %v16587_v29, %v16584_v17  ;;  %v17770_v17 = vpack.c.bf16 %v16649_v4, %v16646_v21  ;;  %v17771_v21 = vpack.c.bf16 %v16642_v63, %v16639_v0  ;;  %v17772_v4 = vpack.c.bf16 %v16675_v42, %v16672_v9 }
 0x9c1   : > { %v17773_v63 = vpack.c.bf16 %v16668_v38, %v16665_v47  ;;  %v17774_v9 = vpack.c.bf16 %v16701_v5, %v16698_v1  ;;  %v17775_v38 = vpack.c.bf16 %v16694_v31, %v16691_v26  ;;  %v17776_v1 = vld [vmem:[#allocation41_spill] sm:$0xff]  ;;  %v17780_v31 = vld [vmem:[#allocation40_spill] sm:$0xff] }
 0x9c2   : > { %v16978_v6 = vpop.f32.mrb[52].mxu1  ;;  %v17777_v5 = vpack.c.bf16 %v16730_v34, %v17776_v1  ;;  %v17787_v1 = vld [vmem:[#allocation9_spill] sm:$0xff] }
 0x9c3   : > { %v16980_v28 = vpop.f32.mrb[53].mxu1 }
 0x9c4   : > { %v16982_v2 = vpop.f32.mrb[54].mxu1 }
 0x9c5   : > { %v16984_v59 = vpop.f32.mrb[55].mxu1 }
 0x9c7   : > { %9596 = vmatmul.mubr.bf16.gmra.mrb[160].mxu1 %v17762_v39 }
 0x9c8   : > { %9603 = vmatprep.mubr.bf16.mxu1 %v17763_v54  ;;  %v17769_v54 = vpack.c.bf16 %v16616_v7, %v16613_v57 }
 0x9ca   : > { %v16992_v56 = vpop.f32.mrb[56].mxu1 }
 0x9cb   : > { %v16994_v44 = vpop.f32.mrb[57].mxu1 }
 0x9cc   : > { %v16996_v52 = vpop.f32.mrb[58].mxu1 }
 0x9cd   : > { %v16998_v41 = vpop.f32.mrb[59].mxu1 }
 0x9cf   : > { %9604 = vmatmul.mubr.bf16.gmra.mrb[164].mxu1 %v17764_v33 }
 0x9d0   : > { %9611 = vmatprep.mubr.bf16.mxu1 %v17765_v30 }
 0x9d2   : > { %v17006_v49 = vpop.f32.mrb[60].mxu1 }
 0x9d3   : > { %17766 = vst [vmem:[#allocation24_spill] sm:$0xff] %v17006_v49  ;;  %v17008_v37 = vpop.f32.mrb[61].mxu1 }
 0x9d4   : > { %v17010_v36 = vpop.f32.mrb[62].mxu1 }
 0x9d5   : > { %17767 = vst [vmem:[#allocation23_spill] sm:$0xff] %v17010_v36  ;;  %v17012_v39 = vpop.f32.mrb[63].mxu1 }
 0x9d6   : > { %17768 = vst [vmem:[#allocation30_spill] sm:$0xff] %v17012_v39 }
 0x9d7   : > { %9612 = vmatmul.mubr.bf16.gmra.mrb[168].mxu1 %v17769_v54 }
 0x9d8   : > { %9619 = vmatprep.mubr.bf16.mxu1 %v17770_v17 }
 0x9da   : > { %v9405_v29 = vpop.f32.mrb[64].mxu1 }
 0x9db   : > { %v9406_v14 = vadd.f32 %v9405_v29, %v16773_v62  ;;  %v9407_v33 = vpop.f32.mrb[65].mxu1 }
 0x9dc   : > { %v9408_v30 = vpop.f32.mrb[66].mxu1 }
 0x9dd   : > { %v9667_v36 = vadd.f32 %v17023_v22, %v9406_v14  ;;  %v9409_v49 = vadd.f32 %v9408_v30, %v16778_v61  ;;  %v9410_v57 = vpop.f32.mrb[67].mxu1 }
 0x9df   : > { %v9668_v7 = vadd.f32 %v17023_v22, %v9409_v49  ;;  %9620 = vmatmul.mubr.bf16.gmra.mrb[172].mxu1 %v17771_v21  ;;  %v9731_v54 = vmax.f32 %v9667_v36, 0.0 }
 0x9e0   : > { %9627 = vmatprep.mubr.bf16.mxu1 %v17772_v4 }
 0x9e1   : > { %v9732_v17 = vmax.f32 %v9668_v7, 0.0 }
 0x9e2   : > { %v9413_v62 = vpop.f32.mrb[68].mxu1 }
 0x9e3   : > { %v9414_v29 = vadd.f32 %v16770_v18, %v9413_v62  ;;  %v9415_v33 = vpop.f32.mrb[69].mxu1  ;;  %v9795_v14 = vpack.c.bf16 %v9732_v17, %v9731_v54 }
 0x9e4   : > { %v9416_v39 = vpop.f32.mrb[70].mxu1 }
 0x9e5   : > { %v9669_v61 = vadd.f32 %v17023_v22, %v9414_v29  ;;  %v9417_v49 = vadd.f32 %v16775_v25, %v9416_v39  ;;  %v9418_v30 = vpop.f32.mrb[71].mxu1  ;;  %11933 = vmatprep.mubr.bf16.mxu0 %v9795_v14  ;;  %v17778_v29 = vld [vmem:[#allocation6_spill] sm:$0xff] }
 0x9e6   : > { %v17779_v30 = vld [vmem:[#allocation5_spill] sm:$0xff] }
 0x9e7   : > { %v9670_v0 = vadd.f32 %v17023_v22, %v9417_v49  ;;  %9628 = vmatmul.mubr.bf16.gmra.mrb[176].mxu1 %v17773_v63  ;;  %v9733_v42 = vmax.f32 %v9669_v61, 0.0 }
 0x9e8   : > { %9635 = vmatprep.mubr.bf16.mxu1 %v17774_v9  ;;  %v17781_v9 = vld [vmem:[#allocation39_spill] sm:$0xff] }
 0x9e9   : > { %v9734_v18 = vmax.f32 %v9670_v0, 0.0  ;;  %v17782_v34 = vpack.c.bf16 %v17780_v31, %v17781_v9  ;;  %v17792_v9 = vld [vmem:[#allocation10_spill] sm:$0xff] }
 0x9ea   : > { %v9421_v36 = vpop.f32.mrb[72].mxu1 }
 0x9eb   : > { %v9796_v57 = vpack.c.bf16 %v9734_v18, %v9733_v42  ;;  %v9422_v7 = vadd.f32 %v9421_v36, %v16794_v43  ;;  %v9423_v21 = vpop.f32.mrb[73].mxu1  ;;  %v17783_v42 = vld [vmem:[#allocation45_spill] sm:$0xff]  ;;  %v17784_v18 = vld [vmem:[#allocation44_spill] sm:$0xff] }
 0x9ec   : > { %v9424_v25 = vpop.f32.mrb[74].mxu1  ;;  %v17785_v36 = vpack.c.bf16 %v17783_v42, %v17784_v18 }
 0x9ed   : > { %v9671_v39 = vadd.f32 %v17023_v22, %v9422_v7  ;;  %v9425_v4 = vadd.f32 %v9424_v25, %v16802_v60  ;;  %v9426_v54 = vpop.f32.mrb[75].mxu1  ;;  %11934 = vmatmul.mubr.bf16.vlgmr.msra.gmra.mrb[0].mxu0 %v9796_v57 }
 0x9ef   : > { %v9672_v47 = vadd.f32 %v17023_v22, %v9425_v4  ;;  %9636 = vmatmul.mubr.bf16.gmra.mrb[180].mxu1 %v17775_v38  ;;  %v9735_v17 = vmax.f32 %v9671_v39, 0.0  ;;  %v17786_v39 = vld [vmem:[#allocation3_spill] sm:$0xff] }
 0x9f0   : > { %9643 = vmatprep.mubr.bf16.mxu1 %v17777_v5 }
 0x9f1   : > { %v9736_v43 = vmax.f32 %v9672_v47, 0.0 }
 0x9f2   : > { %v9429_v62 = vpop.f32.mrb[76].mxu1 }
 0x9f3   : > { %v9430_v33 = vadd.f32 %v17778_v29, %v9429_v62  ;;  %v9431_v14 = vpop.f32.mrb[77].mxu1  ;;  %v9797_v61 = vpack.c.bf16 %v9736_v43, %v9735_v17  ;;  %v17788_v62 = vld [vmem:[#allocation43_spill] sm:$0xff]  ;;  %v17789_v29 = vld [vmem:[#allocation42_spill] sm:$0xff] }
 0x9f4   : > { %v9432_v60 = vpop.f32.mrb[78].mxu1 }
 0x9f5   : > { %v9673_v49 = vadd.f32 %v17023_v22, %v9430_v33  ;;  %v9433_v0 = vadd.f32 %v17779_v30, %v9432_v60  ;;  %v9434_v63 = vpop.f32.mrb[79].mxu1  ;;  %11937 = vmatprep.mubr.bf16.mxu0 %v9797_v61  ;;  %v17790_v33 = vpack.c.bf16 %v17788_v62, %v17789_v29  ;;  %v17794_v29 = vld [vmem:[#allocation8_spill] sm:$0xff] }
 0x9f7   : > { %v9674_v26 = vadd.f32 %v17023_v22, %v9433_v0  ;;  %9644 = vmatmul.mubr.bf16.gmra.mrb[184].mxu1 %v17782_v34  ;;  %v9737_v57 = vmax.f32 %v9673_v49, 0.0  ;;  %v17791_v49 = vld [vmem:[#allocation4_spill] sm:$0xff] }
 0x9f8   : > { %9651 = vmatprep.mubr.bf16.mxu1 %v17785_v36 }
 0x9f9   : > { %v9738_v7 = vmax.f32 %v9674_v26, 0.0 }
 0x9fa   : > { %v9437_v21 = vpop.f32.mrb[80].mxu1 }
 0x9fb   : > { %v9798_v25 = vpack.c.bf16 %v9738_v7, %v9737_v57  ;;  %v9438_v4 = vadd.f32 %v9437_v21, %v17786_v39  ;;  %v9439_v54 = vpop.f32.mrb[81].mxu1 }
 0x9fc   : > { %v9440_v47 = vpop.f32.mrb[82].mxu1 }
 0x9fd   : > { %v9675_v38 = vadd.f32 %v17023_v22, %v9438_v4  ;;  %v9441_v5 = vadd.f32 %v9440_v47, %v17787_v1  ;;  %v9442_v17 = vpop.f32.mrb[83].mxu1  ;;  %11938 = vmatmul.mubr.bf16.gmra.mrb[4].mxu0 %v9798_v25  ;;  %v17793_v25 = vld [vmem:[#allocation7_spill] sm:$0xff] }
 0x9ff   : > { %v9676_v43 = vadd.f32 %v17023_v22, %v9441_v5  ;;  %9652 = vmatmul.mubr.bf16.gmra.mrb[188].mxu1 %v17790_v33  ;;  %v9739_v14 = vmax.f32 %v9675_v38, 0.0 }
 0xa01   : > { %v9740_v61 = vmax.f32 %v9676_v43, 0.0 }
 0xa02   : > { %v9445_v60 = vpop.f32.mrb[84].mxu1 }
 0xa03   : > { %v9446_v30 = vadd.f32 %v17791_v49, %v9445_v60  ;;  %v9447_v0 = vpop.f32.mrb[85].mxu1  ;;  %v9799_v63 = vpack.c.bf16 %v9740_v61, %v9739_v14 }
 0xa04   : > { %v9448_v26 = vpop.f32.mrb[86].mxu1 }
 0xa05   : > { %v9677_v31 = vadd.f32 %v17023_v22, %v9446_v30  ;;  %v9449_v34 = vadd.f32 %v17792_v9, %v9448_v26  ;;  %v9450_v42 = vpop.f32.mrb[87].mxu1  ;;  %11941 = vmatprep.mubr.bf16.mxu0 %v9799_v63 }
 0xa07   : > { %v9678_v18 = vadd.f32 %v17023_v22, %v9449_v34  ;;  %v9741_v36 = vmax.f32 %v9677_v31, 0.0  ;;  %v17795_v34 = vld [vmem:[#allocation13_spill] sm:$0xff] }
 0xa09   : > { %v9742_v57 = vmax.f32 %v9678_v18, 0.0 }
 0xa0a   : > { %v9453_v7 = vpop.f32.mrb[88].mxu1 }
 0xa0b   : > { %v9800_v21 = vpack.c.bf16 %v9742_v57, %v9741_v36  ;;  %v9454_v39 = vadd.f32 %v9453_v7, %v17793_v25  ;;  %v9455_v4 = vpop.f32.mrb[89].mxu1  ;;  %v17796_v7 = vld [vmem:[#allocation11_spill] sm:$0xff] }
 0xa0c   : > { %v9456_v54 = vpop.f32.mrb[90].mxu1 }
 0xa0d   : > { %v9679_v47 = vadd.f32 %v17023_v22, %v9454_v39  ;;  %v9457_v38 = vadd.f32 %v9456_v54, %v16841_v20  ;;  %v9458_v1 = vpop.f32.mrb[91].mxu1  ;;  %11942 = vmatmul.mubr.bf16.gmra.mrb[8].mxu0 %v9800_v21 }
 0xa0f   : > { %v9680_v5 = vadd.f32 %v17023_v22, %v9457_v38  ;;  %v9743_v17 = vmax.f32 %v9679_v47, 0.0  ;;  %v17797_v47 = vld [vmem:[#allocation14_spill] sm:$0xff] }
 0xa11   : > { %v9744_v43 = vmax.f32 %v9680_v5, 0.0 }
 0xa12   : > { %v9461_v62 = vpop.f32.mrb[92].mxu1 }
 0xa13   : > { %v9462_v33 = vadd.f32 %v17794_v29, %v9461_v62  ;;  %v9463_v14 = vpop.f32.mrb[93].mxu1  ;;  %v9801_v61 = vpack.c.bf16 %v9744_v43, %v9743_v17  ;;  %v17798_v62 = vld [vmem:[#allocation12_spill] sm:$0xff] }
 0xa14   : > { %v9464_v60 = vpop.f32.mrb[94].mxu1 }
 0xa15   : > { %v9681_v49 = vadd.f32 %v17023_v22, %v9462_v33  ;;  %v9465_v30 = vadd.f32 %v16838_v24, %v9464_v60  ;;  %v9466_v0 = vpop.f32.mrb[95].mxu1  ;;  %11945 = vmatprep.mubr.bf16.mxu0 %v9801_v61 }
 0xa16   : > { %v17799_v0 = vld [vmem:[#allocation17_spill] sm:$0xff] }
 0xa17   : > { %v9682_v20 = vadd.f32 %v17023_v22, %v9465_v30  ;;  %v9745_v63 = vmax.f32 %v9681_v49, 0.0 }
 0xa19   : > { %v9746_v26 = vmax.f32 %v9682_v20, 0.0 }
 0xa1a   : > { %v9469_v31 = vpop.f32.mrb[96].mxu1 }
 0xa1b   : > { %v9802_v9 = vpack.c.bf16 %v9746_v26, %v9745_v63  ;;  %v9470_v42 = vadd.f32 %v9469_v31, %v17795_v34  ;;  %v9471_v18 = vpop.f32.mrb[97].mxu1 }
 0xa1c   : > { %v9472_v36 = vpop.f32.mrb[98].mxu1 }
 0xa1d   : > { %v9683_v57 = vadd.f32 %v17023_v22, %v9470_v42  ;;  %v9473_v21 = vadd.f32 %v9472_v36, %v17796_v7  ;;  %v9474_v25 = vpop.f32.mrb[99].mxu1  ;;  %11946 = vmatmul.mubr.bf16.gmra.mrb[12].mxu0 %v9802_v9  ;;  %v17800_v9 = vld [vmem:[#allocation15_spill] sm:$0xff] }
 0xa1f   : > { %v9684_v24 = vadd.f32 %v17023_v22, %v9473_v21  ;;  %v9747_v39 = vmax.f32 %v9683_v57, 0.0  ;;  %v17801_v21 = vld [vmem:[#allocation18_spill] sm:$0xff] }
 0xa21   : > { %v9748_v4 = vmax.f32 %v9684_v24, 0.0 }
 0xa22   : > { %v9477_v54 = vpop.f32.mrb[100].mxu1 }
 0xa23   : > { %v9478_v38 = vadd.f32 %v17797_v47, %v9477_v54  ;;  %v9479_v1 = vpop.f32.mrb[101].mxu1  ;;  %v9803_v5 = vpack.c.bf16 %v9748_v4, %v9747_v39  ;;  %v17802_v47 = vld [vmem:[#allocation16_spill] sm:$0xff] }
 0xa24   : > { %v9480_v17 = vpop.f32.mrb[102].mxu1 }
 0xa25   : > { %v9685_v43 = vadd.f32 %v17023_v22, %v9478_v38  ;;  %v9481_v29 = vadd.f32 %v17798_v62, %v9480_v17  ;;  %v9482_v33 = vpop.f32.mrb[103].mxu1  ;;  %11949 = vmatprep.mubr.bf16.mxu0 %v9803_v5 }
 0xa27   : > { %v9686_v14 = vadd.f32 %v17023_v22, %v9481_v29  ;;  %v9749_v61 = vmax.f32 %v9685_v43, 0.0 }
 0xa29   : > { %v9750_v60 = vmax.f32 %v9686_v14, 0.0 }
 0xa2a   : > { %v9485_v49 = vpop.f32.mrb[104].mxu1 }
 0xa2b   : > { %v9804_v30 = vpack.c.bf16 %v9750_v60, %v9749_v61  ;;  %v9486_v20 = vadd.f32 %v9485_v49, %v17799_v0  ;;  %v9487_v63 = vpop.f32.mrb[105].mxu1  ;;  %v17803_v49 = vld [vmem:[#allocation20_spill] sm:$0xff] }
 0xa2c   : > { %v9488_v26 = vpop.f32.mrb[106].mxu1 }
 0xa2d   : > { %v9687_v31 = vadd.f32 %v17023_v22, %v9486_v20  ;;  %v9489_v34 = vadd.f32 %v9488_v26, %v17800_v9  ;;  %v9490_v42 = vpop.f32.mrb[107].mxu1  ;;  %11950 = vmatmul.mubr.bf16.gmra.mrb[16].mxu0 %v9804_v30  ;;  %v17804_v9 = vld [vmem:[#allocation22_spill] sm:$0xff] }
 0xa2f   : > { %v9688_v18 = vadd.f32 %v17023_v22, %v9489_v34  ;;  %v9751_v36 = vmax.f32 %v9687_v31, 0.0 }
 0xa31   : > { %v9752_v57 = vmax.f32 %v9688_v18, 0.0 }
 0xa32   : > { %v9493_v7 = vpop.f32.mrb[108].mxu1 }
 0xa33   : > { %v9494_v25 = vadd.f32 %v17801_v21, %v9493_v7  ;;  %v9495_v24 = vpop.f32.mrb[109].mxu1  ;;  %v9805_v39 = vpack.c.bf16 %v9752_v57, %v9751_v36  ;;  %v17805_v57 = vld [vmem:[#allocation21_spill] sm:$0xff] }
 0xa34   : > { %v9496_v4 = vpop.f32.mrb[110].mxu1 }
 0xa35   : > { %v9689_v54 = vadd.f32 %v17023_v22, %v9494_v25  ;;  %v9497_v38 = vadd.f32 %v17802_v47, %v9496_v4  ;;  %v9498_v1 = vpop.f32.mrb[111].mxu1  ;;  %11953 = vmatprep.mubr.bf16.mxu0 %v9805_v39 }
 0xa37   : > { %v9690_v5 = vadd.f32 %v17023_v22, %v9497_v38  ;;  %v9753_v17 = vmax.f32 %v9689_v54, 0.0 }
 0xa39   : > { %v9754_v43 = vmax.f32 %v9690_v5, 0.0 }
 0xa3a   : > { %v9501_v62 = vpop.f32.mrb[112].mxu1 }
 0xa3b   : > { %v9806_v29 = vpack.c.bf16 %v9754_v43, %v9753_v17  ;;  %v9502_v33 = vadd.f32 %v9501_v62, %v16882_v35  ;;  %v9503_v14 = vpop.f32.mrb[113].mxu1 }
 0xa3c   : > { %v9504_v61 = vpop.f32.mrb[114].mxu1 }
 0xa3d   : > { %v9691_v60 = vadd.f32 %v17023_v22, %v9502_v33  ;;  %v9505_v30 = vadd.f32 %v9504_v61, %v17803_v49  ;;  %v9506_v0 = vpop.f32.mrb[115].mxu1  ;;  %11954 = vmatmul.mubr.bf16.gmra.mrb[20].mxu0 %v9806_v29  ;;  %v17806_v61 = vld [vmem:[#allocation19_spill] sm:$0xff] }
 0xa3f   : > { %v9692_v20 = vadd.f32 %v17023_v22, %v9505_v30  ;;  %v9755_v63 = vmax.f32 %v9691_v60, 0.0 }
 0xa41   : > { %v9756_v26 = vmax.f32 %v9692_v20, 0.0  ;;  %v17807_v20 = vld [vmem:[#allocation26_spill] sm:$0xff] }
 0xa42   : > { %v9509_v31 = vpop.f32.mrb[116].mxu1 }
 0xa43   : > { %v9510_v34 = vadd.f32 %v17804_v9, %v9509_v31  ;;  %v9511_v42 = vpop.f32.mrb[117].mxu1  ;;  %v9807_v18 = vpack.c.bf16 %v9756_v26, %v9755_v63 }
 0xa44   : > { %v9512_v36 = vpop.f32.mrb[118].mxu1 }
 0xa45   : > { %v9693_v35 = vadd.f32 %v17023_v22, %v9510_v34  ;;  %v9513_v7 = vadd.f32 %v17805_v57, %v9512_v36  ;;  %v9514_v21 = vpop.f32.mrb[119].mxu1  ;;  %11957 = vmatprep.mubr.bf16.mxu0 %v9807_v18 }
 0xa47   : > { %v9694_v25 = vadd.f32 %v17023_v22, %v9513_v7  ;;  %v9757_v24 = vmax.f32 %v9693_v35, 0.0 }
 0xa49   : > { %v9758_v39 = vmax.f32 %v9694_v25, 0.0 }
 0xa4a   : > { %v9517_v4 = vpop.f32.mrb[120].mxu1 }
 0xa4b   : > { %v9808_v54 = vpack.c.bf16 %v9758_v39, %v9757_v24  ;;  %v9518_v47 = vadd.f32 %v9517_v4, %v16896_v11  ;;  %v9519_v38 = vpop.f32.mrb[121].mxu1 }
 0xa4c   : > { %v9520_v1 = vpop.f32.mrb[122].mxu1 }
 0xa4d   : > { %v9695_v5 = vadd.f32 %v17023_v22, %v9518_v47  ;;  %v9521_v17 = vadd.f32 %v9520_v1, %v16900_v8  ;;  %v9522_v43 = vpop.f32.mrb[123].mxu1  ;;  %11958 = vmatmul.mubr.bf16.gmra.mrb[24].mxu0 %v9808_v54 }
 0xa4f   : > { %v9696_v62 = vadd.f32 %v17023_v22, %v9521_v17  ;;  %v9759_v29 = vmax.f32 %v9695_v5, 0.0  ;;  %v17808_v5 = vld [vmem:[#allocation25_spill] sm:$0xff] }
 0xa51   : > { %v9760_v33 = vmax.f32 %v9696_v62, 0.0 }
 0xa52   : > { %v9525_v14 = vpop.f32.mrb[124].mxu1 }
 0xa53   : > { %v9526_v60 = vadd.f32 %v17806_v61, %v9525_v14  ;;  %v9527_v49 = vpop.f32.mrb[125].mxu1  ;;  %v9809_v30 = vpack.c.bf16 %v9760_v33, %v9759_v29 }
 0xa54   : > { %v9528_v0 = vpop.f32.mrb[126].mxu1 }
 0xa55   : > { %v9697_v11 = vadd.f32 %v17023_v22, %v9526_v60  ;;  %v9529_v63 = vadd.f32 %v17807_v20, %v9528_v0  ;;  %v9530_v26 = vpop.f32.mrb[127].mxu1  ;;  %11961 = vmatprep.mubr.bf16.mxu0 %v9809_v30 }
 0xa57   : > { %v9698_v8 = vadd.f32 %v17023_v22, %v9529_v63  ;;  %v9761_v31 = vmax.f32 %v9697_v11, 0.0 }
 0xa59   : > { %v9762_v9 = vmax.f32 %v9698_v8, 0.0 }
 0xa5a   : > { %v9533_v34 = vpop.f32.mrb[128].mxu1 }
 0xa5b   : > { %v9810_v42 = vpack.c.bf16 %v9762_v9, %v9761_v31  ;;  %v9534_v18 = vadd.f32 %v9533_v34, %v16910_v40  ;;  %v9535_v36 = vpop.f32.mrb[129].mxu1 }
 0xa5c   : > { %v9536_v35 = vpop.f32.mrb[130].mxu1 }
 0xa5d   : > { %v9699_v57 = vadd.f32 %v17023_v22, %v9534_v18  ;;  %v9537_v7 = vadd.f32 %v9536_v35, %v16914_v50  ;;  %v9538_v21 = vpop.f32.mrb[131].mxu1  ;;  %11962 = vmatmul.mubr.bf16.gmra.mrb[28].mxu0 %v9810_v42 }
 0xa5f   : > { %v9700_v25 = vadd.f32 %v17023_v22, %v9537_v7  ;;  %v9763_v24 = vmax.f32 %v9699_v57, 0.0 }
 0xa61   : > { %v9764_v39 = vmax.f32 %v9700_v25, 0.0 }
 0xa62   : > { %v9541_v4 = vpop.f32.mrb[132].mxu1 }
 0xa63   : > { %v9542_v54 = vadd.f32 %v16908_v58, %v9541_v4  ;;  %v9543_v47 = vpop.f32.mrb[133].mxu1  ;;  %v9811_v38 = vpack.c.bf16 %v9764_v39, %v9763_v24 }
 0xa64   : > { %v9544_v1 = vpop.f32.mrb[134].mxu1 }
 0xa65   : > { %v9701_v40 = vadd.f32 %v17023_v22, %v9542_v54  ;;  %v9545_v17 = vadd.f32 %v17808_v5, %v9544_v1  ;;  %v9546_v43 = vpop.f32.mrb[135].mxu1  ;;  %11965 = vmatprep.mubr.bf16.mxu0 %v9811_v38 }
 0xa67   : > { %v9702_v50 = vadd.f32 %v17023_v22, %v9545_v17  ;;  %v9765_v62 = vmax.f32 %v9701_v40, 0.0 }
 0xa69   : > { %v9766_v29 = vmax.f32 %v9702_v50, 0.0 }
 0xa6a   : > { %v9549_v33 = vpop.f32.mrb[136].mxu1 }
 0xa6b   : > { %v9812_v14 = vpack.c.bf16 %v9766_v29, %v9765_v62  ;;  %v9550_v61 = vadd.f32 %v9549_v33, %v16924_v53  ;;  %v9551_v60 = vpop.f32.mrb[137].mxu1 }
 0xa6c   : > { %v9552_v49 = vpop.f32.mrb[138].mxu1 }
 0xa6d   : > { %v9703_v58 = vadd.f32 %v17023_v22, %v9550_v61  ;;  %v9553_v30 = vadd.f32 %v9552_v49, %v16928_v15  ;;  %v9554_v0 = vpop.f32.mrb[139].mxu1  ;;  %11966 = vmatmul.mubr.bf16.gmra.mrb[32].mxu0 %v9812_v14 }
 0xa6f   : > { %v9704_v11 = vadd.f32 %v17023_v22, %v9553_v30  ;;  %v9767_v20 = vmax.f32 %v9703_v58, 0.0 }
 0xa71   : > { %v9768_v63 = vmax.f32 %v9704_v11, 0.0 }
 0xa72   : > { %v9557_v26 = vpop.f32.mrb[140].mxu1 }
 0xa73   : > { %v9558_v8 = vadd.f32 %v16922_v19, %v9557_v26  ;;  %v9559_v31 = vpop.f32.mrb[141].mxu1  ;;  %v9813_v9 = vpack.c.bf16 %v9768_v63, %v9767_v20 }
 0xa74   : > { %v9560_v34 = vpop.f32.mrb[142].mxu1 }
 0xa75   : > { %v9705_v53 = vadd.f32 %v17023_v22, %v9558_v8  ;;  %v9561_v42 = vadd.f32 %v16926_v55, %v9560_v34  ;;  %v9562_v18 = vpop.f32.mrb[143].mxu1  ;;  %11969 = vmatprep.mubr.bf16.mxu0 %v9813_v9 }
 0xa77   : > { %v9706_v15 = vadd.f32 %v17023_v22, %v9561_v42  ;;  %v9769_v36 = vmax.f32 %v9705_v53, 0.0 }
 0xa79   : > { %v9770_v35 = vmax.f32 %v9706_v15, 0.0 }
 0xa7a   : > { %v9565_v57 = vpop.f32.mrb[144].mxu1 }
 0xa7b   : > { %v9814_v7 = vpack.c.bf16 %v9770_v35, %v9769_v36  ;;  %v9566_v21 = vadd.f32 %v9565_v57, %v16938_v27  ;;  %v9567_v25 = vpop.f32.mrb[145].mxu1 }
 0xa7c   : > { %v9568_v24 = vpop.f32.mrb[146].mxu1 }
 0xa7d   : > { %v9707_v19 = vadd.f32 %v17023_v22, %v9566_v21  ;;  %v9569_v39 = vadd.f32 %v9568_v24, %v16942_v16  ;;  %v9570_v4 = vpop.f32.mrb[147].mxu1  ;;  %11970 = vmatmul.mubr.bf16.gmra.mrb[36].mxu0 %v9814_v7 }
 0xa7f   : > { %v9708_v55 = vadd.f32 %v17023_v22, %v9569_v39  ;;  %v9771_v54 = vmax.f32 %v9707_v19, 0.0 }
 0xa81   : > { %v9772_v47 = vmax.f32 %v9708_v55, 0.0 }
 0xa82   : > { %v9573_v38 = vpop.f32.mrb[148].mxu1 }
 0xa83   : > { %v9574_v1 = vadd.f32 %v16936_v46, %v9573_v38  ;;  %v9575_v40 = vpop.f32.mrb[149].mxu1  ;;  %v9815_v5 = vpack.c.bf16 %v9772_v47, %v9771_v54 }
 0xa84   : > { %v9576_v17 = vpop.f32.mrb[150].mxu1 }
 0xa85   : > { %v9709_v27 = vadd.f32 %v17023_v22, %v9574_v1  ;;  %v9577_v43 = vadd.f32 %v16940_v45, %v9576_v17  ;;  %v9578_v50 = vpop.f32.mrb[151].mxu1  ;;  %11973 = vmatprep.mubr.bf16.mxu0 %v9815_v5 }
 0xa87   : > { %v9710_v16 = vadd.f32 %v17023_v22, %v9577_v43  ;;  %v9773_v62 = vmax.f32 %v9709_v27, 0.0 }
 0xa89   : > { %v9774_v29 = vmax.f32 %v9710_v16, 0.0 }
 0xa8a   : > { %v9581_v33 = vpop.f32.mrb[152].mxu1 }
 0xa8b   : > { %v9816_v14 = vpack.c.bf16 %v9774_v29, %v9773_v62  ;;  %v9582_v61 = vadd.f32 %v9581_v33, %v16952_v51  ;;  %v9583_v60 = vpop.f32.mrb[153].mxu1 }
 0xa8c   : > { %v9584_v49 = vpop.f32.mrb[154].mxu1 }
 0xa8d   : > { %v9711_v46 = vadd.f32 %v17023_v22, %v9582_v61  ;;  %v9585_v58 = vadd.f32 %v9584_v49, %v16956_v23  ;;  %v9586_v30 = vpop.f32.mrb[155].mxu1  ;;  %11974 = vmatmul.mubr.bf16.gmra.mrb[40].mxu0 %v9816_v14 }
 0xa8f   : > { %v9712_v45 = vadd.f32 %v17023_v22, %v9585_v58  ;;  %v9775_v0 = vmax.f32 %v9711_v46, 0.0 }
 0xa91   : > { %v9776_v11 = vmax.f32 %v9712_v45, 0.0 }
 0xa92   : > { %v9589_v20 = vpop.f32.mrb[156].mxu1 }
 0xa93   : > { %v9590_v63 = vadd.f32 %v16950_v32, %v9589_v20  ;;  %v9591_v26 = vpop.f32.mrb[157].mxu1  ;;  %v9817_v8 = vpack.c.bf16 %v9776_v11, %v9775_v0 }
 0xa94   : > { %v9592_v31 = vpop.f32.mrb[158].mxu1 }
 0xa95   : > { %v9713_v51 = vadd.f32 %v17023_v22, %v9590_v63  ;;  %v9593_v9 = vadd.f32 %v16954_v13, %v9592_v31  ;;  %v9594_v34 = vpop.f32.mrb[159].mxu1  ;;  %11977 = vmatprep.mubr.bf16.mxu0 %v9817_v8 }
 0xa97   : > { %v9714_v23 = vadd.f32 %v17023_v22, %v9593_v9  ;;  %v9777_v53 = vmax.f32 %v9713_v51, 0.0 }
 0xa99   : > { %v9778_v42 = vmax.f32 %v9714_v23, 0.0 }
 0xa9a   : > { %v9597_v18 = vpop.f32.mrb[160].mxu1 }
 0xa9b   : > { %v9818_v15 = vpack.c.bf16 %v9778_v42, %v9777_v53  ;;  %v9598_v36 = vadd.f32 %v9597_v18, %v16966_v10  ;;  %v9599_v35 = vpop.f32.mrb[161].mxu1 }
 0xa9c   : > { %v9600_v57 = vpop.f32.mrb[162].mxu1 }
 0xa9d   : > { %v9715_v32 = vadd.f32 %v17023_v22, %v9598_v36  ;;  %v9601_v7 = vadd.f32 %v9600_v57, %v16970_v12  ;;  %v9602_v21 = vpop.f32.mrb[163].mxu1  ;;  %11978 = vmatmul.mubr.bf16.gmra.mrb[44].mxu0 %v9818_v15 }
 0xa9f   : > { %v9716_v13 = vadd.f32 %v17023_v22, %v9601_v7  ;;  %v9779_v25 = vmax.f32 %v9715_v32, 0.0 }
 0xaa1   : > { %v9780_v24 = vmax.f32 %v9716_v13, 0.0 }
 0xaa2   : > { %v9605_v19 = vpop.f32.mrb[164].mxu1 }
 0xaa3   : > { %v9606_v39 = vadd.f32 %v16964_v48, %v9605_v19  ;;  %v9607_v4 = vpop.f32.mrb[165].mxu1  ;;  %v9819_v55 = vpack.c.bf16 %v9780_v24, %v9779_v25 }
 0xaa4   : > { %v9608_v54 = vpop.f32.mrb[166].mxu1 }
 0xaa5   : > { %v9717_v10 = vadd.f32 %v17023_v22, %v9606_v39  ;;  %v9609_v47 = vadd.f32 %v16968_v3, %v9608_v54  ;;  %v9610_v38 = vpop.f32.mrb[167].mxu1  ;;  %11981 = vmatprep.mubr.bf16.mxu0 %v9819_v55 }
 0xaa7   : > { %v9718_v12 = vadd.f32 %v17023_v22, %v9609_v47  ;;  %v9781_v1 = vmax.f32 %v9717_v10, 0.0 }
 0xaa9   : > { %v9782_v40 = vmax.f32 %v9718_v12, 0.0 }
 0xaaa   : > { %v9613_v5 = vpop.f32.mrb[168].mxu1 }
 0xaab   : > { %v9820_v17 = vpack.c.bf16 %v9782_v40, %v9781_v1  ;;  %v9614_v27 = vadd.f32 %v9613_v5, %v16980_v28  ;;  %v9615_v43 = vpop.f32.mrb[169].mxu1 }
 0xaac   : > { %v9616_v50 = vpop.f32.mrb[170].mxu1 }
 0xaad   : > { %v9719_v48 = vadd.f32 %v17023_v22, %v9614_v27  ;;  %v9617_v16 = vadd.f32 %v9616_v50, %v16984_v59  ;;  %v9618_v62 = vpop.f32.mrb[171].mxu1  ;;  %11982 = vmatmul.mubr.bf16.gmra.mrb[48].mxu0 %v9820_v17  ;;  %v17809_v17 = vld [vmem:[#allocation30_spill] sm:$0xff] }
 0xaaf   : > { %v9720_v3 = vadd.f32 %v17023_v22, %v9617_v16  ;;  %v9783_v29 = vmax.f32 %v9719_v48, 0.0 }
 0xab1   : > { %v9784_v33 = vmax.f32 %v9720_v3, 0.0 }
 0xab2   : > { %v9621_v14 = vpop.f32.mrb[172].mxu1 }
 0xab3   : > { %v9622_v61 = vadd.f32 %v16978_v6, %v9621_v14  ;;  %v9623_v60 = vpop.f32.mrb[173].mxu1  ;;  %v9821_v49 = vpack.c.bf16 %v9784_v33, %v9783_v29 }
 0xab4   : > { %v9624_v46 = vpop.f32.mrb[174].mxu1 }
 0xab5   : > { %v9721_v28 = vadd.f32 %v17023_v22, %v9622_v61  ;;  %v9625_v58 = vadd.f32 %v16982_v2, %v9624_v46  ;;  %v9626_v30 = vpop.f32.mrb[175].mxu1  ;;  %11985 = vmatprep.mubr.bf16.mxu0 %v9821_v49  ;;  %v17170_v2 = vld [vmem:[%s17528_s27] ss:$0 sm:$0xff] }
 0xab7   : > { %v9722_v59 = vadd.f32 %v17023_v22, %v9625_v58  ;;  %v9785_v45 = vmax.f32 %v9721_v28, 0.0 }
 0xab9   : > { %v9786_v0 = vmax.f32 %v9722_v59, 0.0  ;;  %v17810_v59 = vld [vmem:[#allocation24_spill] sm:$0xff] }
 0xaba   : > { %v9629_v11 = vpop.f32.mrb[176].mxu1 }
 0xabb   : > { %v9822_v20 = vpack.c.bf16 %v9786_v0, %v9785_v45  ;;  %v9630_v63 = vadd.f32 %v9629_v11, %v16994_v44  ;;  %v9631_v26 = vpop.f32.mrb[177].mxu1 }
 0xabc   : > { %v9632_v8 = vpop.f32.mrb[178].mxu1 }
 0xabd   : > { %v9723_v6 = vadd.f32 %v17023_v22, %v9630_v63  ;;  %v9633_v31 = vadd.f32 %v9632_v8, %v16998_v41  ;;  %v9634_v51 = vpop.f32.mrb[179].mxu1  ;;  %11986 = vmatmul.mubr.bf16.gmra.mrb[52].mxu0 %v9822_v20 }
 0xabe   : > { %v17811_v51 = vld [vmem:[#allocation23_spill] sm:$0xff] }
 0xabf   : > { %v9724_v9 = vadd.f32 %v17023_v22, %v9633_v31  ;;  %v9787_v23 = vmax.f32 %v9723_v6, 0.0 }
 0xac0   : > { %v11935_v34 = vpop.f32.mrb[0].mxu0 }
 0xac1   : > { %v9788_v53 = vmax.f32 %v9724_v9, 0.0  ;;  %v9941_v44 = vadd.f32 %v11935_v34, %v17170_v2  ;;  %v9932_v42 = vpop.f32.mrb[1].mxu0 }
 0xac2   : > { %v9933_v18 = vadd.f32 %v17170_v2, %v9932_v42  ;;  %v9637_v15 = vpop.f32.mrb[180].mxu1  ;;  %v11936_v36 = vpop.f32.mrb[2].mxu0 }
 0xac3   : > { %v11711_v41 = vmul.f32 -1.442695, %v9941_v44  ;;  %v9638_v35 = vadd.f32 %v16992_v56, %v9637_v15  ;;  %v9944_v57 = vadd.f32 %v11936_v36, %v17170_v2  ;;  %v9639_v32 = vpop.f32.mrb[181].mxu1  ;;  %v9935_v7 = vpop.f32.mrb[3].mxu0  ;;  %v9823_v21 = vpack.c.bf16 %v9788_v53, %v9787_v23 }
 0xac4   : > { %v11709_v13 = vmul.f32 -1.442695, %v9933_v18  ;;  %v9936_v25 = vadd.f32 %v17170_v2, %v9935_v7  ;;  %v9640_v24 = vpop.f32.mrb[182].mxu1  ;;  %v10700_v15 = vpop.permute.xlu0 %10699 }
 0xac5   : > { %12649 = vpow2.f32 %v11711_v41  ;;  %v9725_v19 = vadd.f32 %v17023_v22, %v9638_v35  ;;  %v9641_v39 = vadd.f32 %v16996_v52, %v9640_v24  ;;  %v9642_v4 = vpop.f32.mrb[183].mxu1  ;;  %11989 = vmatprep.mubr.bf16.mxu0 %v9823_v21  ;;  %v11712_v55 = vmul.f32 -1.442695, %v9944_v57 }
 0xac6   : > { %12651 = vpow2.f32 %v11709_v13  ;;  %v11710_v54 = vmul.f32 -1.442695, %v9936_v25  ;;  %v10704_v4 = vpop.permute.xlu1 %10703 }
 0xac7   : > { %v9726_v56 = vadd.f32 %v17023_v22, %v9641_v39  ;;  %v9789_v10 = vmax.f32 %v9725_v19, 0.0 }
 0xac8   : > { %12653 = vpow2.f32 %v11710_v54  ;;  %v10702_v13 = vpop.permute.xlu0 %10701 }
 0xac9   : > { %v9790_v47 = vmax.f32 %v9726_v56, 0.0  ;;  %12655 = vpow2.f32 %v11712_v55 }
 0xaca   : > { %v9645_v38 = vpop.f32.mrb[184].mxu1 }
 0xacb   : > { %v9824_v12 = vpack.c.bf16 %v9790_v47, %v9789_v10  ;;  %v9646_v1 = vadd.f32 %v9645_v38, %v17008_v37  ;;  %v9647_v40 = vpop.f32.mrb[185].mxu1 }
 0xacc   : > { %v9648_v5 = vpop.f32.mrb[186].mxu1 }
 0xacd   : > { %v9649_v27 = vadd.f32 %v9648_v5, %v17809_v17  ;;  %v9650_v52 = vpop.f32.mrb[187].mxu1  ;;  %11990 = vmatmul.mubr.bf16.gmra.mrb[56].mxu0 %v9824_v12  ;;  %v9727_v43 = vadd.f32 %v17023_v22, %v9646_v1 }
 0xacf   : > { %v12650_v50 = vpop.eup %12649  ;;  %v9728_v48 = vadd.f32 %v17023_v22, %v9649_v27  ;;  %v9791_v60 = vmax.f32 %v9727_v43, 0.0 }
 0xad0   : > { %v12652_v16 = vpop.eup %12651  ;;  %v10381_v62 = vadd.f32 1.0, %v12650_v50  ;;  %v11939_v3 = vpop.f32.mrb[4].mxu0 }
 0xad1   : > { %v10379_v29 = vadd.f32 1.0, %v12652_v16  ;;  %v9792_v33 = vmax.f32 %v9728_v48, 0.0  ;;  %v9957_v14 = vadd.f32 %v11939_v3, %v17170_v2  ;;  %v9948_v61 = vpop.f32.mrb[5].mxu0  ;;  %v10706_v3 = vpop.permute.xlu1 %10705 }
 0xad2   : > { %v12654_v37 = vpop.eup %12653  ;;  %v9949_v49 = vadd.f32 %v17170_v2, %v9948_v61  ;;  %v9653_v46 = vpop.f32.mrb[188].mxu1 }
 0xad3   : > { %v11940_v28 = vpop.f32.mrb[6].mxu0  ;;  %12657 = vrcp.f32 %v10379_v29  ;;  %v10380_v58 = vadd.f32 1.0, %v12654_v37  ;;  %v11715_v30 = vmul.f32 -1.442695, %v9957_v14  ;;  %v9654_v45 = vadd.f32 %v17810_v59, %v9653_v46  ;;  %v9655_v0 = vpop.f32.mrb[189].mxu1 }
 0xad4   : > { %v9951_v11 = vpop.f32.mrb[7].mxu0  ;;  %v12656_v20 = vpop.eup %12655  ;;  %12659 = vrcp.f32 %v10381_v62  ;;  %v11713_v63 = vmul.f32 -1.442695, %v9949_v49  ;;  %v9960_v26 = vadd.f32 %v11940_v28, %v17170_v2  ;;  %v9825_v23 = vpack.c.bf16 %v9792_v33, %v9791_v60 }
 0xad5   : > { %v9952_v8 = vadd.f32 %v17170_v2, %v9951_v11  ;;  %v9656_v6 = vpop.f32.mrb[190].mxu1  ;;  %12661 = vrcp.f32 %v10380_v58  ;;  %v9729_v31 = vadd.f32 %v17023_v22, %v9654_v45  ;;  %v10382_v42 = vadd.f32 1.0, %v12656_v20  ;;  %v10708_v37 = vpop.permute.xlu0 %10707 }
 0xad6   : > { %v9657_v9 = vadd.f32 %v17811_v51, %v9656_v6  ;;  %v9658_v34 = vpop.f32.mrb[191].mxu1  ;;  %12663 = vpow2.f32 %v11715_v30  ;;  %v11716_v53 = vmul.f32 -1.442695, %v9960_v26  ;;  %11993 = vmatprep.mubr.bf16.mxu0 %v9825_v23  ;;  %v10710_v59 = vpop.permute.xlu1 %10709 }
 0xad7   : > { %v11714_v44 = vmul.f32 -1.442695, %v9952_v8  ;;  %12665 = vpow2.f32 %v11713_v63  ;;  %v9793_v36 = vmax.f32 %v9729_v31, 0.0 }
 0xad8   : > { %v9730_v18 = vadd.f32 %v17023_v22, %v9657_v9 }
 0xad9   : > { %12667 = vpow2.f32 %v11714_v44  ;;  %v10712_v28 = vpop.permute.xlu0 %10711 }
 0xada   : > { %v9794_v41 = vmax.f32 %v9730_v18, 0.0  ;;  %12669 = vpow2.f32 %v11716_v53 }
 0xadb   : > { %12671 = vrcp.f32 %v10382_v42 }
 0xadc   : > { %v9826_v35 = vpack.c.bf16 %v9794_v41, %v9793_v36 }
 0xadd   : > { %v12658_v57 = vpop.eup %12657  ;;  %v10716_v9 = vpop.permute.xlu0 %10715 }
 0xade   : > { %11994 = vmatmul.mubr.bf16.gmra.mrb[60].mxu0 %v9826_v35  ;;  %v12660_v32 = vpop.eup %12659  ;;  %v10892_v7 = vsel %vm10891_vm2, %v12658_v57, %v10700_v15 }
 0xadf   : > { %v12662_v21 = vpop.eup %12661  ;;  %v10957_v25 = vsel %vm10956_vm3, %v10892_v7, 0.0  ;;  %v10894_v27 = vsel %vm10891_vm2, %v12660_v32, %v10704_v4 }
 0xae0   : > { %v12664_v22 = vpop.eup %12663  ;;  %v11943_v24 = vpop.f32.mrb[8].mxu0  ;;  %11021 = vxpose.xlu0.b32.start [1/16] (narrow) %v10957_v25, 8  ;;  %v10893_v19 = vsel %vm10891_vm2, %v12662_v21, %v10702_v13  ;;  %v10959_v33 = vsel %vm10956_vm3, %v10894_v27, 0.0 }
 0xae1   : > { %v12666_v39 = vpop.eup %12665  ;;  %v10385_v55 = vadd.f32 1.0, %v12664_v22  ;;  %v9973_v54 = vadd.f32 %v11943_v24, %v17170_v2  ;;  %v9964_v56 = vpop.f32.mrb[9].mxu0  ;;  %v10958_v17 = vsel %vm10956_vm3, %v10893_v19, 0.0 }
 0xae2   : > { %v10383_v10 = vadd.f32 1.0, %v12666_v39  ;;  %v9965_v47 = vadd.f32 %v17170_v2, %v9964_v56  ;;  %v11944_v38 = vpop.f32.mrb[10].mxu0  ;;  %v10720_v7 = vpop.permute.xlu0 %10719 }
 0xae3   : > { %v12668_v12 = vpop.eup %12667  ;;  %v11719_v1 = vmul.f32 -1.442695, %v9973_v54  ;;  %v9976_v40 = vadd.f32 %v11944_v38, %v17170_v2  ;;  %v9967_v5 = vpop.f32.mrb[11].mxu0 }
 0xae4   : > { %v12670_v52 = vpop.eup %12669  ;;  %12673 = vrcp.f32 %v10383_v10  ;;  %v10384_v43 = vadd.f32 1.0, %v12668_v12  ;;  %v11717_v50 = vmul.f32 -1.442695, %v9965_v47  ;;  %v9968_v48 = vadd.f32 %v17170_v2, %v9967_v5  ;;  %11022 = vxpose.xlu0.b32.cont [2/16] (narrow) %v10958_v17, 8  ;;  %v10714_v13 = vpop.permute.xlu1 %10713 }
 0xae5   : > { %v12672_v16 = vpop.eup %12671  ;;  %12675 = vrcp.f32 %v10385_v55  ;;  %v10386_v29 = vadd.f32 1.0, %v12670_v52  ;;  %v11720_v14 = vmul.f32 -1.442695, %v9976_v40 }
 0xae6   : > { %12677 = vrcp.f32 %v10384_v43  ;;  %v11718_v62 = vmul.f32 -1.442695, %v9968_v48  ;;  %v10895_v61 = vsel %vm10891_vm2, %v12672_v16, %v10706_v3  ;;  %v10724_v39 = vpop.permute.xlu0 %10723 }
 0xae7   : > { %12679 = vpow2.f32 %v11719_v1  ;;  %v10960_v60 = vsel %vm10956_vm3, %v10895_v61, 0.0 }
 0xae8   : > { %12681 = vpow2.f32 %v11717_v50  ;;  %11023 = vxpose.xlu0.b32.cont [3/16] (narrow) %v10959_v33, 8  ;;  %v10718_v12 = vpop.permute.xlu1 %10717 }
 0xae9   : > { %12683 = vpow2.f32 %v11718_v62 }
 0xaea   : > { %12685 = vrcp.f32 %v10386_v29  ;;  %v17217_v54 = vpop.permute.xlu0 %10727 }
 0xaeb   : > { %12687 = vpow2.f32 %v11720_v14 }
 0xaec   : > { %11024 = vxpose.xlu0.b32.cont [4/16] (narrow) %v10960_v60, 8 }
 0xaee   : > { %v12674_v49 = vpop.eup %12673  ;;  %v17224_v48 = vpop.permute.xlu0 %10731 }
 0xaef   : > { %v12676_v46 = vpop.eup %12675  ;;  %v10896_v58 = vsel %vm10891_vm2, %v12674_v49, %v10708_v37 }
 0xaf0   : > { %v12678_v30 = vpop.eup %12677  ;;  %v11947_v45 = vpop.f32.mrb[12].mxu0  ;;  %v10961_v0 = vsel %vm10956_vm3, %v10896_v58, 0.0  ;;  %v10898_v57 = vsel %vm10891_vm2, %v12676_v46, %v10712_v28 }
 0xaf1   : > { %v12680_v11 = vpop.eup %12679  ;;  %v9989_v20 = vadd.f32 %v11947_v45, %v17170_v2  ;;  %11025 = vxpose.xlu0.b32.cont [5/16] (narrow) %v10961_v0, 8  ;;  %v9980_v63 = vpop.f32.mrb[13].mxu0  ;;  %v10897_v26 = vsel %vm10891_vm2, %v12678_v30, %v10710_v59  ;;  %v10963_v22 = vsel %vm10956_vm3, %v10898_v57, 0.0 }
 0xaf2   : > { %v12682_v8 = vpop.eup %12681  ;;  %v10389_v6 = vadd.f32 1.0, %v12680_v11  ;;  %v9981_v31 = vadd.f32 %v17170_v2, %v9980_v63  ;;  %v11948_v51 = vpop.f32.mrb[14].mxu0  ;;  %v10962_v15 = vsel %vm10956_vm3, %v10897_v26, 0.0 }
 0xaf3   : > { %v10387_v34 = vadd.f32 1.0, %v12682_v8  ;;  %v9983_v23 = vpop.f32.mrb[15].mxu0  ;;  %v12684_v53 = vpop.eup %12683  ;;  %v11723_v44 = vmul.f32 -1.442695, %v9989_v20  ;;  %v9992_v42 = vadd.f32 %v11948_v51, %v17170_v2 }
 0xaf4   : > { %v9984_v18 = vadd.f32 %v17170_v2, %v9983_v23  ;;  %v12686_v36 = vpop.eup %12685  ;;  %v10388_v41 = vadd.f32 1.0, %v12684_v53  ;;  %v11721_v35 = vmul.f32 -1.442695, %v9981_v31  ;;  %v17230_v30 = vpop.permute.xlu0 %10735 }
 0xaf5   : > { %12689 = vrcp.f32 %v10387_v34  ;;  %11026 = vxpose.xlu0.b32.cont [6/16] (narrow) %v10962_v15, 8  ;;  %v12688_v32 = vpop.eup %12687  ;;  %v11724_v25 = vmul.f32 -1.442695, %v9992_v42  ;;  %v10899_v19 = vsel %vm10891_vm2, %v12686_v36, %v10714_v13  ;;  %v10722_v45 = vpop.permute.xlu1 %10721 }
 0xaf6   : > { %12691 = vrcp.f32 %v10389_v6  ;;  %v11722_v21 = vmul.f32 -1.442695, %v9984_v18  ;;  %v10390_v24 = vadd.f32 1.0, %v12688_v32  ;;  %v10964_v4 = vsel %vm10956_vm3, %v10899_v19, 0.0 }
 0xaf7   : > { %12693 = vrcp.f32 %v10388_v41 }
 0xaf8   : > { %12695 = vpow2.f32 %v11723_v44  ;;  %v17234_v26 = vpop.permute.xlu0 %10739 }
 0xaf9   : > { %12697 = vpow2.f32 %v11721_v35  ;;  %11027 = vxpose.xlu0.b32.cont [7/16] (narrow) %v10963_v22, 8  ;;  %v10726_v42 = vpop.permute.xlu1 %10725 }
 0xafa   : > { %12699 = vpow2.f32 %v11722_v21 }
 0xafb   : > { %12701 = vpow2.f32 %v11724_v25 }
 0xafc   : > { %12703 = vrcp.f32 %v10390_v24  ;;  %v17237_v6 = vpop.permute.xlu0 %10743 }
 0xafd   : > { %11028 = vxpose.xlu0.b32.cont [8/16] (narrow) %v10964_v4, 8 }
 0xaff   : > { %v12690_v55 = vpop.eup %12689 }
 0xb00   : > { %v12692_v56 = vpop.eup %12691  ;;  %v11951_v10 = vpop.f32.mrb[16].mxu0  ;;  %v10900_v47 = vsel %vm10891_vm2, %v12690_v55, %v10716_v9 }
 0xb01   : > { %v12694_v38 = vpop.eup %12693  ;;  %v10005_v1 = vadd.f32 %v11951_v10, %v17170_v2  ;;  %v10965_v40 = vsel %vm10956_vm3, %v10900_v47, 0.0  ;;  %v9996_v5 = vpop.f32.mrb[17].mxu0  ;;  %v10902_v37 = vsel %vm10891_vm2, %v12692_v56, %v10720_v7 }
 0xb02   : > { %v12696_v17 = vpop.eup %12695  ;;  %11029 = vxpose.xlu0.b32.cont [9/16] (narrow) %v10965_v40, 8  ;;  %v9997_v27 = vadd.f32 %v17170_v2, %v9996_v5  ;;  %v11952_v52 = vpop.f32.mrb[18].mxu0  ;;  %v10901_v43 = vsel %vm10891_vm2, %v12694_v38, %v10718_v12  ;;  %v10967_v11 = vsel %vm10956_vm3, %v10902_v37, 0.0 }
 0xb03   : > { %v12698_v50 = vpop.eup %12697  ;;  %v10393_v16 = vadd.f32 1.0, %v12696_v17  ;;  %v9999_v62 = vpop.f32.mrb[19].mxu0  ;;  %v11727_v14 = vmul.f32 -1.442695, %v10005_v1  ;;  %v10966_v61 = vsel %vm10956_vm3, %v10901_v43, 0.0  ;;  %v10008_v28 = vadd.f32 %v11952_v52, %v17170_v2 }
 0xb04   : > { %v10391_v3 = vadd.f32 1.0, %v12698_v50  ;;  %v10000_v29 = vadd.f32 %v17170_v2, %v9999_v62  ;;  %v12700_v33 = vpop.eup %12699  ;;  %v11725_v46 = vmul.f32 -1.442695, %v9997_v27  ;;  %v17243_v35 = vpop.permute.xlu0 %10747 }
 0xb05   : > { %v12702_v60 = vpop.eup %12701  ;;  %v10392_v49 = vadd.f32 1.0, %v12700_v33  ;;  %v11728_v20 = vmul.f32 -1.442695, %v10008_v28  ;;  %v10730_v1 = vpop.permute.xlu1 %10729 }
 0xb06   : > { %12705 = vrcp.f32 %v10391_v3  ;;  %11030 = vxpose.xlu0.b32.cont [10/16] (narrow) %v10966_v61, 8  ;;  %v12704_v58 = vpop.eup %12703  ;;  %v11726_v59 = vmul.f32 -1.442695, %v10000_v29  ;;  %v10394_v0 = vadd.f32 1.0, %v12702_v60 }
 0xb07   : > { %12707 = vrcp.f32 %v10393_v16  ;;  %v10903_v63 = vsel %vm10891_vm2, %v12704_v58, %v10722_v45 }
 0xb08   : > { %12709 = vrcp.f32 %v10392_v49  ;;  %v10968_v8 = vsel %vm10956_vm3, %v10903_v63, 0.0  ;;  %v17249_v55 = vpop.permute.xlu0 %10751 }
 0xb09   : > { %12711 = vpow2.f32 %v11727_v14  ;;  %v10734_v29 = vpop.permute.xlu1 %10733 }
 0xb0a   : > { %12713 = vpow2.f32 %v11725_v46  ;;  %11031 = vxpose.xlu0.b32.cont [11/16] (narrow) %v10967_v11, 8 }
 0xb0b   : > { %12715 = vpow2.f32 %v11726_v59 }
 0xb0c   : > { %12717 = vrcp.f32 %v10394_v0  ;;  %v17254_v17 = vpop.permute.xlu0 %10755 }
 0xb0d   : > { %12719 = vpow2.f32 %v11728_v20 }
 0xb0e   : > { %11032 = vxpose.xlu0.b32.cont [12/16] (narrow) %v10968_v8, 8 }
 0xb10   : > { %v12706_v31 = vpop.eup %12705  ;;  %v11955_v51 = vpop.f32.mrb[20].mxu0 }
 0xb11   : > { %v12708_v9 = vpop.eup %12707  ;;  %v10021_v34 = vadd.f32 %v11955_v51, %v17170_v2  ;;  %v10904_v23 = vsel %vm10891_vm2, %v12706_v31, %v10724_v39  ;;  %v10012_v53 = vpop.f32.mrb[21].mxu0 }
 0xb12   : > { %v12710_v44 = vpop.eup %12709  ;;  %v10969_v18 = vsel %vm10956_vm3, %v10904_v23, 0.0  ;;  %v10013_v15 = vadd.f32 %v17170_v2, %v10012_v53  ;;  %v11956_v36 = vpop.f32.mrb[22].mxu0  ;;  %v10906_v47 = vsel %vm10891_vm2, %v12708_v9, %v17217_v54 }
 0xb13   : > { %v12712_v41 = vpop.eup %12711  ;;  %v11731_v57 = vmul.f32 -1.442695, %v10021_v34  ;;  %11033 = vxpose.xlu0.b32.cont [13/16] (narrow) %v10969_v18, 8  ;;  %v10015_v32 = vpop.f32.mrb[23].mxu0  ;;  %v10905_v7 = vsel %vm10891_vm2, %v12710_v44, %v10726_v42  ;;  %v10024_v19 = vadd.f32 %v11956_v36, %v17170_v2  ;;  %v10971_v5 = vsel %vm10956_vm3, %v10906_v47, 0.0 }
 0xb14   : > { %v12714_v21 = vpop.eup %12713  ;;  %v10016_v13 = vadd.f32 %v17170_v2, %v10015_v32  ;;  %v11729_v24 = vmul.f32 -1.442695, %v10013_v15  ;;  %v10970_v39 = vsel %vm10956_vm3, %v10905_v7, 0.0  ;;  %v10397_v56 = vadd.f32 1.0, %v12712_v41  ;;  %v17258_v54 = vpop.permute.xlu0 %10759 }
 0xb15   : > { %v10395_v25 = vadd.f32 1.0, %v12714_v21  ;;  %v12716_v22 = vpop.eup %12715  ;;  %12721 = vpow2.f32 %v11731_v57  ;;  %v11732_v40 = vmul.f32 -1.442695, %v10024_v19  ;;  %v10738_v15 = vpop.permute.xlu1 %10737 }
 0xb16   : > { %v12718_v4 = vpop.eup %12717  ;;  %v10396_v10 = vadd.f32 1.0, %v12716_v22  ;;  %v11730_v12 = vmul.f32 -1.442695, %v10016_v13 }
 0xb17   : > { %12723 = vrcp.f32 %v10395_v25  ;;  %11034 = vxpose.xlu0.b32.cont [14/16] (narrow) %v10970_v39, 8  ;;  %v12720_v38 = vpop.eup %12719  ;;  %v10907_v52 = vsel %vm10891_vm2, %v12718_v4, %v10730_v1 }
 0xb18   : > { %12725 = vrcp.f32 %v10396_v10  ;;  %v10398_v27 = vadd.f32 1.0, %v12720_v38  ;;  %v10972_v43 = vsel %vm10956_vm3, %v10907_v52, 0.0  ;;  %v17264_v49 = vpop.permute.xlu0 %10763 }
 0xb19   : > { %12727 = vpow2.f32 %v11729_v24  ;;  %v10742_v4 = vpop.permute.xlu1 %10741 }
 0xb1a   : > { %12729 = vrcp.f32 %v10397_v56 }
 0xb1b   : > { %11035 = vxpose.xlu0.b32.cont [15/16] (narrow) %v10971_v5, 8  ;;  %12731 = vpow2.f32 %v11730_v12 }
 0xb1c   : > { %12733 = vpow2.f32 %v11732_v40  ;;  %v17270_v51 = vpop.permute.xlu0 %10767 }
 0xb1d   : > { %12735 = vrcp.f32 %v10398_v27 }
 0xb1f   : > { %11036 = vxpose.xlu0.b32.end [16/16] (narrow) %v10972_v43, 8  ;;  %v12722_v50 = vpop.eup %12721 }
 0xb20   : > { %v11959_v16 = vpop.f32.mrb[24].mxu0  ;;  %v10401_v59 = vadd.f32 1.0, %v12722_v50  ;;  %v17275_v36 = vpop.permute.xlu0 %10771 }
 0xb21   : > { %v12724_v62 = vpop.eup %12723  ;;  %v10028_v3 = vpop.f32.mrb[25].mxu0  ;;  %v10037_v33 = vadd.f32 %v11959_v16, %v17170_v2 }
 0xb22   : > { %v10908_v14 = vsel %vm10891_vm2, %v12724_v62, %v17224_v48  ;;  %v10029_v61 = vadd.f32 %v17170_v2, %v10028_v3  ;;  %v11960_v37 = vpop.f32.mrb[26].mxu0  ;;  %v12726_v60 = vpop.eup %12725 }
 0xb23   : > { %v10973_v46 = vsel %vm10956_vm3, %v10908_v14, 0.0  ;;  %v10031_v28 = vpop.f32.mrb[27].mxu0  ;;  %v12728_v58 = vpop.eup %12727  ;;  %v10909_v11 = vsel %vm10891_vm2, %v12726_v60, %v10734_v29  ;;  %v11735_v8 = vmul.f32 -1.442695, %v10037_v33  ;;  %v10040_v31 = vadd.f32 %v11960_v37, %v17170_v2 }
 0xb24   : > { %11053 = vxpose.xlu1.b32.start [1/16] (narrow) %v10973_v46, 8  ;;  %v11733_v45 = vmul.f32 -1.442695, %v10029_v61  ;;  %v10032_v0 = vadd.f32 %v17170_v2, %v10031_v28  ;;  %v12730_v20 = vpop.eup %12729  ;;  %v10399_v63 = vadd.f32 1.0, %v12728_v58  ;;  %v10974_v23 = vsel %vm10956_vm3, %v10909_v11, 0.0  ;;  %v17279_v7 = vpop.permute.xlu0 %10775 }
 0xb25   : > { %v12732_v48 = vpop.eup %12731  ;;  %v10910_v44 = vsel %vm10891_vm2, %v12730_v20, %v17230_v30  ;;  %v11736_v18 = vmul.f32 -1.442695, %v10040_v31  ;;  %v10746_v28 = vpop.permute.xlu1 %10745 }
 0xb26   : > { %12737 = vpow2.f32 %v11733_v45  ;;  %v10400_v9 = vadd.f32 1.0, %v12732_v48  ;;  %v11734_v34 = vmul.f32 -1.442695, %v10032_v0  ;;  %v12734_v53 = vpop.eup %12733  ;;  %v10975_v57 = vsel %vm10956_vm3, %v10910_v44, 0.0 }
 0xb27   : > { %12739 = vrcp.f32 %v10399_v63  ;;  %v12736_v42 = vpop.eup %12735  ;;  %v10402_v41 = vadd.f32 1.0, %v12734_v53 }
 0xb28   : > { %12741 = vrcp.f32 %v10401_v59  ;;  %11054 = vxpose.xlu1.b32.cont [2/16] (narrow) %v10974_v23, 8  ;;  %v10911_v32 = vsel %vm10891_vm2, %v12736_v42, %v10738_v15  ;;  %v17286_v12 = vpop.permute.xlu0 %10779 }
 0xb29   : > { %12743 = vrcp.f32 %v10400_v9  ;;  %v10976_v30 = vsel %vm10956_vm3, %v10911_v32, 0.0  ;;  %v10750_v44 = vpop.permute.xlu1 %10749 }
 0xb2a   : > { %12745 = vpow2.f32 %v11735_v8 }
 0xb2b   : > { %12747 = vpow2.f32 %v11734_v34 }
 0xb2c   : > { %11055 = vxpose.xlu1.b32.cont [3/16] (narrow) %v10975_v57, 8  ;;  %12749 = vpow2.f32 %v11736_v18  ;;  %v17292_v29 = vpop.permute.xlu0 %10783 }
 0xb2d   : > { %12751 = vrcp.f32 %v10402_v41 }
 0xb30   : > { %v12738_v21 = vpop.eup %12737  ;;  %11056 = vxpose.xlu1.b32.cont [4/16] (narrow) %v10976_v30, 8  ;;  %v11963_v13 = vpop.f32.mrb[28].mxu0 }
 0xb31   : > { %v12740_v25 = vpop.eup %12739  ;;  %v10403_v22 = vadd.f32 1.0, %v12738_v21  ;;  %v10053_v24 = vadd.f32 %v11963_v13, %v17170_v2  ;;  %v10044_v19 = vpop.f32.mrb[29].mxu0 }
 0xb32   : > { %v12742_v39 = vpop.eup %12741  ;;  %v10912_v56 = vsel %vm10891_vm2, %v12740_v25, %v17234_v26  ;;  %v10045_v10 = vadd.f32 %v17170_v2, %v10044_v19  ;;  %v11964_v47 = vpop.f32.mrb[30].mxu0 }
 0xb33   : > { %v12744_v38 = vpop.eup %12743  ;;  %12753 = vrcp.f32 %v10403_v22  ;;  %v10977_v1 = vsel %vm10956_vm3, %v10912_v56, 0.0  ;;  %v10047_v40 = vpop.f32.mrb[31].mxu0  ;;  %v11739_v16 = vmul.f32 -1.442695, %v10053_v24  ;;  %v10056_v62 = vadd.f32 %v11964_v47, %v17170_v2 }
 0xb34   : > { %v12746_v5 = vpop.eup %12745  ;;  %11057 = vxpose.xlu1.b32.cont [5/16] (narrow) %v10977_v1, 8  ;;  %v11737_v27 = vmul.f32 -1.442695, %v10045_v10  ;;  %v10048_v52 = vadd.f32 %v17170_v2, %v10047_v40  ;;  %v10913_v43 = vsel %vm10891_vm2, %v12744_v38, %v10742_v4  ;;  %v10914_v37 = vsel %vm10891_vm2, %v12742_v39, %v17237_v6  ;;  %v17297_v58 = vpop.permute.xlu0 %10787 }
 0xb35   : > { %v12748_v50 = vpop.eup %12747  ;;  %v10405_v33 = vadd.f32 1.0, %v12746_v5  ;;  %v10978_v14 = vsel %vm10956_vm3, %v10913_v43, 0.0  ;;  %v11740_v46 = vmul.f32 -1.442695, %v10056_v62  ;;  %v10979_v45 = vsel %vm10956_vm3, %v10914_v37, 0.0  ;;  %v10754_v40 = vpop.permute.xlu1 %10753 }
 0xb36   : > { %v10404_v26 = vadd.f32 1.0, %v12748_v50  ;;  %12755 = vpow2.f32 %v11737_v27  ;;  %v11738_v3 = vmul.f32 -1.442695, %v10048_v52  ;;  %v12750_v61 = vpop.eup %12749 }
 0xb37   : > { %v12752_v60 = vpop.eup %12751  ;;  %v10406_v59 = vadd.f32 1.0, %v12750_v61 }
 0xb38   : > { %12757 = vrcp.f32 %v10404_v26  ;;  %11058 = vxpose.xlu1.b32.cont [6/16] (narrow) %v10978_v14, 8  ;;  %v10915_v0 = vsel %vm10891_vm2, %v12752_v60, %v10746_v28  ;;  %v17303_v6 = vpop.permute.xlu0 %10791 }
 0xb39   : > { %12759 = vpow2.f32 %v11739_v16  ;;  %v10980_v63 = vsel %vm10956_vm3, %v10915_v0, 0.0 }
 0xb3a   : > { %12761 = vpow2.f32 %v11738_v3 }
 0xb3b   : > { %12763 = vrcp.f32 %v10405_v33 }
 0xb3c   : > { %11059 = vxpose.xlu1.b32.cont [7/16] (narrow) %v10979_v45, 8  ;;  %12765 = vpow2.f32 %v11740_v46  ;;  %v17309_v15 = vpop.permute.xlu0 %10795  ;;  %v10758_v46 = vpop.permute.xlu1 %10757 }
 0xb3d   : > { %v12754_v11 = vpop.eup %12753  ;;  %12767 = vrcp.f32 %v10406_v59 }
 0xb3e   : > { %v10916_v20 = vsel %vm10891_vm2, %v12754_v11, %v17243_v35 }
 0xb3f   : > { %v10981_v34 = vsel %vm10956_vm3, %v10916_v20, 0.0 }
 0xb40   : > { %v12756_v48 = vpop.eup %12755  ;;  %11060 = vxpose.xlu1.b32.cont [8/16] (narrow) %v10980_v63, 8  ;;  %v11967_v8 = vpop.f32.mrb[32].mxu0 }
 0xb41   : > { %v10407_v31 = vadd.f32 1.0, %v12756_v48  ;;  %v10069_v9 = vadd.f32 %v11967_v8, %v17170_v2  ;;  %v10060_v23 = vpop.f32.mrb[33].mxu0  ;;  %v17314_v39 = vpop.permute.xlu0 %10799 }
 0xb42   : > { %v12758_v53 = vpop.eup %12757  ;;  %v10061_v42 = vadd.f32 %v17170_v2, %v10060_v23  ;;  %v11968_v18 = vpop.f32.mrb[34].mxu0 }
 0xb43   : > { %v12760_v35 = vpop.eup %12759  ;;  %12769 = vrcp.f32 %v10407_v31  ;;  %v11743_v41 = vmul.f32 -1.442695, %v10069_v9  ;;  %v10063_v57 = vpop.f32.mrb[35].mxu0  ;;  %v10072_v21 = vadd.f32 %v11968_v18, %v17170_v2  ;;  %v10917_v25 = vsel %vm10891_vm2, %v12758_v53, %v10750_v44 }
 0xb44   : > { %v12762_v32 = vpop.eup %12761  ;;  %11061 = vxpose.xlu1.b32.cont [9/16] (narrow) %v10981_v34, 8  ;;  %v11741_v30 = vmul.f32 -1.442695, %v10061_v42  ;;  %v10064_v13 = vadd.f32 %v17170_v2, %v10063_v57  ;;  %v10409_v4 = vadd.f32 1.0, %v12760_v35  ;;  %v10982_v56 = vsel %vm10956_vm3, %v10917_v25, 0.0 }
 0xb45   : > { %v12764_v22 = vpop.eup %12763  ;;  %v10408_v24 = vadd.f32 1.0, %v12762_v32  ;;  %12771 = vpow2.f32 %v11743_v41  ;;  %v11744_v47 = vmul.f32 -1.442695, %v10072_v21  ;;  %v17319_v5 = vpop.permute.xlu0 %10803 }
 0xb46   : > { %v11742_v19 = vmul.f32 -1.442695, %v10064_v13  ;;  %v12766_v10 = vpop.eup %12765  ;;  %v10918_v38 = vsel %vm10891_vm2, %v12764_v22, %v17249_v55 }
 0xb47   : > { %12773 = vrcp.f32 %v10408_v24  ;;  %v12768_v1 = vpop.eup %12767  ;;  %v10410_v27 = vadd.f32 1.0, %v12766_v10  ;;  %v10983_v52 = vsel %vm10956_vm3, %v10918_v38, 0.0 }
 0xb48   : > { %12775 = vpow2.f32 %v11741_v30  ;;  %11062 = vxpose.xlu1.b32.cont [10/16] (narrow) %v10982_v56, 8  ;;  %v10919_v43 = vsel %vm10891_vm2, %v12768_v1, %v10754_v40  ;;  %v10762_v30 = vpop.permute.xlu1 %10761 }
 0xb49   : > { %12777 = vpow2.f32 %v11742_v19  ;;  %v17325_v62 = vpop.permute.xlu0 %10807  ;;  %v10984_v55 = vsel %vm10956_vm3, %v10919_v43, 0.0 }
 0xb4a   : > { %12779 = vrcp.f32 %v10409_v4 }
 0xb4b   : > { %12781 = vpow2.f32 %v11744_v47 }
 0xb4c   : > { %11063 = vxpose.xlu1.b32.cont [11/16] (narrow) %v10983_v52, 8  ;;  %12783 = vrcp.f32 %v10410_v27  ;;  %v10766_v47 = vpop.permute.xlu1 %10765 }
 0xb4d   : > { %v12770_v50 = vpop.eup %12769  ;;  %v17331_v45 = vpop.permute.xlu0 %10811 }
 0xb4e   : > { %v10920_v16 = vsel %vm10891_vm2, %v12770_v50, %v17254_v17 }
 0xb4f   : > { %v12772_v26 = vpop.eup %12771  ;;  %v10985_v61 = vsel %vm10956_vm3, %v10920_v16, 0.0 }
 0xb50   : > { %11064 = vxpose.xlu1.b32.cont [12/16] (narrow) %v10984_v55, 8  ;;  %v11971_v3 = vpop.f32.mrb[36].mxu0  ;;  %v10413_v28 = vadd.f32 1.0, %v12772_v26 }
 0xb51   : > { %v12774_v33 = vpop.eup %12773  ;;  %v10085_v14 = vadd.f32 %v11971_v3, %v17170_v2  ;;  %v10076_v37 = vpop.f32.mrb[37].mxu0 }
 0xb52   : > { %v12776_v60 = vpop.eup %12775  ;;  %v10077_v59 = vadd.f32 %v17170_v2, %v10076_v37  ;;  %v11972_v17 = vpop.f32.mrb[38].mxu0  ;;  %v10921_v31 = vsel %vm10891_vm2, %v12774_v33, %v10758_v46 }
 0xb53   : > { %v10411_v0 = vadd.f32 1.0, %v12776_v60  ;;  %v10079_v11 = vpop.f32.mrb[39].mxu0  ;;  %v12778_v20 = vpop.eup %12777  ;;  %v11747_v63 = vmul.f32 -1.442695, %v10085_v14  ;;  %v10088_v48 = vadd.f32 %v11972_v17, %v17170_v2  ;;  %v10986_v18 = vsel %vm10956_vm3, %v10921_v31, 0.0 }
 0xb54   : > { %11065 = vxpose.xlu1.b32.cont [13/16] (narrow) %v10985_v61, 8  ;;  %v10080_v8 = vadd.f32 %v17170_v2, %v10079_v11  ;;  %v12780_v9 = vpop.eup %12779  ;;  %v10412_v34 = vadd.f32 1.0, %v12778_v20  ;;  %v11745_v23 = vmul.f32 -1.442695, %v10077_v59  ;;  %v17336_v44 = vpop.permute.xlu0 %10815 }
 0xb55   : > { %12785 = vrcp.f32 %v10411_v0  ;;  %v12782_v53 = vpop.eup %12781  ;;  %v11748_v35 = vmul.f32 -1.442695, %v10088_v48  ;;  %v10922_v41 = vsel %vm10891_vm2, %v12780_v9, %v17258_v54  ;;  %v10770_v0 = vpop.permute.xlu1 %10769 }
 0xb56   : > { %12787 = vrcp.f32 %v10413_v28  ;;  %v11746_v42 = vmul.f32 -1.442695, %v10080_v8  ;;  %v12784_v57 = vpop.eup %12783  ;;  %v10414_v32 = vadd.f32 1.0, %v12782_v53  ;;  %v10987_v13 = vsel %vm10956_vm3, %v10922_v41, 0.0 }
 0xb57   : > { %12789 = vrcp.f32 %v10412_v34  ;;  %v10923_v25 = vsel %vm10891_vm2, %v12784_v57, %v10762_v30 }
 0xb58   : > { %12791 = vpow2.f32 %v11747_v63  ;;  %11066 = vxpose.xlu1.b32.cont [14/16] (narrow) %v10986_v18, 8  ;;  %v17341_v21 = vpop.permute.xlu0 %10819  ;;  %v10988_v19 = vsel %vm10956_vm3, %v10923_v25, 0.0 }
 0xb59   : > { %12793 = vpow2.f32 %v11745_v23  ;;  %v10774_v31 = vpop.permute.xlu1 %10773 }
 0xb5a   : > { %12795 = vpow2.f32 %v11746_v42 }
 0xb5b   : > { %12797 = vpow2.f32 %v11748_v35 }
 0xb5c   : > { %11067 = vxpose.xlu1.b32.cont [15/16] (narrow) %v10987_v13, 8  ;;  %12799 = vrcp.f32 %v10414_v32  ;;  %v17345_v24 = vpop.permute.xlu0 %10823 }
 0xb5d   : > { %v10778_v23 = vpop.permute.xlu1 %10777 }
 0xb5f   : > { %v12786_v22 = vpop.eup %12785 }
 0xb60   : > { %v12788_v54 = vpop.eup %12787  ;;  %11068 = vxpose.xlu1.b32.end [16/16] (narrow) %v10988_v19, 8  ;;  %v11975_v4 = vpop.f32.mrb[40].mxu0  ;;  %v10924_v56 = vsel %vm10891_vm2, %v12786_v22, %v17264_v49 }
 0xb61   : > { %v12790_v10 = vpop.eup %12789  ;;  %v10101_v38 = vadd.f32 %v11975_v4, %v17170_v2  ;;  %v10989_v1 = vsel %vm10956_vm3, %v10924_v56, 0.0  ;;  %v10092_v40 = vpop.f32.mrb[41].mxu0  ;;  %v10926_v60 = vsel %vm10891_vm2, %v12788_v54, %v17270_v51 }
 0xb62   : > { %v12792_v27 = vpop.eup %12791  ;;  %11085 = vxpose.xlu0.b32.start [1/16] (narrow) %v10989_v1, 8  ;;  %v10093_v52 = vadd.f32 %v17170_v2, %v10092_v40  ;;  %v11976_v43 = vpop.f32.mrb[42].mxu0  ;;  %v10925_v50 = vsel %vm10891_vm2, %v12790_v10, %v10766_v47  ;;  %v10991_v63 = vsel %vm10956_vm3, %v10926_v60, 0.0 }
 0xb63   : > { %v12794_v16 = vpop.eup %12793  ;;  %v10417_v26 = vadd.f32 1.0, %v12792_v27  ;;  %v10095_v55 = vpop.f32.mrb[43].mxu0  ;;  %v11751_v61 = vmul.f32 -1.442695, %v10101_v38  ;;  %v10990_v37 = vsel %vm10956_vm3, %v10925_v50, 0.0 }
 0xb64   : > { %v11037_v49 = vpop.trf.xlu0  ;;  %v10415_v3 = vadd.f32 1.0, %v12794_v16  ;;  %v10096_v33 = vadd.f32 %v17170_v2, %v10095_v55  ;;  %v12796_v14 = vpop.eup %12795  ;;  %v11749_v59 = vmul.f32 -1.442695, %v10093_v52  ;;  %v17368_v2 = vld [vmem:[%s17528_s27] ss:$0 sm:$0xff] }
 0xb65   : > { %v12798_v46 = vpop.eup %12797  ;;  %v10416_v28 = vadd.f32 1.0, %v12796_v14  ;;  %v10104_v17 = vadd.f32 %v17368_v2, %v11976_v43  ;;  %11149 = vst [vmem:[%s17363_s4] sm:$0xff] %v11037_v49  ;;  %v10782_v56 = vpop.permute.xlu1 %10781 }
 0xb66   : > { %12801 = vrcp.f32 %v10415_v3  ;;  %11086 = vxpose.xlu0.b32.cont [2/16] (narrow) %v10990_v37, 8  ;;  %v12800_v51 = vpop.eup %12799  ;;  %v11750_v11 = vmul.f32 -1.442695, %v10096_v33  ;;  %v10418_v20 = vadd.f32 1.0, %v12798_v46 }
 0xb67   : > { %12803 = vrcp.f32 %v10417_v26  ;;  %v11752_v48 = vmul.f32 -1.442695, %v10104_v17  ;;  %v10927_v8 = vsel %vm10891_vm2, %v12800_v51, %v10770_v0 }
 0xb68   : > { %12805 = vrcp.f32 %v10416_v28  ;;  %v10992_v9 = vsel %vm10956_vm3, %v10927_v8, 0.0 }
 0xb69   : > { %12807 = vpow2.f32 %v11751_v61  ;;  %v10786_v26 = vpop.permute.xlu1 %10785 }
 0xb6a   : > { %12809 = vpow2.f32 %v11749_v59  ;;  %11087 = vxpose.xlu0.b32.cont [3/16] (narrow) %v10991_v63, 8 }
 0xb6b   : > { %12811 = vpow2.f32 %v11750_v11 }
 0xb6c   : > { %12813 = vrcp.f32 %v10418_v20 }
 0xb6d   : > { %12815 = vpow2.f32 %v11752_v48  ;;  %v17388_v61 = vpop.permute.xlu1 %10789 }
 0xb6e   : > { %11088 = vxpose.xlu0.b32.cont [4/16] (narrow) %v10992_v9, 8 }
 0xb70   : > { %v12802_v34 = vpop.eup %12801  ;;  %v11979_v53 = vpop.f32.mrb[44].mxu0 }
 0xb71   : > { %v12804_v42 = vpop.eup %12803  ;;  %v10117_v18 = vadd.f32 %v17368_v2, %v11979_v53  ;;  %v10928_v35 = vsel %vm10891_vm2, %v12802_v34, %v17275_v36  ;;  %v10108_v41 = vpop.f32.mrb[45].mxu0 }
 0xb72   : > { %v12806_v57 = vpop.eup %12805  ;;  %v10993_v32 = vsel %vm10956_vm3, %v10928_v35, 0.0  ;;  %v10109_v30 = vadd.f32 %v17368_v2, %v10108_v41  ;;  %v11980_v13 = vpop.f32.mrb[46].mxu0  ;;  %v10930_v50 = vsel %vm10891_vm2, %v12804_v42, %v17279_v7 }
 0xb73   : > { %v12808_v25 = vpop.eup %12807  ;;  %v11755_v22 = vmul.f32 -1.442695, %v10117_v18  ;;  %11089 = vxpose.xlu0.b32.cont [5/16] (narrow) %v10993_v32, 8  ;;  %v10111_v19 = vpop.f32.mrb[47].mxu0  ;;  %v10929_v54 = vsel %vm10891_vm2, %v12806_v57, %v10774_v31  ;;  %v10120_v1 = vadd.f32 %v17368_v2, %v11980_v13  ;;  %v10995_v3 = vsel %vm10956_vm3, %v10930_v50, 0.0 }
 0xb74   : > { %v12810_v4 = vpop.eup %12809  ;;  %v10112_v10 = vadd.f32 %v17368_v2, %v10111_v19  ;;  %v11753_v36 = vmul.f32 -1.442695, %v10109_v30  ;;  %v10994_v40 = vsel %vm10956_vm3, %v10929_v54, 0.0  ;;  %v10421_v52 = vadd.f32 1.0, %v12808_v25  ;;  %v17391_v60 = vpop.permute.xlu1 %10793 }
 0xb75   : > { %v10419_v47 = vadd.f32 1.0, %v12810_v4  ;;  %v12812_v38 = vpop.eup %12811  ;;  %12817 = vpow2.f32 %v11755_v22  ;;  %v11756_v49 = vmul.f32 -1.442695, %v10120_v1 }
 0xb76   : > { %v12814_v27 = vpop.eup %12813  ;;  %v10420_v43 = vadd.f32 1.0, %v12812_v38  ;;  %v11754_v55 = vmul.f32 -1.442695, %v10112_v10 }
 0xb77   : > { %12819 = vrcp.f32 %v10419_v47  ;;  %11090 = vxpose.xlu0.b32.cont [6/16] (narrow) %v10994_v40, 8  ;;  %v12816_v16 = vpop.eup %12815  ;;  %v10931_v14 = vsel %vm10891_vm2, %v12814_v27, %v10778_v23 }
 0xb78   : > { %12821 = vrcp.f32 %v10420_v43  ;;  %v10422_v33 = vadd.f32 1.0, %v12816_v16  ;;  %v10996_v37 = vsel %vm10956_vm3, %v10931_v14, 0.0  ;;  %v17399_v34 = vpop.permute.xlu1 %10797 }
 0xb79   : > { %12823 = vpow2.f32 %v11753_v36 }
 0xb7a   : > { %12825 = vrcp.f32 %v10421_v52 }
 0xb7b   : > { %11091 = vxpose.xlu0.b32.cont [7/16] (narrow) %v10995_v3, 8  ;;  %12827 = vpow2.f32 %v11754_v55 }
 0xb7c   : > { %12829 = vpow2.f32 %v11756_v49  ;;  %v17404_v22 = vpop.permute.xlu1 %10801 }
 0xb7d   : > { %12831 = vrcp.f32 %v10422_v33 }
 0xb7f   : > { %11092 = vxpose.xlu0.b32.cont [8/16] (narrow) %v10996_v37, 8  ;;  %v12818_v7 = vpop.eup %12817 }
 0xb80   : > { %v11983_v46 = vpop.f32.mrb[48].mxu0  ;;  %v10425_v23 = vadd.f32 1.0, %v12818_v7  ;;  %v17409_v10 = vpop.permute.xlu1 %10805 }
 0xb81   : > { %v12820_v28 = vpop.eup %12819  ;;  %v10133_v59 = vadd.f32 %v17368_v2, %v11983_v46  ;;  %v10124_v17 = vpop.f32.mrb[49].mxu0 }
 0xb82   : > { %v10932_v51 = vsel %vm10891_vm2, %v12820_v28, %v17286_v12  ;;  %v10125_v0 = vadd.f32 %v17368_v2, %v10124_v17  ;;  %v11984_v11 = vpop.f32.mrb[50].mxu0  ;;  %v12822_v20 = vpop.eup %12821 }
 0xb83   : > { %v11759_v63 = vmul.f32 -1.442695, %v10133_v59  ;;  %v10997_v48 = vsel %vm10956_vm3, %v10932_v51, 0.0  ;;  %v10136_v8 = vadd.f32 %v17368_v2, %v11984_v11  ;;  %v10127_v31 = vpop.f32.mrb[51].mxu0  ;;  %v12824_v9 = vpop.eup %12823  ;;  %v10933_v12 = vsel %vm10891_vm2, %v12822_v20, %v10782_v56 }
 0xb84   : > { %11093 = vxpose.xlu0.b32.cont [9/16] (narrow) %v10997_v48, 8  ;;  %v11757_v53 = vmul.f32 -1.442695, %v10125_v0  ;;  %v10128_v42 = vadd.f32 %v17368_v2, %v10127_v31  ;;  %v12826_v18 = vpop.eup %12825  ;;  %v10423_v35 = vadd.f32 1.0, %v12824_v9  ;;  %v10998_v13 = vsel %vm10956_vm3, %v10933_v12, 0.0  ;;  %v17413_v40 = vpop.permute.xlu1 %10809 }
 0xb85   : > { %12833 = vpow2.f32 %v11759_v63  ;;  %v12828_v41 = vpop.eup %12827  ;;  %v11760_v57 = vmul.f32 -1.442695, %v10136_v8  ;;  %v10934_v19 = vsel %vm10891_vm2, %v12826_v18, %v17292_v29 }
 0xb86   : > { %12835 = vpow2.f32 %v11757_v53  ;;  %v10424_v32 = vadd.f32 1.0, %v12828_v41  ;;  %v11758_v30 = vmul.f32 -1.442695, %v10128_v42  ;;  %v12830_v25 = vpop.eup %12829  ;;  %v10999_v56 = vsel %vm10956_vm3, %v10934_v19, 0.0 }
 0xb87   : > { %12837 = vrcp.f32 %v10423_v35  ;;  %v12832_v54 = vpop.eup %12831  ;;  %v10426_v4 = vadd.f32 1.0, %v12830_v25 }
 0xb88   : > { %12839 = vrcp.f32 %v10425_v23  ;;  %11094 = vxpose.xlu0.b32.cont [10/16] (narrow) %v10998_v13, 8  ;;  %v10935_v47 = vsel %vm10891_vm2, %v12832_v54, %v10786_v26  ;;  %v17421_v59 = vpop.permute.xlu1 %10813 }
 0xb89   : > { %12841 = vrcp.f32 %v10424_v32  ;;  %v11000_v36 = vsel %vm10956_vm3, %v10935_v47, 0.0 }
 0xb8a   : > { %12843 = vpow2.f32 %v11760_v57 }
 0xb8b   : > { %12845 = vpow2.f32 %v11758_v30 }
 0xb8c   : > { %11095 = vxpose.xlu0.b32.cont [11/16] (narrow) %v10999_v56, 8  ;;  %12847 = vrcp.f32 %v10426_v4  ;;  %v17427_v8 = vpop.permute.xlu1 %10817 }
 0xb8f   : > { %v12834_v38 = vpop.eup %12833 }
 0xb90   : > { %v12836_v1 = vpop.eup %12835  ;;  %11096 = vxpose.xlu0.b32.cont [12/16] (narrow) %v11000_v36, 8  ;;  %v11987_v29 = vpop.f32.mrb[52].mxu0  ;;  %v10429_v55 = vadd.f32 1.0, %v12834_v38 }
 0xb91   : > { %v12838_v27 = vpop.eup %12837  ;;  %v10427_v52 = vadd.f32 1.0, %v12836_v1  ;;  %v10149_v43 = vadd.f32 %v17368_v2, %v11987_v29  ;;  %v10140_v50 = vpop.f32.mrb[53].mxu0 }
 0xb92   : > { %v12840_v16 = vpop.eup %12839  ;;  %v10936_v49 = vsel %vm10891_vm2, %v12838_v27, %v17297_v58  ;;  %v10141_v26 = vadd.f32 %v17368_v2, %v10140_v50  ;;  %v11988_v3 = vpop.f32.mrb[54].mxu0 }
 0xb93   : > { %v12842_v33 = vpop.eup %12841  ;;  %12849 = vrcp.f32 %v10427_v52  ;;  %v11763_v14 = vmul.f32 -1.442695, %v10149_v43  ;;  %v11001_v37 = vsel %vm10956_vm3, %v10936_v49, 0.0  ;;  %v10152_v7 = vadd.f32 %v17368_v2, %v11988_v3  ;;  %v10143_v46 = vpop.f32.mrb[55].mxu0 }
 0xb94   : > { %v12844_v28 = vpop.eup %12843  ;;  %11097 = vxpose.xlu0.b32.cont [13/16] (narrow) %v11001_v37, 8  ;;  %v11761_v17 = vmul.f32 -1.442695, %v10141_v26  ;;  %v10144_v51 = vadd.f32 %v17368_v2, %v10143_v46  ;;  %v10937_v58 = vsel %vm10891_vm2, %v12842_v33, %v17388_v61  ;;  %v10938_v9 = vsel %vm10891_vm2, %v12840_v16, %v17303_v6  ;;  %v17432_v53 = vpop.permute.xlu1 %10821 }
 0xb95   : > { %v12846_v0 = vpop.eup %12845  ;;  %12851 = vpow2.f32 %v11763_v14  ;;  %v11764_v63 = vmul.f32 -1.442695, %v10152_v7  ;;  %v11002_v48 = vsel %vm10956_vm3, %v10937_v58, 0.0  ;;  %v10430_v31 = vadd.f32 1.0, %v12844_v28 }
 0xb96   : > { %v10428_v11 = vadd.f32 1.0, %v12846_v0  ;;  %12853 = vpow2.f32 %v11761_v17  ;;  %v11762_v20 = vmul.f32 -1.442695, %v10144_v51  ;;  %v12848_v23 = vpop.eup %12847  ;;  %v11003_v61 = vsel %vm10956_vm3, %v10938_v9, 0.0 }
 0xb97   : > { %12855 = vrcp.f32 %v10429_v55  ;;  %v10939_v42 = vsel %vm10891_vm2, %v12848_v23, %v17391_v60 }
 0xb98   : > { %12857 = vrcp.f32 %v10428_v11  ;;  %11098 = vxpose.xlu0.b32.cont [14/16] (narrow) %v11002_v48, 8  ;;  %v11004_v41 = vsel %vm10956_vm3, %v10939_v42, 0.0  ;;  %v17440_v32 = vpop.permute.xlu1 %10825 }
 0xb99   : > { %12859 = vpow2.f32 %v11762_v20 }
 0xb9a   : > { %12861 = vpow2.f32 %v11764_v63 }
 0xb9b   : > { %12863 = vrcp.f32 %v10430_v31 }
 0xb9c   : > { %11099 = vxpose.xlu0.b32.cont [15/16] (narrow) %v11003_v61, 8 }
 0xb9d   : > { %v12850_v12 = vpop.eup %12849 }
 0xb9e   : > { %v10940_v18 = vsel %vm10891_vm2, %v12850_v12, %v17309_v15 }
 0xb9f   : > { %v12852_v35 = vpop.eup %12851  ;;  %v11005_v6 = vsel %vm10956_vm3, %v10940_v18, 0.0 }
 0xba0   : > { %v12854_v57 = vpop.eup %12853  ;;  %11100 = vxpose.xlu0.b32.end [16/16] (narrow) %v11004_v41, 8  ;;  %v11991_v30 = vpop.f32.mrb[56].mxu0  ;;  %11117 = vxpose.xlu1.b32.start [1/16] (narrow) %v11005_v6, 8  ;;  %v10433_v4 = vadd.f32 1.0, %v12852_v35 }
 0xba1   : > { %v12856_v13 = vpop.eup %12855  ;;  %v10431_v25 = vadd.f32 1.0, %v12854_v57  ;;  %v10165_v19 = vadd.f32 %v17368_v2, %v11991_v30  ;;  %v10156_v60 = vpop.f32.mrb[57].mxu0 }
 0xba2   : > { %v12858_v54 = vpop.eup %12857  ;;  %v10157_v15 = vadd.f32 %v17368_v2, %v10156_v60  ;;  %v11992_v56 = vpop.f32.mrb[58].mxu0  ;;  %v10942_v49 = vsel %vm10891_vm2, %v12856_v13, %v17314_v39 }
 0xba3   : > { %12865 = vrcp.f32 %v10431_v25  ;;  %v11767_v47 = vmul.f32 -1.442695, %v10165_v19  ;;  %v10168_v38 = vadd.f32 %v17368_v2, %v11992_v56  ;;  %v10159_v36 = vpop.f32.mrb[59].mxu0  ;;  %v10941_v1 = vsel %vm10891_vm2, %v12858_v54, %v17399_v34  ;;  %v12860_v29 = vpop.eup %12859 }
 0xba4   : > { %v11765_v27 = vmul.f32 -1.442695, %v10157_v15  ;;  %v10160_v52 = vadd.f32 %v17368_v2, %v10159_v36  ;;  %v11006_v43 = vsel %vm10956_vm3, %v10941_v1, 0.0  ;;  %v11069_v50 = vpop.trf.xlu1  ;;  %v12862_v16 = vpop.eup %12861  ;;  %v10432_v55 = vadd.f32 1.0, %v12860_v29 }
 0xba5   : > { %12867 = vpow2.f32 %v11767_v47  ;;  %11118 = vxpose.xlu1.b32.cont [2/16] (narrow) %v11006_v43, 8  ;;  %11150 = vst [vmem:[%s17363_s4 + $0x8] sm:$0xff] %v11069_v50  ;;  %v12864_v26 = vpop.eup %12863  ;;  %v11768_v34 = vmul.f32 -1.442695, %v10168_v38  ;;  %v10434_v33 = vadd.f32 1.0, %v12862_v16  ;;  %v11007_v14 = vsel %vm10956_vm3, %v10942_v49, 0.0 }
 0xba6   : > { %12869 = vrcp.f32 %v10433_v4  ;;  %v11766_v3 = vmul.f32 -1.442695, %v10160_v52  ;;  %v10943_v37 = vsel %vm10891_vm2, %v12864_v26, %v17404_v22 }
 0xba7   : > { %12871 = vrcp.f32 %v10432_v55  ;;  %v11008_v7 = vsel %vm10956_vm3, %v10943_v37, 0.0 }
 0xba8   : > { %12873 = vpow2.f32 %v11765_v27 }
 0xba9   : > { %11119 = vxpose.xlu1.b32.cont [3/16] (narrow) %v11007_v14, 8  ;;  %12875 = vpow2.f32 %v11766_v3 }
 0xbaa   : > { %12877 = vpow2.f32 %v11768_v34 }
 0xbab   : > { %12879 = vrcp.f32 %v10434_v33 }
 0xbad   : > { %v12866_v39 = vpop.eup %12865  ;;  %11120 = vxpose.xlu1.b32.cont [4/16] (narrow) %v11008_v7, 8 }
 0xbae   : > { %v10944_v46 = vsel %vm10891_vm2, %v12866_v39, %v17319_v5 }
 0xbaf   : > { %v12868_v28 = vpop.eup %12867  ;;  %v11009_v17 = vsel %vm10956_vm3, %v10944_v46, 0.0 }
 0xbb0   : > { %v12870_v51 = vpop.eup %12869  ;;  %v10437_v63 = vadd.f32 1.0, %v12868_v28 }
 0xbb1   : > { %v11995_v58 = vpop.f32.mrb[60].mxu0  ;;  %v12872_v0 = vpop.eup %12871  ;;  %11121 = vxpose.xlu1.b32.cont [5/16] (narrow) %v11009_v17, 8  ;;  %v10946_v35 = vsel %vm10891_vm2, %v12870_v51, %v17325_v62 }
 0xbb2   : > { %v10181_v11 = vadd.f32 %v17368_v2, %v11995_v58  ;;  %v10172_v22 = vpop.f32.mrb[61].mxu0  ;;  %v12874_v20 = vpop.eup %12873  ;;  %v10945_v9 = vsel %vm10891_vm2, %v12872_v0, %v17409_v10  ;;  %v11011_v19 = vsel %vm10956_vm3, %v10946_v35, 0.0 }
 0xbb3   : > { %v10173_v48 = vadd.f32 %v17368_v2, %v10172_v22  ;;  %v11996_v31 = vpop.f32.mrb[62].mxu0  ;;  %v10435_v23 = vadd.f32 1.0, %v12874_v20  ;;  %v12876_v61 = vpop.eup %12875  ;;  %v11010_v18 = vsel %vm10956_vm3, %v10945_v9, 0.0 }
 0xbb4   : > { %v10175_v5 = vpop.f32.mrb[63].mxu0  ;;  %v11771_v42 = vmul.f32 -1.442695, %v10181_v11  ;;  %v12878_v41 = vpop.eup %12877  ;;  %v10436_v6 = vadd.f32 1.0, %v12876_v61  ;;  %v10184_v30 = vadd.f32 %v17368_v2, %v11996_v31 }
 0xbb5   : > { %v10176_v12 = vadd.f32 %v17368_v2, %v10175_v5  ;;  %12881 = vrcp.f32 %v10435_v23  ;;  %v11769_v57 = vmul.f32 -1.442695, %v10173_v48  ;;  %11122 = vxpose.xlu1.b32.cont [6/16] (narrow) %v11010_v18, 8  ;;  %v12880_v13 = vpop.eup %12879  ;;  %v10438_v25 = vadd.f32 1.0, %v12878_v41 }
 0xbb6   : > { %12883 = vrcp.f32 %v10437_v63  ;;  %v11772_v60 = vmul.f32 -1.442695, %v10184_v30  ;;  %v10947_v62 = vsel %vm10891_vm2, %v12880_v13, %v17413_v40 }
 0xbb7   : > { %12885 = vrcp.f32 %v10436_v6  ;;  %v11770_v10 = vmul.f32 -1.442695, %v10176_v12  ;;  %v11012_v54 = vsel %vm10956_vm3, %v10947_v62, 0.0 }
 0xbb8   : > { %12887 = vpow2.f32 %v11771_v42 }
 0xbb9   : > { %12889 = vpow2.f32 %v11769_v57  ;;  %11123 = vxpose.xlu1.b32.cont [7/16] (narrow) %v11011_v19, 8 }
 0xbba   : > { %12891 = vpow2.f32 %v11770_v10 }
 0xbbb   : > { %12893 = vrcp.f32 %v10438_v25 }
 0xbbc   : > { %12895 = vpow2.f32 %v11772_v60 }
 0xbbd   : > { %11124 = vxpose.xlu1.b32.cont [8/16] (narrow) %v11012_v54, 8 }
 0xbbf   : > { %v12882_v2 = vpop.eup %12881 }
 0xbc0   : > { %v12884_v4 = vpop.eup %12883  ;;  %v10948_v15 = vsel %vm10891_vm2, %v12882_v2, %v17331_v45 }
 0xbc1   : > { %v12886_v56 = vpop.eup %12885  ;;  %v11013_v47 = vsel %vm10956_vm3, %v10948_v15, 0.0  ;;  %v10950_v45 = vsel %vm10891_vm2, %v12884_v4, %v17336_v44 }
 0xbc2   : > { %v12888_v38 = vpop.eup %12887  ;;  %11125 = vxpose.xlu1.b32.cont [9/16] (narrow) %v11013_v47, 8  ;;  %v10949_v36 = vsel %vm10891_vm2, %v12886_v56, %v17421_v59  ;;  %v11015_v55 = vsel %vm10956_vm3, %v10950_v45, 0.0 }
 0xbc3   : > { %v12890_v40 = vpop.eup %12889  ;;  %v11014_v27 = vsel %vm10956_vm3, %v10949_v36, 0.0  ;;  %v10441_v43 = vadd.f32 1.0, %v12888_v38 }
 0xbc4   : > { %v10439_v1 = vadd.f32 1.0, %v12890_v40  ;;  %v12892_v29 = vpop.eup %12891 }
 0xbc5   : > { %v12894_v52 = vpop.eup %12893  ;;  %v10440_v50 = vadd.f32 1.0, %v12892_v29 }
 0xbc6   : > { %12897 = vrcp.f32 %v10439_v1  ;;  %11126 = vxpose.xlu1.b32.cont [10/16] (narrow) %v11014_v27, 8  ;;  %v12896_v16 = vpop.eup %12895  ;;  %v10951_v59 = vsel %vm10891_vm2, %v12894_v52, %v17427_v8 }
 0xbc7   : > { %12899 = vrcp.f32 %v10440_v50  ;;  %v10442_v49 = vadd.f32 1.0, %v12896_v16  ;;  %v11016_v26 = vsel %vm10956_vm3, %v10951_v59, 0.0 }
 0xbc8   : > { %12901 = vrcp.f32 %v10441_v43 }
 0xbc9   : > { %12903 = vrcp.f32 %v10442_v49 }
 0xbca   : > { %11127 = vxpose.xlu1.b32.cont [11/16] (narrow) %v11015_v55, 8 }
 0xbce   : > { %11128 = vxpose.xlu1.b32.cont [12/16] (narrow) %v11016_v26, 8 }
 0xbd0   : > { %v12898_v3 = vpop.eup %12897 }
 0xbd1   : > { %v10952_v34 = vsel %vm10891_vm2, %v12898_v3, %v17341_v21  ;;  %v12900_v44 = vpop.eup %12899 }
 0xbd2   : > { %v11017_v33 = vsel %vm10956_vm3, %v10952_v34, 0.0  ;;  %v10953_v14 = vsel %vm10891_vm2, %v12900_v44, %v17432_v53  ;;  %v12902_v37 = vpop.eup %12901 }
 0xbd3   : > { %11129 = vxpose.xlu1.b32.cont [13/16] (narrow) %v11017_v33, 8  ;;  %v11018_v8 = vsel %vm10956_vm3, %v10953_v14, 0.0  ;;  %v10954_v7 = vsel %vm10891_vm2, %v12902_v37, %v17345_v24  ;;  %v12904_v39 = vpop.eup %12903 }
 0xbd4   : > { %v11019_v46 = vsel %vm10956_vm3, %v10954_v7, 0.0  ;;  %v10955_v21 = vsel %vm10891_vm2, %v12904_v39, %v17440_v32 }
 0xbd5   : > { %v11020_v28 = vsel %vm10956_vm3, %v10955_v21, 0.0 }
 0xbd7   : > { %11130 = vxpose.xlu1.b32.cont [14/16] (narrow) %v11018_v8, 8 }
 0xbdb   : > { %11131 = vxpose.xlu1.b32.cont [15/16] (narrow) %v11019_v46, 8 }
 0xbdf   : > { %11132 = vxpose.xlu1.b32.end [16/16] (narrow) %v11020_v28, 8 }
 0xbe4   : > { %v11101_v17 = vpop.trf.xlu0 }
 0xbe5   : > { %11151 = vst [vmem:[%s17363_s4 + $0x10] sm:$0xff] %v11101_v17 }
 0xc23   : > { %v11133_v53 = vpop.trf.xlu1 }
 0xc24   : > { %11152 = vst [vmem:[%s17363_s4 + $0x18] sm:$0xff] %v11133_v53 }
 0xc25 PF: > { %s40_s9 = sadd.s32 1, %s12945_s9  }
 0xc26   : > { %p37_p5 = scmp.ge.s32.totalorder %s40_s9, 4  }
 0xc28   :  { %39 = sbr.rel (!%p37_p5) target bundleno = 14 (0xe), region = 165 }

</bundles_post_ra>
